<compile_context>
chip_gen: v6e
topology: v6e:2x2x1
jax: 0.10.0
libtpu: 0.0.40
codegen_flags: <defaults>
</compile_context>

<pallas_src>
import functools

import numpy as np

import jax
import jax.numpy as jnp
from jax.experimental import pallas as pl
from jax.experimental.pallas import tpu as pltpu

LEAKY_SLOPE = 0.2                       # pix2pix LeakyReLU slope
_K = 4                                  # conv kernel size
_PAD = 1                                # conv padding
_CHANNELS = (4, 32, 64, 128, 256, 1)    # material_mapping=True progression
_STRIDES = (2, 2, 2, 1, 1)
_OUT_PAD = 8                            # final Cout=1 padded to 8 lanes (not 128)


def _round16(n):
    return max(16, ((n + 15) // 16) * 16)


def _conv_out(size, stride):
    return (size + 2 * _PAD - _K) // stride + 1


def _zero_index(i, ndim):
    return (0,) * ndim


# ------------------------------ fused Pallas kernel ---------------------------------
def _fused_disc_kernel(p2_ref, mask2_ref, w1_ref, w2_ref,
                       g3_ref, w3_ref,
                       g4_ref, w4_hbm_ref,
                       g5_ref, w5_ref, bias_ref,
                       o_ref,
                       w4_vmem, wide4_ref, wide5_ref, dma_sem):
    # Kick off the layer-4 weight DMA (largest constant, ~1 MiB) so it overlaps with
    # the layer 1-3 compute; waited on right before it is needed.
    w4_copy = pltpu.make_async_copy(w4_hbm_ref, w4_vmem, dma_sem)
    w4_copy.start()

    def lrelu(v):
        return jnp.maximum(v, LEAKY_SLOPE * v)

    def conv16(stacked, w_ref, bias, m_out, act):
        # stacked: (16*m_out, C_in) bf16, kernel-position-major row blocks.
        acc = jnp.dot(stacked[0:m_out, :], w_ref[0],
                      preferred_element_type=jnp.float32)
        for k in range(1, 16):   # static unroll; 16-aligned sublane slices
            acc = acc + jnp.dot(stacked[k * m_out:(k + 1) * m_out, :], w_ref[k],
                                preferred_element_type=jnp.float32)
        return act(acc + bias)

    # ---- Layer 1: patches arrive already duplicated into layer-2 stacked order ----
    b1 = bias_ref[0:1, 0:32]
    stacked2 = lrelu(jnp.dot(p2_ref[...], w1_ref[...],
                             preferred_element_type=jnp.float32) + b1)
    # Zero the rows where layer-2's 4x4 window falls into the zero padding
    # (must happen AFTER the bias add / activation to stay exact).
    stacked2 = (stacked2 * mask2_ref[...]).astype(jnp.bfloat16)

    # ---- Layer 2: 16 accumulated narrow dots (32-lane pieces) ----
    m2p = mask2_ref.shape[0] // 16
    a2 = conv16(stacked2, w2_ref, bias_ref[1:2, 0:64], m2p, lrelu).astype(jnp.bfloat16)

    # ---- Layer 3: in-kernel one-hot gather + 16 accumulated dots ----
    m3p = g3_ref.shape[0] // 16
    stacked3 = jnp.dot(g3_ref[...], a2,
                       preferred_element_type=jnp.float32).astype(jnp.bfloat16)
    a3 = conv16(stacked3, w3_ref, bias_ref[2:3, 0:128], m3p, lrelu).astype(jnp.bfloat16)

    # ---- Layer 4: gather, pack to wide im2col in VMEM, ONE (m, 2048)x(2048, 256) dot ----
    m4p = g4_ref.shape[0] // 16
    stacked4 = jnp.dot(g4_ref[...], a3,
                       preferred_element_type=jnp.float32).astype(jnp.bfloat16)
    c3 = stacked4.shape[1]                                  # 128 (lane-tile aligned)
    for k in range(16):
        wide4_ref[:, k * c3:(k + 1) * c3] = stacked4[k * m4p:(k + 1) * m4p, :]
    w4_copy.wait()                                          # weight now VMEM-resident
    a4 = lrelu(jnp.dot(wide4_ref[...], w4_vmem[...],
                       preferred_element_type=jnp.float32) + bias_ref[3:4, 0:256])
    a4 = a4.astype(jnp.bfloat16)

    # ---- Layer 5: gather, pack, ONE (m, 4096)x(4096, 8) dot, no activation ----
    m5p = g5_ref.shape[0] // 16
    stacked5 = jnp.dot(g5_ref[...], a4,
                       preferred_element_type=jnp.float32).astype(jnp.bfloat16)
    c4 = stacked5.shape[1]                                  # 256 (lane-tile aligned)
    for k in range(16):
        wide5_ref[:, k * c4:(k + 1) * c4] = stacked5[k * m5p:(k + 1) * m5p, :]
    out = jnp.dot(wide5_ref[...], w5_ref[...],
                  preferred_element_type=jnp.float32) + bias_ref[4:5, 0:_OUT_PAD]
    o_ref[...] = out


# ------------------------------ trace-time constant builders -------------------------
def _build_stack_plan(n, h_in, w_in, stride):
    """For a (k=4, pad=1) conv: for every (kernel-pos, output-pos) pair, the source
    input row feeding it, or -1 where the window falls in the zero padding / row pad."""
    h_out = _conv_out(h_in, stride)
    w_out = _conv_out(w_in, stride)
    m_out = n * h_out * w_out
    m_pad = _round16(m_out)
    src = np.full((16 * m_pad,), -1, dtype=np.int64)
    for ki in range(_K):
        for kj in range(_K):
            blk = ki * _K + kj
            for b in range(n):
                for ho in range(h_out):
                    hi = stride * ho + ki - _PAD
                    if hi < 0 or hi >= h_in:
                        continue
                    for wo in range(w_out):
                        wi = stride * wo + kj - _PAD
                        if 0 <= wi < w_in:
                            src[blk * m_pad + (b * h_out + ho) * w_out + wo] = \
                                (b * h_in + hi) * w_in + wi
    return src, h_out, w_out, m_out, m_pad


def _one_hot_gather(src, m_in_pad):
    g = np.zeros((src.shape[0], m_in_pad), dtype=np.float32)
    rows = np.nonzero(src >= 0)[0]
    g[rows, src[rows]] = 1.0
    return g


def _im2col_first_layer(x_nhwc, stride):
    """Wrapper-side im2col for layer 1 (tiny input, 64-wide patch rows)."""
    n, h, w, c = x_nhwc.shape
    xp = jnp.pad(x_nhwc, ((0, 0), (_PAD, _PAD), (_PAD, _PAD), (0, 0)))
    h_out = _conv_out(h, stride)
    w_out = _conv_out(w, stride)
    cols = []
    for ki in range(_K):
        for kj in range(_K):
            cols.append(xp[:, ki:ki + stride * h_out:stride,
                           kj:kj + stride * w_out:stride, :])
    patches = jnp.stack(cols, axis=3).reshape(n * h_out * w_out, _K * _K * c)
    return patches, h_out, w_out


def _w_kmajor(w_pt):
    """(Cout, Cin, kh, kw) -> (16, Cin, Cout) bf16 (kernel-position major)."""
    cout, cin, kh, kw = w_pt.shape
    return jnp.transpose(w_pt, (2, 3, 1, 0)).reshape(kh * kw, cin, cout).astype(jnp.bfloat16)


def _w_flat(w_pt, cout_pad=None):
    """(Cout, Cin, kh, kw) -> (16*Cin, Cout[pad]) bf16 for the wide-K fused dots."""
    cout, cin, kh, kw = w_pt.shape
    w = jnp.transpose(w_pt, (2, 3, 1, 0)).reshape(kh * kw * cin, cout)
    if cout_pad is not None and cout_pad > cout:
        w = jnp.pad(w, ((0, 0), (0, cout_pad - cout)))
    return w.astype(jnp.bfloat16)


# ------------------------------ Discriminator ----------------------------------------
def init_params(key):
    """Normal(0, 0.02) weights (pix2pix-style), small random biases for testing."""
    params = []
    for i in range(5):
        key, kw, kb = jax.random.split(key, 3)
        cin, cout = _CHANNELS[i], _CHANNELS[i + 1]
        w = 0.02 * jax.random.normal(kw, (cout, cin, _K, _K), dtype=jnp.float32)
        b = 0.02 * jax.random.normal(kb, (cout,), dtype=jnp.float32)
        params.append((w, b))
    return params


@jax.jit
def discriminator_forward(x_nchw, params):
    # TODO(synk): nn.Dropout layers of the ENCODER blocks are inference-mode identities
    # and are intentionally omitted; spectral_norm=False in this configuration.
    n, c0, h0, w0 = x_nchw.shape
    x = jnp.transpose(x_nchw, (0, 2, 3, 1)).astype(jnp.float32)     # NCHW -> NHWC

    # Layer-1 patches, then duplicated into layer-2 stacked (k-major) order so the
    # kernel's FIRST matmul directly yields layer-2's im2col rows (removes the former
    # layer-2 one-hot gather matmul and its 2 MiB constant).
    p1, h1, w1s = _im2col_first_layer(x, _STRIDES[0])               # (m1, 16*c0)
    m1 = n * h1 * w1s

    src2, h2, w2s, m2, m2p = _build_stack_plan(n, h1, w1s, _STRIDES[1])
    idx2 = np.where(src2 < 0, m1, src2).astype(np.int32)            # -1 -> zero row
    mask2 = (src2 >= 0).astype(np.float32).reshape(-1, 1)
    p1z = jnp.concatenate([p1, jnp.zeros((1, p1.shape[1]), p1.dtype)], axis=0)
    p2_stacked = jnp.take(p1z, jnp.asarray(idx2), axis=0).astype(jnp.bfloat16)

    src3, h3, w3s, m3, m3p = _build_stack_plan(n, h2, w2s, _STRIDES[2])
    src4, h4, w4s, m4, m4p = _build_stack_plan(n, h3, w3s, _STRIDES[3])
    src5, h5, w5s, m5, m5p = _build_stack_plan(n, h4, w4s, _STRIDES[4])
    g3 = jnp.asarray(_one_hot_gather(src3, m2p), jnp.bfloat16)      # (512, 128)
    g4 = jnp.asarray(_one_hot_gather(src4, m3p), jnp.bfloat16)      # (512, 32)
    g5 = jnp.asarray(_one_hot_gather(src5, m4p), jnp.bfloat16)      # (256, 32)

    (wp1, bp1), (wp2, bp2), (wp3, bp3), (wp4, bp4), (wp5, bp5) = params
    w1m = jnp.transpose(wp1, (2, 3, 1, 0)).reshape(
        _K * _K * c0, wp1.shape[0]).astype(jnp.bfloat16)            # (64, 32)
    w2m = _w_kmajor(wp2)                                            # (16, 32, 64)
    w3m = _w_kmajor(wp3)                                            # (16, 64, 128)
    w4f = _w_flat(wp4)                                              # (2048, 256)
    w5f = _w_flat(wp5, cout_pad=_OUT_PAD)                           # (4096, 8)

    # All five biases packed into one small f32 block (fewer prologue DMAs).
    bias = jnp.zeros((8, 256), jnp.float32)
    bias = bias.at[0, :32].set(bp1).at[1, :64].set(bp2).at[2, :128].set(bp3)
    bias = bias.at[3, :256].set(bp4).at[4, :1].set(bp5)

    args = (p2_stacked, jnp.asarray(mask2), w1m, w2m, g3, w3m, g4, w4f, g5, w5f, bias)

    in_specs = [pl.BlockSpec(a.shape, functools.partial(_zero_index, ndim=a.ndim))
                for a in args]
    in_specs[7] = pl.BlockSpec(memory_space=pl.ANY)   # w4f stays in HBM; kernel DMAs it

    out = pl.pallas_call(
        _fused_disc_kernel,
        out_shape=jax.ShapeDtypeStruct((m5p, _OUT_PAD), jnp.float32),
        grid=(1,),
        in_specs=in_specs,
        out_specs=pl.BlockSpec((m5p, _OUT_PAD), lambda i: (0, 0)),
        scratch_shapes=[
            pltpu.VMEM(w4f.shape, jnp.bfloat16),                       # layer-4 weight
            pltpu.VMEM((m4p, 16 * _CHANNELS[3]), jnp.bfloat16),        # wide L4 im2col
            pltpu.VMEM((m5p, 16 * _CHANNELS[4]), jnp.bfloat16),        # wide L5 im2col
            pltpu.SemaphoreType.DMA,
        ],
        compiler_params=pltpu.CompilerParams(dimension_semantics=("arbitrary",)),
    )(*args)

    logits = out[:m5, :1].reshape(n, h5, w5s, 1)
    return jnp.transpose(logits, (0, 3, 1, 2))                      # back to NCHW


def _reference_forward(x, params):
    """Pure-JAX f32 reference (Conv2d + bias + LeakyReLU(0.2), last layer linear)."""
    a = x.astype(jnp.float32)
    for i, (w, b) in enumerate(params):
        a = jax.lax.conv_general_dilated(
            a, w.astype(jnp.float32),
            window_strides=(_STRIDES[i], _STRIDES[i]),
            padding=[(_PAD, _PAD), (_PAD, _PAD)],
            dimension_numbers=("NCHW", "OIHW", "NCHW"),
            precision=jax.lax.Precision.HIGHEST)
        a = a + b.reshape(1, -1, 1, 1)
        if i < 4:
            a = jnp.maximum(a, LEAKY_SLOPE * a)
    return a


if __name__ == "__main__":
    key = jax.random.PRNGKey(0)
    k_params, k_x = jax.random.split(key)
    params = init_params(k_params)
    # Input: NCHW, 4 channels (= in1 + 2*in2 with material_mapping), 32x32 spatial
    # (smallest size keeping the stride-1 k=4 tail convs valid: 32->16->8->4->3->2).
    x = jax.random.normal(k_x, (2, 4, 32, 32), dtype=jnp.float32)

    out = discriminator_forward(x, params)        # expected (2, 1, 2, 2)
    jax.block_until_ready(out)
    assert out.shape == (2, 1, 2, 2), out.shape

    ref = _reference_forward(x, params)
    # bf16 operands (f32 accumulation) -> small drift vs the f32 reference.
    np.testing.assert_allclose(np.asarray(out), np.asarray(ref), rtol=0.08, atol=3e-3)
    print("KERNEL_OK")
</pallas_src>

<mosaic_0001>
module attributes {stable_mosaic.version = 11 : i64} {
  func.func @_fused_disc_kernel(%arg0: i32, %arg1: memref<2048x64xbf16, #tpu.memory_space<vmem>>, %arg2: memref<2048x1xf32, #tpu.memory_space<vmem>>, %arg3: memref<64x32xbf16, #tpu.memory_space<vmem>>, %arg4: memref<16x32x64xbf16, #tpu.memory_space<vmem>>, %arg5: memref<512x128xbf16, #tpu.memory_space<vmem>>, %arg6: memref<16x64x128xbf16, #tpu.memory_space<vmem>>, %arg7: memref<512x32xbf16, #tpu.memory_space<vmem>>, %arg8: memref<2048x256xbf16, #tpu.memory_space<any>>, %arg9: memref<256x32xbf16, #tpu.memory_space<vmem>>, %arg10: memref<4096x8xbf16, #tpu.memory_space<vmem>>, %arg11: memref<8x256xf32, #tpu.memory_space<vmem>>, %arg12: memref<16x8xf32, #tpu.memory_space<vmem>>, %arg13: memref<2048x256xbf16, #tpu.memory_space<vmem>>, %arg14: memref<32x2048xbf16, #tpu.memory_space<vmem>>, %arg15: memref<16x4096xbf16, #tpu.memory_space<vmem>>, %arg16: memref<!tpu.dma_semaphore, #tpu.memory_space<semaphore_mem>>) attributes {dimension_semantics = [#tpu.dimension_semantics<arbitrary>], iteration_bounds = array<i64: 1>, scalar_prefetch = 0 : i64, scratch_operands = 4 : i64, tpu.core_type = #tpu.core_type<tc>, window_params = [{pipeline_mode = #tpu.pipeline_mode<synchronous>, transform_indices = @transform_0, window_bounds = array<i64: 2048, 64>}, {pipeline_mode = #tpu.pipeline_mode<synchronous>, transform_indices = @transform_1, window_bounds = array<i64: 2048, 1>}, {pipeline_mode = #tpu.pipeline_mode<synchronous>, transform_indices = @transform_2, window_bounds = array<i64: 64, 32>}, {pipeline_mode = #tpu.pipeline_mode<synchronous>, transform_indices = @transform_3, window_bounds = array<i64: 16, 32, 64>}, {pipeline_mode = #tpu.pipeline_mode<synchronous>, transform_indices = @transform_4, window_bounds = array<i64: 512, 128>}, {pipeline_mode = #tpu.pipeline_mode<synchronous>, transform_indices = @transform_5, window_bounds = array<i64: 16, 64, 128>}, {pipeline_mode = #tpu.pipeline_mode<synchronous>, transform_indices = @transform_6, window_bounds = array<i64: 512, 32>}, {}, {pipeline_mode = #tpu.pipeline_mode<synchronous>, transform_indices = @transform_8, window_bounds = array<i64: 256, 32>}, {pipeline_mode = #tpu.pipeline_mode<synchronous>, transform_indices = @transform_9, window_bounds = array<i64: 4096, 8>}, {pipeline_mode = #tpu.pipeline_mode<synchronous>, transform_indices = @transform_10, window_bounds = array<i64: 8, 256>}, {pipeline_mode = #tpu.pipeline_mode<synchronous>, transform_indices = @transform_11, window_bounds = array<i64: 16, 8>}]} {
    tpu.enqueue_dma source(%arg8 : memref<2048x256xbf16, #tpu.memory_space<any>>) target(%arg13 : memref<2048x256xbf16, #tpu.memory_space<vmem>>) target_semaphore(%arg16 : memref<!tpu.dma_semaphore, #tpu.memory_space<semaphore_mem>>)
    %c0 = arith.constant 0 : index
    %c0_0 = arith.constant 0 : index
    %0 = vector.load %arg11[%c0, %c0_0] : memref<8x256xf32, #tpu.memory_space<vmem>>, vector<1x32xf32>
    %c0_1 = arith.constant 0 : index
    %c0_2 = arith.constant 0 : index
    %1 = vector.load %arg1[%c0_1, %c0_2] : memref<2048x64xbf16, #tpu.memory_space<vmem>>, vector<2048x64xbf16>
    %c0_3 = arith.constant 0 : index
    %c0_4 = arith.constant 0 : index
    %2 = vector.load %arg3[%c0_3, %c0_4] : memref<64x32xbf16, #tpu.memory_space<vmem>>, vector<64x32xbf16>
    %cst = arith.constant dense<0.000000e+00> : vector<2048x32xf32>
    %3 = tpu.matmul %1, %2, %cst {dimension_numbers = #tpu.dot_dimension_numbers<[1], [0], [0], [1], [0, 0, 1, 1], [], []>} : vector<2048x64xbf16>, vector<64x32xbf16>, vector<2048x32xf32> -> vector<2048x32xf32>
    %4 = vector.broadcast %0 : vector<1x32xf32> to vector<2048x32xf32>
    %5 = arith.addf %3, %4 : vector<2048x32xf32>
    %cst_5 = arith.constant 2.000000e-01 : f32
    %6 = vector.broadcast %cst_5 : f32 to vector<2048x32xf32>
    %7 = arith.mulf %6, %5 : vector<2048x32xf32>
    %8 = arith.maximumf %5, %7 : vector<2048x32xf32>
    %c0_6 = arith.constant 0 : index
    %c0_7 = arith.constant 0 : index
    %9 = vector.load %arg2[%c0_6, %c0_7] : memref<2048x1xf32, #tpu.memory_space<vmem>>, vector<2048x1xf32>
    %10 = vector.broadcast %9 : vector<2048x1xf32> to vector<2048x32xf32>
    %11 = arith.mulf %8, %10 : vector<2048x32xf32>
    %12 = arith.truncf %11 : vector<2048x32xf32> to vector<2048x32xbf16>
    %c1 = arith.constant 1 : index
    %c0_8 = arith.constant 0 : index
    %13 = vector.load %arg11[%c1, %c0_8] : memref<8x256xf32, #tpu.memory_space<vmem>>, vector<1x64xf32>
    %14 = vector.extract_strided_slice %12 {offsets = [0, 0], sizes = [128, 32], strides = [1, 1]} : vector<2048x32xbf16> to vector<128x32xbf16>
    %c0_9 = arith.constant 0 : index
    %c0_10 = arith.constant 0 : index
    %c0_11 = arith.constant 0 : index
    %15 = vector.load %arg4[%c0_9, %c0_10, %c0_11] : memref<16x32x64xbf16, #tpu.memory_space<vmem>>, vector<1x32x64xbf16>
    %16 = vector.shape_cast %15 : vector<1x32x64xbf16> to vector<32x64xbf16>
    %cst_12 = arith.constant dense<0.000000e+00> : vector<128x64xf32>
    %17 = tpu.matmul %14, %16, %cst_12 {dimension_numbers = #tpu.dot_dimension_numbers<[1], [0], [0], [1], [0, 0, 1, 1], [], []>} : vector<128x32xbf16>, vector<32x64xbf16>, vector<128x64xf32> -> vector<128x64xf32>
    %18 = vector.extract_strided_slice %12 {offsets = [128, 0], sizes = [128, 32], strides = [1, 1]} : vector<2048x32xbf16> to vector<128x32xbf16>
    %c1_13 = arith.constant 1 : index
    %c0_14 = arith.constant 0 : index
    %c0_15 = arith.constant 0 : index
    %19 = vector.load %arg4[%c1_13, %c0_14, %c0_15] : memref<16x32x64xbf16, #tpu.memory_space<vmem>>, vector<1x32x64xbf16>
    %20 = vector.shape_cast %19 : vector<1x32x64xbf16> to vector<32x64xbf16>
    %cst_16 = arith.constant dense<0.000000e+00> : vector<128x64xf32>
    %21 = tpu.matmul %18, %20, %cst_16 {dimension_numbers = #tpu.dot_dimension_numbers<[1], [0], [0], [1], [0, 0, 1, 1], [], []>} : vector<128x32xbf16>, vector<32x64xbf16>, vector<128x64xf32> -> vector<128x64xf32>
    %22 = arith.addf %17, %21 : vector<128x64xf32>
    %23 = vector.extract_strided_slice %12 {offsets = [256, 0], sizes = [128, 32], strides = [1, 1]} : vector<2048x32xbf16> to vector<128x32xbf16>
    %c2 = arith.constant 2 : index
    %c0_17 = arith.constant 0 : index
    %c0_18 = arith.constant 0 : index
    %24 = vector.load %arg4[%c2, %c0_17, %c0_18] : memref<16x32x64xbf16, #tpu.memory_space<vmem>>, vector<1x32x64xbf16>
    %25 = vector.shape_cast %24 : vector<1x32x64xbf16> to vector<32x64xbf16>
    %cst_19 = arith.constant dense<0.000000e+00> : vector<128x64xf32>
    %26 = tpu.matmul %23, %25, %cst_19 {dimension_numbers = #tpu.dot_dimension_numbers<[1], [0], [0], [1], [0, 0, 1, 1], [], []>} : vector<128x32xbf16>, vector<32x64xbf16>, vector<128x64xf32> -> vector<128x64xf32>
    %27 = arith.addf %22, %26 : vector<128x64xf32>
    %28 = vector.extract_strided_slice %12 {offsets = [384, 0], sizes = [128, 32], strides = [1, 1]} : vector<2048x32xbf16> to vector<128x32xbf16>
    %c3 = arith.constant 3 : index
    %c0_20 = arith.constant 0 : index
    %c0_21 = arith.constant 0 : index
    %29 = vector.load %arg4[%c3, %c0_20, %c0_21] : memref<16x32x64xbf16, #tpu.memory_space<vmem>>, vector<1x32x64xbf16>
    %30 = vector.shape_cast %29 : vector<1x32x64xbf16> to vector<32x64xbf16>
    %cst_22 = arith.constant dense<0.000000e+00> : vector<128x64xf32>
    %31 = tpu.matmul %28, %30, %cst_22 {dimension_numbers = #tpu.dot_dimension_numbers<[1], [0], [0], [1], [0, 0, 1, 1], [], []>} : vector<128x32xbf16>, vector<32x64xbf16>, vector<128x64xf32> -> vector<128x64xf32>
    %32 = arith.addf %27, %31 : vector<128x64xf32>
    %33 = vector.extract_strided_slice %12 {offsets = [512, 0], sizes = [128, 32], strides = [1, 1]} : vector<2048x32xbf16> to vector<128x32xbf16>
    %c4 = arith.constant 4 : index
    %c0_23 = arith.constant 0 : index
    %c0_24 = arith.constant 0 : index
    %34 = vector.load %arg4[%c4, %c0_23, %c0_24] : memref<16x32x64xbf16, #tpu.memory_space<vmem>>, vector<1x32x64xbf16>
    %35 = vector.shape_cast %34 : vector<1x32x64xbf16> to vector<32x64xbf16>
    %cst_25 = arith.constant dense<0.000000e+00> : vector<128x64xf32>
    %36 = tpu.matmul %33, %35, %cst_25 {dimension_numbers = #tpu.dot_dimension_numbers<[1], [0], [0], [1], [0, 0, 1, 1], [], []>} : vector<128x32xbf16>, vector<32x64xbf16>, vector<128x64xf32> -> vector<128x64xf32>
    %37 = arith.addf %32, %36 : vector<128x64xf32>
    %38 = vector.extract_strided_slice %12 {offsets = [640, 0], sizes = [128, 32], strides = [1, 1]} : vector<2048x32xbf16> to vector<128x32xbf16>
    %c5 = arith.constant 5 : index
    %c0_26 = arith.constant 0 : index
    %c0_27 = arith.constant 0 : index
    %39 = vector.load %arg4[%c5, %c0_26, %c0_27] : memref<16x32x64xbf16, #tpu.memory_space<vmem>>, vector<1x32x64xbf16>
    %40 = vector.shape_cast %39 : vector<1x32x64xbf16> to vector<32x64xbf16>
    %cst_28 = arith.constant dense<0.000000e+00> : vector<128x64xf32>
    %41 = tpu.matmul %38, %40, %cst_28 {dimension_numbers = #tpu.dot_dimension_numbers<[1], [0], [0], [1], [0, 0, 1, 1], [], []>} : vector<128x32xbf16>, vector<32x64xbf16>, vector<128x64xf32> -> vector<128x64xf32>
    %42 = arith.addf %37, %41 : vector<128x64xf32>
    %43 = vector.extract_strided_slice %12 {offsets = [768, 0], sizes = [128, 32], strides = [1, 1]} : vector<2048x32xbf16> to vector<128x32xbf16>
    %c6 = arith.constant 6 : index
    %c0_29 = arith.constant 0 : index
    %c0_30 = arith.constant 0 : index
    %44 = vector.load %arg4[%c6, %c0_29, %c0_30] : memref<16x32x64xbf16, #tpu.memory_space<vmem>>, vector<1x32x64xbf16>
    %45 = vector.shape_cast %44 : vector<1x32x64xbf16> to vector<32x64xbf16>
    %cst_31 = arith.constant dense<0.000000e+00> : vector<128x64xf32>
    %46 = tpu.matmul %43, %45, %cst_31 {dimension_numbers = #tpu.dot_dimension_numbers<[1], [0], [0], [1], [0, 0, 1, 1], [], []>} : vector<128x32xbf16>, vector<32x64xbf16>, vector<128x64xf32> -> vector<128x64xf32>
    %47 = arith.addf %42, %46 : vector<128x64xf32>
    %48 = vector.extract_strided_slice %12 {offsets = [896, 0], sizes = [128, 32], strides = [1, 1]} : vector<2048x32xbf16> to vector<128x32xbf16>
    %c7 = arith.constant 7 : index
    %c0_32 = arith.constant 0 : index
    %c0_33 = arith.constant 0 : index
    %49 = vector.load %arg4[%c7, %c0_32, %c0_33] : memref<16x32x64xbf16, #tpu.memory_space<vmem>>, vector<1x32x64xbf16>
    %50 = vector.shape_cast %49 : vector<1x32x64xbf16> to vector<32x64xbf16>
    %cst_34 = arith.constant dense<0.000000e+00> : vector<128x64xf32>
    %51 = tpu.matmul %48, %50, %cst_34 {dimension_numbers = #tpu.dot_dimension_numbers<[1], [0], [0], [1], [0, 0, 1, 1], [], []>} : vector<128x32xbf16>, vector<32x64xbf16>, vector<128x64xf32> -> vector<128x64xf32>
    %52 = arith.addf %47, %51 : vector<128x64xf32>
    %53 = vector.extract_strided_slice %12 {offsets = [1024, 0], sizes = [128, 32], strides = [1, 1]} : vector<2048x32xbf16> to vector<128x32xbf16>
    %c8 = arith.constant 8 : index
    %c0_35 = arith.constant 0 : index
    %c0_36 = arith.constant 0 : index
    %54 = vector.load %arg4[%c8, %c0_35, %c0_36] : memref<16x32x64xbf16, #tpu.memory_space<vmem>>, vector<1x32x64xbf16>
    %55 = vector.shape_cast %54 : vector<1x32x64xbf16> to vector<32x64xbf16>
    %cst_37 = arith.constant dense<0.000000e+00> : vector<128x64xf32>
    %56 = tpu.matmul %53, %55, %cst_37 {dimension_numbers = #tpu.dot_dimension_numbers<[1], [0], [0], [1], [0, 0, 1, 1], [], []>} : vector<128x32xbf16>, vector<32x64xbf16>, vector<128x64xf32> -> vector<128x64xf32>
    %57 = arith.addf %52, %56 : vector<128x64xf32>
    %58 = vector.extract_strided_slice %12 {offsets = [1152, 0], sizes = [128, 32], strides = [1, 1]} : vector<2048x32xbf16> to vector<128x32xbf16>
    %c9 = arith.constant 9 : index
    %c0_38 = arith.constant 0 : index
    %c0_39 = arith.constant 0 : index
    %59 = vector.load %arg4[%c9, %c0_38, %c0_39] : memref<16x32x64xbf16, #tpu.memory_space<vmem>>, vector<1x32x64xbf16>
    %60 = vector.shape_cast %59 : vector<1x32x64xbf16> to vector<32x64xbf16>
    %cst_40 = arith.constant dense<0.000000e+00> : vector<128x64xf32>
    %61 = tpu.matmul %58, %60, %cst_40 {dimension_numbers = #tpu.dot_dimension_numbers<[1], [0], [0], [1], [0, 0, 1, 1], [], []>} : vector<128x32xbf16>, vector<32x64xbf16>, vector<128x64xf32> -> vector<128x64xf32>
    %62 = arith.addf %57, %61 : vector<128x64xf32>
    %63 = vector.extract_strided_slice %12 {offsets = [1280, 0], sizes = [128, 32], strides = [1, 1]} : vector<2048x32xbf16> to vector<128x32xbf16>
    %c10 = arith.constant 10 : index
    %c0_41 = arith.constant 0 : index
    %c0_42 = arith.constant 0 : index
    %64 = vector.load %arg4[%c10, %c0_41, %c0_42] : memref<16x32x64xbf16, #tpu.memory_space<vmem>>, vector<1x32x64xbf16>
    %65 = vector.shape_cast %64 : vector<1x32x64xbf16> to vector<32x64xbf16>
    %cst_43 = arith.constant dense<0.000000e+00> : vector<128x64xf32>
    %66 = tpu.matmul %63, %65, %cst_43 {dimension_numbers = #tpu.dot_dimension_numbers<[1], [0], [0], [1], [0, 0, 1, 1], [], []>} : vector<128x32xbf16>, vector<32x64xbf16>, vector<128x64xf32> -> vector<128x64xf32>
    %67 = arith.addf %62, %66 : vector<128x64xf32>
    %68 = vector.extract_strided_slice %12 {offsets = [1408, 0], sizes = [128, 32], strides = [1, 1]} : vector<2048x32xbf16> to vector<128x32xbf16>
    %c11 = arith.constant 11 : index
    %c0_44 = arith.constant 0 : index
    %c0_45 = arith.constant 0 : index
    %69 = vector.load %arg4[%c11, %c0_44, %c0_45] : memref<16x32x64xbf16, #tpu.memory_space<vmem>>, vector<1x32x64xbf16>
    %70 = vector.shape_cast %69 : vector<1x32x64xbf16> to vector<32x64xbf16>
    %cst_46 = arith.constant dense<0.000000e+00> : vector<128x64xf32>
    %71 = tpu.matmul %68, %70, %cst_46 {dimension_numbers = #tpu.dot_dimension_numbers<[1], [0], [0], [1], [0, 0, 1, 1], [], []>} : vector<128x32xbf16>, vector<32x64xbf16>, vector<128x64xf32> -> vector<128x64xf32>
    %72 = arith.addf %67, %71 : vector<128x64xf32>
    %73 = vector.extract_strided_slice %12 {offsets = [1536, 0], sizes = [128, 32], strides = [1, 1]} : vector<2048x32xbf16> to vector<128x32xbf16>
    %c12 = arith.constant 12 : index
    %c0_47 = arith.constant 0 : index
    %c0_48 = arith.constant 0 : index
    %74 = vector.load %arg4[%c12, %c0_47, %c0_48] : memref<16x32x64xbf16, #tpu.memory_space<vmem>>, vector<1x32x64xbf16>
    %75 = vector.shape_cast %74 : vector<1x32x64xbf16> to vector<32x64xbf16>
    %cst_49 = arith.constant dense<0.000000e+00> : vector<128x64xf32>
    %76 = tpu.matmul %73, %75, %cst_49 {dimension_numbers = #tpu.dot_dimension_numbers<[1], [0], [0], [1], [0, 0, 1, 1], [], []>} : vector<128x32xbf16>, vector<32x64xbf16>, vector<128x64xf32> -> vector<128x64xf32>
    %77 = arith.addf %72, %76 : vector<128x64xf32>
    %78 = vector.extract_strided_slice %12 {offsets = [1664, 0], sizes = [128, 32], strides = [1, 1]} : vector<2048x32xbf16> to vector<128x32xbf16>
    %c13 = arith.constant 13 : index
    %c0_50 = arith.constant 0 : index
    %c0_51 = arith.constant 0 : index
    %79 = vector.load %arg4[%c13, %c0_50, %c0_51] : memref<16x32x64xbf16, #tpu.memory_space<vmem>>, vector<1x32x64xbf16>
    %80 = vector.shape_cast %79 : vector<1x32x64xbf16> to vector<32x64xbf16>
    %cst_52 = arith.constant dense<0.000000e+00> : vector<128x64xf32>
    %81 = tpu.matmul %78, %80, %cst_52 {dimension_numbers = #tpu.dot_dimension_numbers<[1], [0], [0], [1], [0, 0, 1, 1], [], []>} : vector<128x32xbf16>, vector<32x64xbf16>, vector<128x64xf32> -> vector<128x64xf32>
    %82 = arith.addf %77, %81 : vector<128x64xf32>
    %83 = vector.extract_strided_slice %12 {offsets = [1792, 0], sizes = [128, 32], strides = [1, 1]} : vector<2048x32xbf16> to vector<128x32xbf16>
    %c14 = arith.constant 14 : index
    %c0_53 = arith.constant 0 : index
    %c0_54 = arith.constant 0 : index
    %84 = vector.load %arg4[%c14, %c0_53, %c0_54] : memref<16x32x64xbf16, #tpu.memory_space<vmem>>, vector<1x32x64xbf16>
    %85 = vector.shape_cast %84 : vector<1x32x64xbf16> to vector<32x64xbf16>
    %cst_55 = arith.constant dense<0.000000e+00> : vector<128x64xf32>
    %86 = tpu.matmul %83, %85, %cst_55 {dimension_numbers = #tpu.dot_dimension_numbers<[1], [0], [0], [1], [0, 0, 1, 1], [], []>} : vector<128x32xbf16>, vector<32x64xbf16>, vector<128x64xf32> -> vector<128x64xf32>
    %87 = arith.addf %82, %86 : vector<128x64xf32>
    %88 = vector.extract_strided_slice %12 {offsets = [1920, 0], sizes = [128, 32], strides = [1, 1]} : vector<2048x32xbf16> to vector<128x32xbf16>
    %c15 = arith.constant 15 : index
    %c0_56 = arith.constant 0 : index
    %c0_57 = arith.constant 0 : index
    %89 = vector.load %arg4[%c15, %c0_56, %c0_57] : memref<16x32x64xbf16, #tpu.memory_space<vmem>>, vector<1x32x64xbf16>
    %90 = vector.shape_cast %89 : vector<1x32x64xbf16> to vector<32x64xbf16>
    %cst_58 = arith.constant dense<0.000000e+00> : vector<128x64xf32>
    %91 = tpu.matmul %88, %90, %cst_58 {dimension_numbers = #tpu.dot_dimension_numbers<[1], [0], [0], [1], [0, 0, 1, 1], [], []>} : vector<128x32xbf16>, vector<32x64xbf16>, vector<128x64xf32> -> vector<128x64xf32>
    %92 = arith.addf %87, %91 : vector<128x64xf32>
    %93 = vector.broadcast %13 : vector<1x64xf32> to vector<128x64xf32>
    %94 = arith.addf %92, %93 : vector<128x64xf32>
    %cst_59 = arith.constant 2.000000e-01 : f32
    %95 = vector.broadcast %cst_59 : f32 to vector<128x64xf32>
    %96 = arith.mulf %95, %94 : vector<128x64xf32>
    %97 = arith.maximumf %94, %96 : vector<128x64xf32>
    %98 = arith.truncf %97 : vector<128x64xf32> to vector<128x64xbf16>
    %c0_60 = arith.constant 0 : index
    %c0_61 = arith.constant 0 : index
    %99 = vector.load %arg5[%c0_60, %c0_61] : memref<512x128xbf16, #tpu.memory_space<vmem>>, vector<512x128xbf16>
    %cst_62 = arith.constant dense<0.000000e+00> : vector<512x64xf32>
    %100 = tpu.matmul %99, %98, %cst_62 {dimension_numbers = #tpu.dot_dimension_numbers<[1], [0], [0], [1], [0, 0, 1, 1], [], []>} : vector<512x128xbf16>, vector<128x64xbf16>, vector<512x64xf32> -> vector<512x64xf32>
    %101 = arith.truncf %100 : vector<512x64xf32> to vector<512x64xbf16>
    %c2_63 = arith.constant 2 : index
    %c0_64 = arith.constant 0 : index
    %102 = vector.load %arg11[%c2_63, %c0_64] : memref<8x256xf32, #tpu.memory_space<vmem>>, vector<1x128xf32>
    %103 = vector.extract_strided_slice %101 {offsets = [0, 0], sizes = [32, 64], strides = [1, 1]} : vector<512x64xbf16> to vector<32x64xbf16>
    %c0_65 = arith.constant 0 : index
    %c0_66 = arith.constant 0 : index
    %c0_67 = arith.constant 0 : index
    %104 = vector.load %arg6[%c0_65, %c0_66, %c0_67] : memref<16x64x128xbf16, #tpu.memory_space<vmem>>, vector<1x64x128xbf16>
    %105 = vector.shape_cast %104 : vector<1x64x128xbf16> to vector<64x128xbf16>
    %cst_68 = arith.constant dense<0.000000e+00> : vector<32x128xf32>
    %106 = tpu.matmul %103, %105, %cst_68 {dimension_numbers = #tpu.dot_dimension_numbers<[1], [0], [0], [1], [0, 0, 1, 1], [], []>} : vector<32x64xbf16>, vector<64x128xbf16>, vector<32x128xf32> -> vector<32x128xf32>
    %107 = vector.extract_strided_slice %101 {offsets = [32, 0], sizes = [32, 64], strides = [1, 1]} : vector<512x64xbf16> to vector<32x64xbf16>
    %c1_69 = arith.constant 1 : index
    %c0_70 = arith.constant 0 : index
    %c0_71 = arith.constant 0 : index
    %108 = vector.load %arg6[%c1_69, %c0_70, %c0_71] : memref<16x64x128xbf16, #tpu.memory_space<vmem>>, vector<1x64x128xbf16>
    %109 = vector.shape_cast %108 : vector<1x64x128xbf16> to vector<64x128xbf16>
    %cst_72 = arith.constant dense<0.000000e+00> : vector<32x128xf32>
    %110 = tpu.matmul %107, %109, %cst_72 {dimension_numbers = #tpu.dot_dimension_numbers<[1], [0], [0], [1], [0, 0, 1, 1], [], []>} : vector<32x64xbf16>, vector<64x128xbf16>, vector<32x128xf32> -> vector<32x128xf32>
    %111 = arith.addf %106, %110 : vector<32x128xf32>
    %112 = vector.extract_strided_slice %101 {offsets = [64, 0], sizes = [32, 64], strides = [1, 1]} : vector<512x64xbf16> to vector<32x64xbf16>
    %c2_73 = arith.constant 2 : index
    %c0_74 = arith.constant 0 : index
    %c0_75 = arith.constant 0 : index
    %113 = vector.load %arg6[%c2_73, %c0_74, %c0_75] : memref<16x64x128xbf16, #tpu.memory_space<vmem>>, vector<1x64x128xbf16>
    %114 = vector.shape_cast %113 : vector<1x64x128xbf16> to vector<64x128xbf16>
    %cst_76 = arith.constant dense<0.000000e+00> : vector<32x128xf32>
    %115 = tpu.matmul %112, %114, %cst_76 {dimension_numbers = #tpu.dot_dimension_numbers<[1], [0], [0], [1], [0, 0, 1, 1], [], []>} : vector<32x64xbf16>, vector<64x128xbf16>, vector<32x128xf32> -> vector<32x128xf32>
    %116 = arith.addf %111, %115 : vector<32x128xf32>
    %117 = vector.extract_strided_slice %101 {offsets = [96, 0], sizes = [32, 64], strides = [1, 1]} : vector<512x64xbf16> to vector<32x64xbf16>
    %c3_77 = arith.constant 3 : index
    %c0_78 = arith.constant 0 : index
    %c0_79 = arith.constant 0 : index
    %118 = vector.load %arg6[%c3_77, %c0_78, %c0_79] : memref<16x64x128xbf16, #tpu.memory_space<vmem>>, vector<1x64x128xbf16>
    %119 = vector.shape_cast %118 : vector<1x64x128xbf16> to vector<64x128xbf16>
    %cst_80 = arith.constant dense<0.000000e+00> : vector<32x128xf32>
    %120 = tpu.matmul %117, %119, %cst_80 {dimension_numbers = #tpu.dot_dimension_numbers<[1], [0], [0], [1], [0, 0, 1, 1], [], []>} : vector<32x64xbf16>, vector<64x128xbf16>, vector<32x128xf32> -> vector<32x128xf32>
    %121 = arith.addf %116, %120 : vector<32x128xf32>
    %122 = vector.extract_strided_slice %101 {offsets = [128, 0], sizes = [32, 64], strides = [1, 1]} : vector<512x64xbf16> to vector<32x64xbf16>
    %c4_81 = arith.constant 4 : index
    %c0_82 = arith.constant 0 : index
    %c0_83 = arith.constant 0 : index
    %123 = vector.load %arg6[%c4_81, %c0_82, %c0_83] : memref<16x64x128xbf16, #tpu.memory_space<vmem>>, vector<1x64x128xbf16>
    %124 = vector.shape_cast %123 : vector<1x64x128xbf16> to vector<64x128xbf16>
    %cst_84 = arith.constant dense<0.000000e+00> : vector<32x128xf32>
    %125 = tpu.matmul %122, %124, %cst_84 {dimension_numbers = #tpu.dot_dimension_numbers<[1], [0], [0], [1], [0, 0, 1, 1], [], []>} : vector<32x64xbf16>, vector<64x128xbf16>, vector<32x128xf32> -> vector<32x128xf32>
    %126 = arith.addf %121, %125 : vector<32x128xf32>
    %127 = vector.extract_strided_slice %101 {offsets = [160, 0], sizes = [32, 64], strides = [1, 1]} : vector<512x64xbf16> to vector<32x64xbf16>
    %c5_85 = arith.constant 5 : index
    %c0_86 = arith.constant 0 : index
    %c0_87 = arith.constant 0 : index
    %128 = vector.load %arg6[%c5_85, %c0_86, %c0_87] : memref<16x64x128xbf16, #tpu.memory_space<vmem>>, vector<1x64x128xbf16>
    %129 = vector.shape_cast %128 : vector<1x64x128xbf16> to vector<64x128xbf16>
    %cst_88 = arith.constant dense<0.000000e+00> : vector<32x128xf32>
    %130 = tpu.matmul %127, %129, %cst_88 {dimension_numbers = #tpu.dot_dimension_numbers<[1], [0], [0], [1], [0, 0, 1, 1], [], []>} : vector<32x64xbf16>, vector<64x128xbf16>, vector<32x128xf32> -> vector<32x128xf32>
    %131 = arith.addf %126, %130 : vector<32x128xf32>
    %132 = vector.extract_strided_slice %101 {offsets = [192, 0], sizes = [32, 64], strides = [1, 1]} : vector<512x64xbf16> to vector<32x64xbf16>
    %c6_89 = arith.constant 6 : index
    %c0_90 = arith.constant 0 : index
    %c0_91 = arith.constant 0 : index
    %133 = vector.load %arg6[%c6_89, %c0_90, %c0_91] : memref<16x64x128xbf16, #tpu.memory_space<vmem>>, vector<1x64x128xbf16>
    %134 = vector.shape_cast %133 : vector<1x64x128xbf16> to vector<64x128xbf16>
    %cst_92 = arith.constant dense<0.000000e+00> : vector<32x128xf32>
    %135 = tpu.matmul %132, %134, %cst_92 {dimension_numbers = #tpu.dot_dimension_numbers<[1], [0], [0], [1], [0, 0, 1, 1], [], []>} : vector<32x64xbf16>, vector<64x128xbf16>, vector<32x128xf32> -> vector<32x128xf32>
    %136 = arith.addf %131, %135 : vector<32x128xf32>
    %137 = vector.extract_strided_slice %101 {offsets = [224, 0], sizes = [32, 64], strides = [1, 1]} : vector<512x64xbf16> to vector<32x64xbf16>
    %c7_93 = arith.constant 7 : index
    %c0_94 = arith.constant 0 : index
    %c0_95 = arith.constant 0 : index
    %138 = vector.load %arg6[%c7_93, %c0_94, %c0_95] : memref<16x64x128xbf16, #tpu.memory_space<vmem>>, vector<1x64x128xbf16>
    %139 = vector.shape_cast %138 : vector<1x64x128xbf16> to vector<64x128xbf16>
    %cst_96 = arith.constant dense<0.000000e+00> : vector<32x128xf32>
    %140 = tpu.matmul %137, %139, %cst_96 {dimension_numbers = #tpu.dot_dimension_numbers<[1], [0], [0], [1], [0, 0, 1, 1], [], []>} : vector<32x64xbf16>, vector<64x128xbf16>, vector<32x128xf32> -> vector<32x128xf32>
    %141 = arith.addf %136, %140 : vector<32x128xf32>
    %142 = vector.extract_strided_slice %101 {offsets = [256, 0], sizes = [32, 64], strides = [1, 1]} : vector<512x64xbf16> to vector<32x64xbf16>
    %c8_97 = arith.constant 8 : index
    %c0_98 = arith.constant 0 : index
    %c0_99 = arith.constant 0 : index
    %143 = vector.load %arg6[%c8_97, %c0_98, %c0_99] : memref<16x64x128xbf16, #tpu.memory_space<vmem>>, vector<1x64x128xbf16>
    %144 = vector.shape_cast %143 : vector<1x64x128xbf16> to vector<64x128xbf16>
    %cst_100 = arith.constant dense<0.000000e+00> : vector<32x128xf32>
    %145 = tpu.matmul %142, %144, %cst_100 {dimension_numbers = #tpu.dot_dimension_numbers<[1], [0], [0], [1], [0, 0, 1, 1], [], []>} : vector<32x64xbf16>, vector<64x128xbf16>, vector<32x128xf32> -> vector<32x128xf32>
    %146 = arith.addf %141, %145 : vector<32x128xf32>
    %147 = vector.extract_strided_slice %101 {offsets = [288, 0], sizes = [32, 64], strides = [1, 1]} : vector<512x64xbf16> to vector<32x64xbf16>
    %c9_101 = arith.constant 9 : index
    %c0_102 = arith.constant 0 : index
    %c0_103 = arith.constant 0 : index
    %148 = vector.load %arg6[%c9_101, %c0_102, %c0_103] : memref<16x64x128xbf16, #tpu.memory_space<vmem>>, vector<1x64x128xbf16>
    %149 = vector.shape_cast %148 : vector<1x64x128xbf16> to vector<64x128xbf16>
    %cst_104 = arith.constant dense<0.000000e+00> : vector<32x128xf32>
    %150 = tpu.matmul %147, %149, %cst_104 {dimension_numbers = #tpu.dot_dimension_numbers<[1], [0], [0], [1], [0, 0, 1, 1], [], []>} : vector<32x64xbf16>, vector<64x128xbf16>, vector<32x128xf32> -> vector<32x128xf32>
    %151 = arith.addf %146, %150 : vector<32x128xf32>
    %152 = vector.extract_strided_slice %101 {offsets = [320, 0], sizes = [32, 64], strides = [1, 1]} : vector<512x64xbf16> to vector<32x64xbf16>
    %c10_105 = arith.constant 10 : index
    %c0_106 = arith.constant 0 : index
    %c0_107 = arith.constant 0 : index
    %153 = vector.load %arg6[%c10_105, %c0_106, %c0_107] : memref<16x64x128xbf16, #tpu.memory_space<vmem>>, vector<1x64x128xbf16>
    %154 = vector.shape_cast %153 : vector<1x64x128xbf16> to vector<64x128xbf16>
    %cst_108 = arith.constant dense<0.000000e+00> : vector<32x128xf32>
    %155 = tpu.matmul %152, %154, %cst_108 {dimension_numbers = #tpu.dot_dimension_numbers<[1], [0], [0], [1], [0, 0, 1, 1], [], []>} : vector<32x64xbf16>, vector<64x128xbf16>, vector<32x128xf32> -> vector<32x128xf32>
    %156 = arith.addf %151, %155 : vector<32x128xf32>
    %157 = vector.extract_strided_slice %101 {offsets = [352, 0], sizes = [32, 64], strides = [1, 1]} : vector<512x64xbf16> to vector<32x64xbf16>
    %c11_109 = arith.constant 11 : index
    %c0_110 = arith.constant 0 : index
    %c0_111 = arith.constant 0 : index
    %158 = vector.load %arg6[%c11_109, %c0_110, %c0_111] : memref<16x64x128xbf16, #tpu.memory_space<vmem>>, vector<1x64x128xbf16>
    %159 = vector.shape_cast %158 : vector<1x64x128xbf16> to vector<64x128xbf16>
    %cst_112 = arith.constant dense<0.000000e+00> : vector<32x128xf32>
    %160 = tpu.matmul %157, %159, %cst_112 {dimension_numbers = #tpu.dot_dimension_numbers<[1], [0], [0], [1], [0, 0, 1, 1], [], []>} : vector<32x64xbf16>, vector<64x128xbf16>, vector<32x128xf32> -> vector<32x128xf32>
    %161 = arith.addf %156, %160 : vector<32x128xf32>
    %162 = vector.extract_strided_slice %101 {offsets = [384, 0], sizes = [32, 64], strides = [1, 1]} : vector<512x64xbf16> to vector<32x64xbf16>
    %c12_113 = arith.constant 12 : index
    %c0_114 = arith.constant 0 : index
    %c0_115 = arith.constant 0 : index
    %163 = vector.load %arg6[%c12_113, %c0_114, %c0_115] : memref<16x64x128xbf16, #tpu.memory_space<vmem>>, vector<1x64x128xbf16>
    %164 = vector.shape_cast %163 : vector<1x64x128xbf16> to vector<64x128xbf16>
    %cst_116 = arith.constant dense<0.000000e+00> : vector<32x128xf32>
    %165 = tpu.matmul %162, %164, %cst_116 {dimension_numbers = #tpu.dot_dimension_numbers<[1], [0], [0], [1], [0, 0, 1, 1], [], []>} : vector<32x64xbf16>, vector<64x128xbf16>, vector<32x128xf32> -> vector<32x128xf32>
    %166 = arith.addf %161, %165 : vector<32x128xf32>
    %167 = vector.extract_strided_slice %101 {offsets = [416, 0], sizes = [32, 64], strides = [1, 1]} : vector<512x64xbf16> to vector<32x64xbf16>
    %c13_117 = arith.constant 13 : index
    %c0_118 = arith.constant 0 : index
    %c0_119 = arith.constant 0 : index
    %168 = vector.load %arg6[%c13_117, %c0_118, %c0_119] : memref<16x64x128xbf16, #tpu.memory_space<vmem>>, vector<1x64x128xbf16>
    %169 = vector.shape_cast %168 : vector<1x64x128xbf16> to vector<64x128xbf16>
    %cst_120 = arith.constant dense<0.000000e+00> : vector<32x128xf32>
    %170 = tpu.matmul %167, %169, %cst_120 {dimension_numbers = #tpu.dot_dimension_numbers<[1], [0], [0], [1], [0, 0, 1, 1], [], []>} : vector<32x64xbf16>, vector<64x128xbf16>, vector<32x128xf32> -> vector<32x128xf32>
    %171 = arith.addf %166, %170 : vector<32x128xf32>
    %172 = vector.extract_strided_slice %101 {offsets = [448, 0], sizes = [32, 64], strides = [1, 1]} : vector<512x64xbf16> to vector<32x64xbf16>
    %c14_121 = arith.constant 14 : index
    %c0_122 = arith.constant 0 : index
    %c0_123 = arith.constant 0 : index
    %173 = vector.load %arg6[%c14_121, %c0_122, %c0_123] : memref<16x64x128xbf16, #tpu.memory_space<vmem>>, vector<1x64x128xbf16>
    %174 = vector.shape_cast %173 : vector<1x64x128xbf16> to vector<64x128xbf16>
    %cst_124 = arith.constant dense<0.000000e+00> : vector<32x128xf32>
    %175 = tpu.matmul %172, %174, %cst_124 {dimension_numbers = #tpu.dot_dimension_numbers<[1], [0], [0], [1], [0, 0, 1, 1], [], []>} : vector<32x64xbf16>, vector<64x128xbf16>, vector<32x128xf32> -> vector<32x128xf32>
    %176 = arith.addf %171, %175 : vector<32x128xf32>
    %177 = vector.extract_strided_slice %101 {offsets = [480, 0], sizes = [32, 64], strides = [1, 1]} : vector<512x64xbf16> to vector<32x64xbf16>
    %c15_125 = arith.constant 15 : index
    %c0_126 = arith.constant 0 : index
    %c0_127 = arith.constant 0 : index
    %178 = vector.load %arg6[%c15_125, %c0_126, %c0_127] : memref<16x64x128xbf16, #tpu.memory_space<vmem>>, vector<1x64x128xbf16>
    %179 = vector.shape_cast %178 : vector<1x64x128xbf16> to vector<64x128xbf16>
    %cst_128 = arith.constant dense<0.000000e+00> : vector<32x128xf32>
    %180 = tpu.matmul %177, %179, %cst_128 {dimension_numbers = #tpu.dot_dimension_numbers<[1], [0], [0], [1], [0, 0, 1, 1], [], []>} : vector<32x64xbf16>, vector<64x128xbf16>, vector<32x128xf32> -> vector<32x128xf32>
    %181 = arith.addf %176, %180 : vector<32x128xf32>
    %182 = vector.broadcast %102 : vector<1x128xf32> to vector<32x128xf32>
    %183 = arith.addf %181, %182 : vector<32x128xf32>
    %cst_129 = arith.constant 2.000000e-01 : f32
    %184 = vector.broadcast %cst_129 : f32 to vector<32x128xf32>
    %185 = arith.mulf %184, %183 : vector<32x128xf32>
    %186 = arith.maximumf %183, %185 : vector<32x128xf32>
    %187 = arith.truncf %186 : vector<32x128xf32> to vector<32x128xbf16>
    %c0_130 = arith.constant 0 : index
    %c0_131 = arith.constant 0 : index
    %188 = vector.load %arg7[%c0_130, %c0_131] : memref<512x32xbf16, #tpu.memory_space<vmem>>, vector<512x32xbf16>
    %cst_132 = arith.constant dense<0.000000e+00> : vector<512x128xf32>
    %189 = tpu.matmul %188, %187, %cst_132 {dimension_numbers = #tpu.dot_dimension_numbers<[1], [0], [0], [1], [0, 0, 1, 1], [], []>} : vector<512x32xbf16>, vector<32x128xbf16>, vector<512x128xf32> -> vector<512x128xf32>
    %190 = arith.truncf %189 : vector<512x128xf32> to vector<512x128xbf16>
    %191 = vector.extract_strided_slice %190 {offsets = [0, 0], sizes = [32, 128], strides = [1, 1]} : vector<512x128xbf16> to vector<32x128xbf16>
    %c0_133 = arith.constant 0 : index
    %c0_134 = arith.constant 0 : index
    %192 = vector.load %arg14[%c0_133, %c0_134] : memref<32x2048xbf16, #tpu.memory_space<vmem>>, vector<32x128xbf16>
    tpu.vector_store %arg14[%c0_133, %c0_134], %191 {strides = array<i32>} : memref<32x2048xbf16, #tpu.memory_space<vmem>>, vector<32x128xbf16>,
    %193 = vector.extract_strided_slice %190 {offsets = [32, 0], sizes = [32, 128], strides = [1, 1]} : vector<512x128xbf16> to vector<32x128xbf16>
    %c0_135 = arith.constant 0 : index
    %c128 = arith.constant 128 : index
    %194 = vector.load %arg14[%c0_135, %c128] : memref<32x2048xbf16, #tpu.memory_space<vmem>>, vector<32x128xbf16>
    tpu.vector_store %arg14[%c0_135, %c128], %193 {strides = array<i32>} : memref<32x2048xbf16, #tpu.memory_space<vmem>>, vector<32x128xbf16>,
    %195 = vector.extract_strided_slice %190 {offsets = [64, 0], sizes = [32, 128], strides = [1, 1]} : vector<512x128xbf16> to vector<32x128xbf16>
    %c0_136 = arith.constant 0 : index
    %c256 = arith.constant 256 : index
    %196 = vector.load %arg14[%c0_136, %c256] : memref<32x2048xbf16, #tpu.memory_space<vmem>>, vector<32x128xbf16>
    tpu.vector_store %arg14[%c0_136, %c256], %195 {strides = array<i32>} : memref<32x2048xbf16, #tpu.memory_space<vmem>>, vector<32x128xbf16>,
    %197 = vector.extract_strided_slice %190 {offsets = [96, 0], sizes = [32, 128], strides = [1, 1]} : vector<512x128xbf16> to vector<32x128xbf16>
    %c0_137 = arith.constant 0 : index
    %c384 = arith.constant 384 : index
    %198 = vector.load %arg14[%c0_137, %c384] : memref<32x2048xbf16, #tpu.memory_space<vmem>>, vector<32x128xbf16>
    tpu.vector_store %arg14[%c0_137, %c384], %197 {strides = array<i32>} : memref<32x2048xbf16, #tpu.memory_space<vmem>>, vector<32x128xbf16>,
    %199 = vector.extract_strided_slice %190 {offsets = [128, 0], sizes = [32, 128], strides = [1, 1]} : vector<512x128xbf16> to vector<32x128xbf16>
    %c0_138 = arith.constant 0 : index
    %c512 = arith.constant 512 : index
    %200 = vector.load %arg14[%c0_138, %c512] : memref<32x2048xbf16, #tpu.memory_space<vmem>>, vector<32x128xbf16>
    tpu.vector_store %arg14[%c0_138, %c512], %199 {strides = array<i32>} : memref<32x2048xbf16, #tpu.memory_space<vmem>>, vector<32x128xbf16>,
    %201 = vector.extract_strided_slice %190 {offsets = [160, 0], sizes = [32, 128], strides = [1, 1]} : vector<512x128xbf16> to vector<32x128xbf16>
    %c0_139 = arith.constant 0 : index
    %c640 = arith.constant 640 : index
    %202 = vector.load %arg14[%c0_139, %c640] : memref<32x2048xbf16, #tpu.memory_space<vmem>>, vector<32x128xbf16>
    tpu.vector_store %arg14[%c0_139, %c640], %201 {strides = array<i32>} : memref<32x2048xbf16, #tpu.memory_space<vmem>>, vector<32x128xbf16>,
    %203 = vector.extract_strided_slice %190 {offsets = [192, 0], sizes = [32, 128], strides = [1, 1]} : vector<512x128xbf16> to vector<32x128xbf16>
    %c0_140 = arith.constant 0 : index
    %c768 = arith.constant 768 : index
    %204 = vector.load %arg14[%c0_140, %c768] : memref<32x2048xbf16, #tpu.memory_space<vmem>>, vector<32x128xbf16>
    tpu.vector_store %arg14[%c0_140, %c768], %203 {strides = array<i32>} : memref<32x2048xbf16, #tpu.memory_space<vmem>>, vector<32x128xbf16>,
    %205 = vector.extract_strided_slice %190 {offsets = [224, 0], sizes = [32, 128], strides = [1, 1]} : vector<512x128xbf16> to vector<32x128xbf16>
    %c0_141 = arith.constant 0 : index
    %c896 = arith.constant 896 : index
    %206 = vector.load %arg14[%c0_141, %c896] : memref<32x2048xbf16, #tpu.memory_space<vmem>>, vector<32x128xbf16>
    tpu.vector_store %arg14[%c0_141, %c896], %205 {strides = array<i32>} : memref<32x2048xbf16, #tpu.memory_space<vmem>>, vector<32x128xbf16>,
    %207 = vector.extract_strided_slice %190 {offsets = [256, 0], sizes = [32, 128], strides = [1, 1]} : vector<512x128xbf16> to vector<32x128xbf16>
    %c0_142 = arith.constant 0 : index
    %c1024 = arith.constant 1024 : index
    %208 = vector.load %arg14[%c0_142, %c1024] : memref<32x2048xbf16, #tpu.memory_space<vmem>>, vector<32x128xbf16>
    tpu.vector_store %arg14[%c0_142, %c1024], %207 {strides = array<i32>} : memref<32x2048xbf16, #tpu.memory_space<vmem>>, vector<32x128xbf16>,
    %209 = vector.extract_strided_slice %190 {offsets = [288, 0], sizes = [32, 128], strides = [1, 1]} : vector<512x128xbf16> to vector<32x128xbf16>
    %c0_143 = arith.constant 0 : index
    %c1152 = arith.constant 1152 : index
    %210 = vector.load %arg14[%c0_143, %c1152] : memref<32x2048xbf16, #tpu.memory_space<vmem>>, vector<32x128xbf16>
    tpu.vector_store %arg14[%c0_143, %c1152], %209 {strides = array<i32>} : memref<32x2048xbf16, #tpu.memory_space<vmem>>, vector<32x128xbf16>,
    %211 = vector.extract_strided_slice %190 {offsets = [320, 0], sizes = [32, 128], strides = [1, 1]} : vector<512x128xbf16> to vector<32x128xbf16>
    %c0_144 = arith.constant 0 : index
    %c1280 = arith.constant 1280 : index
    %212 = vector.load %arg14[%c0_144, %c1280] : memref<32x2048xbf16, #tpu.memory_space<vmem>>, vector<32x128xbf16>
    tpu.vector_store %arg14[%c0_144, %c1280], %211 {strides = array<i32>} : memref<32x2048xbf16, #tpu.memory_space<vmem>>, vector<32x128xbf16>,
    %213 = vector.extract_strided_slice %190 {offsets = [352, 0], sizes = [32, 128], strides = [1, 1]} : vector<512x128xbf16> to vector<32x128xbf16>
    %c0_145 = arith.constant 0 : index
    %c1408 = arith.constant 1408 : index
    %214 = vector.load %arg14[%c0_145, %c1408] : memref<32x2048xbf16, #tpu.memory_space<vmem>>, vector<32x128xbf16>
    tpu.vector_store %arg14[%c0_145, %c1408], %213 {strides = array<i32>} : memref<32x2048xbf16, #tpu.memory_space<vmem>>, vector<32x128xbf16>,
    %215 = vector.extract_strided_slice %190 {offsets = [384, 0], sizes = [32, 128], strides = [1, 1]} : vector<512x128xbf16> to vector<32x128xbf16>
    %c0_146 = arith.constant 0 : index
    %c1536 = arith.constant 1536 : index
    %216 = vector.load %arg14[%c0_146, %c1536] : memref<32x2048xbf16, #tpu.memory_space<vmem>>, vector<32x128xbf16>
    tpu.vector_store %arg14[%c0_146, %c1536], %215 {strides = array<i32>} : memref<32x2048xbf16, #tpu.memory_space<vmem>>, vector<32x128xbf16>,
    %217 = vector.extract_strided_slice %190 {offsets = [416, 0], sizes = [32, 128], strides = [1, 1]} : vector<512x128xbf16> to vector<32x128xbf16>
    %c0_147 = arith.constant 0 : index
    %c1664 = arith.constant 1664 : index
    %218 = vector.load %arg14[%c0_147, %c1664] : memref<32x2048xbf16, #tpu.memory_space<vmem>>, vector<32x128xbf16>
    tpu.vector_store %arg14[%c0_147, %c1664], %217 {strides = array<i32>} : memref<32x2048xbf16, #tpu.memory_space<vmem>>, vector<32x128xbf16>,
    %219 = vector.extract_strided_slice %190 {offsets = [448, 0], sizes = [32, 128], strides = [1, 1]} : vector<512x128xbf16> to vector<32x128xbf16>
    %c0_148 = arith.constant 0 : index
    %c1792 = arith.constant 1792 : index
    %220 = vector.load %arg14[%c0_148, %c1792] : memref<32x2048xbf16, #tpu.memory_space<vmem>>, vector<32x128xbf16>
    tpu.vector_store %arg14[%c0_148, %c1792], %219 {strides = array<i32>} : memref<32x2048xbf16, #tpu.memory_space<vmem>>, vector<32x128xbf16>,
    %221 = vector.extract_strided_slice %190 {offsets = [480, 0], sizes = [32, 128], strides = [1, 1]} : vector<512x128xbf16> to vector<32x128xbf16>
    %c0_149 = arith.constant 0 : index
    %c1920 = arith.constant 1920 : index
    %222 = vector.load %arg14[%c0_149, %c1920] : memref<32x2048xbf16, #tpu.memory_space<vmem>>, vector<32x128xbf16>
    tpu.vector_store %arg14[%c0_149, %c1920], %221 {strides = array<i32>} : memref<32x2048xbf16, #tpu.memory_space<vmem>>, vector<32x128xbf16>,
    tpu.wait_dma2 semaphore(%arg16 : memref<!tpu.dma_semaphore, #tpu.memory_space<semaphore_mem>>) src(%arg8 : memref<2048x256xbf16, #tpu.memory_space<any>>) dst(%arg13 : memref<2048x256xbf16, #tpu.memory_space<vmem>>)
    %c0_150 = arith.constant 0 : index
    %c0_151 = arith.constant 0 : index
    %223 = vector.load %arg14[%c0_150, %c0_151] : memref<32x2048xbf16, #tpu.memory_space<vmem>>, vector<32x2048xbf16>
    %c0_152 = arith.constant 0 : index
    %c0_153 = arith.constant 0 : index
    %224 = vector.load %arg13[%c0_152, %c0_153] : memref<2048x256xbf16, #tpu.memory_space<vmem>>, vector<2048x256xbf16>
    %cst_154 = arith.constant dense<0.000000e+00> : vector<32x256xf32>
    %225 = tpu.matmul %223, %224, %cst_154 {dimension_numbers = #tpu.dot_dimension_numbers<[1], [0], [0], [1], [0, 0, 1, 1], [], []>} : vector<32x2048xbf16>, vector<2048x256xbf16>, vector<32x256xf32> -> vector<32x256xf32>
    %c3_155 = arith.constant 3 : index
    %c0_156 = arith.constant 0 : index
    %226 = vector.load %arg11[%c3_155, %c0_156] : memref<8x256xf32, #tpu.memory_space<vmem>>, vector<1x256xf32>
    %227 = vector.broadcast %226 : vector<1x256xf32> to vector<32x256xf32>
    %228 = arith.addf %225, %227 : vector<32x256xf32>
    %cst_157 = arith.constant 2.000000e-01 : f32
    %229 = vector.broadcast %cst_157 : f32 to vector<32x256xf32>
    %230 = arith.mulf %229, %228 : vector<32x256xf32>
    %231 = arith.maximumf %228, %230 : vector<32x256xf32>
    %232 = arith.truncf %231 : vector<32x256xf32> to vector<32x256xbf16>
    %c0_158 = arith.constant 0 : index
    %c0_159 = arith.constant 0 : index
    %233 = vector.load %arg9[%c0_158, %c0_159] : memref<256x32xbf16, #tpu.memory_space<vmem>>, vector<256x32xbf16>
    %cst_160 = arith.constant dense<0.000000e+00> : vector<256x256xf32>
    %234 = tpu.matmul %233, %232, %cst_160 {dimension_numbers = #tpu.dot_dimension_numbers<[1], [0], [0], [1], [0, 0, 1, 1], [], []>} : vector<256x32xbf16>, vector<32x256xbf16>, vector<256x256xf32> -> vector<256x256xf32>
    %235 = arith.truncf %234 : vector<256x256xf32> to vector<256x256xbf16>
    %236 = vector.extract_strided_slice %235 {offsets = [0, 0], sizes = [16, 256], strides = [1, 1]} : vector<256x256xbf16> to vector<16x256xbf16>
    %c0_161 = arith.constant 0 : index
    %c0_162 = arith.constant 0 : index
    %237 = vector.load %arg15[%c0_161, %c0_162] : memref<16x4096xbf16, #tpu.memory_space<vmem>>, vector<16x256xbf16>
    tpu.vector_store %arg15[%c0_161, %c0_162], %236 {strides = array<i32>} : memref<16x4096xbf16, #tpu.memory_space<vmem>>, vector<16x256xbf16>,
    %238 = vector.extract_strided_slice %235 {offsets = [16, 0], sizes = [16, 256], strides = [1, 1]} : vector<256x256xbf16> to vector<16x256xbf16>
    %c0_163 = arith.constant 0 : index
    %c256_164 = arith.constant 256 : index
    %239 = vector.load %arg15[%c0_163, %c256_164] : memref<16x4096xbf16, #tpu.memory_space<vmem>>, vector<16x256xbf16>
    tpu.vector_store %arg15[%c0_163, %c256_164], %238 {strides = array<i32>} : memref<16x4096xbf16, #tpu.memory_space<vmem>>, vector<16x256xbf16>,
    %240 = vector.extract_strided_slice %235 {offsets = [32, 0], sizes = [16, 256], strides = [1, 1]} : vector<256x256xbf16> to vector<16x256xbf16>
    %c0_165 = arith.constant 0 : index
    %c512_166 = arith.constant 512 : index
    %241 = vector.load %arg15[%c0_165, %c512_166] : memref<16x4096xbf16, #tpu.memory_space<vmem>>, vector<16x256xbf16>
    tpu.vector_store %arg15[%c0_165, %c512_166], %240 {strides = array<i32>} : memref<16x4096xbf16, #tpu.memory_space<vmem>>, vector<16x256xbf16>,
    %242 = vector.extract_strided_slice %235 {offsets = [48, 0], sizes = [16, 256], strides = [1, 1]} : vector<256x256xbf16> to vector<16x256xbf16>
    %c0_167 = arith.constant 0 : index
    %c768_168 = arith.constant 768 : index
    %243 = vector.load %arg15[%c0_167, %c768_168] : memref<16x4096xbf16, #tpu.memory_space<vmem>>, vector<16x256xbf16>
    tpu.vector_store %arg15[%c0_167, %c768_168], %242 {strides = array<i32>} : memref<16x4096xbf16, #tpu.memory_space<vmem>>, vector<16x256xbf16>,
    %244 = vector.extract_strided_slice %235 {offsets = [64, 0], sizes = [16, 256], strides = [1, 1]} : vector<256x256xbf16> to vector<16x256xbf16>
    %c0_169 = arith.constant 0 : index
    %c1024_170 = arith.constant 1024 : index
    %245 = vector.load %arg15[%c0_169, %c1024_170] : memref<16x4096xbf16, #tpu.memory_space<vmem>>, vector<16x256xbf16>
    tpu.vector_store %arg15[%c0_169, %c1024_170], %244 {strides = array<i32>} : memref<16x4096xbf16, #tpu.memory_space<vmem>>, vector<16x256xbf16>,
    %246 = vector.extract_strided_slice %235 {offsets = [80, 0], sizes = [16, 256], strides = [1, 1]} : vector<256x256xbf16> to vector<16x256xbf16>
    %c0_171 = arith.constant 0 : index
    %c1280_172 = arith.constant 1280 : index
    %247 = vector.load %arg15[%c0_171, %c1280_172] : memref<16x4096xbf16, #tpu.memory_space<vmem>>, vector<16x256xbf16>
    tpu.vector_store %arg15[%c0_171, %c1280_172], %246 {strides = array<i32>} : memref<16x4096xbf16, #tpu.memory_space<vmem>>, vector<16x256xbf16>,
    %248 = vector.extract_strided_slice %235 {offsets = [96, 0], sizes = [16, 256], strides = [1, 1]} : vector<256x256xbf16> to vector<16x256xbf16>
    %c0_173 = arith.constant 0 : index
    %c1536_174 = arith.constant 1536 : index
    %249 = vector.load %arg15[%c0_173, %c1536_174] : memref<16x4096xbf16, #tpu.memory_space<vmem>>, vector<16x256xbf16>
    tpu.vector_store %arg15[%c0_173, %c1536_174], %248 {strides = array<i32>} : memref<16x4096xbf16, #tpu.memory_space<vmem>>, vector<16x256xbf16>,
    %250 = vector.extract_strided_slice %235 {offsets = [112, 0], sizes = [16, 256], strides = [1, 1]} : vector<256x256xbf16> to vector<16x256xbf16>
    %c0_175 = arith.constant 0 : index
    %c1792_176 = arith.constant 1792 : index
    %251 = vector.load %arg15[%c0_175, %c1792_176] : memref<16x4096xbf16, #tpu.memory_space<vmem>>, vector<16x256xbf16>
    tpu.vector_store %arg15[%c0_175, %c1792_176], %250 {strides = array<i32>} : memref<16x4096xbf16, #tpu.memory_space<vmem>>, vector<16x256xbf16>,
    %252 = vector.extract_strided_slice %235 {offsets = [128, 0], sizes = [16, 256], strides = [1, 1]} : vector<256x256xbf16> to vector<16x256xbf16>
    %c0_177 = arith.constant 0 : index
    %c2048 = arith.constant 2048 : index
    %253 = vector.load %arg15[%c0_177, %c2048] : memref<16x4096xbf16, #tpu.memory_space<vmem>>, vector<16x256xbf16>
    tpu.vector_store %arg15[%c0_177, %c2048], %252 {strides = array<i32>} : memref<16x4096xbf16, #tpu.memory_space<vmem>>, vector<16x256xbf16>,
    %254 = vector.extract_strided_slice %235 {offsets = [144, 0], sizes = [16, 256], strides = [1, 1]} : vector<256x256xbf16> to vector<16x256xbf16>
    %c0_178 = arith.constant 0 : index
    %c2304 = arith.constant 2304 : index
    %255 = vector.load %arg15[%c0_178, %c2304] : memref<16x4096xbf16, #tpu.memory_space<vmem>>, vector<16x256xbf16>
    tpu.vector_store %arg15[%c0_178, %c2304], %254 {strides = array<i32>} : memref<16x4096xbf16, #tpu.memory_space<vmem>>, vector<16x256xbf16>,
    %256 = vector.extract_strided_slice %235 {offsets = [160, 0], sizes = [16, 256], strides = [1, 1]} : vector<256x256xbf16> to vector<16x256xbf16>
    %c0_179 = arith.constant 0 : index
    %c2560 = arith.constant 2560 : index
    %257 = vector.load %arg15[%c0_179, %c2560] : memref<16x4096xbf16, #tpu.memory_space<vmem>>, vector<16x256xbf16>
    tpu.vector_store %arg15[%c0_179, %c2560], %256 {strides = array<i32>} : memref<16x4096xbf16, #tpu.memory_space<vmem>>, vector<16x256xbf16>,
    %258 = vector.extract_strided_slice %235 {offsets = [176, 0], sizes = [16, 256], strides = [1, 1]} : vector<256x256xbf16> to vector<16x256xbf16>
    %c0_180 = arith.constant 0 : index
    %c2816 = arith.constant 2816 : index
    %259 = vector.load %arg15[%c0_180, %c2816] : memref<16x4096xbf16, #tpu.memory_space<vmem>>, vector<16x256xbf16>
    tpu.vector_store %arg15[%c0_180, %c2816], %258 {strides = array<i32>} : memref<16x4096xbf16, #tpu.memory_space<vmem>>, vector<16x256xbf16>,
    %260 = vector.extract_strided_slice %235 {offsets = [192, 0], sizes = [16, 256], strides = [1, 1]} : vector<256x256xbf16> to vector<16x256xbf16>
    %c0_181 = arith.constant 0 : index
    %c3072 = arith.constant 3072 : index
    %261 = vector.load %arg15[%c0_181, %c3072] : memref<16x4096xbf16, #tpu.memory_space<vmem>>, vector<16x256xbf16>
    tpu.vector_store %arg15[%c0_181, %c3072], %260 {strides = array<i32>} : memref<16x4096xbf16, #tpu.memory_space<vmem>>, vector<16x256xbf16>,
    %262 = vector.extract_strided_slice %235 {offsets = [208, 0], sizes = [16, 256], strides = [1, 1]} : vector<256x256xbf16> to vector<16x256xbf16>
    %c0_182 = arith.constant 0 : index
    %c3328 = arith.constant 3328 : index
    %263 = vector.load %arg15[%c0_182, %c3328] : memref<16x4096xbf16, #tpu.memory_space<vmem>>, vector<16x256xbf16>
    tpu.vector_store %arg15[%c0_182, %c3328], %262 {strides = array<i32>} : memref<16x4096xbf16, #tpu.memory_space<vmem>>, vector<16x256xbf16>,
    %264 = vector.extract_strided_slice %235 {offsets = [224, 0], sizes = [16, 256], strides = [1, 1]} : vector<256x256xbf16> to vector<16x256xbf16>
    %c0_183 = arith.constant 0 : index
    %c3584 = arith.constant 3584 : index
    %265 = vector.load %arg15[%c0_183, %c3584] : memref<16x4096xbf16, #tpu.memory_space<vmem>>, vector<16x256xbf16>
    tpu.vector_store %arg15[%c0_183, %c3584], %264 {strides = array<i32>} : memref<16x4096xbf16, #tpu.memory_space<vmem>>, vector<16x256xbf16>,
    %266 = vector.extract_strided_slice %235 {offsets = [240, 0], sizes = [16, 256], strides = [1, 1]} : vector<256x256xbf16> to vector<16x256xbf16>
    %c0_184 = arith.constant 0 : index
    %c3840 = arith.constant 3840 : index
    %267 = vector.load %arg15[%c0_184, %c3840] : memref<16x4096xbf16, #tpu.memory_space<vmem>>, vector<16x256xbf16>
    tpu.vector_store %arg15[%c0_184, %c3840], %266 {strides = array<i32>} : memref<16x4096xbf16, #tpu.memory_space<vmem>>, vector<16x256xbf16>,
    %c0_185 = arith.constant 0 : index
    %c0_186 = arith.constant 0 : index
    %268 = vector.load %arg15[%c0_185, %c0_186] : memref<16x4096xbf16, #tpu.memory_space<vmem>>, vector<16x4096xbf16>
    %c0_187 = arith.constant 0 : index
    %c0_188 = arith.constant 0 : index
    %269 = vector.load %arg10[%c0_187, %c0_188] : memref<4096x8xbf16, #tpu.memory_space<vmem>>, vector<4096x8xbf16>
    %cst_189 = arith.constant dense<0.000000e+00> : vector<16x8xf32>
    %270 = tpu.matmul %268, %269, %cst_189 {dimension_numbers = #tpu.dot_dimension_numbers<[1], [0], [0], [1], [0, 0, 1, 1], [], []>} : vector<16x4096xbf16>, vector<4096x8xbf16>, vector<16x8xf32> -> vector<16x8xf32>
    %c4_190 = arith.constant 4 : index
    %c0_191 = arith.constant 0 : index
    %271 = vector.load %arg11[%c4_190, %c0_191] : memref<8x256xf32, #tpu.memory_space<vmem>>, vector<1x8xf32>
    %272 = vector.broadcast %271 : vector<1x8xf32> to vector<16x8xf32>
    %273 = arith.addf %270, %272 : vector<16x8xf32>
    %c0_192 = arith.constant 0 : index
    %c0_193 = arith.constant 0 : index
    %274 = vector.load %arg12[%c0_192, %c0_193] : memref<16x8xf32, #tpu.memory_space<vmem>>, vector<16x8xf32>
    tpu.vector_store %arg12[%c0_192, %c0_193], %273 {strides = array<i32>} : memref<16x8xf32, #tpu.memory_space<vmem>>, vector<16x8xf32>,
    return
  }
  func.func @transform_0(%arg0: i32) -> (i32, i32) {
    %c0_i32 = arith.constant 0 : i32
    %c0_i32_0 = arith.constant 0 : i32
    %c0_i32_1 = arith.constant 0 : i32
    return %c0_i32, %c0_i32_0 : i32, i32
  }
  func.func @transform_1(%arg0: i32) -> (i32, i32) {
    %c0_i32 = arith.constant 0 : i32
    %c0_i32_0 = arith.constant 0 : i32
    %c0_i32_1 = arith.constant 0 : i32
    return %c0_i32, %c0_i32_0 : i32, i32
  }
  func.func @transform_2(%arg0: i32) -> (i32, i32) {
    %c0_i32 = arith.constant 0 : i32
    %c0_i32_0 = arith.constant 0 : i32
    %c0_i32_1 = arith.constant 0 : i32
    return %c0_i32, %c0_i32_0 : i32, i32
  }
  func.func @transform_3(%arg0: i32) -> (i32, i32, i32) {
    %c0_i32 = arith.constant 0 : i32
    %c0_i32_0 = arith.constant 0 : i32
    %c0_i32_1 = arith.constant 0 : i32
    %c0_i32_2 = arith.constant 0 : i32
    return %c0_i32, %c0_i32_0, %c0_i32_1 : i32, i32, i32
  }
  func.func @transform_4(%arg0: i32) -> (i32, i32) {
    %c0_i32 = arith.constant 0 : i32
    %c0_i32_0 = arith.constant 0 : i32
    %c0_i32_1 = arith.constant 0 : i32
    return %c0_i32, %c0_i32_0 : i32, i32
  }
  func.func @transform_5(%arg0: i32) -> (i32, i32, i32) {
    %c0_i32 = arith.constant 0 : i32
    %c0_i32_0 = arith.constant 0 : i32
    %c0_i32_1 = arith.constant 0 : i32
    %c0_i32_2 = arith.constant 0 : i32
    return %c0_i32, %c0_i32_0, %c0_i32_1 : i32, i32, i32
  }
  func.func @transform_6(%arg0: i32) -> (i32, i32) {
    %c0_i32 = arith.constant 0 : i32
    %c0_i32_0 = arith.constant 0 : i32
    %c0_i32_1 = arith.constant 0 : i32
    return %c0_i32, %c0_i32_0 : i32, i32
  }
  func.func @transform_8(%arg0: i32) -> (i32, i32) {
    %c0_i32 = arith.constant 0 : i32
    %c0_i32_0 = arith.constant 0 : i32
    %c0_i32_1 = arith.constant 0 : i32
    return %c0_i32, %c0_i32_0 : i32, i32
  }
  func.func @transform_9(%arg0: i32) -> (i32, i32) {
    %c0_i32 = arith.constant 0 : i32
    %c0_i32_0 = arith.constant 0 : i32
    %c0_i32_1 = arith.constant 0 : i32
    return %c0_i32, %c0_i32_0 : i32, i32
  }
  func.func @transform_10(%arg0: i32) -> (i32, i32) {
    %c0_i32 = arith.constant 0 : i32
    %c0_i32_0 = arith.constant 0 : i32
    %c0_i32_1 = arith.constant 0 : i32
    return %c0_i32, %c0_i32_0 : i32, i32
  }
  func.func @transform_11(%arg0: i32) -> (i32, i32) {
    %c0_i32 = arith.constant 0 : i32
    %c0_i32_0 = arith.constant 0 : i32
    %c0_i32_1 = arith.constant 0 : i32
    return %c0_i32, %c0_i32_0 : i32, i32
  }
}

</mosaic_0001>

<bundles_post_ra>
// kernel: discriminator_forward.1
= control target key start
LH: loop header
LB: loop body
LE: loop exit
PB: predicated region body
PF: predicated region fallthrough
CT: control target
= control target key end

     0   :  { %s28139_s0 = inlined_call_operand.vmem [shape: bf16[2048,64], index: 0, kind: input, shape index: {}]   ;;  %s28140_s1 = inlined_call_operand.vmem [shape: f32[2048,1], index: 1, kind: input, shape index: {}]   ;;  %s28141_s2 = inlined_call_operand.vmem [shape: bf16[64,32], index: 2, kind: input, shape index: {}]   ;;  %s28142_s3 = inlined_call_operand.vmem [shape: bf16[16,32,64], index: 3, kind: input, shape index: {}]   ;;  %s28143_s4 = inlined_call_operand.vmem [shape: bf16[512,128], index: 4, kind: input, shape index: {}]   ;;  %s28144_s5 = inlined_call_operand.vmem [shape: bf16[16,64,128], index: 5, kind: input, shape index: {}]   ;;  %s28145_s6 = inlined_call_operand.vmem [shape: bf16[512,32], index: 6, kind: input, shape index: {}]   ;;  %s28146_s7 = inlined_call_operand.vmem [shape: bf16[2048,256], index: 7, kind: input, shape index: {}]   ;;  %s28147_s8 = inlined_call_operand.vmem [shape: bf16[256,32], index: 8, kind: input, shape index: {}]   ;;  %s28148_s9 = inlined_call_operand.vmem [shape: bf16[4096,8], index: 9, kind: input, shape index: {}]   ;;  %s28149_s10 = inlined_call_operand.vmem [shape: f32[8,256], index: 10, kind: input, shape index: {}]   ;;  %s28150_s11 = inlined_call_operand.vmem [shape: f32[16,8], index: 11, kind: output, shape index: {}]  }
   0x1   :  { %v20553_v0 = vld [vmem:[%s28146_s7] sm:$0xff]  ;;  %v20558_v1 = vld [vmem:[%s28146_s7 + $0x8] sm:$0xff]  ;;  %v20563_v2 = vld [vmem:[%s28146_s7 + $0x10] sm:$0xff] }
   0x2   :  { %28410 = vst [vmem:[#allocation8_spill] sm:$0xff] %v20553_v0  ;;  %28411 = vst [vmem:[#allocation9_spill] sm:$0xff] %v20558_v1  ;;  %v20568_v3 = vld [vmem:[%s28146_s7 + $0x18] sm:$0xff]  ;;  %v20573_v4 = vld [vmem:[%s28146_s7 + $0x20] sm:$0xff] }
   0x3   :  { %28412 = vst [vmem:[#allocation10_spill] sm:$0xff] %v20563_v2  ;;  %28413 = vst [vmem:[#allocation11_spill] sm:$0xff] %v20568_v3  ;;  %v20578_v5 = vld [vmem:[%s28146_s7 + $0x28] sm:$0xff]  ;;  %v20583_v6 = vld [vmem:[%s28146_s7 + $0x30] sm:$0xff] }
   0x4   :  { %28414 = vst [vmem:[#allocation12_spill] sm:$0xff] %v20573_v4  ;;  %28415 = vst [vmem:[#allocation13_spill] sm:$0xff] %v20578_v5  ;;  %v20588_v7 = vld [vmem:[%s28146_s7 + $0x38] sm:$0xff]  ;;  %v20593_v8 = vld [vmem:[%s28146_s7 + $0x40] sm:$0xff] }
   0x5   :  { %28416 = vst [vmem:[#allocation14_spill] sm:$0xff] %v20583_v6  ;;  %28417 = vst [vmem:[#allocation15_spill] sm:$0xff] %v20588_v7  ;;  %v20598_v9 = vld [vmem:[%s28146_s7 + $0x48] sm:$0xff]  ;;  %v20603_v10 = vld [vmem:[%s28146_s7 + $0x50] sm:$0xff] }
   0x6   :  { %28418 = vst [vmem:[#allocation16_spill] sm:$0xff] %v20593_v8  ;;  %28419 = vst [vmem:[#allocation17_spill] sm:$0xff] %v20598_v9  ;;  %v20608_v11 = vld [vmem:[%s28146_s7 + $0x58] sm:$0xff]  ;;  %v20613_v12 = vld [vmem:[%s28146_s7 + $0x60] sm:$0xff] }
   0x7   :  { %28420 = vst [vmem:[#allocation18_spill] sm:$0xff] %v20603_v10  ;;  %28421 = vst [vmem:[#allocation19_spill] sm:$0xff] %v20608_v11  ;;  %v20618_v13 = vld [vmem:[%s28146_s7 + $0x68] sm:$0xff]  ;;  %v20623_v14 = vld [vmem:[%s28146_s7 + $0x70] sm:$0xff] }
   0x8   :  { %28422 = vst [vmem:[#allocation20_spill] sm:$0xff] %v20613_v12  ;;  %28423 = vst [vmem:[#allocation21_spill] sm:$0xff] %v20618_v13  ;;  %v20628_v15 = vld [vmem:[%s28146_s7 + $0x78] sm:$0xff]  ;;  %v20633_v16 = vld [vmem:[%s28146_s7 + $0x80] sm:$0xff] }
   0x9   :  { %28424 = vst [vmem:[#allocation22_spill] sm:$0xff] %v20623_v14  ;;  %28425 = vst [vmem:[#allocation23_spill] sm:$0xff] %v20628_v15  ;;  %v20638_v17 = vld [vmem:[%s28146_s7 + $0x88] sm:$0xff]  ;;  %v20643_v18 = vld [vmem:[%s28146_s7 + $0x90] sm:$0xff] }
   0xa   :  { %28426 = vst [vmem:[#allocation24_spill] sm:$0xff] %v20633_v16  ;;  %28427 = vst [vmem:[#allocation25_spill] sm:$0xff] %v20638_v17  ;;  %v20648_v19 = vld [vmem:[%s28146_s7 + $0x98] sm:$0xff]  ;;  %v20653_v20 = vld [vmem:[%s28146_s7 + $0xa0] sm:$0xff] }
   0xb   :  { %28428 = vst [vmem:[#allocation26_spill] sm:$0xff] %v20643_v18  ;;  %28429 = vst [vmem:[#allocation27_spill] sm:$0xff] %v20648_v19  ;;  %v20658_v21 = vld [vmem:[%s28146_s7 + $0xa8] sm:$0xff]  ;;  %v20663_v22 = vld [vmem:[%s28146_s7 + $0xb0] sm:$0xff] }
   0xc   :  { %28430 = vst [vmem:[#allocation28_spill] sm:$0xff] %v20653_v20  ;;  %28431 = vst [vmem:[#allocation29_spill] sm:$0xff] %v20658_v21  ;;  %v20668_v23 = vld [vmem:[%s28146_s7 + $0xb8] sm:$0xff]  ;;  %v20673_v24 = vld [vmem:[%s28146_s7 + $0xc0] sm:$0xff] }
   0xd   :  { %28432 = vst [vmem:[#allocation30_spill] sm:$0xff] %v20663_v22  ;;  %28433 = vst [vmem:[#allocation31_spill] sm:$0xff] %v20668_v23  ;;  %v20678_v25 = vld [vmem:[%s28146_s7 + $0xc8] sm:$0xff]  ;;  %v20683_v26 = vld [vmem:[%s28146_s7 + $0xd0] sm:$0xff] }
   0xe   :  { %28434 = vst [vmem:[#allocation32_spill] sm:$0xff] %v20673_v24  ;;  %28435 = vst [vmem:[#allocation33_spill] sm:$0xff] %v20678_v25  ;;  %v20688_v27 = vld [vmem:[%s28146_s7 + $0xd8] sm:$0xff]  ;;  %v20693_v28 = vld [vmem:[%s28146_s7 + $0xe0] sm:$0xff] }
   0xf   :  { %28436 = vst [vmem:[#allocation34_spill] sm:$0xff] %v20683_v26  ;;  %28437 = vst [vmem:[#allocation35_spill] sm:$0xff] %v20688_v27  ;;  %v20698_v29 = vld [vmem:[%s28146_s7 + $0xe8] sm:$0xff]  ;;  %v20703_v30 = vld [vmem:[%s28146_s7 + $0xf0] sm:$0xff] }
  0x10   :  { %28438 = vst [vmem:[#allocation36_spill] sm:$0xff] %v20693_v28  ;;  %28439 = vst [vmem:[#allocation37_spill] sm:$0xff] %v20698_v29  ;;  %v20708_v31 = vld [vmem:[%s28146_s7 + $0xf8] sm:$0xff]  ;;  %v20713_v32 = vld [vmem:[%s28146_s7 + $0x100] sm:$0xff] }
  0x11   :  { %28440 = vst [vmem:[#allocation38_spill] sm:$0xff] %v20703_v30  ;;  %28441 = vst [vmem:[#allocation39_spill] sm:$0xff] %v20708_v31  ;;  %v20718_v33 = vld [vmem:[%s28146_s7 + $0x108] sm:$0xff]  ;;  %v20723_v34 = vld [vmem:[%s28146_s7 + $0x110] sm:$0xff] }
  0x12   :  { %28442 = vst [vmem:[#allocation40_spill] sm:$0xff] %v20713_v32  ;;  %28443 = vst [vmem:[#allocation41_spill] sm:$0xff] %v20718_v33  ;;  %v20728_v35 = vld [vmem:[%s28146_s7 + $0x118] sm:$0xff]  ;;  %v20733_v36 = vld [vmem:[%s28146_s7 + $0x120] sm:$0xff] }
  0x13   :  { %28444 = vst [vmem:[#allocation42_spill] sm:$0xff] %v20723_v34  ;;  %28445 = vst [vmem:[#allocation43_spill] sm:$0xff] %v20728_v35  ;;  %v20738_v37 = vld [vmem:[%s28146_s7 + $0x128] sm:$0xff]  ;;  %v20743_v38 = vld [vmem:[%s28146_s7 + $0x130] sm:$0xff] }
  0x14   :  { %28446 = vst [vmem:[#allocation44_spill] sm:$0xff] %v20733_v36  ;;  %28447 = vst [vmem:[#allocation45_spill] sm:$0xff] %v20738_v37  ;;  %v20748_v39 = vld [vmem:[%s28146_s7 + $0x138] sm:$0xff]  ;;  %v20753_v40 = vld [vmem:[%s28146_s7 + $0x140] sm:$0xff] }
  0x15   :  { %28448 = vst [vmem:[#allocation46_spill] sm:$0xff] %v20743_v38  ;;  %28449 = vst [vmem:[#allocation47_spill] sm:$0xff] %v20748_v39  ;;  %v20758_v41 = vld [vmem:[%s28146_s7 + $0x148] sm:$0xff]  ;;  %v20763_v42 = vld [vmem:[%s28146_s7 + $0x150] sm:$0xff] }
  0x16   :  { %28450 = vst [vmem:[#allocation48_spill] sm:$0xff] %v20753_v40  ;;  %28451 = vst [vmem:[#allocation49_spill] sm:$0xff] %v20758_v41  ;;  %v20768_v43 = vld [vmem:[%s28146_s7 + $0x158] sm:$0xff]  ;;  %v20773_v44 = vld [vmem:[%s28146_s7 + $0x160] sm:$0xff] }
  0x17   :  { %28452 = vst [vmem:[#allocation50_spill] sm:$0xff] %v20763_v42  ;;  %28453 = vst [vmem:[#allocation51_spill] sm:$0xff] %v20768_v43  ;;  %v20778_v45 = vld [vmem:[%s28146_s7 + $0x168] sm:$0xff]  ;;  %v20783_v46 = vld [vmem:[%s28146_s7 + $0x170] sm:$0xff] }
  0x18   :  { %28454 = vst [vmem:[#allocation52_spill] sm:$0xff] %v20773_v44  ;;  %28455 = vst [vmem:[#allocation53_spill] sm:$0xff] %v20778_v45  ;;  %v20788_v47 = vld [vmem:[%s28146_s7 + $0x178] sm:$0xff]  ;;  %v20793_v48 = vld [vmem:[%s28146_s7 + $0x180] sm:$0xff] }
  0x19   :  { %28456 = vst [vmem:[#allocation54_spill] sm:$0xff] %v20783_v46  ;;  %28457 = vst [vmem:[#allocation55_spill] sm:$0xff] %v20788_v47  ;;  %v20798_v49 = vld [vmem:[%s28146_s7 + $0x188] sm:$0xff]  ;;  %v20803_v50 = vld [vmem:[%s28146_s7 + $0x190] sm:$0xff] }
  0x1a   :  { %28458 = vst [vmem:[#allocation56_spill] sm:$0xff] %v20793_v48  ;;  %28459 = vst [vmem:[#allocation57_spill] sm:$0xff] %v20798_v49  ;;  %v20808_v51 = vld [vmem:[%s28146_s7 + $0x198] sm:$0xff]  ;;  %v20813_v52 = vld [vmem:[%s28146_s7 + $0x1a0] sm:$0xff] }
  0x1b   :  { %28460 = vst [vmem:[#allocation58_spill] sm:$0xff] %v20803_v50  ;;  %28461 = vst [vmem:[#allocation59_spill] sm:$0xff] %v20808_v51  ;;  %v20818_v53 = vld [vmem:[%s28146_s7 + $0x1a8] sm:$0xff]  ;;  %v20823_v54 = vld [vmem:[%s28146_s7 + $0x1b0] sm:$0xff] }
  0x1c   :  { %28462 = vst [vmem:[#allocation60_spill] sm:$0xff] %v20813_v52  ;;  %28463 = vst [vmem:[#allocation61_spill] sm:$0xff] %v20818_v53  ;;  %v20828_v55 = vld [vmem:[%s28146_s7 + $0x1b8] sm:$0xff]  ;;  %v20833_v56 = vld [vmem:[%s28146_s7 + $0x1c0] sm:$0xff] }
  0x1d   :  { %28464 = vst [vmem:[#allocation62_spill] sm:$0xff] %v20823_v54  ;;  %28465 = vst [vmem:[#allocation63_spill] sm:$0xff] %v20828_v55  ;;  %v20838_v57 = vld [vmem:[%s28146_s7 + $0x1c8] sm:$0xff]  ;;  %v20843_v58 = vld [vmem:[%s28146_s7 + $0x1d0] sm:$0xff] }
  0x1e   :  { %28466 = vst [vmem:[#allocation64_spill] sm:$0xff] %v20833_v56  ;;  %28467 = vst [vmem:[#allocation65_spill] sm:$0xff] %v20838_v57  ;;  %v20848_v59 = vld [vmem:[%s28146_s7 + $0x1d8] sm:$0xff]  ;;  %v20853_v60 = vld [vmem:[%s28146_s7 + $0x1e0] sm:$0xff] }
  0x1f   :  { %28468 = vst [vmem:[#allocation66_spill] sm:$0xff] %v20843_v58  ;;  %28469 = vst [vmem:[#allocation67_spill] sm:$0xff] %v20848_v59  ;;  %v20858_v61 = vld [vmem:[%s28146_s7 + $0x1e8] sm:$0xff]  ;;  %v20863_v62 = vld [vmem:[%s28146_s7 + $0x1f0] sm:$0xff] }
  0x20   :  { %28470 = vst [vmem:[#allocation68_spill] sm:$0xff] %v20853_v60  ;;  %28471 = vst [vmem:[#allocation69_spill] sm:$0xff] %v20858_v61  ;;  %v20868_v63 = vld [vmem:[%s28146_s7 + $0x1f8] sm:$0xff]  ;;  %v20873_v48 = vld [vmem:[%s28146_s7 + $0x200] sm:$0xff] }
  0x21   :  { %28472 = vst [vmem:[#allocation70_spill] sm:$0xff] %v20863_v62  ;;  %28473 = vst [vmem:[#allocation71_spill] sm:$0xff] %v20868_v63  ;;  %v20878_v49 = vld [vmem:[%s28146_s7 + $0x208] sm:$0xff]  ;;  %v20883_v50 = vld [vmem:[%s28146_s7 + $0x210] sm:$0xff] }
  0x22   :  { %28474 = vst [vmem:[#allocation72_spill] sm:$0xff] %v20873_v48  ;;  %28475 = vst [vmem:[#allocation73_spill] sm:$0xff] %v20878_v49  ;;  %v20888_v51 = vld [vmem:[%s28146_s7 + $0x218] sm:$0xff]  ;;  %v20893_v52 = vld [vmem:[%s28146_s7 + $0x220] sm:$0xff] }
  0x23   :  { %28476 = vst [vmem:[#allocation74_spill] sm:$0xff] %v20883_v50  ;;  %28477 = vst [vmem:[#allocation75_spill] sm:$0xff] %v20888_v51  ;;  %v20898_v53 = vld [vmem:[%s28146_s7 + $0x228] sm:$0xff]  ;;  %v20903_v54 = vld [vmem:[%s28146_s7 + $0x230] sm:$0xff] }
  0x24   :  { %28478 = vst [vmem:[#allocation76_spill] sm:$0xff] %v20893_v52  ;;  %28479 = vst [vmem:[#allocation77_spill] sm:$0xff] %v20898_v53  ;;  %v20908_v55 = vld [vmem:[%s28146_s7 + $0x238] sm:$0xff]  ;;  %v20913_v56 = vld [vmem:[%s28146_s7 + $0x240] sm:$0xff] }
  0x25   :  { %28480 = vst [vmem:[#allocation78_spill] sm:$0xff] %v20903_v54  ;;  %28481 = vst [vmem:[#allocation79_spill] sm:$0xff] %v20908_v55  ;;  %v20918_v57 = vld [vmem:[%s28146_s7 + $0x248] sm:$0xff]  ;;  %v20923_v58 = vld [vmem:[%s28146_s7 + $0x250] sm:$0xff] }
  0x26   :  { %28482 = vst [vmem:[#allocation80_spill] sm:$0xff] %v20913_v56  ;;  %28483 = vst [vmem:[#allocation81_spill] sm:$0xff] %v20918_v57  ;;  %v20928_v59 = vld [vmem:[%s28146_s7 + $0x258] sm:$0xff]  ;;  %v20933_v60 = vld [vmem:[%s28146_s7 + $0x260] sm:$0xff] }
  0x27   :  { %28484 = vst [vmem:[#allocation82_spill] sm:$0xff] %v20923_v58  ;;  %28485 = vst [vmem:[#allocation83_spill] sm:$0xff] %v20928_v59  ;;  %v20938_v61 = vld [vmem:[%s28146_s7 + $0x268] sm:$0xff]  ;;  %v20943_v62 = vld [vmem:[%s28146_s7 + $0x270] sm:$0xff] }
  0x28   :  { %28486 = vst [vmem:[#allocation84_spill] sm:$0xff] %v20933_v60  ;;  %28487 = vst [vmem:[#allocation85_spill] sm:$0xff] %v20938_v61  ;;  %v20948_v63 = vld [vmem:[%s28146_s7 + $0x278] sm:$0xff]  ;;  %v20953_v32 = vld [vmem:[%s28146_s7 + $0x280] sm:$0xff] }
  0x29   :  { %28488 = vst [vmem:[#allocation86_spill] sm:$0xff] %v20943_v62  ;;  %28489 = vst [vmem:[#allocation87_spill] sm:$0xff] %v20948_v63  ;;  %v20958_v33 = vld [vmem:[%s28146_s7 + $0x288] sm:$0xff]  ;;  %v20963_v34 = vld [vmem:[%s28146_s7 + $0x290] sm:$0xff] }
  0x2a   :  { %28490 = vst [vmem:[#allocation88_spill] sm:$0xff] %v20953_v32  ;;  %28491 = vst [vmem:[#allocation89_spill] sm:$0xff] %v20958_v33  ;;  %v20968_v35 = vld [vmem:[%s28146_s7 + $0x298] sm:$0xff]  ;;  %v20973_v36 = vld [vmem:[%s28146_s7 + $0x2a0] sm:$0xff] }
  0x2b   :  { %28492 = vst [vmem:[#allocation90_spill] sm:$0xff] %v20963_v34  ;;  %28493 = vst [vmem:[#allocation91_spill] sm:$0xff] %v20968_v35  ;;  %v20978_v37 = vld [vmem:[%s28146_s7 + $0x2a8] sm:$0xff]  ;;  %v20983_v38 = vld [vmem:[%s28146_s7 + $0x2b0] sm:$0xff] }
  0x2c   :  { %28494 = vst [vmem:[#allocation92_spill] sm:$0xff] %v20973_v36  ;;  %28495 = vst [vmem:[#allocation93_spill] sm:$0xff] %v20978_v37  ;;  %v20988_v39 = vld [vmem:[%s28146_s7 + $0x2b8] sm:$0xff]  ;;  %v20993_v40 = vld [vmem:[%s28146_s7 + $0x2c0] sm:$0xff] }
  0x2d   :  { %28496 = vst [vmem:[#allocation94_spill] sm:$0xff] %v20983_v38  ;;  %28497 = vst [vmem:[#allocation95_spill] sm:$0xff] %v20988_v39  ;;  %v20998_v41 = vld [vmem:[%s28146_s7 + $0x2c8] sm:$0xff]  ;;  %v21003_v42 = vld [vmem:[%s28146_s7 + $0x2d0] sm:$0xff] }
  0x2e   :  { %28498 = vst [vmem:[#allocation96_spill] sm:$0xff] %v20993_v40  ;;  %28499 = vst [vmem:[#allocation97_spill] sm:$0xff] %v20998_v41  ;;  %v21008_v43 = vld [vmem:[%s28146_s7 + $0x2d8] sm:$0xff]  ;;  %v21013_v32 = vld [vmem:[%s28146_s7 + $0x2e0] sm:$0xff] }
  0x2f   :  { %28500 = vst [vmem:[#allocation98_spill] sm:$0xff] %v21003_v42  ;;  %28501 = vst [vmem:[#allocation99_spill] sm:$0xff] %v21008_v43  ;;  %v21018_v33 = vld [vmem:[%s28146_s7 + $0x2e8] sm:$0xff]  ;;  %v21023_v44 = vld [vmem:[%s28146_s7 + $0x2f0] sm:$0xff] }
  0x30   :  { %28502 = vst [vmem:[#allocation100_spill] sm:$0xff] %v21013_v32  ;;  %28503 = vst [vmem:[#allocation101_spill] sm:$0xff] %v21018_v33  ;;  %v21028_v45 = vld [vmem:[%s28146_s7 + $0x2f8] sm:$0xff]  ;;  %v21033_v34 = vld [vmem:[%s28146_s7 + $0x300] sm:$0xff] }
  0x31   :  { %28504 = vst [vmem:[#allocation102_spill] sm:$0xff] %v21023_v44  ;;  %28505 = vst [vmem:[#allocation103_spill] sm:$0xff] %v21028_v45  ;;  %v21038_v35 = vld [vmem:[%s28146_s7 + $0x308] sm:$0xff]  ;;  %v21043_v46 = vld [vmem:[%s28146_s7 + $0x310] sm:$0xff] }
  0x32   :  { %28506 = vst [vmem:[#allocation104_spill] sm:$0xff] %v21033_v34  ;;  %28507 = vst [vmem:[#allocation105_spill] sm:$0xff] %v21038_v35  ;;  %v21048_v47 = vld [vmem:[%s28146_s7 + $0x318] sm:$0xff]  ;;  %v21053_v36 = vld [vmem:[%s28146_s7 + $0x320] sm:$0xff] }
  0x33   :  { %28508 = vst [vmem:[#allocation106_spill] sm:$0xff] %v21043_v46  ;;  %28509 = vst [vmem:[#allocation107_spill] sm:$0xff] %v21048_v47  ;;  %v21058_v34 = vld [vmem:[%s28146_s7 + $0x328] sm:$0xff]  ;;  %v21063_v35 = vld [vmem:[%s28146_s7 + $0x330] sm:$0xff] }
  0x34   :  { %28510 = vst [vmem:[#allocation108_spill] sm:$0xff] %v21053_v36  ;;  %28511 = vst [vmem:[#allocation109_spill] sm:$0xff] %v21058_v34  ;;  %v21068_v46 = vld [vmem:[%s28146_s7 + $0x338] sm:$0xff]  ;;  %v21073_v47 = vld [vmem:[%s28146_s7 + $0x340] sm:$0xff] }
  0x35   :  { %28512 = vst [vmem:[#allocation110_spill] sm:$0xff] %v21063_v35  ;;  %28513 = vst [vmem:[#allocation111_spill] sm:$0xff] %v21068_v46  ;;  %v21078_v36 = vld [vmem:[%s28146_s7 + $0x348] sm:$0xff]  ;;  %v21083_v34 = vld [vmem:[%s28146_s7 + $0x350] sm:$0xff] }
  0x36   :  { %28514 = vst [vmem:[#allocation112_spill] sm:$0xff] %v21073_v47  ;;  %28515 = vst [vmem:[#allocation113_spill] sm:$0xff] %v21078_v36  ;;  %v21088_v35 = vld [vmem:[%s28146_s7 + $0x358] sm:$0xff]  ;;  %v21093_v46 = vld [vmem:[%s28146_s7 + $0x360] sm:$0xff] }
  0x37   :  { %28516 = vst [vmem:[#allocation114_spill] sm:$0xff] %v21083_v34  ;;  %28517 = vst [vmem:[#allocation115_spill] sm:$0xff] %v21088_v35  ;;  %v21098_v47 = vld [vmem:[%s28146_s7 + $0x368] sm:$0xff]  ;;  %v21103_v36 = vld [vmem:[%s28146_s7 + $0x370] sm:$0xff] }
  0x38   :  { %28518 = vst [vmem:[#allocation116_spill] sm:$0xff] %v21093_v46  ;;  %28519 = vst [vmem:[#allocation117_spill] sm:$0xff] %v21098_v47  ;;  %v21108_v34 = vld [vmem:[%s28146_s7 + $0x378] sm:$0xff]  ;;  %v21113_v35 = vld [vmem:[%s28146_s7 + $0x380] sm:$0xff] }
  0x39   :  { %28520 = vst [vmem:[#allocation118_spill] sm:$0xff] %v21103_v36  ;;  %28521 = vst [vmem:[#allocation119_spill] sm:$0xff] %v21108_v34  ;;  %v21118_v46 = vld [vmem:[%s28146_s7 + $0x388] sm:$0xff]  ;;  %v21123_v47 = vld [vmem:[%s28146_s7 + $0x390] sm:$0xff] }
  0x3a   :  { %28522 = vst [vmem:[#allocation120_spill] sm:$0xff] %v21113_v35  ;;  %28523 = vst [vmem:[#allocation121_spill] sm:$0xff] %v21118_v46  ;;  %v21128_v36 = vld [vmem:[%s28146_s7 + $0x398] sm:$0xff]  ;;  %v21133_v34 = vld [vmem:[%s28146_s7 + $0x3a0] sm:$0xff] }
  0x3b   :  { %28524 = vst [vmem:[#allocation122_spill] sm:$0xff] %v21123_v47  ;;  %28525 = vst [vmem:[#allocation123_spill] sm:$0xff] %v21128_v36  ;;  %v21138_v35 = vld [vmem:[%s28146_s7 + $0x3a8] sm:$0xff]  ;;  %v21143_v46 = vld [vmem:[%s28146_s7 + $0x3b0] sm:$0xff] }
  0x3c   :  { %28526 = vst [vmem:[#allocation124_spill] sm:$0xff] %v21133_v34  ;;  %28527 = vst [vmem:[#allocation125_spill] sm:$0xff] %v21138_v35  ;;  %v21148_v47 = vld [vmem:[%s28146_s7 + $0x3b8] sm:$0xff]  ;;  %v21153_v36 = vld [vmem:[%s28146_s7 + $0x3c0] sm:$0xff] }
  0x3d   :  { %28528 = vst [vmem:[#allocation126_spill] sm:$0xff] %v21143_v46  ;;  %28529 = vst [vmem:[#allocation127_spill] sm:$0xff] %v21148_v47  ;;  %v21158_v34 = vld [vmem:[%s28146_s7 + $0x3c8] sm:$0xff]  ;;  %v21163_v35 = vld [vmem:[%s28146_s7 + $0x3d0] sm:$0xff] }
  0x3e   :  { %28530 = vst [vmem:[#allocation128_spill] sm:$0xff] %v21153_v36  ;;  %28531 = vst [vmem:[#allocation129_spill] sm:$0xff] %v21158_v34  ;;  %v21168_v46 = vld [vmem:[%s28146_s7 + $0x3d8] sm:$0xff]  ;;  %v21173_v47 = vld [vmem:[%s28146_s7 + $0x3e0] sm:$0xff] }
  0x3f   :  { %28532 = vst [vmem:[#allocation130_spill] sm:$0xff] %v21163_v35  ;;  %28533 = vst [vmem:[#allocation131_spill] sm:$0xff] %v21168_v46  ;;  %v21178_v36 = vld [vmem:[%s28146_s7 + $0x3e8] sm:$0xff]  ;;  %v21183_v34 = vld [vmem:[%s28146_s7 + $0x3f0] sm:$0xff] }
  0x40   :  { %28534 = vst [vmem:[#allocation132_spill] sm:$0xff] %v21173_v47  ;;  %28535 = vst [vmem:[#allocation133_spill] sm:$0xff] %v21178_v36  ;;  %v21188_v35 = vld [vmem:[%s28146_s7 + $0x3f8] sm:$0xff]  ;;  %v21193_v46 = vld [vmem:[%s28146_s7 + $0x400] sm:$0xff] }
  0x41   :  { %28536 = vst [vmem:[#allocation134_spill] sm:$0xff] %v21183_v34  ;;  %28537 = vst [vmem:[#allocation135_spill] sm:$0xff] %v21188_v35  ;;  %v21198_v47 = vld [vmem:[%s28146_s7 + $0x408] sm:$0xff]  ;;  %v21203_v36 = vld [vmem:[%s28146_s7 + $0x410] sm:$0xff] }
  0x42   :  { %28538 = vst [vmem:[#allocation136_spill] sm:$0xff] %v21193_v46  ;;  %28539 = vst [vmem:[#allocation137_spill] sm:$0xff] %v21198_v47  ;;  %v21208_v34 = vld [vmem:[%s28146_s7 + $0x418] sm:$0xff]  ;;  %v21213_v35 = vld [vmem:[%s28146_s7 + $0x420] sm:$0xff] }
  0x43   :  { %28540 = vst [vmem:[#allocation138_spill] sm:$0xff] %v21203_v36  ;;  %28541 = vst [vmem:[#allocation139_spill] sm:$0xff] %v21208_v34  ;;  %v21218_v46 = vld [vmem:[%s28146_s7 + $0x428] sm:$0xff]  ;;  %v21223_v47 = vld [vmem:[%s28146_s7 + $0x430] sm:$0xff] }
  0x44   :  { %28542 = vst [vmem:[#allocation140_spill] sm:$0xff] %v21213_v35  ;;  %28543 = vst [vmem:[#allocation141_spill] sm:$0xff] %v21218_v46  ;;  %v21228_v36 = vld [vmem:[%s28146_s7 + $0x438] sm:$0xff]  ;;  %v21233_v34 = vld [vmem:[%s28146_s7 + $0x440] sm:$0xff] }
  0x45   :  { %28544 = vst [vmem:[#allocation142_spill] sm:$0xff] %v21223_v47  ;;  %28545 = vst [vmem:[#allocation143_spill] sm:$0xff] %v21228_v36  ;;  %v21238_v35 = vld [vmem:[%s28146_s7 + $0x448] sm:$0xff]  ;;  %v21243_v46 = vld [vmem:[%s28146_s7 + $0x450] sm:$0xff] }
  0x46   :  { %28546 = vst [vmem:[#allocation144_spill] sm:$0xff] %v21233_v34  ;;  %28547 = vst [vmem:[#allocation145_spill] sm:$0xff] %v21238_v35  ;;  %v21248_v47 = vld [vmem:[%s28146_s7 + $0x458] sm:$0xff]  ;;  %v21253_v36 = vld [vmem:[%s28146_s7 + $0x460] sm:$0xff] }
  0x47   :  { %28548 = vst [vmem:[#allocation146_spill] sm:$0xff] %v21243_v46  ;;  %28549 = vst [vmem:[#allocation147_spill] sm:$0xff] %v21248_v47  ;;  %v21258_v34 = vld [vmem:[%s28146_s7 + $0x468] sm:$0xff]  ;;  %v21263_v35 = vld [vmem:[%s28146_s7 + $0x470] sm:$0xff] }
  0x48   :  { %28550 = vst [vmem:[#allocation148_spill] sm:$0xff] %v21253_v36  ;;  %28551 = vst [vmem:[#allocation149_spill] sm:$0xff] %v21258_v34  ;;  %v21268_v46 = vld [vmem:[%s28146_s7 + $0x478] sm:$0xff]  ;;  %v21273_v47 = vld [vmem:[%s28146_s7 + $0x480] sm:$0xff] }
  0x49   :  { %28552 = vst [vmem:[#allocation150_spill] sm:$0xff] %v21263_v35  ;;  %28553 = vst [vmem:[#allocation151_spill] sm:$0xff] %v21268_v46  ;;  %v21278_v36 = vld [vmem:[%s28146_s7 + $0x488] sm:$0xff]  ;;  %v21283_v34 = vld [vmem:[%s28146_s7 + $0x490] sm:$0xff] }
  0x4a   :  { %28554 = vst [vmem:[#allocation152_spill] sm:$0xff] %v21273_v47  ;;  %28555 = vst [vmem:[#allocation153_spill] sm:$0xff] %v21278_v36  ;;  %v21288_v35 = vld [vmem:[%s28146_s7 + $0x498] sm:$0xff]  ;;  %v21293_v46 = vld [vmem:[%s28146_s7 + $0x4a0] sm:$0xff] }
  0x4b   :  { %28556 = vst [vmem:[#allocation154_spill] sm:$0xff] %v21283_v34  ;;  %28557 = vst [vmem:[#allocation155_spill] sm:$0xff] %v21288_v35  ;;  %v21298_v47 = vld [vmem:[%s28146_s7 + $0x4a8] sm:$0xff]  ;;  %v21303_v36 = vld [vmem:[%s28146_s7 + $0x4b0] sm:$0xff] }
  0x4c   :  { %28558 = vst [vmem:[#allocation156_spill] sm:$0xff] %v21293_v46  ;;  %28559 = vst [vmem:[#allocation157_spill] sm:$0xff] %v21298_v47  ;;  %v21308_v34 = vld [vmem:[%s28146_s7 + $0x4b8] sm:$0xff]  ;;  %v21313_v35 = vld [vmem:[%s28146_s7 + $0x4c0] sm:$0xff] }
  0x4d   :  { %28560 = vst [vmem:[#allocation158_spill] sm:$0xff] %v21303_v36  ;;  %28561 = vst [vmem:[#allocation159_spill] sm:$0xff] %v21308_v34  ;;  %v21318_v46 = vld [vmem:[%s28146_s7 + $0x4c8] sm:$0xff]  ;;  %v21323_v47 = vld [vmem:[%s28146_s7 + $0x4d0] sm:$0xff] }
  0x4e   :  { %28562 = vst [vmem:[#allocation160_spill] sm:$0xff] %v21313_v35  ;;  %28563 = vst [vmem:[#allocation161_spill] sm:$0xff] %v21318_v46  ;;  %v21328_v36 = vld [vmem:[%s28146_s7 + $0x4d8] sm:$0xff]  ;;  %v21333_v34 = vld [vmem:[%s28146_s7 + $0x4e0] sm:$0xff] }
  0x4f   :  { %28564 = vst [vmem:[#allocation162_spill] sm:$0xff] %v21323_v47  ;;  %28565 = vst [vmem:[#allocation163_spill] sm:$0xff] %v21328_v36  ;;  %v21338_v35 = vld [vmem:[%s28146_s7 + $0x4e8] sm:$0xff]  ;;  %v21343_v46 = vld [vmem:[%s28146_s7 + $0x4f0] sm:$0xff] }
  0x50   :  { %28566 = vst [vmem:[#allocation164_spill] sm:$0xff] %v21333_v34  ;;  %28567 = vst [vmem:[#allocation165_spill] sm:$0xff] %v21338_v35  ;;  %v21348_v47 = vld [vmem:[%s28146_s7 + $0x4f8] sm:$0xff]  ;;  %v21353_v36 = vld [vmem:[%s28146_s7 + $0x500] sm:$0xff] }
  0x51   :  { %28568 = vst [vmem:[#allocation166_spill] sm:$0xff] %v21343_v46  ;;  %28569 = vst [vmem:[#allocation167_spill] sm:$0xff] %v21348_v47  ;;  %v21358_v34 = vld [vmem:[%s28146_s7 + $0x508] sm:$0xff]  ;;  %v21363_v35 = vld [vmem:[%s28146_s7 + $0x510] sm:$0xff] }
  0x52   :  { %28570 = vst [vmem:[#allocation168_spill] sm:$0xff] %v21353_v36  ;;  %28571 = vst [vmem:[#allocation169_spill] sm:$0xff] %v21358_v34  ;;  %v21368_v46 = vld [vmem:[%s28146_s7 + $0x518] sm:$0xff]  ;;  %v21373_v47 = vld [vmem:[%s28146_s7 + $0x520] sm:$0xff] }
  0x53   :  { %28572 = vst [vmem:[#allocation170_spill] sm:$0xff] %v21363_v35  ;;  %28573 = vst [vmem:[#allocation171_spill] sm:$0xff] %v21368_v46  ;;  %v21378_v36 = vld [vmem:[%s28146_s7 + $0x528] sm:$0xff]  ;;  %v21383_v34 = vld [vmem:[%s28146_s7 + $0x530] sm:$0xff] }
  0x54   :  { %28574 = vst [vmem:[#allocation172_spill] sm:$0xff] %v21373_v47  ;;  %28575 = vst [vmem:[#allocation173_spill] sm:$0xff] %v21378_v36  ;;  %v21388_v35 = vld [vmem:[%s28146_s7 + $0x538] sm:$0xff]  ;;  %v21393_v46 = vld [vmem:[%s28146_s7 + $0x540] sm:$0xff] }
  0x55   :  { %28576 = vst [vmem:[#allocation174_spill] sm:$0xff] %v21383_v34  ;;  %28577 = vst [vmem:[#allocation175_spill] sm:$0xff] %v21388_v35  ;;  %v21398_v47 = vld [vmem:[%s28146_s7 + $0x548] sm:$0xff]  ;;  %v21403_v36 = vld [vmem:[%s28146_s7 + $0x550] sm:$0xff] }
  0x56   :  { %28578 = vst [vmem:[#allocation176_spill] sm:$0xff] %v21393_v46  ;;  %28579 = vst [vmem:[#allocation177_spill] sm:$0xff] %v21398_v47  ;;  %v21408_v34 = vld [vmem:[%s28146_s7 + $0x558] sm:$0xff]  ;;  %v21413_v35 = vld [vmem:[%s28146_s7 + $0x560] sm:$0xff] }
  0x57   :  { %28580 = vst [vmem:[#allocation178_spill] sm:$0xff] %v21403_v36  ;;  %28581 = vst [vmem:[#allocation179_spill] sm:$0xff] %v21408_v34  ;;  %v21418_v46 = vld [vmem:[%s28146_s7 + $0x568] sm:$0xff]  ;;  %v21423_v47 = vld [vmem:[%s28146_s7 + $0x570] sm:$0xff] }
  0x58   :  { %28582 = vst [vmem:[#allocation180_spill] sm:$0xff] %v21413_v35  ;;  %28583 = vst [vmem:[#allocation181_spill] sm:$0xff] %v21418_v46  ;;  %v21428_v36 = vld [vmem:[%s28146_s7 + $0x578] sm:$0xff]  ;;  %v21433_v34 = vld [vmem:[%s28146_s7 + $0x580] sm:$0xff] }
  0x59   :  { %28584 = vst [vmem:[#allocation182_spill] sm:$0xff] %v21423_v47  ;;  %28585 = vst [vmem:[#allocation183_spill] sm:$0xff] %v21428_v36  ;;  %v21438_v35 = vld [vmem:[%s28146_s7 + $0x588] sm:$0xff]  ;;  %v21443_v46 = vld [vmem:[%s28146_s7 + $0x590] sm:$0xff] }
  0x5a   :  { %28586 = vst [vmem:[#allocation184_spill] sm:$0xff] %v21433_v34  ;;  %28587 = vst [vmem:[#allocation185_spill] sm:$0xff] %v21438_v35  ;;  %v21448_v47 = vld [vmem:[%s28146_s7 + $0x598] sm:$0xff]  ;;  %v21453_v36 = vld [vmem:[%s28146_s7 + $0x5a0] sm:$0xff] }
  0x5b   :  { %28588 = vst [vmem:[#allocation186_spill] sm:$0xff] %v21443_v46  ;;  %28589 = vst [vmem:[#allocation187_spill] sm:$0xff] %v21448_v47  ;;  %v21458_v34 = vld [vmem:[%s28146_s7 + $0x5a8] sm:$0xff]  ;;  %v21463_v35 = vld [vmem:[%s28146_s7 + $0x5b0] sm:$0xff] }
  0x5c   :  { %28590 = vst [vmem:[#allocation188_spill] sm:$0xff] %v21453_v36  ;;  %28591 = vst [vmem:[#allocation189_spill] sm:$0xff] %v21458_v34  ;;  %v21468_v46 = vld [vmem:[%s28146_s7 + $0x5b8] sm:$0xff]  ;;  %v21473_v47 = vld [vmem:[%s28146_s7 + $0x5c0] sm:$0xff] }
  0x5d   :  { %28592 = vst [vmem:[#allocation190_spill] sm:$0xff] %v21463_v35  ;;  %28593 = vst [vmem:[#allocation191_spill] sm:$0xff] %v21468_v46  ;;  %v21478_v36 = vld [vmem:[%s28146_s7 + $0x5c8] sm:$0xff]  ;;  %v21483_v34 = vld [vmem:[%s28146_s7 + $0x5d0] sm:$0xff] }
  0x5e   :  { %28594 = vst [vmem:[#allocation192_spill] sm:$0xff] %v21473_v47  ;;  %28595 = vst [vmem:[#allocation193_spill] sm:$0xff] %v21478_v36  ;;  %v21488_v35 = vld [vmem:[%s28146_s7 + $0x5d8] sm:$0xff]  ;;  %v21493_v46 = vld [vmem:[%s28146_s7 + $0x5e0] sm:$0xff] }
  0x5f   :  { %28596 = vst [vmem:[#allocation194_spill] sm:$0xff] %v21483_v34  ;;  %28597 = vst [vmem:[#allocation195_spill] sm:$0xff] %v21488_v35  ;;  %v21498_v47 = vld [vmem:[%s28146_s7 + $0x5e8] sm:$0xff]  ;;  %v21503_v36 = vld [vmem:[%s28146_s7 + $0x5f0] sm:$0xff] }
  0x60   :  { %28598 = vst [vmem:[#allocation196_spill] sm:$0xff] %v21493_v46  ;;  %28599 = vst [vmem:[#allocation197_spill] sm:$0xff] %v21498_v47  ;;  %v21508_v34 = vld [vmem:[%s28146_s7 + $0x5f8] sm:$0xff]  ;;  %v21513_v35 = vld [vmem:[%s28146_s7 + $0x600] sm:$0xff] }
  0x61   :  { %28600 = vst [vmem:[#allocation198_spill] sm:$0xff] %v21503_v36  ;;  %28601 = vst [vmem:[#allocation199_spill] sm:$0xff] %v21508_v34  ;;  %v21518_v46 = vld [vmem:[%s28146_s7 + $0x608] sm:$0xff]  ;;  %v21523_v47 = vld [vmem:[%s28146_s7 + $0x610] sm:$0xff] }
  0x62   :  { %28602 = vst [vmem:[#allocation200_spill] sm:$0xff] %v21513_v35  ;;  %28603 = vst [vmem:[#allocation201_spill] sm:$0xff] %v21518_v46  ;;  %v21528_v36 = vld [vmem:[%s28146_s7 + $0x618] sm:$0xff]  ;;  %v21533_v34 = vld [vmem:[%s28146_s7 + $0x620] sm:$0xff] }
  0x63   :  { %28604 = vst [vmem:[#allocation202_spill] sm:$0xff] %v21523_v47  ;;  %28605 = vst [vmem:[#allocation203_spill] sm:$0xff] %v21528_v36  ;;  %v21538_v35 = vld [vmem:[%s28146_s7 + $0x628] sm:$0xff]  ;;  %v21543_v46 = vld [vmem:[%s28146_s7 + $0x630] sm:$0xff] }
  0x64   :  { %28606 = vst [vmem:[#allocation204_spill] sm:$0xff] %v21533_v34  ;;  %28607 = vst [vmem:[#allocation205_spill] sm:$0xff] %v21538_v35  ;;  %v21548_v47 = vld [vmem:[%s28146_s7 + $0x638] sm:$0xff]  ;;  %v21553_v36 = vld [vmem:[%s28146_s7 + $0x640] sm:$0xff] }
  0x65   :  { %28608 = vst [vmem:[#allocation206_spill] sm:$0xff] %v21543_v46  ;;  %28609 = vst [vmem:[#allocation207_spill] sm:$0xff] %v21548_v47  ;;  %v21558_v34 = vld [vmem:[%s28146_s7 + $0x648] sm:$0xff]  ;;  %v21563_v35 = vld [vmem:[%s28146_s7 + $0x650] sm:$0xff] }
  0x66   :  { %28610 = vst [vmem:[#allocation208_spill] sm:$0xff] %v21553_v36  ;;  %28611 = vst [vmem:[#allocation209_spill] sm:$0xff] %v21558_v34  ;;  %v21568_v46 = vld [vmem:[%s28146_s7 + $0x658] sm:$0xff]  ;;  %v21573_v47 = vld [vmem:[%s28146_s7 + $0x660] sm:$0xff] }
  0x67   :  { %28612 = vst [vmem:[#allocation210_spill] sm:$0xff] %v21563_v35  ;;  %28613 = vst [vmem:[#allocation211_spill] sm:$0xff] %v21568_v46  ;;  %v21578_v36 = vld [vmem:[%s28146_s7 + $0x668] sm:$0xff]  ;;  %v21583_v34 = vld [vmem:[%s28146_s7 + $0x670] sm:$0xff] }
  0x68   :  { %28614 = vst [vmem:[#allocation212_spill] sm:$0xff] %v21573_v47  ;;  %28615 = vst [vmem:[#allocation213_spill] sm:$0xff] %v21578_v36  ;;  %v21588_v35 = vld [vmem:[%s28146_s7 + $0x678] sm:$0xff]  ;;  %v21593_v46 = vld [vmem:[%s28146_s7 + $0x680] sm:$0xff] }
  0x69   :  { %28616 = vst [vmem:[#allocation214_spill] sm:$0xff] %v21583_v34  ;;  %28617 = vst [vmem:[#allocation215_spill] sm:$0xff] %v21588_v35  ;;  %v21598_v47 = vld [vmem:[%s28146_s7 + $0x688] sm:$0xff]  ;;  %v21603_v36 = vld [vmem:[%s28146_s7 + $0x690] sm:$0xff] }
  0x6a   :  { %28618 = vst [vmem:[#allocation216_spill] sm:$0xff] %v21593_v46  ;;  %28619 = vst [vmem:[#allocation217_spill] sm:$0xff] %v21598_v47  ;;  %v21608_v34 = vld [vmem:[%s28146_s7 + $0x698] sm:$0xff]  ;;  %v21613_v35 = vld [vmem:[%s28146_s7 + $0x6a0] sm:$0xff] }
  0x6b   :  { %28620 = vst [vmem:[#allocation218_spill] sm:$0xff] %v21603_v36  ;;  %28621 = vst [vmem:[#allocation219_spill] sm:$0xff] %v21608_v34  ;;  %v21618_v46 = vld [vmem:[%s28146_s7 + $0x6a8] sm:$0xff]  ;;  %v21623_v47 = vld [vmem:[%s28146_s7 + $0x6b0] sm:$0xff] }
  0x6c   :  { %28622 = vst [vmem:[#allocation220_spill] sm:$0xff] %v21613_v35  ;;  %28623 = vst [vmem:[#allocation221_spill] sm:$0xff] %v21618_v46  ;;  %v21628_v36 = vld [vmem:[%s28146_s7 + $0x6b8] sm:$0xff]  ;;  %v21633_v34 = vld [vmem:[%s28146_s7 + $0x6c0] sm:$0xff] }
  0x6d   :  { %28624 = vst [vmem:[#allocation222_spill] sm:$0xff] %v21623_v47  ;;  %28625 = vst [vmem:[#allocation223_spill] sm:$0xff] %v21628_v36  ;;  %v21638_v35 = vld [vmem:[%s28146_s7 + $0x6c8] sm:$0xff]  ;;  %v21643_v46 = vld [vmem:[%s28146_s7 + $0x6d0] sm:$0xff] }
  0x6e   :  { %28626 = vst [vmem:[#allocation224_spill] sm:$0xff] %v21633_v34  ;;  %28627 = vst [vmem:[#allocation225_spill] sm:$0xff] %v21638_v35  ;;  %v21648_v47 = vld [vmem:[%s28146_s7 + $0x6d8] sm:$0xff]  ;;  %v21653_v36 = vld [vmem:[%s28146_s7 + $0x6e0] sm:$0xff] }
  0x6f   :  { %28628 = vst [vmem:[#allocation226_spill] sm:$0xff] %v21643_v46  ;;  %28629 = vst [vmem:[#allocation227_spill] sm:$0xff] %v21648_v47  ;;  %v21658_v34 = vld [vmem:[%s28146_s7 + $0x6e8] sm:$0xff]  ;;  %v21663_v35 = vld [vmem:[%s28146_s7 + $0x6f0] sm:$0xff] }
  0x70   :  { %28630 = vst [vmem:[#allocation228_spill] sm:$0xff] %v21653_v36  ;;  %28631 = vst [vmem:[#allocation229_spill] sm:$0xff] %v21658_v34  ;;  %v21668_v46 = vld [vmem:[%s28146_s7 + $0x6f8] sm:$0xff]  ;;  %v21673_v47 = vld [vmem:[%s28146_s7 + $0x700] sm:$0xff] }
  0x71   :  { %28632 = vst [vmem:[#allocation230_spill] sm:$0xff] %v21663_v35  ;;  %28633 = vst [vmem:[#allocation231_spill] sm:$0xff] %v21668_v46  ;;  %v21678_v36 = vld [vmem:[%s28146_s7 + $0x708] sm:$0xff]  ;;  %v21683_v34 = vld [vmem:[%s28146_s7 + $0x710] sm:$0xff] }
  0x72   :  { %28634 = vst [vmem:[#allocation232_spill] sm:$0xff] %v21673_v47  ;;  %28635 = vst [vmem:[#allocation233_spill] sm:$0xff] %v21678_v36  ;;  %v21688_v35 = vld [vmem:[%s28146_s7 + $0x718] sm:$0xff]  ;;  %v21693_v46 = vld [vmem:[%s28146_s7 + $0x720] sm:$0xff] }
  0x73   :  { %28636 = vst [vmem:[#allocation234_spill] sm:$0xff] %v21683_v34  ;;  %28637 = vst [vmem:[#allocation235_spill] sm:$0xff] %v21688_v35  ;;  %v21698_v47 = vld [vmem:[%s28146_s7 + $0x728] sm:$0xff]  ;;  %v21703_v36 = vld [vmem:[%s28146_s7 + $0x730] sm:$0xff] }
  0x74   :  { %28638 = vst [vmem:[#allocation236_spill] sm:$0xff] %v21693_v46  ;;  %28639 = vst [vmem:[#allocation237_spill] sm:$0xff] %v21698_v47  ;;  %v21708_v34 = vld [vmem:[%s28146_s7 + $0x738] sm:$0xff]  ;;  %v21713_v35 = vld [vmem:[%s28146_s7 + $0x740] sm:$0xff] }
  0x75   :  { %28640 = vst [vmem:[#allocation238_spill] sm:$0xff] %v21703_v36  ;;  %28641 = vst [vmem:[#allocation239_spill] sm:$0xff] %v21708_v34  ;;  %v21718_v46 = vld [vmem:[%s28146_s7 + $0x748] sm:$0xff]  ;;  %v21723_v47 = vld [vmem:[%s28146_s7 + $0x750] sm:$0xff] }
  0x76   :  { %28642 = vst [vmem:[#allocation240_spill] sm:$0xff] %v21713_v35  ;;  %28643 = vst [vmem:[#allocation241_spill] sm:$0xff] %v21718_v46  ;;  %v21728_v36 = vld [vmem:[%s28146_s7 + $0x758] sm:$0xff]  ;;  %v21733_v34 = vld [vmem:[%s28146_s7 + $0x760] sm:$0xff] }
  0x77   :  { %28644 = vst [vmem:[#allocation242_spill] sm:$0xff] %v21723_v47  ;;  %28645 = vst [vmem:[#allocation243_spill] sm:$0xff] %v21728_v36  ;;  %v21738_v35 = vld [vmem:[%s28146_s7 + $0x768] sm:$0xff]  ;;  %v21743_v46 = vld [vmem:[%s28146_s7 + $0x770] sm:$0xff] }
  0x78   :  { %28646 = vst [vmem:[#allocation244_spill] sm:$0xff] %v21733_v34  ;;  %28647 = vst [vmem:[#allocation245_spill] sm:$0xff] %v21738_v35  ;;  %v21748_v47 = vld [vmem:[%s28146_s7 + $0x778] sm:$0xff]  ;;  %v21753_v36 = vld [vmem:[%s28146_s7 + $0x780] sm:$0xff] }
  0x79   :  { %28648 = vst [vmem:[#allocation246_spill] sm:$0xff] %v21743_v46  ;;  %28649 = vst [vmem:[#allocation247_spill] sm:$0xff] %v21748_v47  ;;  %v21758_v34 = vld [vmem:[%s28146_s7 + $0x788] sm:$0xff]  ;;  %v21763_v35 = vld [vmem:[%s28146_s7 + $0x790] sm:$0xff] }
  0x7a   :  { %28650 = vst [vmem:[#allocation248_spill] sm:$0xff] %v21753_v36  ;;  %28651 = vst [vmem:[#allocation249_spill] sm:$0xff] %v21758_v34  ;;  %v21768_v46 = vld [vmem:[%s28146_s7 + $0x798] sm:$0xff]  ;;  %v21773_v47 = vld [vmem:[%s28146_s7 + $0x7a0] sm:$0xff] }
  0x7b   :  { %28652 = vst [vmem:[#allocation250_spill] sm:$0xff] %v21763_v35  ;;  %28653 = vst [vmem:[#allocation251_spill] sm:$0xff] %v21768_v46  ;;  %v21778_v36 = vld [vmem:[%s28146_s7 + $0x7a8] sm:$0xff]  ;;  %v21783_v34 = vld [vmem:[%s28146_s7 + $0x7b0] sm:$0xff] }
  0x7c   :  { %28654 = vst [vmem:[#allocation252_spill] sm:$0xff] %v21773_v47  ;;  %28655 = vst [vmem:[#allocation253_spill] sm:$0xff] %v21778_v36  ;;  %v21788_v35 = vld [vmem:[%s28146_s7 + $0x7b8] sm:$0xff]  ;;  %v21793_v46 = vld [vmem:[%s28146_s7 + $0x7c0] sm:$0xff] }
  0x7d   :  { %28656 = vst [vmem:[#allocation254_spill] sm:$0xff] %v21783_v34  ;;  %28657 = vst [vmem:[#allocation255_spill] sm:$0xff] %v21788_v35  ;;  %v21798_v47 = vld [vmem:[%s28146_s7 + $0x7c8] sm:$0xff]  ;;  %v21803_v36 = vld [vmem:[%s28146_s7 + $0x7d0] sm:$0xff] }
  0x7e   :  { %28658 = vst [vmem:[#allocation256_spill] sm:$0xff] %v21793_v46  ;;  %28659 = vst [vmem:[#allocation257_spill] sm:$0xff] %v21798_v47  ;;  %v21808_v34 = vld [vmem:[%s28146_s7 + $0x7d8] sm:$0xff]  ;;  %v21813_v35 = vld [vmem:[%s28146_s7 + $0x7e0] sm:$0xff] }
  0x7f   :  { %28660 = vst [vmem:[#allocation258_spill] sm:$0xff] %v21803_v36  ;;  %28661 = vst [vmem:[#allocation259_spill] sm:$0xff] %v21808_v34  ;;  %v21818_v46 = vld [vmem:[%s28146_s7 + $0x7e8] sm:$0xff]  ;;  %v21823_v47 = vld [vmem:[%s28146_s7 + $0x7f0] sm:$0xff] }
  0x80   :  { %28662 = vst [vmem:[#allocation260_spill] sm:$0xff] %v21813_v35  ;;  %28663 = vst [vmem:[#allocation261_spill] sm:$0xff] %v21818_v46  ;;  %v21828_v36 = vld [vmem:[%s28146_s7 + $0x7f8] sm:$0xff]  ;;  %v3491_v34 = vld [vmem:[%s28140_s1 + $0x90] sm:$0xff] }
  0x81   :  { %28664 = vst [vmem:[#allocation262_spill] sm:$0xff] %v21823_v47  ;;  %28665 = vst [vmem:[#allocation263_spill] sm:$0xff] %v21828_v36  ;;  %v3489_v35 = vld [vmem:[%s28140_s1 + $0x80] sm:$0xff] }
  0x82   :  { %589 = vsyncadd [#allocation5], 32768  ;;  %v28350_v46 = vmov 0   ;;  %v19917_v47 = vld [vmem:[%s28141_s2 + $0x18] sm:$0xff]   ;;  %v3490_v37 = vld [vmem:[%s28140_s1 + $0x88] sm:$0xff]  ;;  %vm1519_vm0 = vcmask 523264  }
  0x83   :  { %19916 = vset.pattern.permute.xlu1 %v28350_v46  ;;  %19915 = vset.pattern.permute.xlu0 %v28350_v46  ;;  %v3492_v36 = vld [vmem:[%s28140_s1 + $0x98] sm:$0xff]  ;;  %v19918_v16 = vld [vmem:[%s28141_s2 + $0x10] sm:$0xff]   ;;  %v3493_v46 = vld [vmem:[%s28140_s1 + $0xa0] sm:$0xff]  ;;  %vm5415_vm1 = vcmask 261120  }
  0x84   :  { %3821 = vperm.xlu1 %19916, %v3491_v34   ;;  %3811 = vperm.xlu0 %19915, %v3489_v35   ;;  %v19919_v34 = vld [vmem:[%s28141_s2 + $0x8] sm:$0xff]   ;;  %v19951_v38 = vld [vmem:[%s28139_s0 + $0xf0] sm:$0xff]   ;;  %v3544_v20 = vld [vmem:[%s28140_s1 + $0x238] sm:$0xff] }
  0x85   :  { %18990 = vmatprep.subr.bf16.mxu0 %v19917_v47  ;;  %v3494_v35 = vld [vmem:[%s28140_s1 + $0xa8] sm:$0xff]  ;;  %v19982_v19 = vld [vmem:[%s28142_s3 + $0x10] sm:$0xff]   ;;  %v3548_v23 = vld [vmem:[%s28140_s1 + $0x258] sm:$0xff] }
  0x86   :  { %18991 = vmatpush3.bf16.msra.mxu0 %v19917_v47  ;;  %v19921_v47 = vld [vmem:[%s28139_s0] sm:$0xff]   ;;  %v3498_v17 = vld [vmem:[%s28140_s1 + $0xc8] sm:$0xff]  ;;  %v3552_v24 = vld [vmem:[%s28140_s1 + $0x278] sm:$0xff] }
  0x87   :  { %18992 = vmatprep.subr.bf16.mxu0 %v19918_v16  ;;  %18998 = vmatprep.mubr.msk.bf16.mxu0 %vm1519_vm0, %v19921_v47  ;;  %v3500_v47 = vld [vmem:[%s28140_s1 + $0xd8] sm:$0xff]  ;;  %v19954_v42 = vld [vmem:[%s28139_s0 + $0x108] sm:$0xff]   ;;  %v19971_v58 = vld [vmem:[%s28139_s0 + $0x190] sm:$0xff]  }
  0x88   :  { %3826 = vperm.xlu1 %19916, %v3492_v36   ;;  %3816 = vperm.xlu0 %19915, %v3490_v37   ;;  %v19920_v36 = vld [vmem:[%s28141_s2] sm:$0xff]   ;;  %v3496_v37 = vld [vmem:[%s28140_s1 + $0xb8] sm:$0xff]  ;;  %v3579_v7 = vld [vmem:[%s28140_s1 + $0x350] sm:$0xff] }
  0x89   :  { %v3556_v26 = vld [vmem:[%s28140_s1 + $0x298] sm:$0xff]  ;;  %v19973_v8 = vld [vmem:[%s28139_s0 + $0x1a0] sm:$0xff]  }
  0x8a   :  { %18993 = vmatpush3.bf16.msra.mxu0 %v19918_v16  ;;  %v3495_v16 = vld [vmem:[%s28140_s1 + $0xb0] sm:$0xff]  ;;  %v3560_v28 = vld [vmem:[%s28140_s1 + $0x2b8] sm:$0xff] }
  0x8b   :  { %18994 = vmatprep.subr.bf16.mxu0 %v19919_v34  ;;  %v3564_v30 = vld [vmem:[%s28140_s1 + $0x2d8] sm:$0xff] }
  0x8c   :  { %3836 = vperm.xlu1 %19916, %v3494_v35   ;;  %3831 = vperm.xlu0 %19915, %v3493_v46   ;;  %v3497_v46 = vld [vmem:[%s28140_s1 + $0xc0] sm:$0xff]  ;;  %v19922_v35 = vld [vmem:[%s28139_s0 + $0x8] sm:$0xff]   ;;  %v3568_v0 = vld [vmem:[%s28140_s1 + $0x2f8] sm:$0xff] }
  0x8d   :  { %v3572_v2 = vld [vmem:[%s28140_s1 + $0x318] sm:$0xff] }
  0x8e   :  { %18995 = vmatpush3.bf16.msra.mxu0 %v19919_v34  ;;  %v19923_v34 = vld [vmem:[%s28139_s0 + $0x10] sm:$0xff]   ;;  %v3576_v4 = vld [vmem:[%s28140_s1 + $0x338] sm:$0xff] }
  0x8f   :  { %18996 = vmatprep.subr.bf16.mxu0 %v19920_v36 }
  0x90   :  { %3846 = vperm.xlu1 %19916, %v3496_v37   ;;  %3841 = vperm.xlu0 %19915, %v3495_v16   ;;  %v3499_v37 = vld [vmem:[%s28140_s1 + $0xd0] sm:$0xff]  ;;  %v19924_v16 = vld [vmem:[%s28139_s0 + $0x18] sm:$0xff]  }
  0x92   :  { %18997 = vmatpush3.bf16.msra.mxu0 %v19920_v36  ;;  %v3502_v36 = vld [vmem:[%s28140_s1 + $0xe8] sm:$0xff] }
  0x94   :  { %3856 = vperm.xlu1 %19916, %v3498_v17   ;;  %3851 = vperm.xlu0 %19915, %v3497_v46   ;;  %v3501_v17 = vld [vmem:[%s28140_s1 + $0xe0] sm:$0xff] }
  0x95   :  { %18999 = vmatmul.mubr.msk.bf16.vlgmr.msra.gmra.mxu0 %vm1519_vm0, %v19922_v35  ;;  %v19925_v46 = vld [vmem:[%s28139_s0 + $0x20] sm:$0xff]   ;;  %v3504_v35 = vld [vmem:[%s28140_s1 + $0xf8] sm:$0xff] }
  0x96   :  { %19002 = vmatprep.mubr.msk.bf16.mxu0 %vm1519_vm0, %v19923_v34  ;;  %v3503_v34 = vld [vmem:[%s28140_s1 + $0xf0] sm:$0xff] }
  0x98   :  { %3866 = vperm.xlu1 %19916, %v3500_v47   ;;  %3861 = vperm.xlu0 %19915, %v3499_v37   ;;  %v3474_v47 = vld [vmem:[%s28140_s1 + $0x8] sm:$0xff]  ;;  %v3473_v37 = vld [vmem:[%s28140_s1] sm:$0xff] }
  0x9c   :  { %3876 = vperm.xlu1 %19916, %v3502_v36   ;;  %3871 = vperm.xlu0 %19915, %v3501_v17   ;;  %v19926_v36 = vld [vmem:[%s28139_s0 + $0x28] sm:$0xff]   ;;  %v19927_v17 = vld [vmem:[%s28139_s0 + $0x30] sm:$0xff]  }
  0x9d   :  { %19003 = vmatmul.mubr.msk.bf16.gmra.mxu0 %vm1519_vm0, %v19924_v16  ;;  %v3476_v16 = vld [vmem:[%s28140_s1 + $0x18] sm:$0xff] }
  0x9e   :  { %19006 = vmatprep.mubr.msk.bf16.mxu0 %vm1519_vm0, %v19925_v46  ;;  %v3475_v46 = vld [vmem:[%s28140_s1 + $0x10] sm:$0xff] }
  0xa0   :  { %3886 = vperm.xlu1 %19916, %v3504_v35   ;;  %3881 = vperm.xlu0 %19915, %v3503_v34   ;;  %v3478_v35 = vld [vmem:[%s28140_s1 + $0x28] sm:$0xff]  ;;  %v3477_v34 = vld [vmem:[%s28140_s1 + $0x20] sm:$0xff] }
  0xa4   :  { %3736 = vperm.xlu1 %19916, %v3474_v47   ;;  %3731 = vperm.xlu0 %19915, %v3473_v37   ;;  %v19928_v47 = vld [vmem:[%s28139_s0 + $0x38] sm:$0xff]   ;;  %v19929_v37 = vld [vmem:[%s28139_s0 + $0x40] sm:$0xff]  }
  0xa5   :  { %19007 = vmatmul.mubr.msk.bf16.gmra.mxu0 %vm1519_vm0, %v19926_v36  ;;  %v3480_v36 = vld [vmem:[%s28140_s1 + $0x38] sm:$0xff] }
  0xa6   :  { %19010 = vmatprep.mubr.msk.bf16.mxu0 %vm1519_vm0, %v19927_v17  ;;  %v3479_v17 = vld [vmem:[%s28140_s1 + $0x30] sm:$0xff] }
  0xa8   :  { %3746 = vperm.xlu1 %19916, %v3476_v16   ;;  %3741 = vperm.xlu0 %19915, %v3475_v46   ;;  %v3482_v16 = vld [vmem:[%s28140_s1 + $0x48] sm:$0xff]  ;;  %v3481_v46 = vld [vmem:[%s28140_s1 + $0x40] sm:$0xff] }
  0xac   :  { %3756 = vperm.xlu1 %19916, %v3478_v35   ;;  %3751 = vperm.xlu0 %19915, %v3477_v34   ;;  %v19930_v35 = vld [vmem:[%s28139_s0 + $0x48] sm:$0xff]   ;;  %v19931_v34 = vld [vmem:[%s28139_s0 + $0x50] sm:$0xff]  }
  0xad   :  { %19011 = vmatmul.mubr.msk.bf16.gmra.mxu0 %vm1519_vm0, %v19928_v47  ;;  %v3484_v47 = vld [vmem:[%s28140_s1 + $0x58] sm:$0xff] }
  0xae   :  { %19014 = vmatprep.mubr.msk.bf16.mxu0 %vm1519_vm0, %v19929_v37  ;;  %v3483_v37 = vld [vmem:[%s28140_s1 + $0x50] sm:$0xff] }
  0xb0   :  { %3766 = vperm.xlu1 %19916, %v3480_v36   ;;  %3761 = vperm.xlu0 %19915, %v3479_v17   ;;  %v3486_v36 = vld [vmem:[%s28140_s1 + $0x68] sm:$0xff]  ;;  %v3485_v17 = vld [vmem:[%s28140_s1 + $0x60] sm:$0xff] }
  0xb4   :  { %3776 = vperm.xlu1 %19916, %v3482_v16   ;;  %3771 = vperm.xlu0 %19915, %v3481_v46   ;;  %v19932_v16 = vld [vmem:[%s28139_s0 + $0x58] sm:$0xff]   ;;  %v19933_v46 = vld [vmem:[%s28139_s0 + $0x60] sm:$0xff]  }
  0xb5   :  { %19015 = vmatmul.mubr.msk.bf16.gmra.mxu0 %vm1519_vm0, %v19930_v35  ;;  %v3488_v35 = vld [vmem:[%s28140_s1 + $0x78] sm:$0xff] }
  0xb6   :  { %19018 = vmatprep.mubr.msk.bf16.mxu0 %vm1519_vm0, %v19931_v34  ;;  %v3487_v34 = vld [vmem:[%s28140_s1 + $0x70] sm:$0xff] }
  0xb8   :  { %3786 = vperm.xlu1 %19916, %v3484_v47   ;;  %3781 = vperm.xlu0 %19915, %v3483_v37   ;;  %v3506_v47 = vld [vmem:[%s28140_s1 + $0x108] sm:$0xff]  ;;  %v3505_v37 = vld [vmem:[%s28140_s1 + $0x100] sm:$0xff] }
  0xbc   :  { %3796 = vperm.xlu1 %19916, %v3486_v36   ;;  %3791 = vperm.xlu0 %19915, %v3485_v17   ;;  %v19934_v36 = vld [vmem:[%s28139_s0 + $0x68] sm:$0xff]   ;;  %v19935_v17 = vld [vmem:[%s28139_s0 + $0x70] sm:$0xff]  }
  0xbd   :  { %19019 = vmatmul.mubr.msk.bf16.gmra.mxu0 %vm1519_vm0, %v19932_v16  ;;  %v3508_v16 = vld [vmem:[%s28140_s1 + $0x118] sm:$0xff] }
  0xbe   :  { %19022 = vmatprep.mubr.msk.bf16.mxu0 %vm1519_vm0, %v19933_v46  ;;  %v3507_v46 = vld [vmem:[%s28140_s1 + $0x110] sm:$0xff] }
  0xc0   :  { %3806 = vperm.xlu1 %19916, %v3488_v35   ;;  %3801 = vperm.xlu0 %19915, %v3487_v34   ;;  %v3510_v35 = vld [vmem:[%s28140_s1 + $0x128] sm:$0xff]  ;;  %v3509_v34 = vld [vmem:[%s28140_s1 + $0x120] sm:$0xff] }
  0xc4   :  { %3896 = vperm.xlu1 %19916, %v3506_v47   ;;  %3891 = vperm.xlu0 %19915, %v3505_v37   ;;  %v19936_v47 = vld [vmem:[%s28139_s0 + $0x78] sm:$0xff]   ;;  %v19937_v37 = vld [vmem:[%s28139_s0 + $0x80] sm:$0xff]  }
  0xc5   :  { %19023 = vmatmul.mubr.msk.bf16.gmra.mxu0 %vm1519_vm0, %v19934_v36  ;;  %v3512_v36 = vld [vmem:[%s28140_s1 + $0x138] sm:$0xff] }
  0xc6   :  { %19026 = vmatprep.mubr.msk.bf16.mxu0 %vm1519_vm0, %v19935_v17  ;;  %v3511_v17 = vld [vmem:[%s28140_s1 + $0x130] sm:$0xff] }
  0xc8   :  { %3906 = vperm.xlu1 %19916, %v3508_v16   ;;  %3901 = vperm.xlu0 %19915, %v3507_v46   ;;  %v3514_v16 = vld [vmem:[%s28140_s1 + $0x148] sm:$0xff]  ;;  %v3513_v46 = vld [vmem:[%s28140_s1 + $0x140] sm:$0xff] }
  0xcc   :  { %3916 = vperm.xlu1 %19916, %v3510_v35   ;;  %3911 = vperm.xlu0 %19915, %v3509_v34   ;;  %v19938_v35 = vld [vmem:[%s28139_s0 + $0x88] sm:$0xff]   ;;  %v19939_v34 = vld [vmem:[%s28139_s0 + $0x90] sm:$0xff]  }
  0xcd   :  { %19027 = vmatmul.mubr.msk.bf16.gmra.mxu0 %vm1519_vm0, %v19936_v47  ;;  %v3516_v47 = vld [vmem:[%s28140_s1 + $0x158] sm:$0xff] }
  0xce   :  { %19030 = vmatprep.mubr.msk.bf16.mxu0 %vm1519_vm0, %v19937_v37  ;;  %v3515_v37 = vld [vmem:[%s28140_s1 + $0x150] sm:$0xff] }
  0xd0   :  { %3926 = vperm.xlu1 %19916, %v3512_v36   ;;  %3921 = vperm.xlu0 %19915, %v3511_v17   ;;  %v3518_v36 = vld [vmem:[%s28140_s1 + $0x168] sm:$0xff]  ;;  %v3517_v17 = vld [vmem:[%s28140_s1 + $0x160] sm:$0xff] }
  0xd4   :  { %3936 = vperm.xlu1 %19916, %v3514_v16   ;;  %3931 = vperm.xlu0 %19915, %v3513_v46   ;;  %v19940_v16 = vld [vmem:[%s28139_s0 + $0x98] sm:$0xff]   ;;  %v19941_v46 = vld [vmem:[%s28139_s0 + $0xa0] sm:$0xff]  }
  0xd5   :  { %19031 = vmatmul.mubr.msk.bf16.gmra.mxu0 %vm1519_vm0, %v19938_v35  ;;  %v3520_v35 = vld [vmem:[%s28140_s1 + $0x178] sm:$0xff] }
  0xd6   :  { %19034 = vmatprep.mubr.msk.bf16.mxu0 %vm1519_vm0, %v19939_v34  ;;  %v3519_v34 = vld [vmem:[%s28140_s1 + $0x170] sm:$0xff] }
  0xd8   :  { %3946 = vperm.xlu1 %19916, %v3516_v47   ;;  %3941 = vperm.xlu0 %19915, %v3515_v37   ;;  %v3522_v47 = vld [vmem:[%s28140_s1 + $0x188] sm:$0xff]  ;;  %v3521_v37 = vld [vmem:[%s28140_s1 + $0x180] sm:$0xff] }
  0xdc   :  { %3956 = vperm.xlu1 %19916, %v3518_v36   ;;  %3951 = vperm.xlu0 %19915, %v3517_v17   ;;  %v19942_v36 = vld [vmem:[%s28139_s0 + $0xa8] sm:$0xff]   ;;  %v19943_v17 = vld [vmem:[%s28139_s0 + $0xb0] sm:$0xff]  }
  0xdd   :  { %19035 = vmatmul.mubr.msk.bf16.gmra.mxu0 %vm1519_vm0, %v19940_v16  ;;  %v3524_v16 = vld [vmem:[%s28140_s1 + $0x198] sm:$0xff] }
  0xde   :  { %19038 = vmatprep.mubr.msk.bf16.mxu0 %vm1519_vm0, %v19941_v46  ;;  %v3523_v46 = vld [vmem:[%s28140_s1 + $0x190] sm:$0xff] }
  0xe0   :  { %3966 = vperm.xlu1 %19916, %v3520_v35   ;;  %3961 = vperm.xlu0 %19915, %v3519_v34   ;;  %v3526_v35 = vld [vmem:[%s28140_s1 + $0x1a8] sm:$0xff]  ;;  %v3525_v34 = vld [vmem:[%s28140_s1 + $0x1a0] sm:$0xff] }
  0xe4   :  { %3976 = vperm.xlu1 %19916, %v3522_v47   ;;  %3971 = vperm.xlu0 %19915, %v3521_v37   ;;  %v19944_v47 = vld [vmem:[%s28139_s0 + $0xb8] sm:$0xff]   ;;  %v19945_v37 = vld [vmem:[%s28139_s0 + $0xc0] sm:$0xff]  }
  0xe5   :  { %19039 = vmatmul.mubr.msk.bf16.gmra.mxu0 %vm1519_vm0, %v19942_v36  ;;  %v3528_v36 = vld [vmem:[%s28140_s1 + $0x1b8] sm:$0xff] }
  0xe6   :  { %19042 = vmatprep.mubr.msk.bf16.mxu0 %vm1519_vm0, %v19943_v17  ;;  %v3527_v17 = vld [vmem:[%s28140_s1 + $0x1b0] sm:$0xff] }
  0xe8   :  { %3986 = vperm.xlu1 %19916, %v3524_v16   ;;  %3981 = vperm.xlu0 %19915, %v3523_v46   ;;  %v3530_v16 = vld [vmem:[%s28140_s1 + $0x1c8] sm:$0xff]  ;;  %v3529_v46 = vld [vmem:[%s28140_s1 + $0x1c0] sm:$0xff] }
  0xec   :  { %3996 = vperm.xlu1 %19916, %v3526_v35   ;;  %3991 = vperm.xlu0 %19915, %v3525_v34   ;;  %v19946_v35 = vld [vmem:[%s28139_s0 + $0xc8] sm:$0xff]   ;;  %v19947_v34 = vld [vmem:[%s28139_s0 + $0xd0] sm:$0xff]  }
  0xed   :  { %19043 = vmatmul.mubr.msk.bf16.gmra.mxu0 %vm1519_vm0, %v19944_v47  ;;  %v3532_v47 = vld [vmem:[%s28140_s1 + $0x1d8] sm:$0xff] }
  0xee   :  { %19046 = vmatprep.mubr.msk.bf16.mxu0 %vm1519_vm0, %v19945_v37  ;;  %v3531_v37 = vld [vmem:[%s28140_s1 + $0x1d0] sm:$0xff] }
  0xf0   :  { %4006 = vperm.xlu1 %19916, %v3528_v36   ;;  %4001 = vperm.xlu0 %19915, %v3527_v17   ;;  %v3534_v36 = vld [vmem:[%s28140_s1 + $0x1e8] sm:$0xff]  ;;  %v3533_v17 = vld [vmem:[%s28140_s1 + $0x1e0] sm:$0xff] }
  0xf4   :  { %4016 = vperm.xlu1 %19916, %v3530_v16   ;;  %4011 = vperm.xlu0 %19915, %v3529_v46   ;;  %v19948_v16 = vld [vmem:[%s28139_s0 + $0xd8] sm:$0xff]   ;;  %v19949_v46 = vld [vmem:[%s28139_s0 + $0xe0] sm:$0xff]  }
  0xf5   :  { %19047 = vmatmul.mubr.msk.bf16.gmra.mxu0 %vm1519_vm0, %v19946_v35  ;;  %v3536_v35 = vld [vmem:[%s28140_s1 + $0x1f8] sm:$0xff] }
  0xf6   :  { %19050 = vmatprep.mubr.msk.bf16.mxu0 %vm1519_vm0, %v19947_v34  ;;  %v3535_v34 = vld [vmem:[%s28140_s1 + $0x1f0] sm:$0xff] }
  0xf8   :  { %4026 = vperm.xlu1 %19916, %v3532_v47   ;;  %4021 = vperm.xlu0 %19915, %v3531_v37  }
  0xfc   :  { %4036 = vperm.xlu1 %19916, %v3534_v36   ;;  %4031 = vperm.xlu0 %19915, %v3533_v17   ;;  %v3538_v36 = vld [vmem:[%s28140_s1 + $0x208] sm:$0xff]  ;;  %v3537_v17 = vld [vmem:[%s28140_s1 + $0x200] sm:$0xff] }
  0xfd   :  { %19051 = vmatmul.mubr.msk.bf16.gmra.mxu0 %vm1519_vm0, %v19948_v16  ;;  %v19950_v16 = vld [vmem:[%s28139_s0 + $0xe8] sm:$0xff]  }
  0xfe   :  { %19054 = vmatprep.mubr.msk.bf16.mxu0 %vm1519_vm0, %v19949_v46  ;;  %v19981_v46 = vld [vmem:[%s28142_s3 + $0x18] sm:$0xff]  }
  0xff   :  { %v22152_v47 = vpop.permute.xlu1 %3821  ;;  %v22154_v37 = vpop.permute.xlu0 %3811  ;;  %19254 = vmatprep.subr.bf16.mxu1 %v19981_v46 }
 0x100   :  { %4046 = vperm.xlu1 %19916, %v3536_v35   ;;  %4041 = vperm.xlu0 %19915, %v3535_v34   ;;  %v3540_v35 = vld [vmem:[%s28140_s1 + $0x218] sm:$0xff]  ;;  %v3539_v34 = vld [vmem:[%s28140_s1 + $0x210] sm:$0xff] }
 0x101   :  { %19255 = vmatpush3.bf16.msra.mxu1 %v19981_v46 }
 0x102   :  { %19256 = vmatprep.subr.bf16.mxu1 %v19982_v19 }
 0x103   :  { %v22171_v39 = vpop.permute.xlu1 %3826  ;;  %v22173_v18 = vpop.permute.xlu0 %3816 }
 0x104   :  { %4056 = vperm.xlu1 %19916, %v3538_v36   ;;  %4051 = vperm.xlu0 %19915, %v3537_v17   ;;  %v3542_v36 = vld [vmem:[%s28140_s1 + $0x228] sm:$0xff]  ;;  %v3541_v17 = vld [vmem:[%s28140_s1 + $0x220] sm:$0xff] }
 0x105   :  { %19055 = vmatmul.mubr.msk.bf16.gmra.mxu0 %vm1519_vm0, %v19950_v16  ;;  %19257 = vmatpush3.bf16.msra.mxu1 %v19982_v19  ;;  %v19952_v16 = vld [vmem:[%s28139_s0 + $0xf8] sm:$0xff]   ;;  %v19953_v19 = vld [vmem:[%s28139_s0 + $0x100] sm:$0xff]  }
 0x106   :  { %19058 = vmatprep.mubr.msk.bf16.mxu0 %vm1519_vm0, %v19951_v38 }
 0x107   :  { %v22186_v46 = vpop.permute.xlu1 %3836  ;;  %v22188_v40 = vpop.permute.xlu0 %3831 }
 0x108   :  { %4066 = vperm.xlu1 %19916, %v3540_v35   ;;  %4061 = vperm.xlu0 %19915, %v3539_v34   ;;  %v3543_v35 = vld [vmem:[%s28140_s1 + $0x230] sm:$0xff]  ;;  %v19985_v34 = vld [vmem:[%s28142_s3 + $0x8] sm:$0xff]  }
 0x109   :  { %19274 = vmatprep.subr.bf16.mxu1 %v19985_v34 }
 0x10b   :  { %v22202_v38 = vpop.permute.xlu1 %3846  ;;  %v22204_v41 = vpop.permute.xlu0 %3841 }
 0x10c   :  { %4076 = vperm.xlu1 %19916, %v3542_v36   ;;  %4071 = vperm.xlu0 %19915, %v3541_v17   ;;  %v3546_v17 = vld [vmem:[%s28140_s1 + $0x248] sm:$0xff] }
 0x10d   :  { %19059 = vmatmul.mubr.msk.bf16.gmra.mxu0 %vm1519_vm0, %v19952_v16  ;;  %v3545_v16 = vld [vmem:[%s28140_s1 + $0x240] sm:$0xff] }
 0x10e   :  { %19062 = vmatprep.mubr.msk.bf16.mxu0 %vm1519_vm0, %v19953_v19  ;;  %v19955_v19 = vld [vmem:[%s28139_s0 + $0x110] sm:$0xff]  }
 0x10f   :  { %v22217_v21 = vpop.permute.xlu1 %3856  ;;  %v22219_v36 = vpop.permute.xlu0 %3851 }
 0x110   :  { %4086 = vperm.xlu1 %19916, %v3544_v20   ;;  %4081 = vperm.xlu0 %19915, %v3543_v35   ;;  %v3547_v20 = vld [vmem:[%s28140_s1 + $0x250] sm:$0xff] }
 0x113   :  { %v22233_v43 = vpop.permute.xlu1 %3866  ;;  %v22235_v22 = vpop.permute.xlu0 %3861 }
 0x114   :  { %4096 = vperm.xlu1 %19916, %v3546_v17   ;;  %4091 = vperm.xlu0 %19915, %v3545_v16   ;;  %v3550_v17 = vld [vmem:[%s28140_s1 + $0x268] sm:$0xff]  ;;  %v3549_v16 = vld [vmem:[%s28140_s1 + $0x260] sm:$0xff] }
 0x115   :  { %19063 = vmatmul.mubr.msk.bf16.gmra.mxu0 %vm1519_vm0, %v19954_v42  ;;  %v19956_v42 = vld [vmem:[%s28139_s0 + $0x118] sm:$0xff]  }
 0x116   :  { %19066 = vmatprep.mubr.msk.bf16.mxu0 %vm1519_vm0, %v19955_v19  ;;  %v19957_v19 = vld [vmem:[%s28139_s0 + $0x120] sm:$0xff]  }
 0x117   :  { %v22245_v35 = vpop.permute.xlu1 %3876  ;;  %v22247_v34 = vpop.permute.xlu0 %3871 }
 0x118   :  { %4106 = vperm.xlu1 %19916, %v3548_v23   ;;  %4101 = vperm.xlu0 %19915, %v3547_v20   ;;  %v3551_v23 = vld [vmem:[%s28140_s1 + $0x270] sm:$0xff] }
 0x11b   :  { %v22261_v32 = vpop.permute.xlu1 %3886  ;;  %v22263_v33 = vpop.permute.xlu0 %3881 }
 0x11c   :  { %4116 = vperm.xlu1 %19916, %v3550_v17   ;;  %4111 = vperm.xlu0 %19915, %v3549_v16   ;;  %v3554_v17 = vld [vmem:[%s28140_s1 + $0x288] sm:$0xff]  ;;  %v3553_v16 = vld [vmem:[%s28140_s1 + $0x280] sm:$0xff] }
 0x11d   :  { %19067 = vmatmul.mubr.msk.bf16.gmra.mxu0 %vm1519_vm0, %v19956_v42  ;;  %v19958_v42 = vld [vmem:[%s28139_s0 + $0x128] sm:$0xff]  }
 0x11e   :  { %19070 = vmatprep.mubr.msk.bf16.mxu0 %vm1519_vm0, %v19957_v19  ;;  %v19959_v19 = vld [vmem:[%s28139_s0 + $0x130] sm:$0xff]  }
 0x11f   :  { %v22273_v20 = vpop.permute.xlu1 %3736  ;;  %v22275_v25 = vpop.permute.xlu0 %3731 }
 0x120   :  { %4126 = vperm.xlu1 %19916, %v3552_v24   ;;  %4121 = vperm.xlu0 %19915, %v3551_v23   ;;  %v3555_v24 = vld [vmem:[%s28140_s1 + $0x290] sm:$0xff] }
 0x123   :  { %v22289_v44 = vpop.permute.xlu1 %3746  ;;  %v22291_v45 = vpop.permute.xlu0 %3741 }
 0x124   :  { %4136 = vperm.xlu1 %19916, %v3554_v17   ;;  %4131 = vperm.xlu0 %19915, %v3553_v16   ;;  %v3558_v17 = vld [vmem:[%s28140_s1 + $0x2a8] sm:$0xff]  ;;  %v3557_v16 = vld [vmem:[%s28140_s1 + $0x2a0] sm:$0xff] }
 0x125   :  { %19071 = vmatmul.mubr.msk.bf16.gmra.mxu0 %vm1519_vm0, %v19958_v42  ;;  %v19960_v42 = vld [vmem:[%s28139_s0 + $0x138] sm:$0xff]  }
 0x126   :  { %19074 = vmatprep.mubr.msk.bf16.mxu0 %vm1519_vm0, %v19959_v19  ;;  %v19961_v19 = vld [vmem:[%s28139_s0 + $0x140] sm:$0xff]  }
 0x127   :  { %v22301_v23 = vpop.permute.xlu1 %3756  ;;  %v22303_v27 = vpop.permute.xlu0 %3751 }
 0x128   :  { %4146 = vperm.xlu1 %19916, %v3556_v26   ;;  %4141 = vperm.xlu0 %19915, %v3555_v24   ;;  %v3559_v26 = vld [vmem:[%s28140_s1 + $0x2b0] sm:$0xff] }
 0x12b   :  { %v22317_v48 = vpop.permute.xlu1 %3766  ;;  %v22319_v49 = vpop.permute.xlu0 %3761 }
 0x12c   :  { %4156 = vperm.xlu1 %19916, %v3558_v17   ;;  %4151 = vperm.xlu0 %19915, %v3557_v16   ;;  %v3562_v17 = vld [vmem:[%s28140_s1 + $0x2c8] sm:$0xff]  ;;  %v3561_v16 = vld [vmem:[%s28140_s1 + $0x2c0] sm:$0xff] }
 0x12d   :  { %19075 = vmatmul.mubr.msk.bf16.gmra.mxu0 %vm1519_vm0, %v19960_v42  ;;  %v19962_v42 = vld [vmem:[%s28139_s0 + $0x148] sm:$0xff]  }
 0x12e   :  { %19078 = vmatprep.mubr.msk.bf16.mxu0 %vm1519_vm0, %v19961_v19  ;;  %v19963_v19 = vld [vmem:[%s28139_s0 + $0x150] sm:$0xff]  }
 0x12f   :  { %v22329_v24 = vpop.permute.xlu1 %3776  ;;  %v22331_v29 = vpop.permute.xlu0 %3771 }
 0x130   :  { %4166 = vperm.xlu1 %19916, %v3560_v28   ;;  %4161 = vperm.xlu0 %19915, %v3559_v26   ;;  %v3563_v28 = vld [vmem:[%s28140_s1 + $0x2d0] sm:$0xff] }
 0x133   :  { %v22345_v50 = vpop.permute.xlu1 %3786  ;;  %v22347_v51 = vpop.permute.xlu0 %3781 }
 0x134   :  { %4176 = vperm.xlu1 %19916, %v3562_v17   ;;  %4171 = vperm.xlu0 %19915, %v3561_v16   ;;  %v3566_v17 = vld [vmem:[%s28140_s1 + $0x2e8] sm:$0xff]  ;;  %v3565_v16 = vld [vmem:[%s28140_s1 + $0x2e0] sm:$0xff] }
 0x135   :  { %19079 = vmatmul.mubr.msk.bf16.gmra.mxu0 %vm1519_vm0, %v19962_v42  ;;  %v19964_v42 = vld [vmem:[%s28139_s0 + $0x158] sm:$0xff]  }
 0x136   :  { %19082 = vmatprep.mubr.msk.bf16.mxu0 %vm1519_vm0, %v19963_v19  ;;  %v19965_v19 = vld [vmem:[%s28139_s0 + $0x160] sm:$0xff]  }
 0x137   :  { %v22357_v26 = vpop.permute.xlu1 %3796  ;;  %v22359_v31 = vpop.permute.xlu0 %3791 }
 0x138   :  { %4186 = vperm.xlu1 %19916, %v3564_v30   ;;  %4181 = vperm.xlu0 %19915, %v3563_v28   ;;  %v3567_v30 = vld [vmem:[%s28140_s1 + $0x2f0] sm:$0xff] }
 0x13b   :  { %v22373_v52 = vpop.permute.xlu1 %3806  ;;  %v22375_v53 = vpop.permute.xlu0 %3801 }
 0x13c   :  { %4196 = vperm.xlu1 %19916, %v3566_v17   ;;  %4191 = vperm.xlu0 %19915, %v3565_v16   ;;  %v3570_v17 = vld [vmem:[%s28140_s1 + $0x308] sm:$0xff]  ;;  %v3569_v16 = vld [vmem:[%s28140_s1 + $0x300] sm:$0xff] }
 0x13d   :  { %19083 = vmatmul.mubr.msk.bf16.gmra.mxu0 %vm1519_vm0, %v19964_v42  ;;  %v19966_v42 = vld [vmem:[%s28139_s0 + $0x168] sm:$0xff]  }
 0x13e   :  { %19086 = vmatprep.mubr.msk.bf16.mxu0 %vm1519_vm0, %v19965_v19  ;;  %v19967_v19 = vld [vmem:[%s28139_s0 + $0x170] sm:$0xff]  }
 0x13f   :  { %v22385_v28 = vpop.permute.xlu1 %3896  ;;  %v22387_v1 = vpop.permute.xlu0 %3891 }
 0x140   :  { %4206 = vperm.xlu1 %19916, %v3568_v0   ;;  %4201 = vperm.xlu0 %19915, %v3567_v30   ;;  %v3571_v0 = vld [vmem:[%s28140_s1 + $0x310] sm:$0xff] }
 0x143   :  { %v22401_v54 = vpop.permute.xlu1 %3906  ;;  %v22403_v55 = vpop.permute.xlu0 %3901 }
 0x144   :  { %28666 = vst [vmem:[#allocation264_spill] sm:$0xff] %v22401_v54  ;;  %28667 = vst [vmem:[#allocation265_spill] sm:$0xff] %v22403_v55  ;;  %4216 = vperm.xlu1 %19916, %v3570_v17   ;;  %4211 = vperm.xlu0 %19915, %v3569_v16   ;;  %v3574_v17 = vld [vmem:[%s28140_s1 + $0x328] sm:$0xff]  ;;  %v3573_v16 = vld [vmem:[%s28140_s1 + $0x320] sm:$0xff] }
 0x145   :  { %19087 = vmatmul.mubr.msk.bf16.gmra.mxu0 %vm1519_vm0, %v19966_v42  ;;  %v19968_v42 = vld [vmem:[%s28139_s0 + $0x178] sm:$0xff]   ;;  %v19986_v54 = vld [vmem:[%s28139_s0 + $0x1f0] sm:$0xff]  }
 0x146   :  { %19090 = vmatprep.mubr.msk.bf16.mxu0 %vm1519_vm0, %v19967_v19  ;;  %v19969_v19 = vld [vmem:[%s28139_s0 + $0x180] sm:$0xff]  }
 0x147   :  { %v22413_v30 = vpop.permute.xlu1 %3916  ;;  %v22415_v3 = vpop.permute.xlu0 %3911 }
 0x148   :  { %28668 = vst [vmem:[#allocation266_spill] sm:$0xff] %v22413_v30  ;;  %28669 = vst [vmem:[#allocation267_spill] sm:$0xff] %v22415_v3  ;;  %4226 = vperm.xlu1 %19916, %v3572_v2   ;;  %4221 = vperm.xlu0 %19915, %v3571_v0   ;;  %v3575_v2 = vld [vmem:[%s28140_s1 + $0x330] sm:$0xff] }
 0x14b   :  { %v22429_v56 = vpop.permute.xlu1 %3926  ;;  %v22431_v57 = vpop.permute.xlu0 %3921 }
 0x14c   :  { %28670 = vst [vmem:[#allocation268_spill] sm:$0xff] %v22429_v56  ;;  %28671 = vst [vmem:[#allocation269_spill] sm:$0xff] %v22431_v57  ;;  %4236 = vperm.xlu1 %19916, %v3574_v17   ;;  %4231 = vperm.xlu0 %19915, %v3573_v16   ;;  %v3578_v17 = vld [vmem:[%s28140_s1 + $0x348] sm:$0xff]  ;;  %v3577_v16 = vld [vmem:[%s28140_s1 + $0x340] sm:$0xff] }
 0x14d   :  { %19091 = vmatmul.mubr.msk.bf16.gmra.mxu0 %vm1519_vm0, %v19968_v42  ;;  %v19970_v42 = vld [vmem:[%s28139_s0 + $0x188] sm:$0xff]  }
 0x14e   :  { %19094 = vmatprep.mubr.msk.bf16.mxu0 %vm1519_vm0, %v19969_v19  ;;  %v22457_v19 = vld [vmem:[%s28149_s10] ss:$0 sm:$0xff] }
 0x14f   :  { %v22441_v0 = vpop.permute.xlu1 %3936  ;;  %v22443_v5 = vpop.permute.xlu0 %3931 }
 0x150   :  { %28672 = vst [vmem:[#allocation270_spill] sm:$0xff] %v22441_v0  ;;  %28673 = vst [vmem:[#allocation271_spill] sm:$0xff] %v22443_v5  ;;  %4246 = vperm.xlu1 %19916, %v3576_v4   ;;  %4241 = vperm.xlu0 %19915, %v3575_v2   ;;  %v3580_v4 = vld [vmem:[%s28140_s1 + $0x358] sm:$0xff] }
 0x153   :  { %v22462_v59 = vpop.permute.xlu1 %3946  ;;  %v22464_v6 = vpop.permute.xlu0 %3941 }
 0x154   :  { %28674 = vst [vmem:[#allocation272_spill] sm:$0xff] %v22462_v59  ;;  %28675 = vst [vmem:[#allocation273_spill] sm:$0xff] %v22464_v6  ;;  %4256 = vperm.xlu1 %19916, %v3578_v17   ;;  %4251 = vperm.xlu0 %19915, %v3577_v16   ;;  %v3582_v17 = vld [vmem:[%s28140_s1 + $0x368] sm:$0xff]  ;;  %v3581_v16 = vld [vmem:[%s28140_s1 + $0x360] sm:$0xff] }
 0x155   :  { %v19000_v2 = vpop.f32.mrf.mxu0  ;;  %19095 = vmatmul.mubr.msk.bf16.gmra.mxu0 %vm1519_vm0, %v19970_v42  ;;  %v19972_v42 = vld [vmem:[%s28139_s0 + $0x198] sm:$0xff]  }
 0x156   :  { %v1947_v60 = vadd.f32 %v19000_v2, %v22457_v19  ;;  %19098 = vmatprep.mubr.msk.bf16.mxu0 %vm1519_vm0, %v19971_v58 }
 0x157   :  { %v22475_v61 = vpop.permute.xlu1 %3956  ;;  %v22477_v62 = vpop.permute.xlu0 %3951 }
 0x158   :  { %28676 = vst [vmem:[#allocation274_spill] sm:$0xff] %v22475_v61  ;;  %28677 = vst [vmem:[#allocation275_spill] sm:$0xff] %v22477_v62  ;;  %v2963_v63 = vmul.f32 0.2, %v1947_v60  ;;  %v22488_v2 = vpop.f32.mrf.mxu0  ;;  %4266 = vperm.xlu1 %19916, %v3580_v4   ;;  %4261 = vperm.xlu0 %19915, %v3579_v7   ;;  %v3584_v7 = vld [vmem:[%s28140_s1 + $0x378] sm:$0xff]  ;;  %v3583_v4 = vld [vmem:[%s28140_s1 + $0x370] sm:$0xff] }
 0x159   :  { %v19977_v61 = vld [vmem:[%s28139_s0 + $0x1c0] sm:$0xff]  }
 0x15a   :  { %v19001_v58 = vpop.f32.mrf.mxu0  ;;  %v3219_v13 = vmax.f32 %v1947_v60, %v2963_v63  ;;  %v3586_v63 = vld [vmem:[%s28140_s1 + $0x388] sm:$0xff] }
 0x15b   :  { %v1950_v9 = vadd.f32 %v19001_v58, %v22457_v19  ;;  %v22494_v10 = vpop.permute.xlu1 %3966  ;;  %v22496_v11 = vpop.permute.xlu0 %3961 }
 0x15c   :  { %28678 = vst [vmem:[#allocation276_spill] sm:$0xff] %v22494_v10  ;;  %28679 = vst [vmem:[#allocation277_spill] sm:$0xff] %v22496_v11  ;;  %v22498_v12 = vpop.f32.mrf.mxu0  ;;  %4276 = vperm.xlu1 %19916, %v3582_v17   ;;  %4271 = vperm.xlu0 %19915, %v3581_v16   ;;  %v19974_v16 = vld [vmem:[%s28139_s0 + $0x1a8] sm:$0xff]  }
 0x15d   :  { %v2964_v14 = vmul.f32 0.2, %v1950_v9  ;;  %19099 = vmatmul.mubr.msk.bf16.gmra.mxu0 %vm1519_vm0, %v19972_v42 }
 0x15e   :  { %v19004_v58 = vpop.f32.mrf.mxu0  ;;  %19102 = vmatprep.mubr.msk.bf16.mxu0 %vm1519_vm0, %v19973_v8  ;;  %v22522_v8 = vmul.f32 %v22291_v45, %v3219_v13  ;;  %v3588_v45 = vld [vmem:[%s28140_s1 + $0x398] sm:$0xff] }
 0x15f   :  { %v3220_v15 = vmax.f32 %v1950_v9, %v2964_v14  ;;  %v1963_v11 = vadd.f32 %v19004_v58, %v22457_v19  ;;  %v22509_v17 = vpop.permute.xlu1 %3976  ;;  %v22511_v60 = vpop.permute.xlu0 %3971  ;;  %v3585_v14 = vld [vmem:[%s28140_s1 + $0x380] sm:$0xff] }
 0x160   :  { %28680 = vst [vmem:[#allocation278_spill] sm:$0xff] %v22509_v17  ;;  %28681 = vst [vmem:[#allocation279_spill] sm:$0xff] %v22511_v60  ;;  %v22519_v42 = vpop.f32.mrf.mxu0  ;;  %4286 = vperm.xlu1 %19916, %v3584_v7   ;;  %4281 = vperm.xlu0 %19915, %v3583_v4   ;;  %v19975_v17 = vld [vmem:[%s28139_s0 + $0x1b0] sm:$0xff]  }
 0x161   :  { %v22525_v9 = vmul.f32 %v22289_v44, %v3220_v15  ;;  %v2967_v58 = vmul.f32 0.2, %v1963_v11  ;;  %v3587_v7 = vld [vmem:[%s28140_s1 + $0x390] sm:$0xff] }
 0x162   :  { %v19005_v60 = vpop.f32.mrf.mxu0 }
 0x163   :  { %v22535_v4 = vpop.permute.xlu1 %3986  ;;  %v22537_v13 = vpop.permute.xlu0 %3981  ;;  %v1966_v15 = vadd.f32 %v19005_v60, %v22457_v19  ;;  %v3223_v10 = vmax.f32 %v1963_v11, %v2967_v58  ;;  %v19976_v11 = vld [vmem:[%s28139_s0 + $0x1b8] sm:$0xff]  }
 0x164   :  { %28682 = vst [vmem:[#allocation280_spill] sm:$0xff] %v22535_v4  ;;  %28683 = vst [vmem:[#allocation281_spill] sm:$0xff] %v22537_v13  ;;  %v22540_v44 = vpop.f32.mrf.mxu0  ;;  %4296 = vperm.xlu1 %19916, %v3586_v63   ;;  %4291 = vperm.xlu0 %19915, %v3585_v14   ;;  %v3590_v14 = vld [vmem:[%s28140_s1 + $0x3a8] sm:$0xff] }
 0x165   :  { %19103 = vmatmul.mubr.msk.bf16.gmra.mxu0 %vm1519_vm0, %v19974_v16  ;;  %v2968_v4 = vmul.f32 0.2, %v1966_v15  ;;  %v3589_v16 = vld [vmem:[%s28140_s1 + $0x3a0] sm:$0xff] }
 0x166   :  { %v19008_v62 = vpop.f32.mrf.mxu0  ;;  %19106 = vmatprep.mubr.msk.bf16.mxu0 %vm1519_vm0, %v19975_v17 }
 0x167   :  { %v1979_v60 = vadd.f32 %v19008_v62, %v22457_v19  ;;  %v22551_v13 = vpop.permute.xlu1 %3996  ;;  %v22553_v63 = vpop.permute.xlu0 %3991  ;;  %v3224_v58 = vmax.f32 %v1966_v15, %v2968_v4 }
 0x168   :  { %28684 = vst [vmem:[#allocation282_spill] sm:$0xff] %v22551_v13  ;;  %28685 = vst [vmem:[#allocation283_spill] sm:$0xff] %v22553_v63  ;;  %v22564_v17 = vpop.f32.mrf.mxu0  ;;  %4306 = vperm.xlu1 %19916, %v3588_v45   ;;  %4301 = vperm.xlu0 %19915, %v3587_v7   ;;  %v22567_v63 = vmul.f32 %v22319_v49, %v3223_v10  ;;  %v3592_v49 = vld [vmem:[%s28140_s1 + $0x3b8] sm:$0xff] }
 0x169   :  { %v2971_v62 = vmul.f32 0.2, %v1979_v60  ;;  %v22570_v13 = vmul.f32 %v22317_v48, %v3224_v58 }
 0x16a   :  { %v19009_v6 = vpop.f32.mrf.mxu0 }
 0x16b   :  { %v1982_v59 = vadd.f32 %v19009_v6, %v22457_v19  ;;  %v22576_v5 = vpop.permute.xlu1 %4006  ;;  %v22578_v4 = vpop.permute.xlu0 %4001  ;;  %v3227_v10 = vmax.f32 %v1979_v60, %v2971_v62  ;;  %v3591_v6 = vld [vmem:[%s28140_s1 + $0x3b0] sm:$0xff] }
 0x16c   :  { %28686 = vst [vmem:[#allocation284_spill] sm:$0xff] %v22576_v5  ;;  %28687 = vst [vmem:[#allocation285_spill] sm:$0xff] %v22578_v4  ;;  %v22582_v15 = vpop.f32.mrf.mxu0  ;;  %4316 = vperm.xlu1 %19916, %v3590_v14   ;;  %4311 = vperm.xlu0 %19915, %v3589_v16   ;;  %v3594_v16 = vld [vmem:[%s28140_s1 + $0x3c8] sm:$0xff]  ;;  %v19979_v4 = vld [vmem:[%s28139_s0 + $0x1d0] sm:$0xff]  }
 0x16d   :  { %v2972_v48 = vmul.f32 0.2, %v1982_v59  ;;  %19107 = vmatmul.mubr.msk.bf16.gmra.mxu0 %vm1519_vm0, %v19976_v11  ;;  %v19978_v11 = vld [vmem:[%s28139_s0 + $0x1c8] sm:$0xff]  }
 0x16e   :  { %v19012_v45 = vpop.f32.mrf.mxu0  ;;  %19110 = vmatprep.mubr.msk.bf16.mxu0 %vm1519_vm0, %v19977_v61 }
 0x16f   :  { %v3228_v58 = vmax.f32 %v1982_v59, %v2972_v48  ;;  %v1995_v7 = vadd.f32 %v19012_v45, %v22457_v19  ;;  %v22593_v14 = vpop.permute.xlu1 %4016  ;;  %v22595_v60 = vpop.permute.xlu0 %4011  ;;  %v22606_v59 = vmul.f32 %v22347_v51, %v3227_v10  ;;  %v3593_v48 = vld [vmem:[%s28140_s1 + $0x3c0] sm:$0xff] }
 0x170   :  { %28688 = vst [vmem:[#allocation286_spill] sm:$0xff] %v22593_v14  ;;  %28689 = vst [vmem:[#allocation287_spill] sm:$0xff] %v22595_v60  ;;  %v22603_v62 = vpop.f32.mrf.mxu0  ;;  %4326 = vperm.xlu1 %19916, %v3592_v49   ;;  %4321 = vperm.xlu0 %19915, %v3591_v6   ;;  %v3595_v49 = vld [vmem:[%s28140_s1 + $0x3d0] sm:$0xff] }
 0x171   :  { %v22609_v61 = vmul.f32 %v22345_v50, %v3228_v58  ;;  %v2975_v45 = vmul.f32 0.2, %v1995_v7  ;;  %v3596_v58 = vld [vmem:[%s28140_s1 + $0x3d8] sm:$0xff] }
 0x172   :  { %v19013_v60 = vpop.f32.mrf.mxu0 }
 0x173   :  { %v22619_v6 = vpop.permute.xlu1 %4026  ;;  %v22621_v51 = vpop.permute.xlu0 %4021  ;;  %v1998_v50 = vadd.f32 %v19013_v60, %v22457_v19  ;;  %v3231_v14 = vmax.f32 %v1995_v7, %v2975_v45  ;;  %v3597_v45 = vld [vmem:[%s28140_s1 + $0x3e0] sm:$0xff] }
 0x174   :  { %28690 = vst [vmem:[#allocation288_spill] sm:$0xff] %v22619_v6  ;;  %28691 = vst [vmem:[#allocation289_spill] sm:$0xff] %v22621_v51  ;;  %v22624_v10 = vpop.f32.mrf.mxu0  ;;  %4336 = vperm.xlu1 %19916, %v3594_v16   ;;  %4331 = vperm.xlu0 %19915, %v3593_v48   ;;  %v3598_v16 = vld [vmem:[%s28140_s1 + $0x3e8] sm:$0xff] }
 0x175   :  { %19111 = vmatmul.mubr.msk.bf16.gmra.mxu0 %vm1519_vm0, %v19978_v11  ;;  %v2976_v6 = vmul.f32 0.2, %v1998_v50  ;;  %v19980_v11 = vld [vmem:[%s28139_s0 + $0x1d8] sm:$0xff]  }
 0x176   :  { %v19016_v5 = vpop.f32.mrf.mxu0  ;;  %19114 = vmatprep.mubr.msk.bf16.mxu0 %vm1519_vm0, %v19979_v4 }
 0x177   :  { %v22634_v60 = vpop.permute.xlu1 %4036  ;;  %v22636_v51 = vpop.permute.xlu0 %4031  ;;  %v3232_v48 = vmax.f32 %v1998_v50, %v2976_v6  ;;  %v2011_v7 = vadd.f32 %v19016_v5, %v22457_v19  ;;  %v19983_v6 = vld [vmem:[%s28139_s0 + $0x1e0] sm:$0xff]   ;;  %v3600_v50 = vld [vmem:[%s28140_s1 + $0x3f8] sm:$0xff] }
 0x178   :  { %28692 = vst [vmem:[#allocation290_spill] sm:$0xff] %v22634_v60  ;;  %28693 = vst [vmem:[#allocation291_spill] sm:$0xff] %v22636_v51  ;;  %v2002_v57 = vpop.f32.mrf.mxu0  ;;  %4346 = vperm.xlu1 %19916, %v3596_v58   ;;  %4341 = vperm.xlu0 %19915, %v3595_v49   ;;  %v22650_v51 = vmul.f32 %v22375_v53, %v3231_v14 }
 0x179   :  { %v2003_v4 = vadd.f32 %v2002_v57, %v22457_v19  ;;  %v22653_v60 = vmul.f32 %v22373_v52, %v3232_v48  ;;  %v3599_v52 = vld [vmem:[%s28140_s1 + $0x3f0] sm:$0xff] }
 0x17a   :  { %28694 = vst [vmem:[#allocation292_spill] sm:$0xff] %v22650_v51  ;;  %v19017_v0 = vpop.f32.mrf.mxu0  ;;  %v3603_v51 = vld [vmem:[%s28140_s1 + $0x410] sm:$0xff] }
 0x17b   :  { %v2014_v49 = vadd.f32 %v19017_v0, %v22457_v19  ;;  %v22659_v5 = vpop.permute.xlu1 %4046  ;;  %v22661_v57 = vpop.permute.xlu0 %4041  ;;  %v2977_v14 = vmul.f32 0.2, %v2003_v4  ;;  %v2979_v0 = vmul.f32 0.2, %v2011_v7 }
 0x17c   :  { %28695 = vst [vmem:[#allocation293_spill] sm:$0xff] %v22659_v5  ;;  %28696 = vst [vmem:[#allocation294_spill] sm:$0xff] %v22661_v57  ;;  %v2005_v58 = vpop.f32.mrf.mxu0  ;;  %4356 = vperm.xlu1 %19916, %v3598_v16   ;;  %4351 = vperm.xlu0 %19915, %v3597_v45   ;;  %v3602_v16 = vld [vmem:[%s28140_s1 + $0x408] sm:$0xff] }
 0x17d   :  { %v2980_v48 = vmul.f32 0.2, %v2014_v49  ;;  %v2006_v5 = vadd.f32 %v2005_v58, %v22457_v19  ;;  %19115 = vmatmul.mubr.msk.bf16.gmra.mxu0 %vm1519_vm0, %v19980_v11  ;;  %v19984_v45 = vld [vmem:[%s28139_s0 + $0x1e8] sm:$0xff]   ;;  %v3233_v58 = vmax.f32 %v2003_v4, %v2977_v14  ;;  %v3235_v11 = vmax.f32 %v2011_v7, %v2979_v0  ;;  %v3604_v7 = vld [vmem:[%s28140_s1 + $0x418] sm:$0xff] }
 0x17e   :  { %v19020_v57 = vpop.f32.mrf.mxu0  ;;  %19118 = vmatprep.mubr.msk.bf16.mxu0 %vm1519_vm0, %v19983_v6 }
 0x17f   :  { %v3236_v56 = vmax.f32 %v2014_v49, %v2980_v48  ;;  %v2978_v3 = vmul.f32 0.2, %v2006_v5  ;;  %v22674_v55 = vpop.permute.xlu1 %4056  ;;  %v22676_v30 = vpop.permute.xlu0 %4051  ;;  %v2027_v49 = vadd.f32 %v19020_v57, %v22457_v19 }
 0x180   :  { %28697 = vst [vmem:[#allocation295_spill] sm:$0xff] %v22674_v55  ;;  %28698 = vst [vmem:[#allocation296_spill] sm:$0xff] %v22676_v30  ;;  %v2018_v53 = vpop.f32.mrf.mxu0  ;;  %4366 = vperm.xlu1 %19916, %v3600_v50   ;;  %4361 = vperm.xlu0 %19915, %v3599_v52   ;;  %v3601_v30 = vld [vmem:[%s28140_s1 + $0x400] sm:$0xff] }
 0x181   :  { %v3234_v6 = vmax.f32 %v2006_v5, %v2978_v3  ;;  %v2019_v48 = vadd.f32 %v2018_v53, %v22457_v19  ;;  %v5028_v4 = vmul.f32 %v22171_v39, %v3236_v56  ;;  %v5025_v53 = vmul.f32 %v22154_v37, %v3233_v58 }
 0x182   :  { %v19021_v55 = vpop.f32.mrf.mxu0  ;;  %v5027_v39 = vmul.f32 %v22152_v47, %v3235_v11  ;;  %v3606_v11 = vld [vmem:[%s28140_s1 + $0x428] sm:$0xff] }
 0x183   :  { %v2030_v50 = vadd.f32 %v19021_v55, %v22457_v19  ;;  %v22694_v52 = vpop.permute.xlu1 %4066  ;;  %v22696_v3 = vpop.permute.xlu0 %4061  ;;  %v2981_v5 = vmul.f32 0.2, %v2019_v48  ;;  %v5026_v14 = vmul.f32 %v22173_v18, %v3234_v6  ;;  %v2983_v55 = vmul.f32 0.2, %v2027_v49  ;;  %v19990_v18 = vld [vmem:[%s28142_s3] sm:$0xff]  }
 0x184   :  { %28699 = vst [vmem:[#allocation297_spill] sm:$0xff] %v22694_v52  ;;  %28700 = vst [vmem:[#allocation298_spill] sm:$0xff] %v22696_v3  ;;  %v2021_v57 = vpop.f32.mrf.mxu0  ;;  %4376 = vperm.xlu1 %19916, %v3602_v16   ;;  %4371 = vperm.xlu0 %19915, %v3601_v30   ;;  %v5274_v37 = vpack.c.bf16 %v5028_v4, %v5027_v39 }
 0x185   :  { %v2984_v56 = vmul.f32 0.2, %v2030_v50  ;;  %v2022_v0 = vadd.f32 %v2021_v57, %v22457_v19  ;;  %19119 = vmatmul.mubr.msk.bf16.gmra.mxu0 %vm1519_vm0, %v19984_v45  ;;  %v5273_v52 = vpack.c.bf16 %v5026_v14, %v5025_v53  ;;  %v3237_v6 = vmax.f32 %v2019_v48, %v2981_v5  ;;  %v3605_v53 = vld [vmem:[%s28140_s1 + $0x420] sm:$0xff]  ;;  %v20209_v14 = vld [vmem:[%s28142_s3 + $0x8] sm:$0xff]  }
 0x186   :  { %v19024_v3 = vpop.f32.mrf.mxu0  ;;  %19122 = vmatprep.mubr.msk.bf16.mxu0 %vm1519_vm0, %v19986_v54  ;;  %v19987_v54 = vld [vmem:[%s28139_s0 + $0x1f8] sm:$0xff]  }
 0x187   :  { %v3240_v47 = vmax.f32 %v2030_v50, %v2984_v56  ;;  %v2982_v30 = vmul.f32 0.2, %v2022_v0  ;;  %v22714_v16 = vadd.f32 %v19024_v3, %v22457_v19  ;;  %v22716_v58 = vpop.permute.xlu1 %4076  ;;  %v22718_v45 = vpop.permute.xlu0 %4071  ;;  %19258 = vmatprep.mubr.msk.bf16.mxu1 %vm5415_vm1, %v5273_v52  ;;  %v3239_v50 = vmax.f32 %v2027_v49, %v2983_v55  ;;  %v19988_v49 = vld [vmem:[%s28139_s0 + $0x200] sm:$0xff]   ;;  %v22741_v52 = vld [vmem:[%s28142_s3 + $0x28] sm:$0xff]  }
 0x188   :  { %v2034_v4 = vpop.f32.mrf.mxu0  ;;  %4386 = vperm.xlu1 %19916, %v3604_v7   ;;  %19259 = vmatmul.mubr.msk.bf16.vlgmr.msra.gmra.mxu1 %vm5415_vm1, %v5274_v37  ;;  %v5029_v56 = vmul.f32 %v22188_v40, %v3237_v6  ;;  %v3607_v40 = vld [vmem:[%s28140_s1 + $0x430] sm:$0xff] }
 0x189   :  { %v3238_v3 = vmax.f32 %v2022_v0, %v2982_v30  ;;  %v2035_v57 = vadd.f32 %v2034_v4, %v22457_v19  ;;  %4381 = vperm.xlu0 %19915, %v3603_v51   ;;  %19275 = vmatpush3.bf16.msra.mxu1 %v20209_v14  ;;  %v5032_v51 = vmul.f32 %v22202_v38, %v3240_v47  ;;  %v2987_v5 = vmul.f32 0.2, %v22714_v16 }
 0x18a   :  { %v19025_v48 = vpop.f32.mrf.mxu0  ;;  %19276 = vmatprep.subr.bf16.mxu1 %v19990_v18  ;;  %v5031_v4 = vmul.f32 %v22204_v41, %v3239_v50  ;;  %v22764_v41 = vadd.f32 %v22498_v12, %v22457_v19 }
 0x18b   :  { %v5030_v7 = vmul.f32 %v22186_v46, %v3238_v3  ;;  %v22746_v39 = vpop.permute.xlu1 %4086  ;;  %v22748_v55 = vpop.permute.xlu0 %4081  ;;  %v2985_v0 = vmul.f32 0.2, %v2035_v57  ;;  %v2046_v37 = vadd.f32 %v19025_v48, %v22457_v19  ;;  %v3608_v46 = vld [vmem:[%s28140_s1 + $0x438] sm:$0xff]  ;;  %v3243_v48 = vmax.f32 %v22714_v16, %v2987_v5  ;;  %v3609_v5 = vld [vmem:[%s28140_s1 + $0x440] sm:$0xff] }
 0x18c   :  { %v2037_v30 = vpop.f32.mrf.mxu0  ;;  %4396 = vperm.xlu1 %19916, %v3606_v11   ;;  %v5276_v11 = vpack.c.bf16 %v5032_v51, %v5031_v4  ;;  %v1939_v16 = vadd.f32 %v22488_v2, %v22457_v19 }
 0x18d   :  { %v2038_v38 = vadd.f32 %v2037_v30, %v22457_v19  ;;  %4391 = vperm.xlu0 %19915, %v3605_v53   ;;  %19123 = vmatmul.mubr.msk.bf16.gmra.mxu0 %vm1519_vm0, %v19987_v54  ;;  %v2988_v47 = vmul.f32 0.2, %v2046_v37  ;;  %v5275_v14 = vpack.c.bf16 %v5030_v7, %v5029_v56  ;;  %v19989_v53 = vld [vmem:[%s28139_s0 + $0x208] sm:$0xff]  }
 0x18e   :  { %v19028_v3 = vpop.f32.mrf.mxu0  ;;  %19126 = vmatprep.mubr.msk.bf16.mxu0 %vm1519_vm0, %v19988_v49  ;;  %19277 = vmatpush3.bf16.msra.mxu1 %v19990_v18  ;;  %v3241_v49 = vmax.f32 %v2035_v57, %v2985_v0  ;;  %v3610_v30 = vld [vmem:[%s28140_s1 + $0x448] sm:$0xff]  ;;  %v19991_v0 = vld [vmem:[%s28139_s0 + $0x210] sm:$0xff]  }
 0x18f   :  { %v2986_v54 = vmul.f32 0.2, %v2038_v38  ;;  %v22766_v6 = vpop.permute.xlu1 %4096  ;;  %v22768_v50 = vpop.permute.xlu0 %4091  ;;  %19294 = vmatprep.subr.bf16.mxu1 %v22741_v52  ;;  %v3244_v18 = vmax.f32 %v2046_v37, %v2988_v47  ;;  %19262 = vmatprep.mubr.msk.bf16.mxu1 %vm5415_vm1, %v5275_v14  ;;  %v22777_v7 = vadd.f32 %v19028_v3, %v22457_v19  ;;  %v2962_v37 = vmul.f32 0.2, %v22764_v41  ;;  %v3612_v3 = vld [vmem:[%s28140_s1 + $0x458] sm:$0xff] }
 0x190   :  { %v2050_v12 = vpop.f32.mrf.mxu0  ;;  %4406 = vperm.xlu1 %19916, %v3608_v46   ;;  %19263 = vmatmul.mubr.msk.bf16.gmra.mxu1 %vm5415_vm1, %v5276_v11  ;;  %v5033_v14 = vmul.f32 %v22219_v36, %v3241_v49  ;;  %v3611_v36 = vld [vmem:[%s28140_s1 + $0x450] sm:$0xff] }
 0x191   :  { %v3242_v51 = vmax.f32 %v2038_v38, %v2986_v54  ;;  %v2051_v56 = vadd.f32 %v2050_v12, %v22457_v19  ;;  %4401 = vperm.xlu0 %19915, %v3607_v40   ;;  %v5036_v4 = vmul.f32 %v22233_v43, %v3244_v18  ;;  %v5035_v54 = vmul.f32 %v22235_v22, %v3243_v48 }
 0x192   :  { %v19029_v57 = vpop.f32.mrf.mxu0  ;;  %v2991_v43 = vmul.f32 0.2, %v22777_v7  ;;  %v2961_v12 = vmul.f32 0.2, %v1939_v16 }
 0x193   :  { %v5034_v38 = vmul.f32 %v22217_v21, %v3242_v51  ;;  %v2062_v46 = vadd.f32 %v19029_v57, %v22457_v19  ;;  %v22796_v47 = vpop.permute.xlu1 %4106  ;;  %v22798_v2 = vpop.permute.xlu0 %4101  ;;  %v2989_v40 = vmul.f32 0.2, %v2051_v56  ;;  %v5278_v49 = vpack.c.bf16 %v5036_v4, %v5035_v54 }
 0x194   :  { %28701 = vst [vmem:[#allocation299_spill] sm:$0xff] %v22798_v2  ;;  %v2053_v11 = vpop.f32.mrf.mxu0  ;;  %4416 = vperm.xlu1 %19916, %v3610_v30   ;;  %v3247_v4 = vmax.f32 %v22777_v7, %v2991_v43  ;;  %v19993_v7 = vld [vmem:[%s28139_s0 + $0x220] sm:$0xff]  }
 0x195   :  { %v2992_v21 = vmul.f32 0.2, %v2062_v46  ;;  %v2054_v18 = vadd.f32 %v2053_v11, %v22457_v19  ;;  %4411 = vperm.xlu0 %19915, %v3609_v5   ;;  %19127 = vmatmul.mubr.msk.bf16.gmra.mxu0 %vm1519_vm0, %v19989_v53  ;;  %v5277_v57 = vpack.c.bf16 %v5034_v38, %v5033_v14  ;;  %v19992_v53 = vld [vmem:[%s28139_s0 + $0x218] sm:$0xff]   ;;  %v3218_v5 = vmax.f32 %v22764_v41, %v2962_v37  ;;  %v3614_v11 = vld [vmem:[%s28140_s1 + $0x468] sm:$0xff]  ;;  %v3613_v37 = vld [vmem:[%s28140_s1 + $0x460] sm:$0xff] }
 0x196   :  { %v22808_v51 = vpop.f32.mrf.mxu0  ;;  %19130 = vmatprep.mubr.msk.bf16.mxu0 %vm1519_vm0, %v19991_v0  ;;  %v1958_v38 = vadd.f32 %v22540_v44, %v22457_v19  ;;  %v3245_v14 = vmax.f32 %v2051_v56, %v2989_v40  ;;  %v3217_v41 = vmax.f32 %v1939_v16, %v2961_v12  ;;  %v1955_v44 = vadd.f32 %v22519_v42, %v22457_v19 }
 0x197   :  { %v3248_v22 = vmax.f32 %v2062_v46, %v2992_v21  ;;  %v2990_v48 = vmul.f32 0.2, %v2054_v18  ;;  %v22814_v30 = vpop.permute.xlu1 %4116  ;;  %v22816_v2 = vpop.permute.xlu0 %4111  ;;  %19266 = vmatprep.mubr.msk.bf16.mxu1 %vm5415_vm1, %v5277_v57  ;;  %v5010_v42 = vmul.f32 %v22273_v20, %v3218_v5  ;;  %v5039_v12 = vmul.f32 %v22263_v33, %v3247_v4  ;;  %v3618_v4 = vld [vmem:[%s28140_s1 + $0x488] sm:$0xff] }
 0x198   :  { %v22825_v0 = vpop.f32.mrf.mxu0  ;;  %4426 = vperm.xlu1 %19916, %v3612_v3   ;;  %19267 = vmatmul.mubr.msk.bf16.gmra.mxu1 %vm5415_vm1, %v5278_v49  ;;  %v2966_v43 = vmul.f32 0.2, %v1958_v38  ;;  %v5037_v21 = vmul.f32 %v22247_v34, %v3245_v14  ;;  %v2965_v57 = vmul.f32 0.2, %v1955_v44  ;;  %v3615_v34 = vld [vmem:[%s28140_s1 + $0x470] sm:$0xff] }
 0x199   :  { %v3246_v46 = vmax.f32 %v2054_v18, %v2990_v48  ;;  %4421 = vperm.xlu0 %19915, %v3611_v36   ;;  %v5040_v3 = vmul.f32 %v22261_v32, %v3248_v22  ;;  %v3616_v32 = vld [vmem:[%s28140_s1 + $0x478] sm:$0xff]  ;;  %v19994_v48 = vld [vmem:[%s28139_s0 + $0x228] sm:$0xff]  }
 0x19a   :  { %v22834_v56 = vpop.f32.mrf.mxu0 }
 0x19b   :  { %v5038_v40 = vmul.f32 %v22245_v35, %v3246_v46  ;;  %v22844_v54 = vpop.permute.xlu1 %4126  ;;  %v22846_v16 = vpop.permute.xlu0 %4121  ;;  %v5009_v35 = vmul.f32 %v22275_v25, %v3217_v41  ;;  %v5280_v33 = vpack.c.bf16 %v5040_v3, %v5039_v12  ;;  %v3222_v25 = vmax.f32 %v1958_v38, %v2966_v43  ;;  %v19996_v41 = vld [vmem:[%s28139_s0 + $0x230] sm:$0xff]  }
 0x19c   :  { %v22850_v18 = vpop.f32.mrf.mxu0  ;;  %4436 = vperm.xlu1 %19916, %v3614_v11   ;;  %v3221_v46 = vmax.f32 %v1955_v44, %v2965_v57  ;;  %v1971_v38 = vadd.f32 %v22564_v17, %v22457_v19  ;;  %v3617_v11 = vld [vmem:[%s28140_s1 + $0x480] sm:$0xff]  ;;  %v3620_v17 = vld [vmem:[%s28140_s1 + $0x498] sm:$0xff] }
 0x19d   :  { %4431 = vperm.xlu0 %19915, %v3613_v37   ;;  %19131 = vmatmul.mubr.msk.bf16.gmra.mxu0 %vm1519_vm0, %v19992_v53  ;;  %v5279_v20 = vpack.c.bf16 %v5038_v40, %v5037_v21  ;;  %v1974_v53 = vadd.f32 %v22582_v15, %v22457_v19  ;;  %v5265_v14 = vpack.c.bf16 %v5010_v42, %v5009_v35  ;;  %v22922_v57 = vld [vmem:[%s28149_s10] ss:$0 sm:$0xff] }
 0x19e   :  { %v22858_v36 = vpop.f32.mrf.mxu0  ;;  %19134 = vmatprep.mubr.msk.bf16.mxu0 %vm1519_vm0, %v19993_v7  ;;  %v5014_v44 = vmul.f32 %v22301_v23, %v3222_v25  ;;  %v5013_v40 = vmul.f32 %v22303_v27, %v3221_v46  ;;  %v2969_v42 = vmul.f32 0.2, %v1971_v38  ;;  %v3619_v23 = vld [vmem:[%s28140_s1 + $0x490] sm:$0xff]  ;;  %v20000_v27 = vld [vmem:[%s28142_s3 + $0x20] sm:$0xff]   ;;  %v3622_v25 = vld [vmem:[%s28140_s1 + $0x4a8] sm:$0xff] }
 0x19f   :  { %v22864_v49 = vpop.permute.xlu1 %4136  ;;  %v22866_v22 = vpop.permute.xlu0 %4131  ;;  %19270 = vmatprep.mubr.msk.bf16.mxu1 %vm5415_vm1, %v5279_v20  ;;  %v2970_v3 = vmul.f32 0.2, %v1974_v53  ;;  %v1990_v20 = vadd.f32 %v22922_v57, %v22624_v10 }
 0x1a0   :  { %v22874_v5 = vpop.f32.mrf.mxu0  ;;  %4446 = vperm.xlu1 %19916, %v3616_v32   ;;  %19271 = vmatmul.mubr.msk.bf16.gmra.mxu1 %vm5415_vm1, %v5280_v33  ;;  %v19997_v32 = vld [vmem:[%s28139_s0 + $0x238] sm:$0xff]   ;;  %v5267_v33 = vpack.c.bf16 %v5014_v44, %v5013_v40 }
 0x1a1   :  { %4441 = vperm.xlu0 %19915, %v3615_v34   ;;  %19278 = vmatprep.mubr.msk.bf16.mxu1 %vm5415_vm1, %v5265_v14  ;;  %v3226_v35 = vmax.f32 %v1974_v53, %v2970_v3  ;;  %v3225_v53 = vmax.f32 %v1971_v38, %v2969_v42  ;;  %v1987_v14 = vadd.f32 %v22922_v57, %v22603_v62  ;;  %v22954_v62 = vld [vmem:[%s28142_s3 + $0x38] sm:$0xff]   ;;  %v2974_v38 = vmul.f32 0.2, %v1990_v20 }
 0x1a2   :  { %v22883_v15 = vpop.f32.mrf.mxu0 }
 0x1a3   :  { %v22891_v37 = vpop.permute.xlu1 %4146  ;;  %v22893_v7 = vpop.permute.xlu0 %4141  ;;  %v5017_v44 = vmul.f32 %v22331_v29, %v3225_v53  ;;  %v2973_v3 = vmul.f32 0.2, %v1987_v14  ;;  %v3230_v29 = vmax.f32 %v1990_v20, %v2974_v38  ;;  %v2067_v20 = vadd.f32 %v22922_v57, %v22825_v0  ;;  %v3625_v53 = vld [vmem:[%s28140_s1 + $0x4c0] sm:$0xff] }
 0x1a4   :  { %v22896_v19 = vpop.f32.mrf.mxu0  ;;  %4456 = vperm.xlu1 %19916, %v3618_v4  }
 0x1a5   :  { %4451 = vperm.xlu0 %19915, %v3617_v11   ;;  %19135 = vmatmul.mubr.msk.bf16.gmra.mxu0 %vm1519_vm0, %v19994_v48  ;;  %v28702_v48 = vpack.c.bf16 %v22525_v9, %v22522_v8  ;;  %v3621_v8 = vld [vmem:[%s28140_s1 + $0x4a0] sm:$0xff] }
 0x1a6   :  { %v22903_v43 = vpop.f32.mrf.mxu0  ;;  %19138 = vmatprep.mubr.msk.bf16.mxu0 %vm1519_vm0, %v19996_v41  ;;  %v19998_v9 = vld [vmem:[%s28139_s0 + $0x240] sm:$0xff]   ;;  %v3624_v41 = vld [vmem:[%s28140_s1 + $0x4b8] sm:$0xff] }
 0x1a7   :  { %v22909_v21 = vpop.permute.xlu1 %4156  ;;  %v22911_v12 = vpop.permute.xlu0 %4151 }
 0x1a8   :  { %v22926_v34 = vpop.f32.mrf.mxu0  ;;  %4466 = vperm.xlu1 %19916, %v3620_v17   ;;  %19279 = vmatmul.mubr.msk.bf16.vlgmr.msra.gmra.mxu1 %vm5415_vm1, %v28702_v48  ;;  %v3626_v48 = vld [vmem:[%s28140_s1 + $0x4c8] sm:$0xff] }
 0x1a9   :  { %4461 = vperm.xlu0 %19915, %v3619_v23   ;;  %19282 = vmatprep.mubr.msk.bf16.mxu1 %vm5415_vm1, %v5267_v33  ;;  %v19999_v23 = vld [vmem:[%s28139_s0 + $0x248] sm:$0xff]  }
 0x1aa   :  { %19295 = vmatpush3.bf16.msra.mxu1 %v22741_v52  ;;  %v22939_v10 = vpop.f32.mrf.mxu0  ;;  %v5018_v52 = vmul.f32 %v22329_v24, %v3226_v35  ;;  %v3623_v24 = vld [vmem:[%s28140_s1 + $0x4b0] sm:$0xff] }
 0x1ab   :  { %v22947_v4 = vpop.permute.xlu1 %4166  ;;  %v22949_v46 = vpop.permute.xlu0 %4161  ;;  %19296 = vmatprep.subr.bf16.mxu1 %v20000_v27 }
 0x1ac   :  { %v22957_v11 = vpop.f32.mrf.mxu0  ;;  %4476 = vperm.xlu1 %19916, %v3622_v25   ;;  %v5269_v33 = vpack.c.bf16 %v5018_v52, %v5017_v44  ;;  %v3229_v25 = vmax.f32 %v1987_v14, %v2973_v3  ;;  %v5022_v14 = vmul.f32 %v22357_v26, %v3230_v29  ;;  %v3628_v52 = vld [vmem:[%s28140_s1 + $0x4d8] sm:$0xff]  ;;  %v3627_v26 = vld [vmem:[%s28140_s1 + $0x4d0] sm:$0xff]  ;;  %v2078_v3 = vadd.f32 %v22922_v57, %v22834_v56 }
 0x1ad   :  { %4471 = vperm.xlu0 %19915, %v3621_v8   ;;  %19139 = vmatmul.mubr.msk.bf16.gmra.mxu0 %vm1519_vm0, %v19997_v32  ;;  %v2070_v32 = vadd.f32 %v22922_v57, %v22850_v18  ;;  %v28707_v56 = vpack.c.bf16 %v22609_v61, %v22606_v59  ;;  %v20003_v59 = vld [vmem:[%s28139_s0 + $0x260] sm:$0xff]  }
 0x1ae   :  { %v22964_v17 = vpop.f32.mrf.mxu0  ;;  %19142 = vmatprep.mubr.msk.bf16.mxu0 %vm1519_vm0, %v19998_v9  ;;  %19297 = vmatpush3.bf16.msra.mxu1 %v20000_v27  ;;  %v28703_v27 = vpack.c.bf16 %v22570_v13, %v22567_v63  ;;  %v20001_v13 = vld [vmem:[%s28139_s0 + $0x250] sm:$0xff]   ;;  %v5021_v38 = vmul.f32 %v22359_v31, %v3229_v25  ;;  %v20002_v31 = vld [vmem:[%s28139_s0 + $0x258] sm:$0xff]   ;;  %v2075_v25 = vadd.f32 %v22922_v57, %v22808_v51  ;;  %v3629_v51 = vld [vmem:[%s28140_s1 + $0x4e0] sm:$0xff]  ;;  %v2996_v61 = vmul.f32 0.2, %v2078_v3 }
 0x1af   :  { %v22970_v40 = vpop.permute.xlu1 %4176  ;;  %v22972_v42 = vpop.permute.xlu0 %4171  ;;  %19314 = vmatprep.subr.bf16.mxu1 %v22954_v62  ;;  %v2994_v9 = vmul.f32 0.2, %v2070_v32 }
 0x1b0   :  { %v22980_v35 = vpop.f32.mrf.mxu0  ;;  %4486 = vperm.xlu1 %19916, %v3624_v41   ;;  %19283 = vmatmul.mubr.msk.bf16.gmra.mxu1 %vm5415_vm1, %v28703_v27  ;;  %v2993_v41 = vmul.f32 0.2, %v2067_v20 }
 0x1b1   :  { %4481 = vperm.xlu0 %19915, %v3623_v24   ;;  %19286 = vmatprep.mubr.msk.bf16.mxu1 %vm5415_vm1, %v5269_v33  ;;  %v3250_v29 = vmax.f32 %v2070_v32, %v2994_v9  ;;  %v2086_v33 = vadd.f32 %v22922_v57, %v22896_v19  ;;  %v3630_v32 = vld [vmem:[%s28140_s1 + $0x4e8] sm:$0xff]  ;;  %v2083_v19 = vadd.f32 %v22922_v57, %v22874_v5  ;;  %v3632_v5 = vld [vmem:[%s28140_s1 + $0x4f8] sm:$0xff] }
 0x1b2   :  { %v22992_v18 = vpop.f32.mrf.mxu0 }
 0x1b3   :  { %v23000_v63 = vpop.permute.xlu1 %4186  ;;  %v23002_v8 = vpop.permute.xlu0 %4181 }
 0x1b4   :  { %28704 = vst [vmem:[#allocation300_spill] sm:$0xff] %v23002_v8  ;;  %v23005_v0 = vpop.f32.mrf.mxu0  ;;  %4496 = vperm.xlu1 %19916, %v3626_v48   ;;  %v5271_v48 = vpack.c.bf16 %v5022_v14, %v5021_v38 }
 0x1b5   :  { %4491 = vperm.xlu0 %19915, %v3625_v53   ;;  %19143 = vmatmul.mubr.msk.bf16.gmra.mxu0 %vm1519_vm0, %v19999_v23  ;;  %v3249_v53 = vmax.f32 %v2067_v20, %v2993_v41  ;;  %v5042_v20 = vmul.f32 %v22385_v28, %v3250_v29  ;;  %v2995_v41 = vmul.f32 0.2, %v2075_v25  ;;  %v3252_v28 = vmax.f32 %v2078_v3, %v2996_v61  ;;  %v28712_v61 = vld [vmem:[#allocation292_spill] sm:$0xff] }
 0x1b6   :  { %v23012_v44 = vpop.f32.mrf.mxu0  ;;  %19146 = vmatprep.mubr.msk.bf16.mxu0 %vm1519_vm0, %v20001_v13  ;;  %v23071_v29 = vadd.f32 %v22922_v57, %v22883_v15  ;;  %v23088_v15 = vadd.f32 %v22922_v57, %v22858_v36  ;;  %v20006_v36 = vld [vmem:[%s28139_s0 + $0x270] sm:$0xff]  }
 0x1b7   :  { %v23020_v24 = vpop.permute.xlu1 %4196  ;;  %v23022_v23 = vpop.permute.xlu0 %4191 }
 0x1b8   :  { %28705 = vst [vmem:[#allocation301_spill] sm:$0xff] %v23020_v24  ;;  %28706 = vst [vmem:[#allocation302_spill] sm:$0xff] %v23022_v23  ;;  %v23029_v27 = vpop.f32.mrf.mxu0  ;;  %4506 = vperm.xlu1 %19916, %v3628_v52   ;;  %19287 = vmatmul.mubr.msk.bf16.gmra.mxu1 %vm5415_vm1, %v28707_v56  ;;  %v2998_v52 = vmul.f32 0.2, %v2086_v33 }
 0x1b9   :  { %4501 = vperm.xlu0 %19915, %v3627_v26   ;;  %19290 = vmatprep.mubr.msk.bf16.mxu1 %vm5415_vm1, %v5271_v48  ;;  %v5041_v26 = vmul.f32 %v22387_v1, %v3249_v53  ;;  %v2997_v48 = vmul.f32 0.2, %v2083_v19  ;;  %v20004_v1 = vld [vmem:[%s28139_s0 + $0x268] sm:$0xff]   ;;  %v23082_v53 = vadd.f32 %v22922_v57, %v22957_v11 }
 0x1ba   :  { %v23043_v13 = vpop.f32.mrf.mxu0  ;;  %v3634_v11 = vld [vmem:[%s28140_s1 + $0x508] sm:$0xff] }
 0x1bb   :  { %v23051_v14 = vpop.permute.xlu1 %4206  ;;  %v23053_v9 = vpop.permute.xlu0 %4201  ;;  %v5281_v3 = vpack.c.bf16 %v5042_v20, %v5041_v26 }
 0x1bc   :  { %28708 = vst [vmem:[#allocation303_spill] sm:$0xff] %v23051_v14  ;;  %28709 = vst [vmem:[#allocation304_spill] sm:$0xff] %v23053_v9  ;;  %v23059_v38 = vpop.f32.mrf.mxu0  ;;  %4516 = vperm.xlu1 %19916, %v3630_v32   ;;  %v3631_v9 = vld [vmem:[%s28140_s1 + $0x4f0] sm:$0xff] }
 0x1bd   :  { %4511 = vperm.xlu0 %19915, %v3629_v51   ;;  %19147 = vmatmul.mubr.msk.bf16.gmra.mxu0 %vm1519_vm0, %v20002_v31  ;;  %v3254_v31 = vmax.f32 %v2086_v33, %v2998_v52  ;;  %v3253_v33 = vmax.f32 %v2083_v19, %v2997_v48  ;;  %v3000_v19 = vmul.f32 0.2, %v23071_v29  ;;  %v3002_v48 = vmul.f32 0.2, %v23082_v53 }
 0x1be   :  { %v23063_v56 = vpop.f32.mrf.mxu0  ;;  %19150 = vmatprep.mubr.msk.bf16.mxu0 %vm1519_vm0, %v20003_v59  ;;  %v3251_v59 = vmax.f32 %v2075_v25, %v2995_v41  ;;  %v28717_v41 = vld [vmem:[#allocation266_spill] sm:$0xff] }
 0x1bf   :  { %v23073_v32 = vpop.permute.xlu1 %4216  ;;  %v23075_v51 = vpop.permute.xlu0 %4211  ;;  %v5046_v26 = vmul.f32 %v28717_v41, %v3254_v31 }
 0x1c0   :  { %28710 = vst [vmem:[#allocation305_spill] sm:$0xff] %v23073_v32  ;;  %28711 = vst [vmem:[#allocation306_spill] sm:$0xff] %v23075_v51  ;;  %v23084_v14 = vpop.f32.mrf.mxu0  ;;  %4526 = vperm.xlu1 %19916, %v3632_v5   ;;  %v28713_v51 = vpack.c.bf16 %v22653_v60, %v28712_v61  ;;  %v23099_v5 = vadd.f32 %v22922_v57, %v22926_v34  ;;  %v3633_v60 = vld [vmem:[%s28140_s1 + $0x500] sm:$0xff]  ;;  %v2999_v32 = vmul.f32 0.2, %v23088_v15 }
 0x1c1   :  { %4521 = vperm.xlu0 %19915, %v3631_v9   ;;  %v28714_v9 = vld [vmem:[#allocation264_spill] sm:$0xff] }
 0x1c2   :  { %19291 = vmatmul.mubr.msk.bf16.gmra.mxu1 %vm5415_vm1, %v28713_v51  ;;  %v23102_v25 = vpop.f32.mrf.mxu0  ;;  %v5044_v20 = vmul.f32 %v28714_v9, %v3252_v28  ;;  %v3636_v28 = vld [vmem:[%s28140_s1 + $0x518] sm:$0xff]  ;;  %v3001_v31 = vmul.f32 0.2, %v23099_v5 }
 0x1c3   :  { %19298 = vmatprep.mubr.msk.bf16.mxu1 %vm5415_vm1, %v5281_v3  ;;  %v23112_v52 = vpop.permute.xlu1 %4226  ;;  %v23114_v34 = vpop.permute.xlu0 %4221  ;;  %v28718_v3 = vld [vmem:[#allocation265_spill] sm:$0xff]  ;;  %v28719_v9 = vld [vmem:[#allocation267_spill] sm:$0xff] }
 0x1c4   :  { %28715 = vst [vmem:[#allocation292_spill] sm:$0xff] %v23112_v52  ;;  %28716 = vst [vmem:[#allocation264_spill] sm:$0xff] %v23114_v34  ;;  %v23118_v51 = vpop.f32.mrf.mxu0  ;;  %4536 = vperm.xlu1 %19916, %v3634_v11   ;;  %v5043_v61 = vmul.f32 %v28718_v3, %v3251_v59  ;;  %v5045_v34 = vmul.f32 %v28719_v9, %v3253_v33  ;;  %v3635_v11 = vld [vmem:[%s28140_s1 + $0x510] sm:$0xff]  ;;  %v3638_v9 = vld [vmem:[%s28140_s1 + $0x528] sm:$0xff] }
 0x1c5   :  { %4531 = vperm.xlu0 %19915, %v3633_v60   ;;  %19151 = vmatmul.mubr.msk.bf16.gmra.mxu0 %vm1519_vm0, %v20004_v1  ;;  %v3256_v60 = vmax.f32 %v23071_v29, %v3000_v19  ;;  %v23137_v1 = vadd.f32 %v22922_v57, %v22939_v10  ;;  %v20007_v52 = vld [vmem:[%s28139_s0 + $0x278] sm:$0xff]   ;;  %v20010_v29 = vld [vmem:[%s28142_s3 + $0x30] sm:$0xff]   ;;  %v23155_v10 = vadd.f32 %v22922_v57, %v23005_v0 }
 0x1c6   :  { %v23128_v41 = vpop.f32.mrf.mxu0  ;;  %19154 = vmatprep.mubr.msk.bf16.mxu0 %vm1519_vm0, %v20006_v36  ;;  %v5282_v59 = vpack.c.bf16 %v5044_v20, %v5043_v61  ;;  %v3258_v36 = vmax.f32 %v23082_v53, %v3002_v48  ;;  %v5283_v19 = vpack.c.bf16 %v5046_v26, %v5045_v34  ;;  %v3255_v61 = vmax.f32 %v23088_v15, %v2999_v32  ;;  %v3637_v53 = vld [vmem:[%s28140_s1 + $0x520] sm:$0xff]  ;;  %v23183_v15 = vld [vmem:[%s28142_s3 + $0x48] sm:$0xff]  }
 0x1c7   :  { %v23139_v3 = vpop.permute.xlu1 %4236  ;;  %v23141_v33 = vpop.permute.xlu0 %4231  ;;  %v3257_v0 = vmax.f32 %v23099_v5, %v3001_v31  ;;  %v23171_v48 = vadd.f32 %v22922_v57, %v22980_v35  ;;  %v28722_v5 = vld [vmem:[#allocation268_spill] sm:$0xff]  ;;  %v3004_v35 = vmul.f32 0.2, %v23137_v1  ;;  %v28725_v31 = vld [vmem:[#allocation270_spill] sm:$0xff] }
 0x1c8   :  { %28720 = vst [vmem:[#allocation266_spill] sm:$0xff] %v23139_v3  ;;  %28721 = vst [vmem:[#allocation265_spill] sm:$0xff] %v23141_v33  ;;  %v23157_v20 = vpop.f32.mrf.mxu0  ;;  %4546 = vperm.xlu1 %19916, %v3636_v28   ;;  %v23162_v33 = vadd.f32 %v22922_v57, %v22903_v43  ;;  %v20008_v43 = vld [vmem:[%s28139_s0 + $0x280] sm:$0xff]   ;;  %v5048_v34 = vmul.f32 %v28722_v5, %v3256_v60  ;;  %v28726_v3 = vld [vmem:[#allocation269_spill] sm:$0xff] }
 0x1c9   :  { %4541 = vperm.xlu0 %19915, %v3635_v11   ;;  %v5050_v11 = vmul.f32 %v28725_v31, %v3258_v36  ;;  %v5047_v60 = vmul.f32 %v28726_v3, %v3255_v61  ;;  %v3005_v23 = vmul.f32 0.2, %v23171_v48  ;;  %v3639_v36 = vld [vmem:[%s28140_s1 + $0x530] sm:$0xff]  ;;  %v3260_v3 = vmax.f32 %v23137_v1, %v3004_v35 }
 0x1ca   :  { %19299 = vmatmul.mubr.msk.bf16.vlgmr.msra.gmra.mxu1 %vm5415_vm1, %v5282_v59  ;;  %v23175_v32 = vpop.f32.mrf.mxu0  ;;  %v3006_v59 = vmul.f32 0.2, %v23155_v10  ;;  %v3003_v5 = vmul.f32 0.2, %v23162_v33  ;;  %v2126_v61 = vadd.f32 %v22922_v57, %v22992_v18  ;;  %v2123_v18 = vadd.f32 %v22922_v57, %v22964_v17  ;;  %v3641_v17 = vld [vmem:[%s28140_s1 + $0x540] sm:$0xff]  ;;  %v20011_v35 = vld [vmem:[%s28139_s0 + $0x290] sm:$0xff]  }
 0x1cb   :  { %19302 = vmatprep.mubr.msk.bf16.mxu1 %vm5415_vm1, %v5283_v19  ;;  %19315 = vmatpush3.bf16.msra.mxu1 %v22954_v62  ;;  %v23187_v26 = vpop.permute.xlu1 %4246  ;;  %v23189_v28 = vpop.permute.xlu0 %4241  ;;  %v3640_v62 = vld [vmem:[%s28140_s1 + $0x538] sm:$0xff] }
 0x1cc   :  { %28723 = vst [vmem:[#allocation267_spill] sm:$0xff] %v23187_v26  ;;  %28724 = vst [vmem:[#allocation268_spill] sm:$0xff] %v23189_v28  ;;  %19316 = vmatprep.subr.bf16.mxu1 %v20010_v29  ;;  %v23196_v19 = vpop.f32.mrf.mxu0  ;;  %4556 = vperm.xlu1 %19916, %v3638_v9   ;;  %v28727_v28 = vld [vmem:[#allocation271_spill] sm:$0xff]  ;;  %v5284_v9 = vpack.c.bf16 %v5048_v34, %v5047_v60  ;;  %v3259_v1 = vmax.f32 %v23162_v33, %v3003_v5 }
 0x1cd   :  { %4551 = vperm.xlu0 %19915, %v3637_v53   ;;  %19155 = vmatmul.mubr.msk.bf16.gmra.mxu0 %vm1519_vm0, %v20007_v52  ;;  %v5049_v26 = vmul.f32 %v28727_v28, %v3257_v0  ;;  %v3262_v0 = vmax.f32 %v23155_v10, %v3006_v59  ;;  %v2134_v28 = vadd.f32 %v22922_v57, %v23059_v38  ;;  %v20009_v38 = vld [vmem:[%s28139_s0 + $0x288] sm:$0xff]  }
 0x1ce   :  { %v23203_v8 = vpop.f32.mrf.mxu0  ;;  %19158 = vmatprep.mubr.msk.bf16.mxu0 %vm1519_vm0, %v20008_v43  ;;  %v3642_v43 = vld [vmem:[%s28140_s1 + $0x548] sm:$0xff]  ;;  %v3261_v10 = vmax.f32 %v23171_v48, %v3005_v23  ;;  %v2131_v34 = vadd.f32 %v22922_v57, %v23029_v27  ;;  %v28733_v27 = vld [vmem:[#allocation274_spill] sm:$0xff] }
 0x1cf   :  { %19317 = vmatpush3.bf16.msra.mxu1 %v20010_v29  ;;  %v23212_v52 = vpop.permute.xlu1 %4256  ;;  %v23214_v53 = vpop.permute.xlu0 %4251  ;;  %v5285_v29 = vpack.c.bf16 %v5050_v11, %v5049_v26  ;;  %v28730_v26 = vld [vmem:[#allocation272_spill] sm:$0xff]  ;;  %v3008_v11 = vmul.f32 0.2, %v2126_v61  ;;  %v5054_v48 = vmul.f32 %v28733_v27, %v3262_v0  ;;  %v3010_v60 = vmul.f32 0.2, %v2134_v28  ;;  %v3643_v0 = vld [vmem:[%s28140_s1 + $0x550] sm:$0xff] }
 0x1d0   :  { %28728 = vst [vmem:[#allocation270_spill] sm:$0xff] %v23212_v52  ;;  %28729 = vst [vmem:[#allocation269_spill] sm:$0xff] %v23214_v53  ;;  %19334 = vmatprep.subr.bf16.mxu1 %v23183_v15  ;;  %v23220_v31 = vpop.f32.mrf.mxu0  ;;  %4566 = vperm.xlu1 %19916, %v3640_v62   ;;  %v5052_v62 = vmul.f32 %v28730_v26, %v3260_v3  ;;  %v3644_v3 = vld [vmem:[%s28140_s1 + $0x558] sm:$0xff]  ;;  %v3009_v53 = vmul.f32 0.2, %v2131_v34 }
 0x1d1   :  { %4561 = vperm.xlu0 %19915, %v3639_v36   ;;  %v28734_v36 = vld [vmem:[#allocation273_spill] sm:$0xff]  ;;  %v28735_v26 = vld [vmem:[#allocation275_spill] sm:$0xff] }
 0x1d2   :  { %19303 = vmatmul.mubr.msk.bf16.gmra.mxu1 %vm5415_vm1, %v5284_v9  ;;  %v23236_v33 = vpop.f32.mrf.mxu0  ;;  %v5051_v9 = vmul.f32 %v28734_v36, %v3259_v1  ;;  %v3266_v36 = vmax.f32 %v2134_v28, %v3010_v60  ;;  %v2147_v28 = vadd.f32 %v22922_v57, %v23084_v14  ;;  %v28741_v14 = vld [vmem:[#allocation278_spill] sm:$0xff] }
 0x1d3   :  { %19306 = vmatprep.mubr.msk.bf16.mxu1 %vm5415_vm1, %v5285_v29  ;;  %v23245_v59 = vpop.permute.xlu1 %4266  ;;  %v23247_v23 = vpop.permute.xlu0 %4261  ;;  %v3007_v29 = vmul.f32 0.2, %v2123_v18 }
 0x1d4   :  { %28731 = vst [vmem:[#allocation271_spill] sm:$0xff] %v23245_v59  ;;  %28732 = vst [vmem:[#allocation272_spill] sm:$0xff] %v23247_v23  ;;  %v23250_v5 = vpop.f32.mrf.mxu0  ;;  %4576 = vperm.xlu1 %19916, %v3642_v43   ;;  %v5053_v59 = vmul.f32 %v28735_v26, %v3261_v10  ;;  %v5286_v1 = vpack.c.bf16 %v5052_v62, %v5051_v9  ;;  %v3264_v43 = vmax.f32 %v2126_v61, %v3008_v11  ;;  %v20012_v61 = vld [vmem:[%s28139_s0 + $0x298] sm:$0xff]   ;;  %v20013_v62 = vld [vmem:[%s28139_s0 + $0x2a0] sm:$0xff]  }
 0x1d5   :  { %4571 = vperm.xlu0 %19915, %v3641_v17   ;;  %19159 = vmatmul.mubr.msk.bf16.gmra.mxu0 %vm1519_vm0, %v20009_v38  ;;  %v2142_v38 = vadd.f32 %v22922_v57, %v23043_v13  ;;  %v2150_v10 = vadd.f32 %v22922_v57, %v23118_v51  ;;  %v3263_v24 = vmax.f32 %v2123_v18, %v3007_v29  ;;  %v3646_v13 = vld [vmem:[%s28140_s1 + $0x568] sm:$0xff]  ;;  %v28738_v11 = vld [vmem:[#allocation276_spill] sm:$0xff] }
 0x1d6   :  { %v23258_v23 = vpop.f32.mrf.mxu0  ;;  %19162 = vmatprep.mubr.msk.bf16.mxu0 %vm1519_vm0, %v20011_v35  ;;  %v5287_v52 = vpack.c.bf16 %v5054_v48, %v5053_v59  ;;  %v2139_v35 = vadd.f32 %v22922_v57, %v23012_v44  ;;  %v3265_v51 = vmax.f32 %v2131_v34, %v3009_v53  ;;  %v3645_v44 = vld [vmem:[%s28140_s1 + $0x560] sm:$0xff]  ;;  %v5056_v59 = vmul.f32 %v28738_v11, %v3264_v43  ;;  %v28742_v29 = vld [vmem:[#allocation277_spill] sm:$0xff]  ;;  %v28743_v43 = vld [vmem:[#allocation279_spill] sm:$0xff] }
 0x1d7   :  { %v23266_v17 = vpop.permute.xlu1 %4276  ;;  %v23268_v27 = vpop.permute.xlu0 %4271  ;;  %v3012_v48 = vmul.f32 0.2, %v2142_v38  ;;  %v5058_v34 = vmul.f32 %v28741_v14, %v3266_v36  ;;  %v3647_v36 = vld [vmem:[%s28140_s1 + $0x570] sm:$0xff] }
 0x1d8   :  { %28736 = vst [vmem:[#allocation274_spill] sm:$0xff] %v23266_v17  ;;  %28737 = vst [vmem:[#allocation273_spill] sm:$0xff] %v23268_v27  ;;  %v23272_v26 = vpop.f32.mrf.mxu0  ;;  %4586 = vperm.xlu1 %19916, %v3644_v3   ;;  %v5055_v3 = vmul.f32 %v28742_v29, %v3263_v24  ;;  %v5057_v11 = vmul.f32 %v28743_v43, %v3265_v51  ;;  %v23324_v29 = vadd.f32 %v22922_v57, %v23196_v19  ;;  %v20014_v19 = vld [vmem:[%s28139_s0 + $0x2a8] sm:$0xff]  }
 0x1d9   :  { %4581 = vperm.xlu0 %19915, %v3643_v0   ;;  %v3011_v0 = vmul.f32 0.2, %v2139_v35 }
 0x1da   :  { %19307 = vmatmul.mubr.msk.bf16.gmra.mxu1 %vm5415_vm1, %v5286_v1  ;;  %v23286_v18 = vpop.f32.mrf.mxu0  ;;  %v3648_v1 = vld [vmem:[%s28140_s1 + $0x578] sm:$0xff]  ;;  %v5288_v24 = vpack.c.bf16 %v5056_v59, %v5055_v3  ;;  %v5289_v27 = vpack.c.bf16 %v5058_v34, %v5057_v11  ;;  %v23341_v59 = vadd.f32 %v22922_v57, %v23157_v20  ;;  %v28746_v34 = vld [vmem:[#allocation280_spill] sm:$0xff]  ;;  %v28749_v3 = vld [vmem:[#allocation282_spill] sm:$0xff] }
 0x1db   :  { %19310 = vmatprep.mubr.msk.bf16.mxu1 %vm5415_vm1, %v5287_v52  ;;  %v23295_v60 = vpop.permute.xlu1 %4286  ;;  %v23297_v53 = vpop.permute.xlu0 %4281  ;;  %v3014_v52 = vmul.f32 0.2, %v2150_v10  ;;  %v28750_v11 = vld [vmem:[#allocation281_spill] sm:$0xff] }
 0x1dc   :  { %28739 = vst [vmem:[#allocation275_spill] sm:$0xff] %v23295_v60  ;;  %28740 = vst [vmem:[#allocation276_spill] sm:$0xff] %v23297_v53  ;;  %v23300_v9 = vpop.f32.mrf.mxu0  ;;  %4596 = vperm.xlu1 %19916, %v3646_v13   ;;  %v3013_v60 = vmul.f32 0.2, %v2147_v28  ;;  %v3268_v13 = vmax.f32 %v2142_v38, %v3012_v48  ;;  %v23330_v38 = vadd.f32 %v22922_v57, %v23063_v56  ;;  %v20016_v48 = vld [vmem:[%s28139_s0 + $0x2b0] sm:$0xff]  }
 0x1dd   :  { %4591 = vperm.xlu0 %19915, %v3645_v44   ;;  %19163 = vmatmul.mubr.msk.bf16.gmra.mxu0 %vm1519_vm0, %v20012_v61  ;;  %v23316_v61 = vadd.f32 %v22922_v57, %v23102_v25  ;;  %v3270_v51 = vmax.f32 %v2150_v10, %v3014_v52  ;;  %v3650_v25 = vld [vmem:[%s28140_s1 + $0x588] sm:$0xff] }
 0x1de   :  { %v23308_v53 = vpop.f32.mrf.mxu0  ;;  %19166 = vmatprep.mubr.msk.bf16.mxu0 %vm1519_vm0, %v20013_v62  ;;  %v3267_v62 = vmax.f32 %v2139_v35, %v3011_v0  ;;  %v3269_v10 = vmax.f32 %v2147_v28, %v3013_v60  ;;  %v3649_v35 = vld [vmem:[%s28140_s1 + $0x580] sm:$0xff]  ;;  %v5060_v52 = vmul.f32 %v28746_v34, %v3268_v13  ;;  %v3018_v0 = vmul.f32 0.2, %v23324_v29  ;;  %v3652_v13 = vld [vmem:[%s28140_s1 + $0x598] sm:$0xff] }
 0x1df   :  { %v23318_v44 = vpop.permute.xlu1 %4296  ;;  %v23320_v14 = vpop.permute.xlu0 %4291  ;;  %v3016_v28 = vmul.f32 0.2, %v23316_v61  ;;  %v28751_v34 = vld [vmem:[#allocation283_spill] sm:$0xff] }
 0x1e0   :  { %28744 = vst [vmem:[#allocation278_spill] sm:$0xff] %v23318_v44  ;;  %28745 = vst [vmem:[#allocation277_spill] sm:$0xff] %v23320_v14  ;;  %v23326_v43 = vpop.f32.mrf.mxu0  ;;  %4606 = vperm.xlu1 %19916, %v3648_v1   ;;  %v2198_v14 = vadd.f32 %v22922_v57, %v23300_v9  ;;  %v20019_v9 = vld [vmem:[%s28139_s0 + $0x2c8] sm:$0xff]  }
 0x1e1   :  { %4601 = vperm.xlu0 %19915, %v3647_v36   ;;  %v5059_v36 = vmul.f32 %v28750_v11, %v3267_v62 }
 0x1e2   :  { %19311 = vmatmul.mubr.msk.bf16.gmra.mxu1 %vm5415_vm1, %v5288_v24  ;;  %v23344_v56 = vpop.f32.mrf.mxu0  ;;  %v3015_v24 = vmul.f32 0.2, %v23330_v38 }
 0x1e3   :  { %19318 = vmatprep.mubr.msk.bf16.mxu1 %vm5415_vm1, %v5289_v27  ;;  %v23354_v60 = vpop.permute.xlu1 %4306  ;;  %v23356_v20 = vpop.permute.xlu0 %4301  ;;  %v5062_v27 = vmul.f32 %v28749_v3, %v3270_v51  ;;  %v3017_v51 = vmul.f32 0.2, %v23341_v59  ;;  %v5290_v62 = vpack.c.bf16 %v5060_v52, %v5059_v36  ;;  %v28754_v36 = vld [vmem:[#allocation284_spill] sm:$0xff] }
 0x1e4   :  { %28747 = vst [vmem:[#allocation279_spill] sm:$0xff] %v23354_v60  ;;  %28748 = vst [vmem:[#allocation280_spill] sm:$0xff] %v23356_v20  ;;  %v23360_v1 = vpop.f32.mrf.mxu0  ;;  %4616 = vperm.xlu1 %19916, %v3650_v25   ;;  %v5061_v20 = vmul.f32 %v28751_v34, %v3269_v10  ;;  %v3651_v25 = vld [vmem:[%s28140_s1 + $0x590] sm:$0xff]  ;;  %v20020_v34 = vld [vmem:[%s28142_s3 + $0x40] sm:$0xff]   ;;  %v3274_v60 = vmax.f32 %v23324_v29, %v3018_v0 }
 0x1e5   :  { %4611 = vperm.xlu0 %19915, %v3649_v35   ;;  %19167 = vmatmul.mubr.msk.bf16.gmra.mxu0 %vm1519_vm0, %v20014_v19  ;;  %v3272_v35 = vmax.f32 %v23316_v61, %v3016_v28  ;;  %v23379_v19 = vadd.f32 %v22922_v57, %v23175_v32  ;;  %v3271_v32 = vmax.f32 %v23330_v38, %v3015_v24  ;;  %v3654_v29 = vld [vmem:[%s28140_s1 + $0x5a8] sm:$0xff] }
 0x1e6   :  { %v23370_v3 = vpop.f32.mrf.mxu0  ;;  %19170 = vmatprep.mubr.msk.bf16.mxu0 %vm1519_vm0, %v20016_v48  ;;  %v23391_v48 = vadd.f32 %v22922_v57, %v23250_v5  ;;  %v5291_v61 = vpack.c.bf16 %v5062_v27, %v5061_v20  ;;  %v23398_v28 = vadd.f32 %v22922_v57, %v23128_v41  ;;  %v20017_v5 = vld [vmem:[%s28139_s0 + $0x2b8] sm:$0xff]   ;;  %v3273_v0 = vmax.f32 %v23341_v59, %v3017_v51  ;;  %v3653_v20 = vld [vmem:[%s28140_s1 + $0x5a0] sm:$0xff]  ;;  %v28757_v51 = vld [vmem:[#allocation286_spill] sm:$0xff] }
 0x1e7   :  { %v23381_v11 = vpop.permute.xlu1 %4316  ;;  %v23383_v10 = vpop.permute.xlu0 %4311  ;;  %v23410_v38 = vadd.f32 %v22922_v57, %v23220_v31  ;;  %v20018_v27 = vld [vmem:[%s28139_s0 + $0x2c0] sm:$0xff]   ;;  %v5064_v59 = vmul.f32 %v28754_v36, %v3272_v35  ;;  %v3020_v24 = vmul.f32 0.2, %v23379_v19  ;;  %v28758_v35 = vld [vmem:[#allocation285_spill] sm:$0xff] }
 0x1e8   :  { %28752 = vst [vmem:[#allocation282_spill] sm:$0xff] %v23381_v11  ;;  %28753 = vst [vmem:[#allocation281_spill] sm:$0xff] %v23383_v10  ;;  %v23393_v52 = vpop.f32.mrf.mxu0  ;;  %4626 = vperm.xlu1 %19916, %v3652_v13   ;;  %v5063_v36 = vmul.f32 %v28758_v35, %v3271_v32  ;;  %v3019_v10 = vmul.f32 0.2, %v23398_v28 }
 0x1e9   :  { %4621 = vperm.xlu0 %19915, %v3651_v25   ;;  %v5066_v25 = vmul.f32 %v28757_v51, %v3274_v60  ;;  %v3021_v60 = vmul.f32 0.2, %v23410_v38 }
 0x1ea   :  { %19319 = vmatmul.mubr.msk.bf16.vlgmr.msra.gmra.mxu1 %vm5415_vm1, %v5290_v62  ;;  %v23414_v41 = vpop.f32.mrf.mxu0  ;;  %v3022_v62 = vmul.f32 0.2, %v23391_v48  ;;  %v5292_v32 = vpack.c.bf16 %v5064_v59, %v5063_v36  ;;  %v28762_v59 = vld [vmem:[#allocation288_spill] sm:$0xff]  ;;  %v3026_v36 = vmul.f32 0.2, %v2198_v14 }
 0x1eb   :  { %19322 = vmatprep.mubr.msk.bf16.mxu1 %vm5415_vm1, %v5291_v61  ;;  %19335 = vmatpush3.bf16.msra.mxu1 %v23183_v15  ;;  %v23424_v31 = vpop.permute.xlu1 %4326  ;;  %v23426_v13 = vpop.permute.xlu0 %4321  ;;  %v23431_v15 = vld [vmem:[%s28142_s3 + $0x58] sm:$0xff]  }
 0x1ec   :  { %28755 = vst [vmem:[#allocation283_spill] sm:$0xff] %v23424_v31  ;;  %28756 = vst [vmem:[#allocation284_spill] sm:$0xff] %v23426_v13  ;;  %19336 = vmatprep.subr.bf16.mxu1 %v20020_v34  ;;  %v23435_v61 = vpop.f32.mrf.mxu0  ;;  %4636 = vperm.xlu1 %19916, %v3654_v29   ;;  %v3656_v13 = vld [vmem:[%s28140_s1 + $0x5b8] sm:$0xff]  ;;  %v3655_v29 = vld [vmem:[%s28140_s1 + $0x5b0] sm:$0xff] }
 0x1ed   :  { %4631 = vperm.xlu0 %19915, %v3653_v20   ;;  %19171 = vmatmul.mubr.msk.bf16.gmra.mxu0 %vm1519_vm0, %v20017_v5  ;;  %v28759_v31 = vld [vmem:[#allocation287_spill] sm:$0xff]  ;;  %v3276_v5 = vmax.f32 %v23379_v19, %v3020_v24  ;;  %v2190_v20 = vadd.f32 %v22922_v57, %v23236_v33  ;;  %v3275_v19 = vmax.f32 %v23398_v28, %v3019_v10  ;;  %v20021_v28 = vld [vmem:[%s28139_s0 + $0x2d0] sm:$0xff]  }
 0x1ee   :  { %v5065_v11 = vmul.f32 %v28759_v31, %v3273_v0  ;;  %v23445_v51 = vpop.f32.mrf.mxu0  ;;  %19174 = vmatprep.mubr.msk.bf16.mxu0 %vm1519_vm0, %v20018_v27  ;;  %v3278_v31 = vmax.f32 %v23391_v48, %v3022_v62  ;;  %v2187_v33 = vadd.f32 %v22922_v57, %v23203_v8  ;;  %v3658_v27 = vld [vmem:[%s28140_s1 + $0x5c8] sm:$0xff]  ;;  %v3277_v48 = vmax.f32 %v23410_v38, %v3021_v60  ;;  %v3657_v8 = vld [vmem:[%s28140_s1 + $0x5c0] sm:$0xff] }
 0x1ef   :  { %19337 = vmatpush3.bf16.msra.mxu1 %v20020_v34  ;;  %v23454_v35 = vpop.permute.xlu1 %4336  ;;  %v23456_v0 = vpop.permute.xlu0 %4331  ;;  %v5068_v24 = vmul.f32 %v28762_v59, %v3276_v5  ;;  %v3660_v5 = vld [vmem:[%s28140_s1 + $0x5d8] sm:$0xff] }
 0x1f0   :  { %28760 = vst [vmem:[#allocation286_spill] sm:$0xff] %v23454_v35  ;;  %28761 = vst [vmem:[#allocation285_spill] sm:$0xff] %v23456_v0  ;;  %19354 = vmatprep.subr.bf16.mxu1 %v23431_v15  ;;  %v23462_v44 = vpop.f32.mrf.mxu0  ;;  %4646 = vperm.xlu1 %19916, %v3656_v13   ;;  %v5293_v34 = vpack.c.bf16 %v5066_v25, %v5065_v11  ;;  %v2195_v11 = vadd.f32 %v22922_v57, %v23272_v26  ;;  %v3024_v13 = vmul.f32 0.2, %v2190_v20  ;;  %v28765_v26 = vld [vmem:[#allocation290_spill] sm:$0xff]  ;;  %v28767_v59 = vld [vmem:[#allocation291_spill] sm:$0xff] }
 0x1f1   :  { %4641 = vperm.xlu0 %19915, %v3655_v29   ;;  %v5070_v62 = vmul.f32 %v28765_v26, %v3278_v31  ;;  %v28766_v29 = vld [vmem:[#allocation289_spill] sm:$0xff]  ;;  %v3659_v31 = vld [vmem:[%s28140_s1 + $0x5d0] sm:$0xff] }
 0x1f2   :  { %19323 = vmatmul.mubr.msk.bf16.gmra.mxu1 %vm5415_vm1, %v5292_v32  ;;  %v23478_v10 = vpop.f32.mrf.mxu0  ;;  %v5067_v32 = vmul.f32 %v28766_v29, %v3275_v19  ;;  %v3025_v0 = vmul.f32 0.2, %v2195_v11  ;;  %v3282_v29 = vmax.f32 %v2198_v14, %v3026_v36  ;;  %v20022_v14 = vld [vmem:[%s28139_s0 + $0x2d8] sm:$0xff]  }
 0x1f3   :  { %19326 = vmatprep.mubr.msk.bf16.mxu1 %vm5415_vm1, %v5293_v34  ;;  %v23487_v25 = vpop.permute.xlu1 %4346  ;;  %v23489_v38 = vpop.permute.xlu0 %4341  ;;  %v3023_v34 = vmul.f32 0.2, %v2187_v33 }
 0x1f4   :  { %28763 = vst [vmem:[#allocation287_spill] sm:$0xff] %v23487_v25  ;;  %28764 = vst [vmem:[#allocation288_spill] sm:$0xff] %v23489_v38  ;;  %v23492_v60 = vpop.f32.mrf.mxu0  ;;  %4656 = vperm.xlu1 %19916, %v3658_v27   ;;  %v5069_v25 = vmul.f32 %v28767_v59, %v3277_v48  ;;  %v5294_v19 = vpack.c.bf16 %v5068_v24, %v5067_v32  ;;  %v3280_v27 = vmax.f32 %v2190_v20, %v3024_v13  ;;  %v20023_v24 = vld [vmem:[%s28139_s0 + $0x2e0] sm:$0xff]   ;;  %v28769_v13 = vld [vmem:[#allocation293_spill] sm:$0xff] }
 0x1f5   :  { %4651 = vperm.xlu0 %19915, %v3657_v8   ;;  %19175 = vmatmul.mubr.msk.bf16.gmra.mxu0 %vm1519_vm0, %v20019_v9  ;;  %v2206_v9 = vadd.f32 %v22922_v57, %v23286_v18  ;;  %v2214_v48 = vadd.f32 %v22922_v57, %v23360_v1  ;;  %v3279_v17 = vmax.f32 %v2187_v33, %v3023_v34  ;;  %v3662_v18 = vld [vmem:[%s28140_s1 + $0x5e8] sm:$0xff]  ;;  %v28773_v34 = vld [vmem:[#allocation294_spill] sm:$0xff] }
 0x1f6   :  { %v23500_v38 = vpop.f32.mrf.mxu0  ;;  %19178 = vmatprep.mubr.msk.bf16.mxu0 %vm1519_vm0, %v20021_v28  ;;  %v5295_v35 = vpack.c.bf16 %v5070_v62, %v5069_v25  ;;  %v2203_v28 = vadd.f32 %v22922_v57, %v23258_v23  ;;  %v3281_v1 = vmax.f32 %v2195_v11, %v3025_v0  ;;  %v2211_v20 = vadd.f32 %v22922_v57, %v23326_v43  ;;  %v3661_v23 = vld [vmem:[%s28140_s1 + $0x5e0] sm:$0xff]  ;;  %v28772_v43 = vld [vmem:[#allocation295_spill] sm:$0xff] }
 0x1f7   :  { %v23508_v8 = vpop.permute.xlu1 %4356  ;;  %v23510_v26 = vpop.permute.xlu0 %4351  ;;  %v5072_v25 = vmul.f32 %v28769_v13, %v3280_v27  ;;  %v3028_v62 = vmul.f32 0.2, %v2206_v9  ;;  %v5074_v11 = vmul.f32 %v28772_v43, %v3282_v29  ;;  %v28774_v27 = vld [vmem:[#allocation296_spill] sm:$0xff]  ;;  %v3663_v29 = vld [vmem:[%s28140_s1 + $0x5f0] sm:$0xff] }
 0x1f8   :  { %28768 = vst [vmem:[#allocation290_spill] sm:$0xff] %v23510_v26  ;;  %v23514_v59 = vpop.f32.mrf.mxu0  ;;  %4666 = vperm.xlu1 %19916, %v3660_v5   ;;  %v5071_v5 = vmul.f32 %v28773_v34, %v3279_v17  ;;  %v5073_v13 = vmul.f32 %v28774_v27, %v3281_v1  ;;  %v23564_v1 = vadd.f32 %v22922_v57, %v23435_v61  ;;  %v20024_v61 = vld [vmem:[%s28139_s0 + $0x2e8] sm:$0xff]  }
 0x1f9   :  { %4661 = vperm.xlu0 %19915, %v3659_v31   ;;  %v3027_v31 = vmul.f32 0.2, %v2203_v28 }
 0x1fa   :  { %19327 = vmatmul.mubr.msk.bf16.gmra.mxu1 %vm5415_vm1, %v5294_v19  ;;  %v23528_v33 = vpop.f32.mrf.mxu0  ;;  %v3664_v19 = vld [vmem:[%s28140_s1 + $0x5f8] sm:$0xff]  ;;  %v5296_v17 = vpack.c.bf16 %v5072_v25, %v5071_v5  ;;  %v5297_v26 = vpack.c.bf16 %v5074_v11, %v5073_v13  ;;  %v3665_v25 = vld [vmem:[%s28140_s1 + $0x600] sm:$0xff] }
 0x1fb   :  { %19330 = vmatprep.mubr.msk.bf16.mxu1 %vm5415_vm1, %v5295_v35  ;;  %v23537_v36 = vpop.permute.xlu1 %4366  ;;  %v23539_v0 = vpop.permute.xlu0 %4361  ;;  %v3030_v35 = vmul.f32 0.2, %v2214_v48 }
 0x1fc   :  { %28770 = vst [vmem:[#allocation289_spill] sm:$0xff] %v23537_v36  ;;  %28771 = vst [vmem:[#allocation291_spill] sm:$0xff] %v23539_v0  ;;  %v23542_v32 = vpop.f32.mrf.mxu0  ;;  %4676 = vperm.xlu1 %19916, %v3662_v18   ;;  %v3029_v36 = vmul.f32 0.2, %v2211_v20  ;;  %v3284_v18 = vmax.f32 %v2206_v9, %v3028_v62  ;;  %v23572_v9 = vadd.f32 %v22922_v57, %v23308_v53  ;;  %v28775_v62 = vld [vmem:[#allocation297_spill] sm:$0xff] }
 0x1fd   :  { %4671 = vperm.xlu0 %19915, %v3661_v23   ;;  %19179 = vmatmul.mubr.msk.bf16.gmra.mxu0 %vm1519_vm0, %v20022_v14  ;;  %v23558_v14 = vadd.f32 %v22922_v57, %v23344_v56  ;;  %v3286_v43 = vmax.f32 %v2214_v48, %v3030_v35  ;;  %v3666_v56 = vld [vmem:[%s28140_s1 + $0x608] sm:$0xff] }
 0x1fe   :  { %v23550_v0 = vpop.f32.mrf.mxu0  ;;  %19182 = vmatprep.mubr.msk.bf16.mxu0 %vm1519_vm0, %v20023_v24  ;;  %v3283_v24 = vmax.f32 %v2203_v28, %v3027_v31  ;;  %v3285_v48 = vmax.f32 %v2211_v20, %v3029_v36  ;;  %v23584_v28 = vld [vmem:[%s28149_s10] ss:$0 sm:$0xff]  ;;  %v20026_v20 = vld [vmem:[%s28139_s0 + $0x2f0] sm:$0xff]   ;;  %v5076_v36 = vmul.f32 %v28775_v62, %v3284_v18  ;;  %v3031_v13 = vmul.f32 0.2, %v23572_v9 }
 0x1ff   :  { %v23560_v23 = vpop.permute.xlu1 %4376  ;;  %v23566_v34 = vpop.permute.xlu0 %4371  ;;  %v2227_v57 = vadd.f32 %v23584_v28, %v23393_v52  ;;  %v3032_v11 = vmul.f32 0.2, %v23558_v14  ;;  %v5078_v35 = vmul.f32 %v22716_v58, %v3286_v43  ;;  %v3034_v52 = vmul.f32 0.2, %v23564_v1  ;;  %v28776_v31 = vld [vmem:[#allocation298_spill] sm:$0xff] }
 0x200   :  { %v23568_v27 = vpop.f32.mrf.mxu0  ;;  %4686 = vperm.xlu1 %19916, %v3664_v19   ;;  %v5075_v19 = vmul.f32 %v28776_v31, %v3283_v24  ;;  %v5077_v58 = vmul.f32 %v22718_v45, %v3285_v48  ;;  %v3667_v24 = vld [vmem:[%s28140_s1 + $0x610] sm:$0xff]  ;;  %v23631_v62 = vadd.f32 %v23584_v28, %v23492_v60  ;;  %v20027_v60 = vld [vmem:[%s28139_s0 + $0x2f8] sm:$0xff]  }
 0x201   :  { %4681 = vperm.xlu0 %19915, %v3663_v29   ;;  %v3668_v29 = vld [vmem:[%s28140_s1 + $0x618] sm:$0xff]  ;;  %v20030_v45 = vld [vmem:[%s28142_s3 + $0x50] sm:$0xff]   ;;  %v3290_v48 = vmax.f32 %v23564_v1, %v3034_v52  ;;  %v3670_v1 = vld [vmem:[%s28140_s1 + $0x628] sm:$0xff] }
 0x202   :  { %19331 = vmatmul.mubr.msk.bf16.gmra.mxu1 %vm5415_vm1, %v5296_v17  ;;  %v23589_v53 = vpop.f32.mrf.mxu0  ;;  %v3033_v17 = vmul.f32 0.2, %v2227_v57  ;;  %v20028_v52 = vld [vmem:[%s28139_s0 + $0x300] sm:$0xff]  }
 0x203   :  { %19338 = vmatprep.mubr.msk.bf16.mxu1 %vm5415_vm1, %v5297_v26  ;;  %v23601_v5 = vpop.permute.xlu1 %4386 }
 0x204   :  { %v23603_v26 = vpop.f32.mrf.mxu0  ;;  %4696 = vperm.xlu1 %19916, %v3666_v56   ;;  %v23612_v18 = vpop.permute.xlu0 %4381  ;;  %v5298_v56 = vpack.c.bf16 %v5076_v36, %v5075_v19  ;;  %v3289_v36 = vmax.f32 %v2227_v57, %v3033_v17  ;;  %v23666_v19 = vld [vmem:[%s28142_s3 + $0x68] sm:$0xff]  }
 0x205   :  { %4691 = vperm.xlu0 %19915, %v3665_v25   ;;  %19183 = vmatmul.mubr.msk.bf16.gmra.mxu0 %vm1519_vm0, %v20024_v61  ;;  %v3288_v61 = vmax.f32 %v23558_v14, %v3032_v11  ;;  %v23623_v25 = vadd.f32 %v23584_v28, %v23414_v41  ;;  %v3287_v14 = vmax.f32 %v23572_v9, %v3031_v13  ;;  %v3038_v13 = vmul.f32 0.2, %v23631_v62 }
 0x206   :  { %v23614_v43 = vpop.f32.mrf.mxu0  ;;  %19186 = vmatprep.mubr.msk.bf16.mxu0 %vm1519_vm0, %v20026_v20  ;;  %v5299_v20 = vpack.c.bf16 %v5078_v35, %v5077_v58  ;;  %v23638_v41 = vadd.f32 %v23584_v28, %v23370_v3  ;;  %v2243_v11 = vadd.f32 %v23584_v28, %v23462_v44  ;;  %v3669_v35 = vld [vmem:[%s28140_s1 + $0x620] sm:$0xff] }
 0x207   :  { %v23649_v9 = vpop.permute.xlu1 %4396  ;;  %v5080_v57 = vmul.f32 %v22746_v39, %v3288_v61  ;;  %v3036_v44 = vmul.f32 0.2, %v23623_v25  ;;  %v5079_v17 = vmul.f32 %v22748_v55, %v3287_v14  ;;  %v2254_v14 = vadd.f32 %v23584_v28, %v23478_v10  ;;  %v3674_v10 = vld [vmem:[%s28140_s1 + $0x648] sm:$0xff] }
 0x208   :  { %v23633_v31 = vpop.f32.mrf.mxu0  ;;  %4706 = vperm.xlu1 %19916, %v3668_v29   ;;  %v23670_v29 = vpop.permute.xlu0 %4391  ;;  %v3035_v39 = vmul.f32 0.2, %v23638_v41 }
 0x209   :  { %4701 = vperm.xlu0 %19915, %v3667_v24   ;;  %v3672_v24 = vld [vmem:[%s28140_s1 + $0x638] sm:$0xff]  ;;  %v5300_v55 = vpack.c.bf16 %v5080_v57, %v5079_v17 }
 0x20a   :  { %19339 = vmatmul.mubr.msk.bf16.vlgmr.msra.gmra.mxu1 %vm5415_vm1, %v5298_v56  ;;  %v23653_v3 = vpop.f32.mrf.mxu0  ;;  %v3037_v56 = vmul.f32 0.2, %v2243_v11 }
 0x20b   :  { %19342 = vmatprep.mubr.msk.bf16.mxu1 %vm5415_vm1, %v5299_v20  ;;  %19355 = vmatpush3.bf16.msra.mxu1 %v23431_v15  ;;  %v5082_v15 = vmul.f32 %v22766_v6, %v3290_v48  ;;  %v5081_v6 = vmul.f32 %v22768_v50, %v3289_v36  ;;  %v3671_v48 = vld [vmem:[%s28140_s1 + $0x630] sm:$0xff]  ;;  %v3292_v20 = vmax.f32 %v23623_v25, %v3036_v44 }
 0x20c   :  { %19356 = vmatprep.subr.bf16.mxu1 %v20030_v45  ;;  %v23672_v58 = vpop.f32.mrf.mxu0  ;;  %4716 = vperm.xlu1 %19916, %v3670_v1   ;;  %v3294_v50 = vmax.f32 %v23631_v62, %v3038_v13  ;;  %v2262_v1 = vadd.f32 %v23584_v28, %v23542_v32  ;;  %v2251_v25 = vadd.f32 %v23584_v28, %v23445_v51  ;;  %v20029_v32 = vld [vmem:[%s28139_s0 + $0x308] sm:$0xff]   ;;  %v23710_v57 = vpop.permute.xlu0 %4401  ;;  %v20031_v44 = vld [vmem:[%s28139_s0 + $0x310] sm:$0xff]  }
 0x20d   :  { %4711 = vperm.xlu0 %19915, %v3669_v35   ;;  %19187 = vmatmul.mubr.msk.bf16.gmra.mxu0 %vm1519_vm0, %v20027_v60  ;;  %v23694_v60 = vpop.permute.xlu1 %4406  ;;  %v5301_v35 = vpack.c.bf16 %v5082_v15, %v5081_v6  ;;  %v3293_v62 = vmax.f32 %v2243_v11, %v3037_v56  ;;  %28777 = vst [vmem:[#allocation293_spill] sm:$0xff] %v23710_v57  ;;  %v3040_v11 = vmul.f32 0.2, %v2254_v14  ;;  %v3676_v56 = vld [vmem:[%s28140_s1 + $0x658] sm:$0xff] }
 0x20e   :  { %v23681_v61 = vpop.f32.mrf.mxu0  ;;  %19190 = vmatprep.mubr.msk.bf16.mxu0 %vm1519_vm0, %v20028_v52  ;;  %v2259_v52 = vadd.f32 %v23584_v28, %v23514_v59  ;;  %v5084_v15 = vmul.f32 %v22796_v47, %v3292_v20  ;;  %v5086_v13 = vmul.f32 %v22814_v30, %v3294_v50  ;;  %v3042_v59 = vmul.f32 0.2, %v2262_v1  ;;  %v3675_v20 = vld [vmem:[%s28140_s1 + $0x650] sm:$0xff] }
 0x20f   :  { %19357 = vmatpush3.bf16.msra.mxu1 %v20030_v45  ;;  %v3291_v45 = vmax.f32 %v23638_v41, %v3035_v39  ;;  %v3673_v41 = vld [vmem:[%s28140_s1 + $0x640] sm:$0xff]  ;;  %v28778_v39 = vld [vmem:[#allocation299_spill] sm:$0xff]  ;;  %v3039_v6 = vmul.f32 0.2, %v2251_v25  ;;  %v2267_v57 = vadd.f32 %v23584_v28, %v23500_v38 }
 0x210   :  { %19374 = vmatprep.subr.bf16.mxu1 %v23666_v19  ;;  %v23696_v36 = vpop.f32.mrf.mxu0  ;;  %4726 = vperm.xlu1 %19916, %v3672_v24   ;;  %v3041_v47 = vmul.f32 0.2, %v2259_v52  ;;  %v3677_v38 = vld [vmem:[%s28140_s1 + $0x660] sm:$0xff] }
 0x211   :  { %4721 = vperm.xlu0 %19915, %v3671_v48   ;;  %v5083_v24 = vmul.f32 %v28778_v39, %v3291_v45  ;;  %v5085_v48 = vmul.f32 %v22816_v2, %v3293_v62  ;;  %v2270_v45 = vadd.f32 %v23584_v28, %v23528_v33  ;;  %v2278_v2 = vadd.f32 %v23584_v28, %v23603_v26  ;;  %v3678_v33 = vld [vmem:[%s28140_s1 + $0x668] sm:$0xff]  ;;  %v20032_v26 = vld [vmem:[%s28139_s0 + $0x318] sm:$0xff]  }
 0x212   :  { %19343 = vmatmul.mubr.msk.bf16.gmra.mxu1 %vm5415_vm1, %v5300_v55  ;;  %v23713_v51 = vpop.f32.mrf.mxu0  ;;  %v23731_v55 = vpop.permute.xlu1 %4416  ;;  %v3295_v39 = vmax.f32 %v2251_v25, %v3039_v6  ;;  %v3043_v6 = vmul.f32 0.2, %v2267_v57 }
 0x213   :  { %19346 = vmatprep.mubr.msk.bf16.mxu1 %vm5415_vm1, %v5301_v35  ;;  %28779 = vst [vmem:[#allocation295_spill] sm:$0xff] %v23731_v55  ;;  %v5302_v50 = vpack.c.bf16 %v5084_v15, %v5083_v24  ;;  %v3296_v35 = vmax.f32 %v2254_v14, %v3040_v11  ;;  %v3297_v14 = vmax.f32 %v2259_v52, %v3041_v47  ;;  %v3044_v11 = vmul.f32 0.2, %v2270_v45 }
 0x214   :  { %v23723_v17 = vpop.f32.mrf.mxu0  ;;  %4736 = vperm.xlu1 %19916, %v3674_v10   ;;  %v3298_v10 = vmax.f32 %v2262_v1, %v3042_v59  ;;  %v2275_v1 = vadd.f32 %v23584_v28, %v23568_v27  ;;  %v5087_v24 = vmul.f32 %v22846_v16, %v3295_v39 }
 0x215   :  { %4731 = vperm.xlu0 %19915, %v3673_v41   ;;  %19191 = vmatmul.mubr.msk.bf16.gmra.mxu0 %vm1519_vm0, %v20029_v32  ;;  %v23743_v32 = vpop.permute.xlu0 %4411  ;;  %v5303_v41 = vpack.c.bf16 %v5086_v13, %v5085_v48  ;;  %v5088_v15 = vmul.f32 %v22844_v54, %v3296_v35  ;;  %v3046_v13 = vmul.f32 0.2, %v2278_v2  ;;  %v5089_v54 = vmul.f32 %v22866_v22, %v3297_v14 }
 0x216   :  { %v23733_v30 = vpop.f32.mrf.mxu0  ;;  %19194 = vmatprep.mubr.msk.bf16.mxu0 %vm1519_vm0, %v20031_v44  ;;  %28780 = vst [vmem:[#allocation294_spill] sm:$0xff] %v23743_v32  ;;  %v20033_v44 = vld [vmem:[%s28139_s0 + $0x320] sm:$0xff]   ;;  %v5090_v52 = vmul.f32 %v22864_v49, %v3298_v10  ;;  %v23769_v59 = vpop.permute.xlu1 %4426  ;;  %v3045_v48 = vmul.f32 0.2, %v2275_v1  ;;  %v2286_v35 = vadd.f32 %v23584_v28, %v23589_v53  ;;  %v23791_v22 = vadd.f32 %v23584_v28, %v23672_v58  ;;  %v3682_v53 = vld [vmem:[%s28140_s1 + $0x688] sm:$0xff] }
 0x217   :  { %28781 = vst [vmem:[#allocation296_spill] sm:$0xff] %v23769_v59  ;;  %v5304_v16 = vpack.c.bf16 %v5088_v15, %v5087_v24  ;;  %v3302_v10 = vmax.f32 %v2278_v2, %v3046_v13  ;;  %v20034_v58 = vld [vmem:[%s28139_s0 + $0x328] sm:$0xff]   ;;  %v2291_v2 = vadd.f32 %v23584_v28, %v23633_v31 }
 0x218   :  { %v23745_v62 = vpop.f32.mrf.mxu0  ;;  %4746 = vperm.xlu1 %19916, %v3676_v56   ;;  %v3680_v56 = vld [vmem:[%s28140_s1 + $0x678] sm:$0xff]  ;;  %v5305_v39 = vpack.c.bf16 %v5090_v52, %v5089_v54  ;;  %v3050_v31 = vmul.f32 0.2, %v23791_v22  ;;  %v3683_v54 = vld [vmem:[%s28140_s1 + $0x690] sm:$0xff] }
 0x219   :  { %4741 = vperm.xlu0 %19915, %v3675_v20   ;;  %v23779_v49 = vpop.permute.xlu0 %4421  ;;  %v3679_v20 = vld [vmem:[%s28140_s1 + $0x670] sm:$0xff]  ;;  %v5094_v15 = vmul.f32 %v22909_v21, %v3302_v10  ;;  %v3049_v21 = vmul.f32 0.2, %v2291_v2 }
 0x21a   :  { %19347 = vmatmul.mubr.msk.bf16.gmra.mxu1 %vm5415_vm1, %v5302_v50  ;;  %v23759_v25 = vpop.f32.mrf.mxu0  ;;  %28782 = vst [vmem:[#allocation297_spill] sm:$0xff] %v23779_v49  ;;  %v3300_v50 = vmax.f32 %v2270_v45, %v3044_v11  ;;  %v3301_v45 = vmax.f32 %v2275_v1, %v3045_v48  ;;  %v23806_v14 = vpop.permute.xlu1 %4436  ;;  %v3048_v1 = vmul.f32 0.2, %v2286_v35 }
 0x21b   :  { %19350 = vmatprep.mubr.msk.bf16.mxu1 %vm5415_vm1, %v5303_v41  ;;  %28783 = vst [vmem:[#allocation298_spill] sm:$0xff] %v23806_v14 }
 0x21c   :  { %v23771_v27 = vpop.f32.mrf.mxu0  ;;  %4756 = vperm.xlu1 %19916, %v3678_v33   ;;  %v3299_v33 = vmax.f32 %v2267_v57, %v3043_v6  ;;  %v3681_v57 = vld [vmem:[%s28140_s1 + $0x680] sm:$0xff]  ;;  %v5093_v6 = vmul.f32 %v22911_v12, %v3301_v45  ;;  %v3304_v48 = vmax.f32 %v2286_v35, %v3048_v1  ;;  %v3306_v12 = vmax.f32 %v23791_v22, %v3050_v31  ;;  %v3686_v22 = vld [vmem:[%s28140_s1 + $0x6a8] sm:$0xff] }
 0x21d   :  { %4751 = vperm.xlu0 %19915, %v3677_v38   ;;  %19195 = vmatmul.mubr.msk.bf16.gmra.mxu0 %vm1519_vm0, %v20032_v26  ;;  %v2283_v26 = vadd.f32 %v23584_v28, %v23550_v0  ;;  %v20036_v38 = vld [vmem:[%s28139_s0 + $0x330] sm:$0xff]   ;;  %v23820_v11 = vpop.permute.xlu0 %4431  ;;  %v3685_v45 = vld [vmem:[%s28140_s1 + $0x6a0] sm:$0xff] }
 0x21e   :  { %v23781_v47 = vpop.f32.mrf.mxu0  ;;  %19198 = vmatprep.mubr.msk.bf16.mxu0 %vm1519_vm0, %v20033_v44  ;;  %v5092_v44 = vmul.f32 %v22891_v37, %v3300_v50  ;;  %28784 = vst [vmem:[#allocation299_spill] sm:$0xff] %v23820_v11  ;;  %v5091_v13 = vmul.f32 %v22893_v7, %v3299_v33  ;;  %v3684_v37 = vld [vmem:[%s28140_s1 + $0x698] sm:$0xff]  ;;  %v23846_v50 = vadd.f32 %v23584_v28, %v23723_v17  ;;  %v23848_v10 = vpop.permute.xlu1 %4446 }
 0x21f   :  { %v3047_v24 = vmul.f32 0.2, %v2283_v26  ;;  %28785 = vst [vmem:[#allocation307_spill] sm:$0xff] %v23848_v10  ;;  %v5307_v35 = vpack.c.bf16 %v5094_v15, %v5093_v6  ;;  %v20037_v17 = vld [vmem:[%s28139_s0 + $0x338] sm:$0xff]  }
 0x220   :  { %v23793_v41 = vpop.f32.mrf.mxu0  ;;  %4766 = vperm.xlu1 %19916, %v3680_v56   ;;  %v5306_v7 = vpack.c.bf16 %v5092_v44, %v5091_v13  ;;  %v3054_v44 = vmul.f32 0.2, %v23846_v50 }
 0x221   :  { %4761 = vperm.xlu0 %19915, %v3679_v20   ;;  %v23838_v20 = vadd.f32 %v23584_v28, %v23653_v3  ;;  %v3303_v33 = vmax.f32 %v2283_v26, %v3047_v24  ;;  %v23854_v3 = vadd.f32 %v23584_v28, %v23614_v43  ;;  %v23865_v26 = vpop.permute.xlu0 %4441 }
 0x222   :  { %19351 = vmatmul.mubr.msk.bf16.gmra.mxu1 %vm5415_vm1, %v5304_v16  ;;  %v23809_v0 = vpop.f32.mrf.mxu0  ;;  %v20040_v16 = vld [vmem:[%s28142_s3 + $0x60] sm:$0xff]   ;;  %28786 = vst [vmem:[#allocation308_spill] sm:$0xff] %v23865_v26 }
 0x223   :  { %19358 = vmatprep.mubr.msk.bf16.mxu1 %vm5415_vm1, %v5305_v39  ;;  %v5095_v15 = vmul.f32 %v22949_v46, %v3303_v33  ;;  %v3051_v31 = vmul.f32 0.2, %v23854_v3  ;;  %v3687_v46 = vld [vmem:[%s28140_s1 + $0x6b0] sm:$0xff]  ;;  %v2323_v33 = vadd.f32 %v23584_v28, %v23745_v62 }
 0x224   :  { %v23822_v52 = vpop.f32.mrf.mxu0  ;;  %4776 = vperm.xlu1 %19916, %v3682_v53   ;;  %v3305_v53 = vmax.f32 %v2291_v2, %v3049_v21  ;;  %v5096_v2 = vmul.f32 %v22947_v4, %v3304_v48  ;;  %v3688_v4 = vld [vmem:[%s28140_s1 + $0x6b8] sm:$0xff] }
 0x225   :  { %4771 = vperm.xlu0 %19915, %v3681_v57   ;;  %19199 = vmatmul.mubr.msk.bf16.gmra.mxu0 %vm1519_vm0, %v20034_v58  ;;  %v2307_v58 = vadd.f32 %v23584_v28, %v23696_v36  ;;  %v20038_v57 = vld [vmem:[%s28139_s0 + $0x340] sm:$0xff]   ;;  %v3052_v36 = vmul.f32 0.2, %v23838_v20  ;;  %v23910_v48 = vpop.permute.xlu0 %4451 }
 0x226   :  { %v23830_v56 = vpop.f32.mrf.mxu0  ;;  %19202 = vmatprep.mubr.msk.bf16.mxu0 %vm1519_vm0, %v20036_v38  ;;  %v23882_v38 = vld [vmem:[%s28142_s3 + $0x78] sm:$0xff]   ;;  %v5097_v13 = vmul.f32 %v22972_v42, %v3305_v53  ;;  %v5308_v6 = vpack.c.bf16 %v5096_v2, %v5095_v15  ;;  %v3310_v42 = vmax.f32 %v23846_v50, %v3054_v44  ;;  %28788 = vst [vmem:[#allocation310_spill] sm:$0xff] %v23910_v48 }
 0x227   :  { %v3053_v24 = vmul.f32 0.2, %v2307_v58  ;;  %v3308_v21 = vmax.f32 %v23838_v20, %v3052_v36  ;;  %v2315_v20 = vadd.f32 %v23584_v28, %v23681_v61  ;;  %v3689_v61 = vld [vmem:[%s28140_s1 + $0x6c0] sm:$0xff]  ;;  %v3692_v15 = vld [vmem:[%s28140_s1 + $0x6d8] sm:$0xff] }
 0x228   :  { %v23850_v39 = vpop.f32.mrf.mxu0  ;;  %4786 = vperm.xlu1 %19916, %v3684_v37   ;;  %v28791_v36 = vld [vmem:[#allocation300_spill] sm:$0xff] }
 0x229   :  { %4781 = vperm.xlu0 %19915, %v3683_v54   ;;  %v2318_v54 = vadd.f32 %v23584_v28, %v23713_v51  ;;  %v3690_v51 = vld [vmem:[%s28140_s1 + $0x6c8] sm:$0xff]  ;;  %v3309_v50 = vmax.f32 %v2307_v58, %v3053_v24  ;;  %v3055_v44 = vmul.f32 0.2, %v2315_v20 }
 0x22a   :  { %19359 = vmatmul.mubr.msk.bf16.vlgmr.msra.gmra.mxu1 %vm5415_vm1, %v5306_v7  ;;  %v23869_v43 = vpop.f32.mrf.mxu0  ;;  %v2326_v7 = vadd.f32 %v23584_v28, %v23771_v27  ;;  %v20039_v27 = vld [vmem:[%s28139_s0 + $0x348] sm:$0xff]  }
 0x22b   :  { %19362 = vmatprep.mubr.msk.bf16.mxu1 %vm5415_vm1, %v5307_v35  ;;  %19375 = vmatpush3.bf16.msra.mxu1 %v23666_v19  ;;  %v5098_v19 = vmul.f32 %v22970_v40, %v3306_v12  ;;  %v23895_v40 = vpop.permute.xlu1 %4456  ;;  %v3056_v53 = vmul.f32 0.2, %v2318_v54 }
 0x22c   :  { %19376 = vmatprep.subr.bf16.mxu1 %v20040_v16  ;;  %v23886_v1 = vpop.f32.mrf.mxu0  ;;  %4796 = vperm.xlu1 %19916, %v3686_v22   ;;  %28787 = vst [vmem:[#allocation309_spill] sm:$0xff] %v23895_v40  ;;  %v20041_v22 = vld [vmem:[%s28139_s0 + $0x350] sm:$0xff]  }
 0x22d   :  { %4791 = vperm.xlu0 %19915, %v3685_v45   ;;  %19203 = vmatmul.mubr.msk.bf16.gmra.mxu0 %vm1519_vm0, %v20037_v17  ;;  %v5309_v35 = vpack.c.bf16 %v5098_v19, %v5097_v13  ;;  %v5100_v17 = vmul.f32 %v23000_v63, %v3308_v21  ;;  %v28789_v45 = vld [vmem:[#allocation301_spill] sm:$0xff]  ;;  %v28792_v63 = vld [vmem:[#allocation302_spill] sm:$0xff]  ;;  %v23947_v13 = vpop.permute.xlu0 %4461  ;;  %v3312_v21 = vmax.f32 %v2318_v54, %v3056_v53  ;;  %v28795_v53 = vld [vmem:[#allocation303_spill] sm:$0xff] }
 0x22e   :  { %v23897_v37 = vpop.f32.mrf.mxu0  ;;  %19206 = vmatprep.mubr.msk.bf16.mxu0 %vm1519_vm0, %v20038_v57  ;;  %v5102_v58 = vmul.f32 %v28789_v45, %v3310_v42  ;;  %v3058_v57 = vmul.f32 0.2, %v2326_v7  ;;  %28793 = vst [vmem:[#allocation300_spill] sm:$0xff] %v23947_v13  ;;  %v2334_v42 = vadd.f32 %v23584_v28, %v23759_v25  ;;  %v3694_v54 = vld [vmem:[%s28140_s1 + $0x6e8] sm:$0xff]  ;;  %v20042_v25 = vld [vmem:[%s28139_s0 + $0x358] sm:$0xff]  }
 0x22f   :  { %19377 = vmatpush3.bf16.msra.mxu1 %v20040_v16  ;;  %v3307_v16 = vmax.f32 %v23854_v3, %v3051_v31  ;;  %v23937_v2 = vpop.permute.xlu1 %4466  ;;  %v5101_v31 = vmul.f32 %v28792_v63, %v3309_v50  ;;  %v3311_v50 = vmax.f32 %v2315_v20, %v3055_v44  ;;  %v3693_v20 = vld [vmem:[%s28140_s1 + $0x6e0] sm:$0xff]  ;;  %v5104_v45 = vmul.f32 %v28795_v53, %v3312_v21 }
 0x230   :  { %19394 = vmatprep.subr.bf16.mxu1 %v23882_v38  ;;  %v23912_v12 = vpop.f32.mrf.mxu0  ;;  %4806 = vperm.xlu1 %19916, %v3688_v4   ;;  %28790 = vst [vmem:[#allocation301_spill] sm:$0xff] %v23937_v2  ;;  %v3057_v4 = vmul.f32 0.2, %v2323_v33  ;;  %v28798_v44 = vld [vmem:[#allocation304_spill] sm:$0xff] }
 0x231   :  { %4801 = vperm.xlu0 %19915, %v3687_v46   ;;  %v5099_v19 = vmul.f32 %v28791_v36, %v3307_v16  ;;  %v3691_v46 = vld [vmem:[%s28140_s1 + $0x6d0] sm:$0xff]  ;;  %v2342_v16 = vadd.f32 %v23584_v28, %v23822_v52  ;;  %v23985_v36 = vpop.permute.xlu0 %4471 }
 0x232   :  { %19363 = vmatmul.mubr.msk.bf16.gmra.mxu1 %vm5415_vm1, %v5308_v6  ;;  %v23927_v3 = vpop.f32.mrf.mxu0  ;;  %v3313_v52 = vmax.f32 %v2323_v33, %v3057_v4  ;;  %v3060_v33 = vmul.f32 0.2, %v2334_v42  ;;  %28797 = vst [vmem:[#allocation303_spill] sm:$0xff] %v23985_v36  ;;  %v28799_v4 = vld [vmem:[#allocation306_spill] sm:$0xff] }
 0x233   :  { %19366 = vmatprep.mubr.msk.bf16.mxu1 %vm5415_vm1, %v5309_v35  ;;  %v5310_v6 = vpack.c.bf16 %v5100_v17, %v5099_v19  ;;  %v3314_v35 = vmax.f32 %v2326_v7, %v3058_v57  ;;  %v2339_v7 = vadd.f32 %v23584_v28, %v23793_v41  ;;  %v20043_v17 = vld [vmem:[%s28139_s0 + $0x360] sm:$0xff]   ;;  %v3062_v41 = vmul.f32 0.2, %v2342_v16 }
 0x234   :  { %v23939_v62 = vpop.f32.mrf.mxu0  ;;  %4816 = vperm.xlu1 %19916, %v3690_v51  }
 0x235   :  { %4811 = vperm.xlu0 %19915, %v3689_v61   ;;  %19207 = vmatmul.mubr.msk.bf16.gmra.mxu0 %vm1519_vm0, %v20039_v27  ;;  %v5311_v27 = vpack.c.bf16 %v5102_v58, %v5101_v31  ;;  %v2331_v61 = vadd.f32 %v23584_v28, %v23733_v30  ;;  %v28796_v58 = vld [vmem:[#allocation305_spill] sm:$0xff]  ;;  %v3696_v31 = vld [vmem:[%s28140_s1 + $0x6f8] sm:$0xff] }
 0x236   :  { %v23949_v24 = vpop.f32.mrf.mxu0  ;;  %19210 = vmatprep.mubr.msk.bf16.mxu0 %vm1519_vm0, %v20041_v22  ;;  %v23972_v22 = vpop.permute.xlu1 %4476  ;;  %v5106_v57 = vmul.f32 %v28796_v58, %v3314_v35  ;;  %v3695_v35 = vld [vmem:[%s28140_s1 + $0x6f0] sm:$0xff] }
 0x237   :  { %28794 = vst [vmem:[#allocation302_spill] sm:$0xff] %v23972_v22  ;;  %v3059_v63 = vmul.f32 0.2, %v2331_v61 }
 0x238   :  { %v23959_v51 = vpop.f32.mrf.mxu0  ;;  %4826 = vperm.xlu1 %19916, %v3692_v15   ;;  %v5103_v15 = vmul.f32 %v28798_v44, %v3311_v50  ;;  %v3316_v50 = vmax.f32 %v2334_v42, %v3060_v33  ;;  %v20046_v33 = vld [vmem:[%s28139_s0 + $0x370] sm:$0xff]  }
 0x239   :  { %4821 = vperm.xlu0 %19915, %v3691_v46   ;;  %v5105_v46 = vmul.f32 %v28799_v4, %v3313_v52  ;;  %v24007_v52 = vadd.f32 %v23584_v28, %v23886_v1  ;;  %v3315_v44 = vmax.f32 %v2331_v61, %v3059_v63  ;;  %v20044_v1 = vld [vmem:[%s28139_s0 + $0x368] sm:$0xff]   ;;  %v24026_v61 = vpop.permute.xlu0 %4481  ;;  %v28804_v4 = vld [vmem:[#allocation264_spill] sm:$0xff] }
 0x23a   :  { %19367 = vmatmul.mubr.msk.bf16.gmra.mxu1 %vm5415_vm1, %v5310_v6  ;;  %v23975_v30 = vpop.f32.mrf.mxu0  ;;  %v3061_v6 = vmul.f32 0.2, %v2339_v7  ;;  %28801 = vst [vmem:[#allocation304_spill] sm:$0xff] %v24026_v61 }
 0x23b   :  { %19370 = vmatprep.mubr.msk.bf16.mxu1 %vm5415_vm1, %v5311_v27  ;;  %v5312_v27 = vpack.c.bf16 %v5104_v45, %v5103_v15  ;;  %v5313_v58 = vpack.c.bf16 %v5106_v57, %v5105_v46  ;;  %v3697_v45 = vld [vmem:[%s28140_s1 + $0x700] sm:$0xff]  ;;  %v28803_v15 = vld [vmem:[#allocation266_spill] sm:$0xff]  ;;  %v3066_v63 = vmul.f32 0.2, %v24007_v52  ;;  %v5107_v46 = vmul.f32 %v28804_v4, %v3315_v44 }
 0x23c   :  { %v23987_v19 = vpop.f32.mrf.mxu0  ;;  %4836 = vperm.xlu1 %19916, %v3694_v54   ;;  %v2350_v54 = vadd.f32 %v23584_v28, %v23809_v0  ;;  %v3698_v0 = vld [vmem:[%s28140_s1 + $0x708] sm:$0xff]  ;;  %v3317_v42 = vmax.f32 %v2339_v7, %v3061_v6  ;;  %v28802_v57 = vld [vmem:[#allocation292_spill] sm:$0xff]  ;;  %v3699_v44 = vld [vmem:[%s28140_s1 + $0x710] sm:$0xff] }
 0x23d   :  { %4831 = vperm.xlu0 %19915, %v3693_v20   ;;  %19211 = vmatmul.mubr.msk.bf16.gmra.mxu0 %vm1519_vm0, %v20042_v25  ;;  %v3318_v25 = vmax.f32 %v2342_v16, %v3062_v41  ;;  %v24003_v20 = vpop.permute.xlu1 %4486  ;;  %v24024_v16 = vadd.f32 %v23584_v28, %v23850_v39  ;;  %v5108_v7 = vmul.f32 %v28802_v57, %v3316_v50  ;;  %v24066_v4 = vpop.permute.xlu0 %4491 }
 0x23e   :  { %v23995_v21 = vpop.f32.mrf.mxu0  ;;  %19214 = vmatprep.mubr.msk.bf16.mxu0 %vm1519_vm0, %v20043_v17  ;;  %28800 = vst [vmem:[#allocation305_spill] sm:$0xff] %v24003_v20  ;;  %v24013_v17 = vadd.f32 %v23584_v28, %v23781_v47  ;;  %v3064_v41 = vmul.f32 0.2, %v2350_v54  ;;  %28807 = vst [vmem:[#allocation292_spill] sm:$0xff] %v24066_v4 }
 0x23f   :  { %v5110_v39 = vmul.f32 %v28803_v15, %v3318_v25  ;;  %v3065_v25 = vmul.f32 0.2, %v24024_v16  ;;  %v3322_v15 = vmax.f32 %v24007_v52, %v3066_v63  ;;  %v20047_v52 = vld [vmem:[%s28139_s0 + $0x378] sm:$0xff]   ;;  %v20048_v63 = vld [vmem:[%s28139_s0 + $0x380] sm:$0xff]  }
 0x240   :  { %v24009_v53 = vpop.f32.mrf.mxu0  ;;  %4846 = vperm.xlu1 %19916, %v3696_v31   ;;  %v3063_v6 = vmul.f32 0.2, %v24013_v17 }
 0x241   :  { %4841 = vperm.xlu0 %19915, %v3695_v35   ;;  %v3700_v35 = vld [vmem:[%s28140_s1 + $0x718] sm:$0xff]  ;;  %v24128_v20 = vpop.permute.xlu0 %4501 }
 0x242   :  { %19371 = vmatmul.mubr.msk.bf16.gmra.mxu1 %vm5415_vm1, %v5312_v27  ;;  %v24029_v47 = vpop.f32.mrf.mxu0  ;;  %v28805_v27 = vld [vmem:[#allocation265_spill] sm:$0xff]  ;;  %28813 = vst [vmem:[#allocation264_spill] sm:$0xff] %v24128_v20  ;;  %v24147_v20 = vadd.f32 %v23584_v28, %v23987_v19 }
 0x243   :  { %19378 = vmatprep.mubr.msk.bf16.mxu1 %vm5415_vm1, %v5313_v58  ;;  %v5109_v50 = vmul.f32 %v28805_v27, %v3317_v42  ;;  %v24050_v58 = vpop.permute.xlu1 %4496  ;;  %v20050_v42 = vld [vmem:[%s28142_s3 + $0x70] sm:$0xff]   ;;  %v24070_v27 = vadd.f32 %v23584_v28, %v23939_v62  ;;  %v3702_v62 = vld [vmem:[%s28140_s1 + $0x728] sm:$0xff] }
 0x244   :  { %v24040_v31 = vpop.f32.mrf.mxu0  ;;  %4856 = vperm.xlu1 %19916, %v3698_v0   ;;  %28806 = vst [vmem:[#allocation306_spill] sm:$0xff] %v24050_v58  ;;  %v5314_v0 = vpack.c.bf16 %v5108_v7, %v5107_v46  ;;  %v28808_v46 = vld [vmem:[#allocation267_spill] sm:$0xff]  ;;  %v3706_v19 = vld [vmem:[%s28140_s1 + $0x748] sm:$0xff] }
 0x245   :  { %4851 = vperm.xlu0 %19915, %v3697_v45   ;;  %19215 = vmatmul.mubr.msk.bf16.gmra.mxu0 %vm1519_vm0, %v20044_v1  ;;  %v3320_v1 = vmax.f32 %v2350_v54, %v3064_v41  ;;  %v24060_v45 = vadd.f32 %v23584_v28, %v23869_v43  ;;  %v5315_v54 = vpack.c.bf16 %v5110_v39, %v5109_v50  ;;  %v3701_v39 = vld [vmem:[%s28140_s1 + $0x720] sm:$0xff] }
 0x246   :  { %v24052_v57 = vpop.f32.mrf.mxu0  ;;  %19218 = vmatprep.mubr.msk.bf16.mxu0 %vm1519_vm0, %v20046_v33  ;;  %v3319_v33 = vmax.f32 %v24013_v17, %v3063_v6  ;;  %v24077_v43 = vadd.f32 %v23584_v28, %v23830_v56  ;;  %v3321_v41 = vmax.f32 %v24024_v16, %v3065_v25  ;;  %v24091_v17 = vadd.f32 %v23584_v28, %v23912_v12 }
 0x247   :  { %v5112_v16 = vmul.f32 %v28808_v46, %v3320_v1  ;;  %v3068_v6 = vmul.f32 0.2, %v24060_v45  ;;  %v24113_v25 = vpop.permute.xlu1 %4506  ;;  %v28811_v1 = vld [vmem:[#allocation268_spill] sm:$0xff] }
 0x248   :  { %v24072_v61 = vpop.f32.mrf.mxu0  ;;  %4866 = vperm.xlu1 %19916, %v3700_v35   ;;  %v24079_v7 = vpop.f32.mrf.mxu1  ;;  %v28809_v35 = vld [vmem:[#allocation270_spill] sm:$0xff]  ;;  %28810 = vst [vmem:[#allocation266_spill] sm:$0xff] %v24113_v25  ;;  %v3067_v46 = vmul.f32 0.2, %v24077_v43  ;;  %v3069_v58 = vmul.f32 0.2, %v24091_v17 }
 0x249   :  { %4861 = vperm.xlu0 %19915, %v3699_v44   ;;  %v5114_v50 = vmul.f32 %v28809_v35, %v3322_v15  ;;  %v3070_v44 = vmul.f32 0.2, %v24070_v27  ;;  %v3704_v15 = vld [vmem:[%s28140_s1 + $0x738] sm:$0xff]  ;;  %v28812_v35 = vld [vmem:[#allocation269_spill] sm:$0xff] }
 0x24a   :  { %19379 = vmatmul.mubr.msk.bf16.vlgmr.msra.gmra.mxu1 %vm5415_vm1, %v5314_v0  ;;  %v24095_v56 = vpop.f32.mrf.mxu0  ;;  %v24105_v12 = vpop.f32.mrf.mxu1  ;;  %v5113_v25 = vmul.f32 %v28812_v35, %v3321_v41 }
 0x24b   :  { %19382 = vmatprep.mubr.msk.bf16.mxu1 %vm5415_vm1, %v5315_v54  ;;  %19395 = vmatpush3.bf16.msra.mxu1 %v23882_v38  ;;  %v24110_v38 = vld [vmem:[%s28142_s3 + $0x88] sm:$0xff]   ;;  %v5111_v54 = vmul.f32 %v28811_v1, %v3319_v33  ;;  %v3703_v33 = vld [vmem:[%s28140_s1 + $0x730] sm:$0xff]  ;;  %v24139_v1 = vadd.f32 %v23584_v28, %v23927_v3  ;;  %v3326_v35 = vmax.f32 %v24070_v27, %v3070_v44  ;;  %v28815_v44 = vld [vmem:[#allocation271_spill] sm:$0xff] }
 0x24c   :  { %19396 = vmatprep.subr.bf16.mxu1 %v20050_v42  ;;  %v24116_v0 = vpop.f32.mrf.mxu0  ;;  %4876 = vperm.xlu1 %19916, %v3702_v62   ;;  %v24120_v4 = vpop.f32.mrf.mxu1  ;;  %v24154_v3 = vadd.f32 %v23584_v28, %v23897_v37  ;;  %v20049_v27 = vld [vmem:[%s28139_s0 + $0x388] sm:$0xff]   ;;  %v2387_v37 = vadd.f32 %v23584_v28, %v23959_v51 }
 0x24d   :  { %4871 = vperm.xlu0 %19915, %v3701_v39   ;;  %19219 = vmatmul.mubr.msk.bf16.gmra.mxu0 %vm1519_vm0, %v20047_v52  ;;  %v5316_v52 = vpack.c.bf16 %v5112_v16, %v5111_v54  ;;  %v3324_v39 = vmax.f32 %v24060_v45, %v3068_v6  ;;  %v3323_v45 = vmax.f32 %v24077_v43, %v3067_v46  ;;  %v24166_v43 = vpop.permute.xlu1 %4516  ;;  %v28816_v46 = vld [vmem:[#allocation274_spill] sm:$0xff] }
 0x24e   :  { %v24130_v62 = vpop.f32.mrf.mxu0  ;;  %19222 = vmatprep.mubr.msk.bf16.mxu0 %vm1519_vm0, %v20048_v63  ;;  %v24141_v41 = vpop.f32.mrf.mxu1  ;;  %v3325_v16 = vmax.f32 %v24091_v17, %v3069_v58  ;;  %28814 = vst [vmem:[#allocation265_spill] sm:$0xff] %v24166_v43  ;;  %v3072_v58 = vmul.f32 0.2, %v24139_v1  ;;  %v5118_v51 = vmul.f32 %v28816_v46, %v3326_v35  ;;  %v3071_v13 = vmul.f32 0.2, %v24154_v3  ;;  %v28819_v35 = vld [vmem:[#allocation273_spill] sm:$0xff] }
 0x24f   :  { %19397 = vmatpush3.bf16.msra.mxu1 %v20050_v42  ;;  %v5317_v42 = vpack.c.bf16 %v5114_v50, %v5113_v25  ;;  %v3705_v50 = vld [vmem:[%s28140_s1 + $0x740] sm:$0xff]  ;;  %v20051_v25 = vld [vmem:[%s28139_s0 + $0x390] sm:$0xff]   ;;  %v5116_v54 = vmul.f32 %v28815_v44, %v3324_v39  ;;  %v3708_v39 = vld [vmem:[%s28140_s1 + $0x758] sm:$0xff]  ;;  %v3073_v46 = vmul.f32 0.2, %v2387_v37 }
 0x250   :  { %19414 = vmatprep.subr.bf16.mxu1 %v24110_v38  ;;  %v24149_v36 = vpop.f32.mrf.mxu0  ;;  %4886 = vperm.xlu1 %19916, %v3704_v15   ;;  %v24156_v63 = vpop.f32.mrf.mxu1  ;;  %v5117_v44 = vmul.f32 %v28819_v35, %v3325_v16  ;;  %v24216_v35 = vadd.f32 %v23584_v28, %v24040_v31  ;;  %v20052_v31 = vld [vmem:[%s28139_s0 + $0x398] sm:$0xff]  }
 0x251   :  { %4881 = vperm.xlu0 %19915, %v3703_v33   ;;  %v24184_v15 = vpop.permute.xlu0 %4511  ;;  %v3074_v33 = vmul.f32 0.2, %v24147_v20  ;;  %v24211_v2 = vpop.permute.xlu1 %4526 }
 0x252   :  { %19383 = vmatmul.mubr.msk.bf16.gmra.mxu1 %vm5415_vm1, %v5316_v52  ;;  %v24171_v6 = vpop.f32.mrf.mxu0  ;;  %v24181_v17 = vpop.f32.mrf.mxu1  ;;  %28817 = vst [vmem:[#allocation267_spill] sm:$0xff] %v24184_v15  ;;  %28820 = vst [vmem:[#allocation270_spill] sm:$0xff] %v24211_v2 }
 0x253   :  { %19386 = vmatprep.mubr.msk.bf16.mxu1 %vm5415_vm1, %v5317_v42  ;;  %v28818_v42 = vld [vmem:[#allocation272_spill] sm:$0xff]  ;;  %v3330_v16 = vmax.f32 %v24147_v20, %v3074_v33  ;;  %v3710_v20 = vld [vmem:[%s28140_s1 + $0x768] sm:$0xff]  ;;  %v28822_v33 = vld [vmem:[#allocation275_spill] sm:$0xff] }
 0x254   :  { %v24187_v52 = vpop.f32.mrf.mxu0  ;;  %4896 = vperm.xlu1 %19916, %v3706_v19   ;;  %v5115_v43 = vmul.f32 %v28818_v42, %v3323_v45  ;;  %v24191_v22 = vpop.f32.mrf.mxu1  ;;  %v3707_v45 = vld [vmem:[%s28140_s1 + $0x750] sm:$0xff] }
 0x255   :  { %4891 = vperm.xlu0 %19915, %v3705_v50   ;;  %19223 = vmatmul.mubr.msk.bf16.gmra.mxu0 %vm1519_vm0, %v20049_v27  ;;  %v3328_v50 = vmax.f32 %v24139_v1, %v3072_v58  ;;  %v24207_v27 = vadd.f32 %v23584_v28, %v23975_v30  ;;  %v3327_v1 = vmax.f32 %v24154_v3, %v3071_v13  ;;  %v24234_v58 = vpop.permute.xlu0 %4521  ;;  %v3709_v3 = vld [vmem:[%s28140_s1 + $0x760] sm:$0xff] }
 0x256   :  { %v24198_v15 = vpop.f32.mrf.mxu0  ;;  %19226 = vmatprep.mubr.msk.bf16.mxu0 %vm1519_vm0, %v20051_v25  ;;  %v5318_v19 = vpack.c.bf16 %v5116_v54, %v5115_v43  ;;  %v24209_v42 = vpop.f32.mrf.mxu1  ;;  %v5319_v43 = vpack.c.bf16 %v5118_v51, %v5117_v44  ;;  %v24223_v30 = vadd.f32 %v23584_v28, %v23949_v24  ;;  %v3329_v54 = vmax.f32 %v2387_v37, %v3073_v46  ;;  %v20053_v51 = vld [vmem:[%s28139_s0 + $0x3a0] sm:$0xff]   ;;  %v28823_v46 = vld [vmem:[#allocation278_spill] sm:$0xff] }
 0x257   :  { %28821 = vst [vmem:[#allocation268_spill] sm:$0xff] %v24234_v58  ;;  %v2403_v13 = vadd.f32 %v23584_v28, %v24009_v53  ;;  %v3076_v37 = vmul.f32 0.2, %v24207_v27  ;;  %v5122_v53 = vmul.f32 %v28823_v46, %v3330_v16  ;;  %v24264_v46 = vpop.permute.xlu1 %4536 }
 0x258   :  { %v24218_v48 = vpop.f32.mrf.mxu0  ;;  %4906 = vperm.xlu1 %19916, %v3708_v39   ;;  %v24225_v25 = vpop.f32.mrf.mxu1  ;;  %v5120_v39 = vmul.f32 %v28822_v33, %v3328_v50  ;;  %v3075_v2 = vmul.f32 0.2, %v24223_v30  ;;  %v3712_v50 = vld [vmem:[%s28140_s1 + $0x778] sm:$0xff]  ;;  %v28825_v33 = vld [vmem:[#allocation277_spill] sm:$0xff]  ;;  %28826 = vst [vmem:[#allocation269_spill] sm:$0xff] %v24264_v46  ;;  %v24284_v46 = vadd.f32 %v23584_v28, %v24116_v0 }
 0x259   :  { %4901 = vperm.xlu0 %19915, %v3707_v45   ;;  %v3078_v45 = vmul.f32 0.2, %v24216_v35  ;;  %v5121_v16 = vmul.f32 %v28825_v33, %v3329_v54  ;;  %v3077_v40 = vmul.f32 0.2, %v2403_v13  ;;  %v24279_v54 = vpop.permute.xlu0 %4531  ;;  %v3714_v0 = vld [vmem:[%s28140_s1 + $0x788] sm:$0xff] }
 0x25a   :  { %19387 = vmatmul.mubr.msk.bf16.gmra.mxu1 %vm5415_vm1, %v5318_v19  ;;  %v24239_v24 = vpop.f32.mrf.mxu0  ;;  %v24249_v44 = vpop.f32.mrf.mxu1  ;;  %28827 = vst [vmem:[#allocation271_spill] sm:$0xff] %v24279_v54 }
 0x25b   :  { %19390 = vmatprep.mubr.msk.bf16.mxu1 %vm5415_vm1, %v5319_v43  ;;  %v28824_v43 = vld [vmem:[#allocation276_spill] sm:$0xff]  ;;  %v3334_v33 = vmax.f32 %v24216_v35, %v3078_v45  ;;  %v20054_v35 = vld [vmem:[%s28139_s0 + $0x3a8] sm:$0xff]  }
 0x25c   :  { %v24253_v19 = vpop.f32.mrf.mxu0  ;;  %4916 = vperm.xlu1 %19916, %v3710_v20   ;;  %v5119_v58 = vmul.f32 %v28824_v43, %v3327_v1  ;;  %v24257_v26 = vpop.f32.mrf.mxu1  ;;  %v3711_v1 = vld [vmem:[%s28140_s1 + $0x770] sm:$0xff] }
 0x25d   :  { %4911 = vperm.xlu0 %19915, %v3709_v3   ;;  %19227 = vmatmul.mubr.msk.bf16.gmra.mxu0 %vm1519_vm0, %v20052_v31  ;;  %v3332_v31 = vmax.f32 %v24207_v27, %v3076_v37  ;;  %v24275_v3 = vadd.f32 %v23584_v28, %v24029_v47  ;;  %v3331_v27 = vmax.f32 %v24223_v30, %v3075_v2  ;;  %v3713_v30 = vld [vmem:[%s28140_s1 + $0x780] sm:$0xff]  ;;  %v20056_v37 = vld [vmem:[%s28139_s0 + $0x3b0] sm:$0xff]  }
 0x25e   :  { %v24266_v10 = vpop.f32.mrf.mxu0  ;;  %19230 = vmatprep.mubr.msk.bf16.mxu0 %vm1519_vm0, %v20053_v51  ;;  %v5320_v20 = vpack.c.bf16 %v5120_v39, %v5119_v58  ;;  %v24277_v43 = vpop.f32.mrf.mxu1  ;;  %v5321_v58 = vpack.c.bf16 %v5122_v53, %v5121_v16  ;;  %v24291_v47 = vadd.f32 %v23584_v28, %v23995_v21  ;;  %v3333_v39 = vmax.f32 %v2403_v13, %v3077_v40  ;;  %v28828_v53 = vld [vmem:[#allocation279_spill] sm:$0xff] }
 0x25f   :  { %v24304_v2 = vadd.f32 %v23584_v28, %v24072_v61  ;;  %v5124_v45 = vmul.f32 %v28828_v53, %v3332_v31  ;;  %v3080_v40 = vmul.f32 0.2, %v24275_v3  ;;  %v24319_v28 = vpop.permute.xlu1 %4546  ;;  %v28830_v61 = vld [vmem:[#allocation282_spill] sm:$0xff]  ;;  %v3082_v16 = vmul.f32 0.2, %v24284_v46  ;;  %v3716_v31 = vld [vmem:[%s28140_s1 + $0x798] sm:$0xff] }
 0x260   :  { %v24286_v11 = vpop.f32.mrf.mxu0  ;;  %4926 = vperm.xlu1 %19916, %v3712_v50   ;;  %v24293_v51 = vpop.f32.mrf.mxu1  ;;  %28829 = vst [vmem:[#allocation274_spill] sm:$0xff] %v24319_v28  ;;  %v5126_v50 = vmul.f32 %v28830_v61, %v3334_v33  ;;  %v3079_v54 = vmul.f32 0.2, %v24291_v47  ;;  %v28832_v53 = vld [vmem:[#allocation281_spill] sm:$0xff] }
 0x261   :  { %4921 = vperm.xlu0 %19915, %v3711_v1   ;;  %v5125_v33 = vmul.f32 %v28832_v53, %v3333_v39  ;;  %v24334_v61 = vpop.permute.xlu0 %4541  ;;  %v3081_v28 = vmul.f32 0.2, %v24304_v2 }
 0x262   :  { %19391 = vmatmul.mubr.msk.bf16.gmra.mxu1 %vm5415_vm1, %v5320_v20  ;;  %v24307_v21 = vpop.f32.mrf.mxu0  ;;  %v24317_v13 = vpop.f32.mrf.mxu1  ;;  %v28831_v20 = vld [vmem:[#allocation280_spill] sm:$0xff]  ;;  %28833 = vst [vmem:[#allocation272_spill] sm:$0xff] %v24334_v61 }
 0x263   :  { %19398 = vmatprep.mubr.msk.bf16.mxu1 %vm5415_vm1, %v5321_v58  ;;  %v5123_v58 = vmul.f32 %v28831_v20, %v3331_v27  ;;  %v3715_v27 = vld [vmem:[%s28140_s1 + $0x790] sm:$0xff]  ;;  %v24347_v20 = vld [vmem:[%s28149_s10] ss:$0 sm:$0xff] }
 0x264   :  { %v24323_v1 = vpop.f32.mrf.mxu0  ;;  %4936 = vperm.xlu1 %19916, %v3714_v0   ;;  %v24327_v49 = vpop.f32.mrf.mxu1  ;;  %v24351_v39 = vadd.f32 %v24347_v20, %v24095_v56  ;;  %v20060_v61 = vld [vmem:[%s28142_s3 + $0x80] sm:$0xff]   ;;  %v24368_v56 = vadd.f32 %v24347_v20, %v24052_v57  ;;  %v24382_v57 = vadd.f32 %v24347_v20, %v24149_v36 }
 0x265   :  { %4931 = vperm.xlu0 %19915, %v3713_v30   ;;  %19231 = vmatmul.mubr.msk.bf16.gmra.mxu0 %vm1519_vm0, %v20054_v35  ;;  %v5322_v30 = vpack.c.bf16 %v5124_v45, %v5123_v58  ;;  %v3336_v35 = vmax.f32 %v24275_v3, %v3080_v40  ;;  %v24361_v3 = vadd.f32 %v24347_v20, %v24187_v52  ;;  %v20057_v52 = vld [vmem:[%s28139_s0 + $0x3b8] sm:$0xff]  }
 0x266   :  { %v24337_v0 = vpop.f32.mrf.mxu0  ;;  %19234 = vmatprep.mubr.msk.bf16.mxu0 %vm1519_vm0, %v20056_v37  ;;  %v24353_v53 = vpop.f32.mrf.mxu1  ;;  %v3338_v37 = vmax.f32 %v24284_v46, %v3082_v16  ;;  %v5323_v40 = vpack.c.bf16 %v5126_v50, %v5125_v33  ;;  %v3335_v58 = vmax.f32 %v24291_v47, %v3079_v54  ;;  %v3718_v46 = vld [vmem:[%s28140_s1 + $0x7a8] sm:$0xff]  ;;  %v3337_v54 = vmax.f32 %v24304_v2, %v3081_v28  ;;  %v20058_v2 = vld [vmem:[%s28139_s0 + $0x3c0] sm:$0xff]   ;;  %v28835_v28 = vld [vmem:[#allocation283_spill] sm:$0xff] }
 0x267   :  { %v24377_v16 = vpop.permute.xlu1 %4556  ;;  %v5128_v36 = vmul.f32 %v28835_v28, %v3336_v35  ;;  %v3084_v33 = vmul.f32 0.2, %v24351_v39  ;;  %v28838_v35 = vld [vmem:[#allocation284_spill] sm:$0xff]  ;;  %v3083_v32 = vmul.f32 0.2, %v24368_v56 }
 0x268   :  { %v24363_v45 = vpop.f32.mrf.mxu0  ;;  %4946 = vperm.xlu1 %19916, %v3716_v31   ;;  %v19280_v14 = vpop.f32.mrf.mxu1  ;;  %28834 = vst [vmem:[#allocation273_spill] sm:$0xff] %v24377_v16  ;;  %v3717_v31 = vld [vmem:[%s28140_s1 + $0x7a0] sm:$0xff]  ;;  %v5127_v28 = vmul.f32 %v28838_v35, %v3335_v58  ;;  %v3719_v58 = vld [vmem:[%s28140_s1 + $0x7b0] sm:$0xff] }
 0x269   :  { %4941 = vperm.xlu0 %19915, %v3715_v27   ;;  %v24385_v47 = vadd.f32 %v19280_v14, %v24079_v7  ;;  %v24402_v7 = vld [vmem:[%s28142_s3 + $0x98] sm:$0xff]   ;;  %v28837_v27 = vld [vmem:[#allocation286_spill] sm:$0xff] }
 0x26a   :  { %19399 = vmatmul.mubr.msk.bf16.vlgmr.msra.gmra.mxu1 %vm5415_vm1, %v5322_v30  ;;  %v24389_v50 = vpop.f32.mrf.mxu0  ;;  %v5607_v14 = vpop.f32.mrf.mxu1  ;;  %v5130_v30 = vmul.f32 %v28837_v27, %v3338_v37  ;;  %v3720_v37 = vld [vmem:[%s28140_s1 + $0x7b8] sm:$0xff]  ;;  %v28839_v27 = vld [vmem:[#allocation285_spill] sm:$0xff] }
 0x26b   :  { %19402 = vmatprep.mubr.msk.bf16.mxu1 %vm5415_vm1, %v5323_v40  ;;  %19415 = vmatpush3.bf16.msra.mxu1 %v24110_v38  ;;  %v24404_v38 = vpop.permute.xlu0 %4551  ;;  %v3086_v40 = vmul.f32 0.2, %v24361_v3  ;;  %v24409_v16 = vadd.f32 %v5607_v14, %v24105_v12  ;;  %v3085_v12 = vmul.f32 0.2, %v24382_v57 }
 0x26c   :  { %19416 = vmatprep.subr.bf16.mxu1 %v20060_v61  ;;  %28836 = vst [vmem:[#allocation275_spill] sm:$0xff] %v24404_v38  ;;  %v24411_v59 = vpop.f32.mrf.mxu0  ;;  %4956 = vperm.xlu1 %19916, %v3718_v46   ;;  %v19281_v55 = vpop.f32.mrf.mxu1  ;;  %v5129_v38 = vmul.f32 %v28839_v27, %v3337_v54  ;;  %v24433_v54 = vadd.f32 %v24347_v20, %v24171_v6 }
 0x26d   :  { %4951 = vperm.xlu0 %19915, %v3717_v31   ;;  %19235 = vmatmul.mubr.msk.bf16.gmra.mxu0 %vm1519_vm0, %v20057_v52  ;;  %v24422_v14 = vadd.f32 %v19281_v55, %v24120_v4  ;;  %v5324_v52 = vpack.c.bf16 %v5128_v36, %v5127_v28  ;;  %v3340_v31 = vmax.f32 %v24351_v39, %v3084_v33  ;;  %v24436_v55 = vpop.permute.xlu1 %4566 }
 0x26e   :  { %v24424_v46 = vpop.f32.mrf.mxu0  ;;  %19238 = vmatprep.mubr.msk.bf16.mxu0 %vm1519_vm0, %v20058_v2  ;;  %v5610_v35 = vpop.f32.mrf.mxu1  ;;  %v3342_v4 = vmax.f32 %v24361_v3, %v3086_v40  ;;  %v24441_v27 = vadd.f32 %v24347_v20, %v24253_v19  ;;  %v5325_v39 = vpack.c.bf16 %v5130_v30, %v5129_v38  ;;  %v3339_v6 = vmax.f32 %v24368_v56, %v3083_v32  ;;  %v3722_v19 = vld [vmem:[%s28140_s1 + $0x7c8] sm:$0xff]  ;;  %v3721_v30 = vld [vmem:[%s28140_s1 + $0x7c0] sm:$0xff]  ;;  %v20061_v40 = vld [vmem:[%s28139_s0 + $0x3d0] sm:$0xff]  }
 0x26f   :  { %19417 = vmatpush3.bf16.msra.mxu1 %v20060_v61  ;;  %v24444_v61 = vadd.f32 %v5610_v35, %v24141_v41  ;;  %v24451_v36 = vadd.f32 %v24347_v20, %v24130_v62  ;;  %v20059_v41 = vld [vmem:[%s28139_s0 + $0x3c8] sm:$0xff]   ;;  %v24460_v3 = vpop.permute.xlu0 %4561  ;;  %v3341_v32 = vmax.f32 %v24382_v57, %v3085_v12  ;;  %v24465_v62 = vadd.f32 %v24347_v20, %v24218_v48  ;;  %v28841_v57 = vld [vmem:[#allocation287_spill] sm:$0xff]  ;;  %v28842_v35 = vld [vmem:[#allocation288_spill] sm:$0xff] }
 0x270   :  { %19434 = vmatprep.subr.bf16.mxu1 %v24402_v7  ;;  %v24446_v2 = vpop.f32.mrf.mxu0  ;;  %4966 = vperm.xlu1 %19916, %v3720_v37   ;;  %v19284_v33 = vpop.f32.mrf.mxu1  ;;  %28840 = vst [vmem:[#allocation278_spill] sm:$0xff] %v24460_v3  ;;  %v5132_v28 = vmul.f32 %v28841_v57, %v3340_v31  ;;  %v3088_v48 = vmul.f32 0.2, %v24433_v54  ;;  %v3090_v12 = vmul.f32 0.2, %v24441_v27 }
 0x271   :  { %4961 = vperm.xlu0 %19915, %v3719_v58   ;;  %v24468_v56 = vadd.f32 %v19284_v33, %v24156_v63  ;;  %v5134_v63 = vmul.f32 %v23508_v8, %v3342_v4  ;;  %v3087_v33 = vmul.f32 0.2, %v24451_v36  ;;  %v3724_v8 = vld [vmem:[%s28140_s1 + $0x7d8] sm:$0xff]  ;;  %v24494_v31 = vpop.permute.xlu1 %4576  ;;  %v28844_v4 = vld [vmem:[#allocation290_spill] sm:$0xff]  ;;  %v3089_v57 = vmul.f32 0.2, %v24465_v62 }
 0x272   :  { %19403 = vmatmul.mubr.msk.bf16.gmra.mxu1 %vm5415_vm1, %v5324_v52  ;;  %v24471_v38 = vpop.f32.mrf.mxu0  ;;  %v5623_v37 = vpop.f32.mrf.mxu1  ;;  %28843 = vst [vmem:[#allocation276_spill] sm:$0xff] %v24494_v31 }
 0x273   :  { %19406 = vmatprep.mubr.msk.bf16.mxu1 %vm5415_vm1, %v5325_v39  ;;  %v24484_v58 = vadd.f32 %v5623_v37, %v24181_v17  ;;  %v5131_v39 = vmul.f32 %v28842_v35, %v3339_v6  ;;  %v5133_v17 = vmul.f32 %v28844_v4, %v3341_v32  ;;  %v3344_v37 = vmax.f32 %v24433_v54, %v3088_v48  ;;  %v24512_v4 = vpop.permute.xlu0 %4571 }
 0x274   :  { %v24486_v52 = vpop.f32.mrf.mxu0  ;;  %4976 = vperm.xlu1 %19916, %v3722_v19   ;;  %v19285_v3 = vpop.f32.mrf.mxu1  ;;  %v24510_v35 = vadd.f32 %v24347_v20, %v24239_v24  ;;  %v24527_v24 = vadd.f32 %v24347_v20, %v24198_v15 }
 0x275   :  { %4971 = vperm.xlu0 %19915, %v3721_v30   ;;  %19239 = vmatmul.mubr.msk.bf16.gmra.mxu0 %vm1519_vm0, %v20059_v41  ;;  %v24499_v19 = vadd.f32 %v19285_v3, %v24191_v22  ;;  %v3723_v30 = vld [vmem:[%s28140_s1 + $0x7d0] sm:$0xff]  ;;  %v5326_v41 = vpack.c.bf16 %v5132_v28, %v5131_v39  ;;  %v3346_v22 = vmax.f32 %v24441_v27, %v3090_v12  ;;  %v3725_v12 = vld [vmem:[%s28140_s1 + $0x7e0] sm:$0xff] }
 0x276   :  { %v24501_v6 = vpop.f32.mrf.mxu0  ;;  %19242 = vmatprep.mubr.msk.bf16.mxu0 %vm1519_vm0, %v20061_v40  ;;  %v5626_v32 = vpop.f32.mrf.mxu1  ;;  %v24517_v3 = vadd.f32 %v24347_v20, %v24323_v1  ;;  %v5327_v54 = vpack.c.bf16 %v5134_v63, %v5133_v17  ;;  %v3343_v28 = vmax.f32 %v24451_v36, %v3087_v33  ;;  %v3726_v1 = vld [vmem:[%s28140_s1 + $0x7e8] sm:$0xff]  ;;  %v3345_v27 = vmax.f32 %v24465_v62, %v3089_v57  ;;  %v20063_v39 = vld [vmem:[%s28139_s0 + $0x3e0] sm:$0xff]  }
 0x277   :  { %v24520_v31 = vadd.f32 %v5626_v32, %v24209_v42  ;;  %v20062_v42 = vld [vmem:[%s28139_s0 + $0x3d8] sm:$0xff]   ;;  %v24539_v36 = vadd.f32 %v24347_v20, %v24286_v11  ;;  %v28845_v62 = vld [vmem:[#allocation289_spill] sm:$0xff]  ;;  %v3092_v11 = vmul.f32 0.2, %v24510_v35  ;;  %v24555_v17 = vpop.permute.xlu1 %4586 }
 0x278   :  { %v24522_v40 = vpop.f32.mrf.mxu0  ;;  %4986 = vperm.xlu1 %19916, %v3724_v8   ;;  %v19288_v48 = vpop.f32.mrf.mxu1  ;;  %v5136_v33 = vmul.f32 %v28845_v62, %v3344_v37  ;;  %v3094_v57 = vmul.f32 0.2, %v24517_v3  ;;  %v28846_v32 = vld [vmem:[#allocation291_spill] sm:$0xff] }
 0x279   :  { %4981 = vperm.xlu0 %19915, %v3723_v30   ;;  %v24542_v15 = vadd.f32 %v19288_v48, %v24225_v25  ;;  %v5138_v25 = vmul.f32 %v23560_v23, %v3346_v22  ;;  %v3091_v48 = vmul.f32 0.2, %v24527_v24  ;;  %v3728_v23 = vld [vmem:[%s28140_s1 + $0x7f8] sm:$0xff]  ;;  %v24570_v22 = vpop.permute.xlu0 %4581  ;;  %v3093_v62 = vmul.f32 0.2, %v24539_v36 }
 0x27a   :  { %19407 = vmatmul.mubr.msk.bf16.gmra.mxu1 %vm5415_vm1, %v5326_v41  ;;  %v24545_v63 = vpop.f32.mrf.mxu0  ;;  %v5639_v8 = vpop.f32.mrf.mxu1  ;;  %28847 = vst [vmem:[#allocation277_spill] sm:$0xff] %v24570_v22 }
 0x27b   :  { %19410 = vmatprep.mubr.msk.bf16.mxu1 %vm5415_vm1, %v5327_v54  ;;  %v24560_v30 = vadd.f32 %v5639_v8, %v24249_v44  ;;  %v5135_v54 = vmul.f32 %v28846_v32, %v3343_v28  ;;  %v5137_v44 = vmul.f32 %v23566_v34, %v3345_v27  ;;  %v3348_v8 = vmax.f32 %v24510_v35, %v3092_v11 }
 0x27c   :  { %v24562_v41 = vpop.f32.mrf.mxu0  ;;  %4996 = vperm.xlu1 %19916, %v3726_v1   ;;  %v19289_v37 = vpop.f32.mrf.mxu1  ;;  %v2478_v32 = vadd.f32 %v24347_v20, %v24307_v21  ;;  %v3350_v27 = vmax.f32 %v24517_v3, %v3094_v57  ;;  %v2475_v35 = vadd.f32 %v24347_v20, %v24266_v10  ;;  %v2483_v11 = vadd.f32 %v24347_v20, %v24363_v45 }
 0x27d   :  { %4991 = vperm.xlu0 %19915, %v3725_v12   ;;  %19243 = vmatmul.mubr.msk.bf16.gmra.mxu0 %vm1519_vm0, %v20062_v42  ;;  %v24575_v1 = vadd.f32 %v19289_v37, %v24257_v26  ;;  %v3727_v12 = vld [vmem:[%s28140_s1 + $0x7f0] sm:$0xff]  ;;  %v5328_v42 = vpack.c.bf16 %v5136_v33, %v5135_v54  ;;  %v24589_v26 = vadd.f32 %v24347_v20, %v24411_v59  ;;  %v20064_v59 = vld [vmem:[%s28139_s0 + $0x3e8] sm:$0xff]   ;;  %v24603_v3 = vpop.permute.xlu1 %4596 }
 0x27e   :  { %v24577_v28 = vpop.f32.mrf.mxu0  ;;  %19246 = vmatprep.mubr.msk.bf16.mxu0 %vm1519_vm0, %v20063_v39  ;;  %v5642_v34 = vpop.f32.mrf.mxu1  ;;  %v5329_v39 = vpack.c.bf16 %v5138_v25, %v5137_v44  ;;  %v3347_v33 = vmax.f32 %v24527_v24, %v3091_v48  ;;  %v20066_v25 = vld [vmem:[%s28139_s0 + $0x3f0] sm:$0xff]   ;;  %v5140_v57 = vmul.f32 %v23601_v5, %v3348_v8  ;;  %v3096_v54 = vmul.f32 0.2, %v2478_v32 }
 0x27f   :  { %v24592_v37 = vadd.f32 %v5642_v34, %v24277_v43  ;;  %v3349_v43 = vmax.f32 %v24539_v36, %v3093_v62  ;;  %v5142_v36 = vmul.f32 %v23649_v9, %v3350_v27  ;;  %v3098_v45 = vmul.f32 0.2, %v24589_v26 }
 0x280   :  { %v24594_v22 = vpop.f32.mrf.mxu0  ;;  %5006 = vperm.xlu1 %19916, %v3728_v23   ;;  %v24618_v23 = vpop.permute.xlu0 %4591  ;;  %v5139_v62 = vmul.f32 %v23612_v18, %v3347_v33  ;;  %v3097_v8 = vmul.f32 0.2, %v2483_v11  ;;  %v3352_v27 = vmax.f32 %v2478_v32, %v3096_v54  ;;  %v20068_v33 = vld [vmem:[%s28142_s3 + $0x90] sm:$0xff]  }
 0x281   :  { %5001 = vperm.xlu0 %19915, %v3727_v12   ;;  %v3095_v12 = vmul.f32 0.2, %v2475_v35  ;;  %v5141_v5 = vmul.f32 %v23670_v29, %v3349_v43  ;;  %v3354_v29 = vmax.f32 %v24589_v26, %v3098_v45  ;;  %v20067_v26 = vld [vmem:[%s28139_s0 + $0x3f8] sm:$0xff]  }
 0x282   :  { %v19292_v21 = vpop.f32.mrf.mxu1  ;;  %19411 = vmatmul.mubr.msk.bf16.gmra.mxu1 %vm5415_vm1, %v5328_v42  ;;  %v24612_v10 = vpop.f32.mrf.mxu0 }
 0x283   :  { %v24609_v24 = vadd.f32 %v19292_v21, %v24293_v51  ;;  %19418 = vmatprep.mubr.msk.bf16.mxu1 %vm5415_vm1, %v5329_v39  ;;  %v2494_v39 = vadd.f32 %v24347_v20, %v24389_v50  ;;  %v24641_v21 = vpop.permute.xlu1 %4606  ;;  %v5331_v32 = vpack.c.bf16 %v5142_v36, %v5141_v5  ;;  %v2491_v50 = vadd.f32 %v24347_v20, %v24337_v0 }
 0x284   :  { %v5655_v48 = vpop.f32.mrf.mxu1  ;;  %v24625_v44 = vpop.f32.mrf.mxu0 }
 0x285   :  { %v24623_v51 = vadd.f32 %v5655_v48, %v24317_v13  ;;  %19247 = vmatmul.mubr.msk.bf16.gmra.mxu0 %vm1519_vm0, %v20064_v59  ;;  %v5330_v13 = vpack.c.bf16 %v5140_v57, %v5139_v62  ;;  %v24657_v54 = vpop.permute.xlu0 %4601  ;;  %v3100_v36 = vmul.f32 0.2, %v2494_v39 }
 0x286   :  { %v19293_v42 = vpop.f32.mrf.mxu1  ;;  %v24633_v9 = vpop.f32.mrf.mxu0  ;;  %19250 = vmatprep.mubr.msk.bf16.mxu0 %vm1519_vm0, %v20066_v25  ;;  %v3351_v25 = vmax.f32 %v2475_v35, %v3095_v12  ;;  %28848 = vst [vmem:[#allocation279_spill] sm:$0xff] %v24657_v54  ;;  %v5144_v35 = vmul.f32 %v23694_v60, %v3352_v27  ;;  %v28851_v27 = vld [vmem:[#allocation294_spill] sm:$0xff] }
 0x287   :  { %v24631_v34 = vadd.f32 %v19293_v42, %v24327_v49  ;;  %v2502_v49 = vadd.f32 %v24347_v20, %v24486_v52  ;;  %v3353_v52 = vmax.f32 %v2483_v11, %v3097_v8  ;;  %v24672_v11 = vld [vmem:[%s28142_s3 + $0xa8] sm:$0xff]   ;;  %v3099_v8 = vmul.f32 0.2, %v2491_v50 }
 0x288   :  { %v5658_v18 = vpop.f32.mrf.mxu1  ;;  %v24649_v43 = vpop.f32.mrf.mxu0 }
 0x289   :  { %v24647_v59 = vadd.f32 %v5658_v18, %v24353_v53  ;;  %v2499_v53 = vadd.f32 %v24347_v20, %v24446_v2  ;;  %v28849_v2 = vld [vmem:[#allocation295_spill] sm:$0xff]  ;;  %v5145_v18 = vmul.f32 %v28851_v27, %v3353_v52  ;;  %v2518_v52 = vadd.f32 %v24347_v20, %v24562_v41  ;;  %v28853_v41 = vld [vmem:[#allocation296_spill] sm:$0xff] }
 0x28a   :  { %v19300_v57 = vpop.f32.mrf.mxu1  ;;  %19419 = vmatmul.mubr.msk.bf16.vlgmr.msra.gmra.mxu1 %vm5415_vm1, %v5330_v13  ;;  %v24666_v0 = vpop.f32.mrf.mxu0  ;;  %v5146_v62 = vmul.f32 %v28849_v2, %v3354_v29 }
 0x28b   :  { %v24662_v48 = vadd.f32 %v19300_v57, %v24385_v47  ;;  %19422 = vmatprep.mubr.msk.bf16.mxu1 %vm5415_vm1, %v5331_v32  ;;  %19435 = vmatpush3.bf16.msra.mxu1 %v24402_v7  ;;  %v3102_v47 = vmul.f32 0.2, %v2502_v49  ;;  %v28850_v7 = vld [vmem:[#allocation293_spill] sm:$0xff]  ;;  %v24682_v13 = vpop.permute.xlu1 %4616  ;;  %v3101_v32 = vmul.f32 0.2, %v2499_v53 }
 0x28c   :  { %v5745_v45 = vpop.f32.mrf.mxu1  ;;  %19436 = vmatprep.subr.bf16.mxu1 %v20068_v33  ;;  %v24678_v42 = vpop.f32.mrf.mxu0  ;;  %v5143_v5 = vmul.f32 %v28850_v7, %v3351_v25  ;;  %v2510_v25 = vadd.f32 %v24347_v20, %v24471_v38 }
 0x28d   :  { %v24676_v12 = vadd.f32 %v5745_v45, %v24409_v16  ;;  %19251 = vmatmul.mubr.msk.bf16.gmra.mxu0 %vm1519_vm0, %v20067_v26  ;;  %v3356_v45 = vmax.f32 %v2494_v39, %v3100_v36  ;;  %v24693_v26 = vpop.permute.xlu0 %4611  ;;  %v3358_v7 = vmax.f32 %v2502_v49, %v3102_v47  ;;  %v2507_v39 = vadd.f32 %v24347_v20, %v24424_v46  ;;  %v28855_v46 = vld [vmem:[#allocation298_spill] sm:$0xff] }
 0x28e   :  { %v19301_v60 = vpop.f32.mrf.mxu1  ;;  %v24688_v29 = vpop.f32.mrf.mxu0  ;;  %v5332_v16 = vpack.c.bf16 %v5144_v35, %v5143_v5  ;;  %28852 = vst [vmem:[#allocation282_spill] sm:$0xff] %v24693_v26  ;;  %v3355_v35 = vmax.f32 %v2491_v50, %v3099_v8  ;;  %v3357_v36 = vmax.f32 %v2499_v53, %v3101_v32  ;;  %v2515_v49 = vadd.f32 %v24347_v20, %v24522_v40 }
 0x28f   :  { %v24686_v57 = vadd.f32 %v19301_v60, %v24422_v14  ;;  %19437 = vmatpush3.bf16.msra.mxu1 %v20068_v33  ;;  %v5333_v33 = vpack.c.bf16 %v5146_v62, %v5145_v18  ;;  %v5148_v62 = vmul.f32 %v28853_v41, %v3356_v45  ;;  %v3104_v50 = vmul.f32 0.2, %v2510_v25  ;;  %v24714_v8 = vpop.permute.xlu1 %4626 }
 0x290   :  { %v5748_v2 = vpop.f32.mrf.mxu1  ;;  %19454 = vmatprep.subr.bf16.mxu1 %v24672_v11  ;;  %v24700_v60 = vpop.f32.mrf.mxu0  ;;  %28854 = vst [vmem:[#allocation280_spill] sm:$0xff] %v24714_v8  ;;  %v5150_v27 = vmul.f32 %v28855_v46, %v3358_v7  ;;  %v3106_v18 = vmul.f32 0.2, %v2518_v52  ;;  %v3105_v41 = vmul.f32 0.2, %v2515_v49 }
 0x291   :  { %v24698_v14 = vadd.f32 %v5748_v2, %v24444_v61  ;;  %v3360_v46 = vmax.f32 %v2510_v25, %v3104_v50 }
 0x292   :  { %v19304_v38 = vpop.f32.mrf.mxu1  ;;  %19423 = vmatmul.mubr.msk.bf16.gmra.mxu1 %vm5415_vm1, %v5332_v16  ;;  %v24711_v61 = vpop.f32.mrf.mxu0  ;;  %v3103_v16 = vmul.f32 0.2, %v2507_v39  ;;  %v3362_v54 = vmax.f32 %v2518_v52, %v3106_v18  ;;  %v2531_v52 = vadd.f32 %v24347_v20, %v24594_v22 }
 0x293   :  { %v24708_v47 = vadd.f32 %v19304_v38, %v24468_v56  ;;  %19426 = vmatprep.mubr.msk.bf16.mxu1 %vm5415_vm1, %v5333_v33  ;;  %v28856_v56 = vld [vmem:[#allocation297_spill] sm:$0xff]  ;;  %v24723_v33 = vpop.permute.xlu0 %4621  ;;  %v28858_v38 = vld [vmem:[#allocation299_spill] sm:$0xff]  ;;  %v24743_v25 = vpop.permute.xlu1 %4636 }
 0x294   :  { %v5761_v5 = vpop.f32.mrf.mxu1  ;;  %v24720_v40 = vpop.f32.mrf.mxu0  ;;  %v5147_v32 = vmul.f32 %v28856_v56, %v3355_v35  ;;  %28857 = vst [vmem:[#allocation281_spill] sm:$0xff] %v24723_v33  ;;  %v5149_v45 = vmul.f32 %v28858_v38, %v3357_v36  ;;  %v2534_v35 = vadd.f32 %v24347_v20, %v24625_v44  ;;  %28859 = vst [vmem:[#allocation283_spill] sm:$0xff] %v24743_v25  ;;  %v3109_v33 = vmul.f32 0.2, %v2531_v52 }
 0x295   :  { %v24718_v53 = vadd.f32 %v5761_v5, %v24484_v58  ;;  %v2526_v58 = vadd.f32 %v24347_v20, %v24545_v63  ;;  %v3361_v63 = vmax.f32 %v2515_v49, %v3105_v41 }
 0x296   :  { %v19305_v2 = vpop.f32.mrf.mxu1  ;;  %v24729_v8 = vpop.f32.mrf.mxu0  ;;  %v5334_v7 = vpack.c.bf16 %v5148_v62, %v5147_v32  ;;  %v5335_v38 = vpack.c.bf16 %v5150_v27, %v5149_v45  ;;  %v28862_v32 = vld [vmem:[#allocation309_spill] sm:$0xff]  ;;  %v3110_v45 = vmul.f32 0.2, %v2534_v35 }
 0x297   :  { %v24727_v26 = vadd.f32 %v19305_v2, %v24499_v19  ;;  %v3359_v19 = vmax.f32 %v2507_v39, %v3103_v16  ;;  %v2523_v2 = vadd.f32 %v24347_v20, %v24501_v6  ;;  %v28860_v39 = vld [vmem:[#allocation307_spill] sm:$0xff]  ;;  %v3108_v27 = vmul.f32 0.2, %v2526_v58  ;;  %v24754_v18 = vpop.permute.xlu0 %4631 }
 0x298   :  { %v5764_v5 = vpop.f32.mrf.mxu1  ;;  %v24738_v36 = vpop.f32.mrf.mxu0  ;;  %v5152_v50 = vmul.f32 %v28860_v39, %v3360_v46  ;;  %28861 = vst [vmem:[#allocation286_spill] sm:$0xff] %v24754_v18  ;;  %v5154_v16 = vmul.f32 %v28862_v32, %v3362_v54  ;;  %v3366_v25 = vmax.f32 %v2534_v35, %v3110_v45  ;;  %v2547_v35 = vadd.f32 %v24347_v20, %v24649_v43  ;;  %v28869_v43 = vld [vmem:[#allocation300_spill] sm:$0xff] }
 0x299   :  { %v24736_v56 = vadd.f32 %v5764_v5, %v24520_v31  ;;  %v3364_v54 = vmax.f32 %v2526_v58, %v3108_v27  ;;  %v24771_v32 = vpop.permute.xlu1 %4646  ;;  %v2539_v58 = vadd.f32 %v24347_v20, %v24577_v28  ;;  %v3365_v27 = vmax.f32 %v2531_v52, %v3109_v33 }
 0x29a   :  { %v19308_v62 = vpop.f32.mrf.mxu1  ;;  %19427 = vmatmul.mubr.msk.bf16.gmra.mxu1 %vm5415_vm1, %v5334_v7  ;;  %v24751_v31 = vpop.f32.mrf.mxu0  ;;  %v3107_v7 = vmul.f32 0.2, %v2523_v2  ;;  %28865 = vst [vmem:[#allocation284_spill] sm:$0xff] %v24771_v32 }
 0x29b   :  { %v24748_v44 = vadd.f32 %v19308_v62, %v24542_v15  ;;  %19430 = vmatprep.mubr.msk.bf16.mxu1 %vm5415_vm1, %v5335_v38  ;;  %v28863_v15 = vld [vmem:[#allocation308_spill] sm:$0xff]  ;;  %v28864_v38 = vld [vmem:[#allocation310_spill] sm:$0xff] }
 0x29c   :  { %v5777_v6 = vpop.f32.mrf.mxu1  ;;  %v24760_v22 = vpop.f32.mrf.mxu0  ;;  %v5151_v41 = vmul.f32 %v28863_v15, %v3359_v19  ;;  %v5153_v62 = vmul.f32 %v28864_v38, %v3361_v63  ;;  %v2550_v19 = vadd.f32 %v24347_v20, %v24678_v42 }
 0x29d   :  { %v24758_v49 = vadd.f32 %v5777_v6, %v24560_v30  ;;  %v2542_v30 = vadd.f32 %v24347_v20, %v24612_v10  ;;  %v24783_v10 = vpop.permute.xlu0 %4641 }
 0x29e   :  { %v19309_v5 = vpop.f32.mrf.mxu1  ;;  %v24767_v39 = vpop.f32.mrf.mxu0  ;;  %v5336_v18 = vpack.c.bf16 %v5152_v50, %v5151_v41  ;;  %28866 = vst [vmem:[#allocation285_spill] sm:$0xff] %v24783_v10  ;;  %v28868_v41 = vld [vmem:[#allocation302_spill] sm:$0xff]  ;;  %v3113_v10 = vmul.f32 0.2, %v2547_v35 }
 0x29f   :  { %v24765_v46 = vadd.f32 %v19309_v5, %v24575_v1  ;;  %v5337_v1 = vpack.c.bf16 %v5154_v16, %v5153_v62  ;;  %v3363_v5 = vmax.f32 %v2523_v2, %v3107_v7  ;;  %v28867_v2 = vld [vmem:[#allocation301_spill] sm:$0xff]  ;;  %v3112_v45 = vmul.f32 0.2, %v2542_v30 }
 0x2a0   :  { %v5780_v6 = vpop.f32.mrf.mxu1  ;;  %v24778_v15 = vpop.f32.mrf.mxu0  ;;  %v5156_v16 = vmul.f32 %v28867_v2, %v3364_v54  ;;  %v5158_v7 = vmul.f32 %v28868_v41, %v3366_v25 }
 0x2a1   :  { %v24776_v63 = vadd.f32 %v5780_v6, %v24592_v37  ;;  %v5155_v52 = vmul.f32 %v28869_v43, %v3363_v5  ;;  %v24801_v6 = vpop.permute.xlu1 %4656  ;;  %v3368_v41 = vmax.f32 %v2542_v30, %v3112_v45  ;;  %v20070_v5 = vld [vmem:[%s28142_s3 + $0xa0] sm:$0xff]   ;;  %v24814_v43 = vpop.permute.xlu0 %4651 }
 0x2a2   :  { %v19312_v50 = vpop.f32.mrf.mxu1  ;;  %19431 = vmatmul.mubr.msk.bf16.gmra.mxu1 %vm5415_vm1, %v5336_v18  ;;  %v24791_v37 = vpop.f32.mrf.mxu0  ;;  %v3114_v18 = vmul.f32 0.2, %v2550_v19  ;;  %28870 = vst [vmem:[#allocation287_spill] sm:$0xff] %v24801_v6  ;;  %28872 = vst [vmem:[#allocation288_spill] sm:$0xff] %v24814_v43 }
 0x2a3   :  { %v24788_v42 = vadd.f32 %v19312_v50, %v24609_v24  ;;  %19438 = vmatprep.mubr.msk.bf16.mxu1 %vm5415_vm1, %v5337_v1  ;;  %v3111_v24 = vmul.f32 0.2, %v2539_v58  ;;  %v28871_v1 = vld [vmem:[#allocation303_spill] sm:$0xff]  ;;  %v5338_v25 = vpack.c.bf16 %v5156_v16, %v5155_v52  ;;  %v3369_v52 = vmax.f32 %v2547_v35, %v3113_v10 }
 0x2a4   :  { %v5793_v28 = vpop.f32.mrf.mxu1  ;;  %v24798_v33 = vpop.f32.mrf.mxu0  ;;  %v5157_v50 = vmul.f32 %v28871_v1, %v3365_v27  ;;  %v3370_v6 = vmax.f32 %v2550_v19, %v3114_v18  ;;  %v2566_v27 = vadd.f32 %v24347_v20, %v24720_v40  ;;  %v2563_v19 = vadd.f32 %v24347_v20, %v24700_v60  ;;  %v28873_v40 = vld [vmem:[#allocation305_spill] sm:$0xff]  ;;  %v24839_v10 = vld [vmem:[%s28142_s3 + $0xb8] sm:$0xff]  }
 0x2a5   :  { %v24796_v38 = vadd.f32 %v5793_v28, %v24623_v51  ;;  %v2558_v51 = vadd.f32 %v24347_v20, %v24666_v0  ;;  %v3367_v16 = vmax.f32 %v2539_v58, %v3111_v24  ;;  %v2555_v0 = vadd.f32 %v24347_v20, %v24633_v9  ;;  %v24841_v60 = vpop.permute.xlu1 %4666 }
 0x2a6   :  { %v19313_v62 = vpop.f32.mrf.mxu1  ;;  %v24807_v2 = vpop.f32.mrf.mxu0  ;;  %v5339_v30 = vpack.c.bf16 %v5158_v7, %v5157_v50  ;;  %v5160_v58 = vmul.f32 %v28873_v40, %v3368_v41  ;;  %28874 = vst [vmem:[#allocation290_spill] sm:$0xff] %v24841_v60  ;;  %v3118_v24 = vmul.f32 0.2, %v2566_v27  ;;  %v28876_v50 = vld [vmem:[#allocation304_spill] sm:$0xff]  ;;  %v3117_v43 = vmul.f32 0.2, %v2563_v19 }
 0x2a7   :  { %v24805_v54 = vadd.f32 %v19313_v62, %v24631_v34  ;;  %v3116_v7 = vmul.f32 0.2, %v2558_v51  ;;  %v3115_v41 = vmul.f32 0.2, %v2555_v0 }
 0x2a8   :  { %v5796_v28 = vpop.f32.mrf.mxu1  ;;  %v24821_v62 = vpop.f32.mrf.mxu0 }
 0x2a9   :  { %v24819_v34 = vadd.f32 %v5796_v28, %v24647_v59 }
 0x2aa   :  { %v19320_v45 = vpop.f32.mrf.mxu1  ;;  %19439 = vmatmul.mubr.msk.bf16.vlgmr.msra.gmra.mxu1 %vm5415_vm1, %v5338_v25  ;;  %v24833_v59 = vpop.f32.mrf.mxu0  ;;  %v5159_v25 = vmul.f32 %v28876_v50, %v3367_v16  ;;  %v3374_v16 = vmax.f32 %v2566_v27, %v3118_v24  ;;  %v2582_v50 = vadd.f32 %v24347_v20, %v24760_v22  ;;  %v2579_v27 = vadd.f32 %v24347_v20, %v24738_v36 }
 0x2ab   :  { %v24829_v18 = vadd.f32 %v19320_v45, %v24662_v48  ;;  %19442 = vmatprep.mubr.msk.bf16.mxu1 %vm5415_vm1, %v5339_v30  ;;  %19455 = vmatpush3.bf16.msra.mxu1 %v24672_v11  ;;  %v28875_v48 = vld [vmem:[#allocation306_spill] sm:$0xff]  ;;  %v24850_v30 = vpop.permute.xlu0 %4661  ;;  %v28878_v45 = vld [vmem:[#allocation292_spill] sm:$0xff] }
 0x2ac   :  { %v5899_v9 = vpop.f32.mrf.mxu1  ;;  %19456 = vmatprep.subr.bf16.mxu1 %v20070_v5  ;;  %v5162_v35 = vmul.f32 %v28875_v48, %v3370_v6  ;;  %v24847_v11 = vpop.f32.mrf.mxu0  ;;  %28877 = vst [vmem:[#allocation289_spill] sm:$0xff] %v24850_v30  ;;  %v5161_v40 = vmul.f32 %v28878_v45, %v3369_v52  ;;  %v5340_v6 = vpack.c.bf16 %v5160_v58, %v5159_v25  ;;  %v28882_v25 = vld [vmem:[#allocation265_spill] sm:$0xff]  ;;  %v3121_v30 = vmul.f32 0.2, %v2579_v27 }
 0x2ad   :  { %v24845_v1 = vadd.f32 %v5899_v9, %v24676_v12  ;;  %v3372_v12 = vmax.f32 %v2558_v51, %v3116_v7  ;;  %v2574_v9 = vadd.f32 %v24347_v20, %v24711_v61  ;;  %v3371_v45 = vmax.f32 %v2555_v0, %v3115_v41  ;;  %v24871_v61 = vpop.permute.xlu1 %4676  ;;  %v28880_v0 = vld [vmem:[#allocation266_spill] sm:$0xff] }
 0x2ae   :  { %v19321_v28 = vpop.f32.mrf.mxu1  ;;  %v24856_v60 = vpop.f32.mrf.mxu0  ;;  %v2571_v51 = vadd.f32 %v24347_v20, %v24688_v29  ;;  %28879 = vst [vmem:[#allocation291_spill] sm:$0xff] %v24871_v61  ;;  %v3373_v58 = vmax.f32 %v2563_v19, %v3117_v43  ;;  %v5166_v41 = vmul.f32 %v28882_v25, %v3374_v16 }
 0x2af   :  { %v24854_v32 = vadd.f32 %v19321_v28, %v24686_v57  ;;  %19457 = vmatpush3.bf16.msra.mxu1 %v20070_v5  ;;  %v5341_v28 = vpack.c.bf16 %v5162_v35, %v5161_v40  ;;  %v5164_v7 = vmul.f32 %v28880_v0, %v3372_v12  ;;  %v3120_v35 = vmul.f32 0.2, %v2574_v9  ;;  %v24882_v24 = vpop.permute.xlu0 %4671 }
 0x2b0   :  { %v5902_v48 = vpop.f32.mrf.mxu1  ;;  %19474 = vmatprep.subr.bf16.mxu1 %v24839_v10  ;;  %v24866_v57 = vpop.f32.mrf.mxu0  ;;  %28881 = vst [vmem:[#allocation295_spill] sm:$0xff] %v24882_v24  ;;  %v3122_v40 = vmul.f32 0.2, %v2582_v50 }
 0x2b1   :  { %v24864_v52 = vadd.f32 %v5902_v48, %v24698_v14  ;;  %v3376_v16 = vmax.f32 %v2574_v9, %v3120_v35  ;;  %v24899_v25 = vpop.permute.xlu1 %4686  ;;  %v2587_v9 = vadd.f32 %v24347_v20, %v24729_v8  ;;  %v3377_v35 = vmax.f32 %v2579_v27, %v3121_v30 }
 0x2b2   :  { %v19324_v5 = vpop.f32.mrf.mxu1  ;;  %19443 = vmatmul.mubr.msk.bf16.gmra.mxu1 %vm5415_vm1, %v5340_v6  ;;  %v24879_v14 = vpop.f32.mrf.mxu0  ;;  %v3119_v6 = vmul.f32 0.2, %v2571_v51  ;;  %28885 = vst [vmem:[#allocation293_spill] sm:$0xff] %v24899_v25  ;;  %v3378_v61 = vmax.f32 %v2582_v50, %v3122_v40  ;;  %v2595_v50 = vadd.f32 %v24347_v20, %v24778_v15  ;;  %v28889_v15 = vld [vmem:[#allocation268_spill] sm:$0xff] }
 0x2b3   :  { %v24876_v22 = vadd.f32 %v19324_v5, %v24708_v47  ;;  %19446 = vmatprep.mubr.msk.bf16.mxu1 %vm5415_vm1, %v5341_v28  ;;  %v28883_v47 = vld [vmem:[#allocation264_spill] sm:$0xff]  ;;  %v28884_v28 = vld [vmem:[#allocation267_spill] sm:$0xff] }
 0x2b4   :  { %v5915_v29 = vpop.f32.mrf.mxu1  ;;  %v24888_v36 = vpop.f32.mrf.mxu0  ;;  %v5163_v19 = vmul.f32 %v28883_v47, %v3371_v45  ;;  %v5165_v5 = vmul.f32 %v28884_v28, %v3373_v58  ;;  %v2598_v45 = vadd.f32 %v24347_v20, %v24798_v33 }
 0x2b5   :  { %v24886_v43 = vadd.f32 %v5915_v29, %v24718_v53  ;;  %v2590_v53 = vadd.f32 %v24347_v20, %v24751_v31  ;;  %v24911_v31 = vpop.permute.xlu0 %4681 }
 0x2b6   :  { %v19325_v48 = vpop.f32.mrf.mxu1  ;;  %v24895_v0 = vpop.f32.mrf.mxu0  ;;  %v5342_v24 = vpack.c.bf16 %v5164_v7, %v5163_v19  ;;  %28886 = vst [vmem:[#allocation294_spill] sm:$0xff] %v24911_v31  ;;  %v28888_v19 = vld [vmem:[#allocation269_spill] sm:$0xff]  ;;  %v3125_v31 = vmul.f32 0.2, %v2595_v50 }
 0x2b7   :  { %v24893_v12 = vadd.f32 %v19325_v48, %v24727_v26  ;;  %v5343_v26 = vpack.c.bf16 %v5166_v41, %v5165_v5  ;;  %v3375_v48 = vmax.f32 %v2571_v51, %v3119_v6  ;;  %v28887_v51 = vld [vmem:[#allocation270_spill] sm:$0xff]  ;;  %v3124_v40 = vmul.f32 0.2, %v2590_v53 }
 0x2b8   :  { %v5918_v29 = vpop.f32.mrf.mxu1  ;;  %v24906_v47 = vpop.f32.mrf.mxu0  ;;  %v5168_v41 = vmul.f32 %v28887_v51, %v3376_v16  ;;  %v5170_v6 = vmul.f32 %v28888_v19, %v3378_v61 }
 0x2b9   :  { %v24904_v58 = vadd.f32 %v5918_v29, %v24736_v56  ;;  %v5167_v27 = vmul.f32 %v28889_v15, %v3375_v48  ;;  %v24929_v29 = vpop.permute.xlu1 %4696  ;;  %v3380_v19 = vmax.f32 %v2590_v53, %v3124_v40  ;;  %v24939_v25 = vpop.permute.xlu0 %4691  ;;  %v2614_v15 = vadd.f32 %v24347_v20, %v24847_v11  ;;  %v28892_v11 = vld [vmem:[#allocation274_spill] sm:$0xff] }
 0x2ba   :  { %v19328_v7 = vpop.f32.mrf.mxu1  ;;  %19447 = vmatmul.mubr.msk.bf16.gmra.mxu1 %vm5415_vm1, %v5342_v24  ;;  %v24919_v56 = vpop.f32.mrf.mxu0  ;;  %v3126_v24 = vmul.f32 0.2, %v2598_v45  ;;  %28891 = vst [vmem:[#allocation296_spill] sm:$0xff] %v24939_v25  ;;  %v2603_v53 = vadd.f32 %v24347_v20, %v24767_v39  ;;  %v28894_v39 = vld [vmem:[#allocation273_spill] sm:$0xff] }
 0x2bb   :  { %v24916_v33 = vadd.f32 %v19328_v7, %v24748_v44  ;;  %19450 = vmatprep.mubr.msk.bf16.mxu1 %vm5415_vm1, %v5343_v26  ;;  %v3123_v44 = vmul.f32 0.2, %v2587_v9  ;;  %v28890_v26 = vld [vmem:[#allocation271_spill] sm:$0xff]  ;;  %v5344_v61 = vpack.c.bf16 %v5168_v41, %v5167_v27 }
 0x2bc   :  { %v5931_v8 = vpop.f32.mrf.mxu1  ;;  %v24926_v30 = vpop.f32.mrf.mxu0  ;;  %v5169_v7 = vmul.f32 %v28890_v26, %v3377_v35  ;;  %v3382_v48 = vmax.f32 %v2598_v45, %v3126_v24  ;;  %v2611_v45 = vadd.f32 %v24347_v20, %v24821_v62 }
 0x2bd   :  { %v24924_v28 = vadd.f32 %v5931_v8, %v24758_v49  ;;  %v2606_v49 = vadd.f32 %v24347_v20, %v24791_v37  ;;  %v3381_v37 = vmax.f32 %v2595_v50, %v3125_v31  ;;  %v24960_v27 = vpop.permute.xlu1 %4706 }
 0x2be   :  { %v19329_v5 = vpop.f32.mrf.mxu1  ;;  %v24935_v51 = vpop.f32.mrf.mxu0  ;;  %28893 = vst [vmem:[#allocation298_spill] sm:$0xff] %v24960_v27 }
 0x2bf   :  { %v24933_v16 = vadd.f32 %v19329_v5, %v24765_v46  ;;  %v5345_v46 = vpack.c.bf16 %v5170_v6, %v5169_v7  ;;  %v3379_v5 = vmax.f32 %v2587_v9, %v3123_v44  ;;  %v5172_v6 = vmul.f32 %v28892_v11, %v3380_v19 }
 0x2c0   :  { %v5934_v8 = vpop.f32.mrf.mxu1  ;;  %v24946_v26 = vpop.f32.mrf.mxu0  ;;  %v3128_v9 = vmul.f32 0.2, %v2606_v49  ;;  %v5174_v44 = vmul.f32 %v28894_v39, %v3382_v48  ;;  %v3130_v7 = vmul.f32 0.2, %v2614_v15  ;;  %v3129_v11 = vmul.f32 0.2, %v2611_v45 }
 0x2c1   :  { %v24944_v35 = vadd.f32 %v5934_v8, %v24776_v63 }
 0x2c2   :  { %v19332_v41 = vpop.f32.mrf.mxu1  ;;  %19451 = vmatmul.mubr.msk.bf16.gmra.mxu1 %vm5415_vm1, %v5344_v61  ;;  %v24957_v63 = vpop.f32.mrf.mxu0  ;;  %v3127_v61 = vmul.f32 0.2, %v2603_v53  ;;  %v3384_v39 = vmax.f32 %v2606_v49, %v3128_v9 }
 0x2c3   :  { %v24954_v40 = vadd.f32 %v19332_v41, %v24788_v42  ;;  %19458 = vmatprep.mubr.msk.bf16.mxu1 %vm5415_vm1, %v5345_v46  ;;  %v28895_v42 = vld [vmem:[#allocation272_spill] sm:$0xff]  ;;  %v24969_v46 = vpop.permute.xlu0 %4701  ;;  %v28896_v41 = vld [vmem:[#allocation275_spill] sm:$0xff] }
 0x2c4   :  { %v5947_v24 = vpop.f32.mrf.mxu1  ;;  %v24966_v62 = vpop.f32.mrf.mxu0  ;;  %v5171_v50 = vmul.f32 %v28895_v42, %v3379_v5  ;;  %v5173_v19 = vmul.f32 %v28896_v41, %v3381_v37  ;;  %v20072_v5 = vld [vmem:[%s28142_s3 + $0xb0] sm:$0xff]   ;;  %v20079_v37 = vld [vmem:[%s28144_s5 + $0x38] sm:$0xff]   ;;  %v3386_v42 = vmax.f32 %v2614_v15, %v3130_v7  ;;  %v3383_v9 = vmax.f32 %v2603_v53, %v3127_v61 }
 0x2c5   :  { %v24964_v31 = vadd.f32 %v5947_v24, %v24796_v38  ;;  %v24979_v38 = vadd.f32 %v24347_v20, %v24833_v59  ;;  %19654 = vmatprep.subr.bf16.mxu0 %v20079_v37  ;;  %v24997_v41 = vpop.permute.xlu1 %4716  ;;  %v3385_v15 = vmax.f32 %v2611_v45, %v3129_v11  ;;  %v25013_v45 = vld [vmem:[%s28142_s3 + $0xc8] sm:$0xff]  }
 0x2c6   :  { %v19333_v8 = vpop.f32.mrf.mxu1  ;;  %v24975_v27 = vpop.f32.mrf.mxu0  ;;  %v5346_v48 = vpack.c.bf16 %v5172_v6, %v5171_v50  ;;  %v5347_v59 = vpack.c.bf16 %v5174_v44, %v5173_v19  ;;  %v2619_v50 = vadd.f32 %v24347_v20, %v24807_v2  ;;  %v5176_v2 = vmul.f32 %v24436_v55, %v3384_v39  ;;  %19655 = vmatpush3.bf16.msra.mxu0 %v20079_v37  ;;  %v28898_v55 = vld [vmem:[#allocation278_spill] sm:$0xff] }
 0x2c7   :  { %v24973_v25 = vadd.f32 %v19333_v8, %v24805_v54  ;;  %v2630_v54 = vadd.f32 %v24347_v20, %v24888_v36  ;;  %v2627_v36 = vadd.f32 %v24347_v20, %v24866_v57  ;;  %v3132_v44 = vmul.f32 0.2, %v24979_v38  ;;  %v25015_v20 = vpop.permute.xlu0 %4711 }
 0x2c8   :  { %v5950_v24 = vpop.f32.mrf.mxu1  ;;  %v24992_v49 = vpop.f32.mrf.mxu0  ;;  %v5175_v11 = vmul.f32 %v28898_v55, %v3383_v9 }
 0x2c9   :  { %v24990_v6 = vadd.f32 %v5950_v24, %v24819_v34  ;;  %v3134_v61 = vmul.f32 0.2, %v2630_v54  ;;  %v5177_v24 = vmul.f32 %v24512_v4, %v3385_v15  ;;  %v25039_v4 = vpop.permute.xlu1 %4726 }
 0x2ca   :  { %v19340_v8 = vpop.f32.mrf.mxu1  ;;  %19459 = vmatmul.mubr.msk.bf16.vlgmr.msra.gmra.mxu1 %vm5415_vm1, %v5346_v48  ;;  %v25006_v53 = vpop.f32.mrf.mxu0  ;;  %v3131_v48 = vmul.f32 0.2, %v2619_v50 }
 0x2cb   :  { %v25002_v34 = vadd.f32 %v19340_v8, %v24829_v18  ;;  %19462 = vmatprep.mubr.msk.bf16.mxu1 %vm5415_vm1, %v5347_v59  ;;  %19475 = vmatpush3.bf16.msra.mxu1 %v24839_v10  ;;  %v28897_v18 = vld [vmem:[#allocation276_spill] sm:$0xff]  ;;  %v3133_v59 = vmul.f32 0.2, %v2627_v36 }
 0x2cc   :  { %v6053_v7 = vpop.f32.mrf.mxu1  ;;  %19476 = vmatprep.subr.bf16.mxu1 %v20072_v5  ;;  %v5178_v57 = vmul.f32 %v28897_v18, %v3386_v42  ;;  %v25021_v19 = vpop.f32.mrf.mxu0  ;;  %v5348_v42 = vpack.c.bf16 %v5176_v2, %v5175_v11  ;;  %v3388_v18 = vmax.f32 %v24979_v38, %v3132_v44  ;;  %v3387_v44 = vmax.f32 %v2619_v50, %v3131_v48 }
 0x2cd   :  { %v25019_v10 = vadd.f32 %v6053_v7, %v24845_v1  ;;  %v25034_v1 = vld [vmem:[%s28149_s10] ss:$0 sm:$0xff]  ;;  %v25051_v11 = vpop.permute.xlu0 %4721 }
 0x2ce   :  { %v19341_v39 = vpop.f32.mrf.mxu1  ;;  %v25028_v37 = vpop.f32.mrf.mxu0  ;;  %v2638_v9 = vadd.f32 %v25034_v1, %v24879_v14  ;;  %v5349_v2 = vpack.c.bf16 %v5178_v57, %v5177_v24  ;;  %v2635_v55 = vadd.f32 %v25034_v1, %v24856_v60  ;;  %28899 = vst [vmem:[#allocation297_spill] sm:$0xff] %v25051_v11  ;;  %v5180_v50 = vmul.f32 %v24555_v17, %v3388_v18 }
 0x2cf   :  { %v25026_v8 = vadd.f32 %v19341_v39, %v24854_v32  ;;  %19477 = vmatpush3.bf16.msra.mxu1 %v20072_v5  ;;  %v3390_v32 = vmax.f32 %v2630_v54, %v3134_v61  ;;  %v2646_v5 = vadd.f32 %v25034_v1, %v24926_v30  ;;  %v3389_v39 = vmax.f32 %v2627_v36, %v3133_v59 }
 0x2d0   :  { %v6056_v7 = vpop.f32.mrf.mxu1  ;;  %19494 = vmatprep.subr.bf16.mxu1 %v25013_v45  ;;  %v25046_v38 = vpop.f32.mrf.mxu0  ;;  %v2643_v54 = vadd.f32 %v25034_v1, %v24906_v47  ;;  %v3136_v57 = vmul.f32 0.2, %v2638_v9  ;;  %v28900_v47 = vld [vmem:[#allocation277_spill] sm:$0xff] }
 0x2d1   :  { %v25044_v15 = vadd.f32 %v6056_v7, %v24864_v52  ;;  %v5182_v61 = vmul.f32 %v24603_v3, %v3390_v32  ;;  %v3138_v48 = vmul.f32 0.2, %v2646_v5  ;;  %v5179_v59 = vmul.f32 %v28900_v47, %v3387_v44  ;;  %v25069_v7 = vpop.permute.xlu1 %4736  ;;  %v25079_v11 = vpop.permute.xlu0 %4731 }
 0x2d2   :  { %v19344_v14 = vpop.f32.mrf.mxu1  ;;  %19463 = vmatmul.mubr.msk.bf16.gmra.mxu1 %vm5415_vm1, %v5348_v42  ;;  %v25059_v52 = vpop.f32.mrf.mxu0  ;;  %v3392_v32 = vmax.f32 %v2638_v9, %v3136_v57  ;;  %v2662_v47 = vadd.f32 %v25034_v1, %v24966_v62  ;;  %v2651_v9 = vadd.f32 %v25034_v1, %v24895_v0 }
 0x2d3   :  { %v25056_v30 = vadd.f32 %v19344_v14, %v24876_v22  ;;  %19466 = vmatprep.mubr.msk.bf16.mxu1 %vm5415_vm1, %v5349_v2  ;;  %v3135_v22 = vmul.f32 0.2, %v2635_v55  ;;  %v5181_v2 = vmul.f32 %v24618_v23, %v3389_v39  ;;  %v3137_v14 = vmul.f32 0.2, %v2643_v54 }
 0x2d4   :  { %v6069_v60 = vpop.f32.mrf.mxu1  ;;  %v25066_v36 = vpop.f32.mrf.mxu0  ;;  %v5350_v3 = vpack.c.bf16 %v5180_v50, %v5179_v59  ;;  %v3394_v44 = vmax.f32 %v2646_v5, %v3138_v48  ;;  %v2659_v5 = vadd.f32 %v25034_v1, %v24946_v26  ;;  %v5184_v62 = vmul.f32 %v24641_v21, %v3392_v32 }
 0x2d5   :  { %v25064_v24 = vadd.f32 %v6069_v60, %v24886_v43  ;;  %v2654_v43 = vadd.f32 %v25034_v1, %v24919_v56  ;;  %v3393_v56 = vmax.f32 %v2643_v54, %v3137_v14  ;;  %v25100_v48 = vpop.permute.xlu1 %4746  ;;  %v3142_v59 = vmul.f32 0.2, %v2662_v47 }
 0x2d6   :  { %v19345_v42 = vpop.f32.mrf.mxu1  ;;  %v25075_v18 = vpop.f32.mrf.mxu0  ;;  %28901 = vst [vmem:[#allocation299_spill] sm:$0xff] %v25100_v48  ;;  %v5186_v0 = vmul.f32 %v24682_v13, %v3394_v44  ;;  %v3141_v32 = vmul.f32 0.2, %v2659_v5 }
 0x2d7   :  { %v25073_v17 = vadd.f32 %v19345_v42, %v24893_v12  ;;  %v5351_v12 = vpack.c.bf16 %v5182_v61, %v5181_v2  ;;  %v3391_v42 = vmax.f32 %v2635_v55, %v3135_v22  ;;  %v3140_v55 = vmul.f32 0.2, %v2654_v43 }
 0x2d8   :  { %v6072_v60 = vpop.f32.mrf.mxu1  ;;  %v25086_v39 = vpop.f32.mrf.mxu0  ;;  %v3139_v2 = vmul.f32 0.2, %v2651_v9  ;;  %v3398_v48 = vmax.f32 %v2662_v47, %v3142_v59  ;;  %v2675_v47 = vadd.f32 %v25034_v1, %v24992_v49 }
 0x2d9   :  { %v25084_v23 = vadd.f32 %v6072_v60, %v24904_v58  ;;  %v28904_v60 = vld [vmem:[#allocation282_spill] sm:$0xff]  ;;  %v3396_v44 = vmax.f32 %v2654_v43, %v3140_v55  ;;  %v25129_v43 = vpop.permute.xlu1 %4756 }
 0x2da   :  { %v19348_v50 = vpop.f32.mrf.mxu1  ;;  %19467 = vmatmul.mubr.msk.bf16.gmra.mxu1 %vm5415_vm1, %v5350_v3  ;;  %v25097_v58 = vpop.f32.mrf.mxu0  ;;  %v5185_v21 = vmul.f32 %v28904_v60, %v3393_v56  ;;  %28905 = vst [vmem:[#allocation309_spill] sm:$0xff] %v25129_v43 }
 0x2db   :  { %v25094_v57 = vadd.f32 %v19348_v50, %v24916_v33  ;;  %19470 = vmatprep.mubr.msk.bf16.mxu1 %vm5415_vm1, %v5351_v12  ;;  %v28902_v33 = vld [vmem:[#allocation279_spill] sm:$0xff]  ;;  %v25109_v3 = vpop.permute.xlu0 %4741 }
 0x2dc   :  { %v6085_v61 = vpop.f32.mrf.mxu1  ;;  %v25106_v26 = vpop.f32.mrf.mxu0  ;;  %v5183_v22 = vmul.f32 %v28902_v33, %v3391_v42  ;;  %28903 = vst [vmem:[#allocation307_spill] sm:$0xff] %v25109_v3  ;;  %v2678_v42 = vadd.f32 %v25034_v1, %v25021_v19  ;;  %v5353_v60 = vpack.c.bf16 %v5186_v0, %v5185_v21  ;;  %v3145_v3 = vmul.f32 0.2, %v2675_v47 }
 0x2dd   :  { %v25104_v54 = vadd.f32 %v6085_v61, %v24924_v28  ;;  %v2670_v28 = vadd.f32 %v25034_v1, %v24957_v63  ;;  %v3397_v63 = vmax.f32 %v2659_v5, %v3141_v32 }
 0x2de   :  { %v19349_v14 = vpop.f32.mrf.mxu1  ;;  %v25115_v50 = vpop.f32.mrf.mxu0  ;;  %v5352_v13 = vpack.c.bf16 %v5184_v62, %v5183_v22  ;;  %v28908_v22 = vld [vmem:[#allocation283_spill] sm:$0xff]  ;;  %v3146_v21 = vmul.f32 0.2, %v2678_v42 }
 0x2df   :  { %v25113_v12 = vadd.f32 %v19349_v14, %v24933_v16  ;;  %v3395_v16 = vmax.f32 %v2651_v9, %v3139_v2  ;;  %v2667_v14 = vadd.f32 %v25034_v1, %v24935_v51  ;;  %v28906_v9 = vld [vmem:[#allocation280_spill] sm:$0xff]  ;;  %v3144_v0 = vmul.f32 0.2, %v2670_v28  ;;  %v25140_v59 = vpop.permute.xlu0 %4751 }
 0x2e0   :  { %v6088_v61 = vpop.f32.mrf.mxu1  ;;  %v25124_v56 = vpop.f32.mrf.mxu0  ;;  %v5188_v55 = vmul.f32 %v28906_v9, %v3396_v44  ;;  %28907 = vst [vmem:[#allocation308_spill] sm:$0xff] %v25140_v59  ;;  %v5190_v2 = vmul.f32 %v28908_v22, %v3398_v48 }
 0x2e1   :  { %v25122_v33 = vadd.f32 %v6088_v61, %v24944_v35  ;;  %v3400_v48 = vmax.f32 %v2670_v28, %v3144_v0  ;;  %v25160_v22 = vpop.permute.xlu1 %4766 }
 0x2e2   :  { %v19352_v62 = vpop.f32.mrf.mxu1  ;;  %19471 = vmatmul.mubr.msk.bf16.gmra.mxu1 %vm5415_vm1, %v5352_v13  ;;  %v25137_v35 = vpop.f32.mrf.mxu0  ;;  %v3143_v13 = vmul.f32 0.2, %v2667_v14  ;;  %28911 = vst [vmem:[#allocation310_spill] sm:$0xff] %v25160_v22 }
 0x2e3   :  { %v25134_v19 = vadd.f32 %v19352_v62, %v24954_v40  ;;  %19478 = vmatprep.mubr.msk.bf16.mxu1 %vm5415_vm1, %v5353_v60  ;;  %v28909_v40 = vld [vmem:[#allocation281_spill] sm:$0xff]  ;;  %v28910_v60 = vld [vmem:[#allocation286_spill] sm:$0xff] }
 0x2e4   :  { %v6101_v51 = vpop.f32.mrf.mxu1  ;;  %v25146_v49 = vpop.f32.mrf.mxu0  ;;  %v5187_v32 = vmul.f32 %v28909_v40, %v3395_v16  ;;  %v5189_v62 = vmul.f32 %v28910_v60, %v3397_v63  ;;  %v20074_v16 = vld [vmem:[%s28142_s3 + $0xc0] sm:$0xff]   ;;  %v3402_v40 = vmax.f32 %v2678_v42, %v3146_v21  ;;  %v2694_v63 = vadd.f32 %v25034_v1, %v25066_v36 }
 0x2e5   :  { %v25144_v5 = vadd.f32 %v6101_v51, %v24964_v31  ;;  %v2686_v31 = vadd.f32 %v25034_v1, %v25006_v53  ;;  %v2683_v53 = vadd.f32 %v25034_v1, %v24975_v27  ;;  %v3401_v60 = vmax.f32 %v2675_v47, %v3145_v3  ;;  %v25187_v3 = vld [vmem:[%s28142_s3 + $0xd8] sm:$0xff]  }
 0x2e6   :  { %v19353_v61 = vpop.f32.mrf.mxu1  ;;  %v25153_v9 = vpop.f32.mrf.mxu0  ;;  %v5354_v59 = vpack.c.bf16 %v5188_v55, %v5187_v32  ;;  %v5355_v28 = vpack.c.bf16 %v5190_v2, %v5189_v62  ;;  %v3399_v55 = vmax.f32 %v2667_v14, %v3143_v13  ;;  %v2691_v42 = vadd.f32 %v25034_v1, %v25046_v38  ;;  %v28913_v14 = vld [vmem:[#allocation284_spill] sm:$0xff]  ;;  %v28914_v38 = vld [vmem:[#allocation287_spill] sm:$0xff] }
 0x2e7   :  { %v25151_v44 = vadd.f32 %v19353_v61, %v24973_v25  ;;  %v25172_v32 = vpop.permute.xlu0 %4761  ;;  %v5192_v27 = vmul.f32 %v28913_v14, %v3400_v48  ;;  %v3148_v2 = vmul.f32 0.2, %v2686_v31  ;;  %v5194_v47 = vmul.f32 %v28914_v38, %v3402_v40 }
 0x2e8   :  { %v6104_v51 = vpop.f32.mrf.mxu1  ;;  %v25167_v61 = vpop.f32.mrf.mxu0  ;;  %28912 = vst [vmem:[#allocation301_spill] sm:$0xff] %v25172_v32  ;;  %v3149_v32 = vmul.f32 0.2, %v2691_v42 }
 0x2e9   :  { %v25165_v25 = vadd.f32 %v6104_v51, %v24990_v6  ;;  %v3147_v51 = vmul.f32 0.2, %v2683_v53 }
 0x2ea   :  { %v19360_v0 = vpop.f32.mrf.mxu1  ;;  %19479 = vmatmul.mubr.msk.bf16.vlgmr.msra.gmra.mxu1 %vm5415_vm1, %v5354_v59  ;;  %v25181_v6 = vpop.f32.mrf.mxu0 }
 0x2eb   :  { %v25177_v36 = vadd.f32 %v19360_v0, %v25002_v34  ;;  %19482 = vmatprep.mubr.msk.bf16.mxu1 %vm5415_vm1, %v5355_v28  ;;  %19495 = vmatpush3.bf16.msra.mxu1 %v25013_v45  ;;  %v3150_v34 = vmul.f32 0.2, %v2694_v63  ;;  %v28915_v45 = vld [vmem:[#allocation285_spill] sm:$0xff]  ;;  %v25196_v28 = vpop.permute.xlu1 %4776  ;;  %v28917_v0 = vld [vmem:[#allocation288_spill] sm:$0xff] }
 0x2ec   :  { %v6207_v21 = vpop.f32.mrf.mxu1  ;;  %19496 = vmatprep.subr.bf16.mxu1 %v20074_v16  ;;  %v25193_v13 = vpop.f32.mrf.mxu0  ;;  %v5191_v62 = vmul.f32 %v28915_v45, %v3399_v55  ;;  %28916 = vst [vmem:[#allocation302_spill] sm:$0xff] %v25196_v28  ;;  %v5193_v14 = vmul.f32 %v28917_v0, %v3401_v60  ;;  %v2710_v60 = vadd.f32 %v25034_v1, %v25106_v26  ;;  %v28919_v26 = vld [vmem:[#allocation290_spill] sm:$0xff] }
 0x2ed   :  { %v25191_v59 = vadd.f32 %v6207_v21, %v25019_v10  ;;  %v3404_v10 = vmax.f32 %v2686_v31, %v3148_v2  ;;  %v2702_v21 = vadd.f32 %v25034_v1, %v25059_v52  ;;  %v25207_v55 = vpop.permute.xlu0 %4771  ;;  %v3406_v45 = vmax.f32 %v2694_v63, %v3150_v34 }
 0x2ee   :  { %v19361_v48 = vpop.f32.mrf.mxu1  ;;  %v25202_v43 = vpop.f32.mrf.mxu0  ;;  %v5356_v40 = vpack.c.bf16 %v5192_v27, %v5191_v62  ;;  %28918 = vst [vmem:[#allocation300_spill] sm:$0xff] %v25207_v55  ;;  %v3403_v27 = vmax.f32 %v2683_v53, %v3147_v51  ;;  %v2699_v31 = vadd.f32 %v25034_v1, %v25028_v37  ;;  %v3405_v2 = vmax.f32 %v2691_v42, %v3149_v32  ;;  %v28921_v37 = vld [vmem:[#allocation291_spill] sm:$0xff] }
 0x2ef   :  { %v25200_v22 = vadd.f32 %v19361_v48, %v25026_v8  ;;  %19497 = vmatpush3.bf16.msra.mxu1 %v20074_v16  ;;  %v5357_v16 = vpack.c.bf16 %v5194_v47, %v5193_v14  ;;  %v2707_v63 = vadd.f32 %v25034_v1, %v25086_v39  ;;  %v5196_v47 = vmul.f32 %v28919_v26, %v3404_v10  ;;  %v25228_v51 = vpop.permute.xlu1 %4786 }
 0x2f0   :  { %v6210_v38 = vpop.f32.mrf.mxu1  ;;  %19514 = vmatprep.subr.bf16.mxu1 %v25187_v3  ;;  %v25214_v48 = vpop.f32.mrf.mxu0  ;;  %v3152_v53 = vmul.f32 0.2, %v2702_v21  ;;  %28920 = vst [vmem:[#allocation303_spill] sm:$0xff] %v25228_v51  ;;  %v5198_v0 = vmul.f32 %v28921_v37, %v3406_v45  ;;  %v3154_v14 = vmul.f32 0.2, %v2710_v60 }
 0x2f1   :  { %v25212_v8 = vadd.f32 %v6210_v38, %v25044_v15  ;;  %v3153_v26 = vmul.f32 0.2, %v2707_v63 }
 0x2f2   :  { %v19364_v52 = vpop.f32.mrf.mxu1  ;;  %19483 = vmatmul.mubr.msk.bf16.gmra.mxu1 %vm5415_vm1, %v5356_v40  ;;  %v25225_v15 = vpop.f32.mrf.mxu0  ;;  %v3151_v40 = vmul.f32 0.2, %v2699_v31  ;;  %v3408_v37 = vmax.f32 %v2702_v21, %v3152_v53  ;;  %v3410_v28 = vmax.f32 %v2710_v60, %v3154_v14  ;;  %v2723_v60 = vadd.f32 %v25034_v1, %v25124_v56 }
 0x2f3   :  { %v25222_v34 = vadd.f32 %v19364_v52, %v25056_v30  ;;  %19486 = vmatprep.mubr.msk.bf16.mxu1 %vm5415_vm1, %v5357_v16  ;;  %v28922_v30 = vld [vmem:[#allocation289_spill] sm:$0xff]  ;;  %v25237_v16 = vpop.permute.xlu0 %4781  ;;  %v28924_v52 = vld [vmem:[#allocation295_spill] sm:$0xff]  ;;  %v25257_v21 = vpop.permute.xlu1 %4796 }
 0x2f4   :  { %v6223_v62 = vpop.f32.mrf.mxu1  ;;  %v25234_v39 = vpop.f32.mrf.mxu0  ;;  %v5195_v42 = vmul.f32 %v28922_v30, %v3403_v27  ;;  %28923 = vst [vmem:[#allocation305_spill] sm:$0xff] %v25237_v16  ;;  %v5197_v10 = vmul.f32 %v28924_v52, %v3405_v2  ;;  %v2726_v27 = vadd.f32 %v25034_v1, %v25146_v49 }
 0x2f5   :  { %v25232_v32 = vadd.f32 %v6223_v62, %v25064_v24  ;;  %v2718_v24 = vadd.f32 %v25034_v1, %v25097_v58  ;;  %v3409_v58 = vmax.f32 %v2707_v63, %v3153_v26 }
 0x2f6   :  { %v19365_v38 = vpop.f32.mrf.mxu1  ;;  %v25243_v51 = vpop.f32.mrf.mxu0  ;;  %v5358_v45 = vpack.c.bf16 %v5196_v47, %v5195_v42  ;;  %v5359_v52 = vpack.c.bf16 %v5198_v0, %v5197_v10  ;;  %v5202_v42 = vmul.f32 %v24929_v29, %v3410_v28 }
 0x2f7   :  { %v25241_v55 = vadd.f32 %v19365_v38, %v25073_v17  ;;  %v3407_v17 = vmax.f32 %v2699_v31, %v3151_v40  ;;  %v2715_v38 = vadd.f32 %v25034_v1, %v25075_v18  ;;  %v28925_v31 = vld [vmem:[#allocation293_spill] sm:$0xff]  ;;  %v3156_v0 = vmul.f32 0.2, %v2718_v24  ;;  %v25268_v14 = vpop.permute.xlu0 %4791 }
 0x2f8   :  { %v6226_v62 = vpop.f32.mrf.mxu1  ;;  %v25252_v2 = vpop.f32.mrf.mxu0  ;;  %v5200_v53 = vmul.f32 %v28925_v31, %v3408_v37  ;;  %28926 = vst [vmem:[#allocation306_spill] sm:$0xff] %v25268_v14  ;;  %v3158_v40 = vmul.f32 0.2, %v2726_v27 }
 0x2f9   :  { %v25250_v30 = vadd.f32 %v6226_v62, %v25084_v23  ;;  %v3155_v26 = vmul.f32 0.2, %v2715_v38  ;;  %v28928_v62 = vld [vmem:[#allocation296_spill] sm:$0xff]  ;;  %v3412_v29 = vmax.f32 %v2718_v24, %v3156_v0  ;;  %v2731_v24 = vadd.f32 %v25034_v1, %v25115_v50 }
 0x2fa   :  { %v19368_v47 = vpop.f32.mrf.mxu1  ;;  %19487 = vmatmul.mubr.msk.bf16.gmra.mxu1 %vm5415_vm1, %v5358_v45  ;;  %v25265_v23 = vpop.f32.mrf.mxu0 }
 0x2fb   :  { %v25262_v49 = vadd.f32 %v19368_v47, %v25094_v57  ;;  %19490 = vmatprep.mubr.msk.bf16.mxu1 %vm5415_vm1, %v5359_v52  ;;  %v28927_v57 = vld [vmem:[#allocation294_spill] sm:$0xff]  ;;  %v5201_v52 = vmul.f32 %v28928_v62, %v3409_v58  ;;  %v3157_v47 = vmul.f32 0.2, %v2723_v60 }
 0x2fc   :  { %v6239_v18 = vpop.f32.mrf.mxu1  ;;  %v25274_v56 = vpop.f32.mrf.mxu0  ;;  %v5199_v10 = vmul.f32 %v28927_v57, %v3407_v17  ;;  %v3414_v17 = vmax.f32 %v2726_v27, %v3158_v40  ;;  %v2742_v57 = vadd.f32 %v25034_v1, %v25193_v13  ;;  %v2739_v27 = vadd.f32 %v25034_v1, %v25167_v61 }
 0x2fd   :  { %v25272_v63 = vadd.f32 %v6239_v18, %v25104_v54  ;;  %v2734_v54 = vadd.f32 %v25034_v1, %v25137_v35  ;;  %v25285_v18 = vpop.permute.xlu1 %4806  ;;  %v5361_v16 = vpack.c.bf16 %v5202_v42, %v5201_v52  ;;  %v25297_v35 = vpop.permute.xlu0 %4801  ;;  %v3413_v0 = vmax.f32 %v2723_v60, %v3157_v47 }
 0x2fe   :  { %v19369_v45 = vpop.f32.mrf.mxu1  ;;  %v25281_v31 = vpop.f32.mrf.mxu0  ;;  %v5360_v14 = vpack.c.bf16 %v5200_v53, %v5199_v10  ;;  %v5206_v10 = vmul.f32 %v24997_v41, %v3414_v17  ;;  %v3161_v47 = vmul.f32 0.2, %v2739_v27 }
 0x2ff   :  { %v25279_v37 = vadd.f32 %v19369_v45, %v25113_v12  ;;  %v3411_v45 = vmax.f32 %v2715_v38, %v3155_v26  ;;  %v28929_v38 = vld [vmem:[#allocation298_spill] sm:$0xff]  ;;  %v3160_v40 = vmul.f32 0.2, %v2734_v54 }
 0x300   :  { %v6242_v28 = vpop.f32.mrf.mxu1  ;;  %v25292_v12 = vpop.f32.mrf.mxu0  ;;  %v5204_v42 = vmul.f32 %v28929_v38, %v3412_v29 }
 0x301   :  { %v25290_v58 = vadd.f32 %v6242_v28, %v25122_v33  ;;  %v5203_v61 = vmul.f32 %v24969_v46, %v3411_v45  ;;  %v25315_v52 = vpop.permute.xlu1 %4816  ;;  %v3416_v17 = vmax.f32 %v2734_v54, %v3160_v40  ;;  %v20076_v46 = vld [vmem:[%s28142_s3 + $0xd0] sm:$0xff]   ;;  %v25328_v45 = vpop.permute.xlu0 %4811 }
 0x302   :  { %v19372_v53 = vpop.f32.mrf.mxu1  ;;  %19491 = vmatmul.mubr.msk.bf16.gmra.mxu1 %vm5415_vm1, %v5360_v14  ;;  %v25305_v33 = vpop.f32.mrf.mxu0  ;;  %v3162_v14 = vmul.f32 0.2, %v2742_v57 }
 0x303   :  { %v25302_v13 = vadd.f32 %v19372_v53, %v25134_v19  ;;  %19498 = vmatprep.mubr.msk.bf16.mxu1 %vm5415_vm1, %v5361_v16  ;;  %v3159_v19 = vmul.f32 0.2, %v2731_v24  ;;  %v5205_v16 = vmul.f32 %v25015_v20, %v3413_v0  ;;  %v5362_v41 = vpack.c.bf16 %v5204_v42, %v5203_v61 }
 0x304   :  { %v6255_v50 = vpop.f32.mrf.mxu1  ;;  %v25312_v60 = vpop.f32.mrf.mxu0  ;;  %v3418_v20 = vmax.f32 %v2742_v57, %v3162_v14 }
 0x305   :  { %v25310_v26 = vadd.f32 %v6255_v50, %v25144_v5  ;;  %v2750_v5 = vadd.f32 %v25034_v1, %v25181_v6  ;;  %v5363_v38 = vpack.c.bf16 %v5206_v10, %v5205_v16  ;;  %v3415_v54 = vmax.f32 %v2731_v24, %v3159_v19  ;;  %v28930_v19 = vld [vmem:[#allocation297_spill] sm:$0xff] }
 0x306   :  { %v19373_v62 = vpop.f32.mrf.mxu1  ;;  %v25321_v28 = vpop.f32.mrf.mxu0  ;;  %v2747_v6 = vadd.f32 %v25034_v1, %v25153_v9  ;;  %v3417_v50 = vmax.f32 %v2739_v27, %v3161_v47  ;;  %v2755_v10 = vadd.f32 %v25034_v1, %v25214_v48  ;;  %v25353_v27 = vld [vmem:[%s28142_s3 + $0xe8] sm:$0xff]  }
 0x307   :  { %v25319_v29 = vadd.f32 %v19373_v62, %v25151_v44  ;;  %v2758_v44 = vadd.f32 %v25034_v1, %v25234_v39  ;;  %v5208_v39 = vmul.f32 %v25039_v4, %v3416_v17  ;;  %v3164_v24 = vmul.f32 0.2, %v2750_v5  ;;  %v25355_v48 = vpop.permute.xlu1 %4826  ;;  %v25364_v47 = vpop.permute.xlu0 %4821 }
 0x308   :  { %v6258_v53 = vpop.f32.mrf.mxu1  ;;  %v25335_v42 = vpop.f32.mrf.mxu0  ;;  %v5207_v4 = vmul.f32 %v28930_v19, %v3415_v54  ;;  %v3163_v62 = vmul.f32 0.2, %v2747_v6  ;;  %28931 = vst [vmem:[#allocation304_spill] sm:$0xff] %v25364_v47  ;;  %v3165_v17 = vmul.f32 0.2, %v2755_v10 }
 0x309   :  { %v25333_v0 = vadd.f32 %v6258_v53, %v25165_v25  ;;  %v3166_v14 = vmul.f32 0.2, %v2758_v44 }
 0x30a   :  { %v19380_v40 = vpop.f32.mrf.mxu1  ;;  %19499 = vmatmul.mubr.msk.bf16.vlgmr.msra.gmra.mxu1 %vm5415_vm1, %v5362_v41  ;;  %v25347_v25 = vpop.f32.mrf.mxu0  ;;  %v5209_v41 = vmul.f32 %v25079_v11, %v3417_v50  ;;  %v2774_v11 = vadd.f32 %v25034_v1, %v25274_v56  ;;  %v3419_v19 = vmax.f32 %v2747_v6, %v3163_v62  ;;  %v28932_v6 = vld [vmem:[#allocation299_spill] sm:$0xff] }
 0x30b   :  { %v25343_v57 = vadd.f32 %v19380_v40, %v25177_v36  ;;  %19502 = vmatprep.mubr.msk.bf16.mxu1 %vm5415_vm1, %v5363_v38  ;;  %19515 = vmatpush3.bf16.msra.mxu1 %v25187_v3  ;;  %v5210_v36 = vmul.f32 %v25069_v7, %v3418_v20  ;;  %v5364_v7 = vpack.c.bf16 %v5208_v39, %v5207_v4  ;;  %v28934_v4 = vld [vmem:[#allocation309_spill] sm:$0xff] }
 0x30c   :  { %v6361_v9 = vpop.f32.mrf.mxu1  ;;  %19516 = vmatprep.subr.bf16.mxu1 %v20076_v46  ;;  %v25361_v3 = vpop.f32.mrf.mxu0  ;;  %v2766_v20 = vadd.f32 %v25034_v1, %v25225_v15  ;;  %v3421_v39 = vmax.f32 %v2755_v10, %v3165_v17 }
 0x30d   :  { %v25359_v61 = vadd.f32 %v6361_v9, %v25191_v59  ;;  %v3420_v59 = vmax.f32 %v2750_v5, %v3164_v24  ;;  %v5365_v54 = vpack.c.bf16 %v5210_v36, %v5209_v41  ;;  %v3422_v9 = vmax.f32 %v2758_v44, %v3166_v14  ;;  %v25385_v15 = vpop.permute.xlu1 %4836  ;;  %v25396_v14 = vpop.permute.xlu0 %4831 }
 0x30e   :  { %v19381_v16 = vpop.f32.mrf.mxu1  ;;  %v25370_v38 = vpop.f32.mrf.mxu0  ;;  %v2763_v5 = vadd.f32 %v25034_v1, %v25202_v43  ;;  %v2771_v44 = vadd.f32 %v25034_v1, %v25252_v2  ;;  %v3168_v36 = vmul.f32 0.2, %v2766_v20  ;;  %28933 = vst [vmem:[#allocation292_spill] sm:$0xff] %v25396_v14 }
 0x30f   :  { %v25368_v53 = vadd.f32 %v19381_v16, %v25200_v22  ;;  %19517 = vmatpush3.bf16.msra.mxu1 %v20076_v46  ;;  %v5212_v24 = vmul.f32 %v28932_v6, %v3420_v59  ;;  %v5214_v62 = vmul.f32 %v28934_v4, %v3422_v9  ;;  %v3170_v16 = vmul.f32 0.2, %v2774_v11 }
 0x310   :  { %v6364_v40 = vpop.f32.mrf.mxu1  ;;  %19534 = vmatprep.subr.bf16.mxu1 %v25353_v27  ;;  %v25380_v22 = vpop.f32.mrf.mxu0  ;;  %v3167_v17 = vmul.f32 0.2, %v2763_v5  ;;  %v3424_v9 = vmax.f32 %v2766_v20, %v3168_v36  ;;  %v2779_v20 = vadd.f32 %v25034_v1, %v25243_v51 }
 0x311   :  { %v25378_v50 = vadd.f32 %v6364_v40, %v25212_v8  ;;  %v28936_v40 = vld [vmem:[#allocation308_spill] sm:$0xff]  ;;  %v25413_v4 = vpop.permute.xlu1 %4846 }
 0x312   :  { %v19384_v46 = vpop.f32.mrf.mxu1  ;;  %19503 = vmatmul.mubr.msk.bf16.gmra.mxu1 %vm5415_vm1, %v5364_v7  ;;  %v25393_v8 = vpop.f32.mrf.mxu0 }
 0x313   :  { %v25390_v56 = vadd.f32 %v19384_v46, %v25222_v34  ;;  %19506 = vmatprep.mubr.msk.bf16.mxu1 %vm5415_vm1, %v5365_v54  ;;  %v28935_v34 = vld [vmem:[#allocation307_spill] sm:$0xff]  ;;  %v5213_v54 = vmul.f32 %v28936_v40, %v3421_v39  ;;  %v3169_v46 = vmul.f32 0.2, %v2771_v44 }
 0x314   :  { %v6377_v43 = vpop.f32.mrf.mxu1  ;;  %v25402_v2 = vpop.f32.mrf.mxu0  ;;  %v5211_v41 = vmul.f32 %v28935_v34, %v3419_v19  ;;  %v3426_v19 = vmax.f32 %v2774_v11, %v3170_v16  ;;  %v2790_v34 = vadd.f32 %v25034_v1, %v25312_v60  ;;  %v2787_v11 = vadd.f32 %v25034_v1, %v25292_v12  ;;  %v28941_v12 = vld [vmem:[#allocation301_spill] sm:$0xff] }
 0x315   :  { %v25400_v10 = vadd.f32 %v6377_v43, %v25232_v32  ;;  %v2782_v32 = vadd.f32 %v25034_v1, %v25265_v23  ;;  %v5367_v47 = vpack.c.bf16 %v5214_v62, %v5213_v54  ;;  %v25425_v23 = vpop.permute.xlu0 %4841  ;;  %v3425_v36 = vmax.f32 %v2771_v44, %v3169_v46 }
 0x316   :  { %v19385_v7 = vpop.f32.mrf.mxu1  ;;  %v25409_v6 = vpop.f32.mrf.mxu0  ;;  %v5366_v14 = vpack.c.bf16 %v5212_v24, %v5211_v41  ;;  %28937 = vst [vmem:[#allocation266_spill] sm:$0xff] %v25425_v23  ;;  %v28939_v41 = vld [vmem:[#allocation302_spill] sm:$0xff]  ;;  %v3173_v23 = vmul.f32 0.2, %v2787_v11 }
 0x317   :  { %v25407_v59 = vadd.f32 %v19385_v7, %v25241_v55  ;;  %v3423_v7 = vmax.f32 %v2763_v5, %v3167_v17  ;;  %v28938_v5 = vld [vmem:[#allocation310_spill] sm:$0xff]  ;;  %v3172_v16 = vmul.f32 0.2, %v2782_v32  ;;  %v5218_v17 = vmul.f32 %v28939_v41, %v3426_v19 }
 0x318   :  { %v6380_v43 = vpop.f32.mrf.mxu1  ;;  %v25420_v55 = vpop.f32.mrf.mxu0  ;;  %v5216_v62 = vmul.f32 %v28938_v5, %v3424_v9 }
 0x319   :  { %v25418_v39 = vadd.f32 %v6380_v43, %v25250_v30  ;;  %v5215_v54 = vmul.f32 %v28941_v12, %v3423_v7  ;;  %v25443_v43 = vpop.permute.xlu1 %4856  ;;  %v3428_v41 = vmax.f32 %v2782_v32, %v3172_v16  ;;  %v2795_v32 = vadd.f32 %v25034_v1, %v25281_v31 }
 0x31a   :  { %v19388_v24 = vpop.f32.mrf.mxu1  ;;  %19507 = vmatmul.mubr.msk.bf16.gmra.mxu1 %vm5415_vm1, %v5366_v14  ;;  %v25433_v30 = vpop.f32.mrf.mxu0  ;;  %v3174_v14 = vmul.f32 0.2, %v2790_v34  ;;  %28942 = vst [vmem:[#allocation264_spill] sm:$0xff] %v25443_v43  ;;  %v2806_v43 = vadd.f32 %v25034_v1, %v25361_v3  ;;  %v2803_v16 = vadd.f32 %v25034_v1, %v25335_v42  ;;  %v28944_v3 = vld [vmem:[#allocation303_spill] sm:$0xff] }
 0x31b   :  { %v25430_v60 = vadd.f32 %v19388_v24, %v25262_v49  ;;  %19510 = vmatprep.mubr.msk.bf16.mxu1 %vm5415_vm1, %v5367_v47  ;;  %v3171_v49 = vmul.f32 0.2, %v2779_v20  ;;  %v28943_v47 = vld [vmem:[#allocation300_spill] sm:$0xff]  ;;  %v5368_v19 = vpack.c.bf16 %v5216_v62, %v5215_v54 }
 0x31c   :  { %v6393_v51 = vpop.f32.mrf.mxu1  ;;  %v25440_v44 = vpop.f32.mrf.mxu0  ;;  %v5217_v24 = vmul.f32 %v28943_v47, %v3425_v36  ;;  %v3430_v12 = vmax.f32 %v2790_v34, %v3174_v14  ;;  %v3175_v47 = vmul.f32 0.2, %v2795_v32 }
 0x31d   :  { %v25438_v40 = vadd.f32 %v6393_v51, %v25272_v63  ;;  %v2798_v63 = vadd.f32 %v25034_v1, %v25305_v33  ;;  %v3429_v33 = vmax.f32 %v2787_v11, %v3173_v23  ;;  %v25474_v54 = vpop.permute.xlu1 %4866 }
 0x31e   :  { %v19389_v46 = vpop.f32.mrf.mxu1  ;;  %v25449_v5 = vpop.f32.mrf.mxu0  ;;  %v5369_v7 = vpack.c.bf16 %v5218_v17, %v5217_v24  ;;  %v5220_v17 = vmul.f32 %v28944_v3, %v3428_v41  ;;  %v5222_v31 = vmul.f32 %v25257_v21, %v3430_v12 }
 0x31f   :  { %28940 = vst [vmem:[#allocation265_spill] sm:$0xff] %v25438_v40  ;;  %v25447_v9 = vadd.f32 %v19389_v46, %v25279_v37  ;;  %v25453_v40 = vpop.permute.xlu0 %4851  ;;  %v3427_v46 = vmax.f32 %v2779_v20, %v3171_v49  ;;  %v3176_v20 = vmul.f32 0.2, %v2798_v63  ;;  %v3178_v49 = vmul.f32 0.2, %v2806_v43 }
 0x320   :  { %v6396_v51 = vpop.f32.mrf.mxu1  ;;  %v25460_v37 = vpop.f32.mrf.mxu0 }
 0x321   :  { %v25458_v36 = vadd.f32 %v6396_v51, %v25290_v58  ;;  %v28947_v51 = vld [vmem:[#allocation306_spill] sm:$0xff]  ;;  %v3432_v12 = vmax.f32 %v2798_v63, %v3176_v20  ;;  %v2811_v63 = vadd.f32 %v25034_v1, %v25321_v28  ;;  %v25506_v20 = vpop.permute.xlu1 %4876 }
 0x322   :  { %v19392_v62 = vpop.f32.mrf.mxu1  ;;  %19511 = vmatmul.mubr.msk.bf16.gmra.mxu1 %vm5415_vm1, %v5368_v19  ;;  %v25471_v58 = vpop.f32.mrf.mxu0  ;;  %v5221_v41 = vmul.f32 %v28947_v51, %v3429_v33  ;;  %v2822_v33 = vadd.f32 %v25034_v1, %v25402_v2 }
 0x323   :  { %v25468_v34 = vadd.f32 %v19392_v62, %v25302_v13  ;;  %19518 = vmatprep.mubr.msk.bf16.mxu1 %vm5415_vm1, %v5369_v7  ;;  %v28945_v13 = vld [vmem:[#allocation305_spill] sm:$0xff]  ;;  %v25483_v19 = vpop.permute.xlu0 %4861  ;;  %v3177_v7 = vmul.f32 0.2, %v2803_v16  ;;  %v5224_v28 = vmul.f32 %v25285_v18, %v3432_v12  ;;  %v3179_v51 = vmul.f32 0.2, %v2811_v63 }
 0x324   :  { %v6409_v14 = vpop.f32.mrf.mxu1  ;;  %v25480_v42 = vpop.f32.mrf.mxu0  ;;  %v5219_v11 = vmul.f32 %v28945_v13, %v3427_v46  ;;  %28946 = vst [vmem:[#allocation267_spill] sm:$0xff] %v25483_v19  ;;  %v20078_v46 = vld [vmem:[%s28142_s3 + $0xe0] sm:$0xff]   ;;  %v5371_v13 = vpack.c.bf16 %v5222_v31, %v5221_v41  ;;  %v3434_v19 = vmax.f32 %v2806_v43, %v3178_v49  ;;  %v2819_v43 = vadd.f32 %v25034_v1, %v25380_v22 }
 0x325   :  { %v25478_v23 = vadd.f32 %v6409_v14, %v25310_v26  ;;  %v2814_v26 = vadd.f32 %v25034_v1, %v25347_v25  ;;  %v3182_v49 = vmul.f32 0.2, %v2822_v33 }
 0x326   :  { %v19393_v24 = vpop.f32.mrf.mxu1  ;;  %v25489_v3 = vpop.f32.mrf.mxu0  ;;  %v5370_v21 = vpack.c.bf16 %v5220_v17, %v5219_v11  ;;  %v3431_v17 = vmax.f32 %v2795_v32, %v3175_v47  ;;  %v3433_v11 = vmax.f32 %v2803_v16, %v3177_v7  ;;  %v25521_v16 = vld [vmem:[%s28142_s3 + $0xf8] sm:$0xff]  }
 0x327   :  { %v25487_v62 = vadd.f32 %v19393_v24, %v25319_v29  ;;  %v3180_v32 = vmul.f32 0.2, %v2814_v26  ;;  %v25523_v22 = vpop.permute.xlu0 %4871 }
 0x328   :  { %v6412_v14 = vpop.f32.mrf.mxu1  ;;  %v25501_v24 = vpop.f32.mrf.mxu0  ;;  %v5223_v18 = vmul.f32 %v25297_v35, %v3431_v17  ;;  %v5225_v7 = vmul.f32 %v25328_v45, %v3433_v11  ;;  %v2838_v45 = vadd.f32 %v25034_v1, %v25440_v44 }
 0x329   :  { %v25499_v29 = vadd.f32 %v6412_v14, %v25333_v0  ;;  %v25541_v35 = vpop.permute.xlu1 %4886 }
 0x32a   :  { %v19400_v25 = vpop.f32.mrf.mxu1  ;;  %19519 = vmatmul.mubr.msk.bf16.vlgmr.msra.gmra.mxu1 %vm5415_vm1, %v5370_v21  ;;  %v25515_v0 = vpop.f32.mrf.mxu0  ;;  %v3181_v21 = vmul.f32 0.2, %v2819_v43 }
 0x32b   :  { %v25511_v2 = vadd.f32 %v19400_v25, %v25343_v57  ;;  %19522 = vmatprep.mubr.msk.bf16.mxu1 %vm5415_vm1, %v5371_v13  ;;  %19535 = vmatpush3.bf16.msra.mxu1 %v25353_v27  ;;  %v5226_v57 = vmul.f32 %v25315_v52, %v3434_v19  ;;  %v5372_v52 = vpack.c.bf16 %v5224_v28, %v5223_v18  ;;  %v25553_v28 = vpop.permute.xlu0 %4881 }
 0x32c   :  { %v6515_v31 = vpop.f32.mrf.mxu1  ;;  %19536 = vmatprep.subr.bf16.mxu1 %v20078_v46  ;;  %v25529_v27 = vpop.f32.mrf.mxu0  ;;  %v3436_v19 = vmax.f32 %v2814_v26, %v3180_v32  ;;  %v3438_v25 = vmax.f32 %v2822_v33, %v3182_v49  ;;  %v2827_v26 = vadd.f32 %v25034_v1, %v25370_v38  ;;  %v3437_v32 = vmax.f32 %v2819_v43, %v3181_v21  ;;  %v28949_v21 = vld [vmem:[#allocation292_spill] sm:$0xff] }
 0x32d   :  { %v25527_v47 = vadd.f32 %v6515_v31, %v25359_v61  ;;  %v2830_v61 = vadd.f32 %v25034_v1, %v25393_v8  ;;  %v5373_v17 = vpack.c.bf16 %v5226_v57, %v5225_v7  ;;  %v2835_v33 = vadd.f32 %v25034_v1, %v25420_v55  ;;  %v28948_v55 = vld [vmem:[#allocation304_spill] sm:$0xff]  ;;  %v25571_v7 = vpop.permute.xlu1 %4896 }
 0x32e   :  { %v19401_v41 = vpop.f32.mrf.mxu1  ;;  %v25536_v14 = vpop.f32.mrf.mxu0  ;;  %v5230_v57 = vmul.f32 %v25385_v15, %v3438_v25  ;;  %v3186_v49 = vmul.f32 0.2, %v2838_v45 }
 0x32f   :  { %v25534_v12 = vadd.f32 %v19401_v41, %v25368_v53  ;;  %19537 = vmatpush3.bf16.msra.mxu1 %v20078_v46  ;;  %v3435_v46 = vmax.f32 %v2811_v63, %v3179_v51  ;;  %v5228_v63 = vmul.f32 %v25355_v48, %v3436_v19  ;;  %v3184_v31 = vmul.f32 0.2, %v2830_v61 }
 0x330   :  { %v6518_v13 = vpop.f32.mrf.mxu1  ;;  %19554 = vmatprep.subr.bf16.mxu1 %v25521_v16  ;;  %v25548_v11 = vpop.f32.mrf.mxu0 }
 0x331   :  { %v25546_v53 = vadd.f32 %v6518_v13, %v25378_v50  ;;  %v5227_v51 = vmul.f32 %v28948_v55, %v3435_v46  ;;  %v3185_v13 = vmul.f32 0.2, %v2835_v33  ;;  %v2854_v55 = vadd.f32 %v25034_v1, %v25480_v42 }
 0x332   :  { %v19404_v8 = vpop.f32.mrf.mxu1  ;;  %19523 = vmatmul.mubr.msk.bf16.gmra.mxu1 %vm5415_vm1, %v5372_v52  ;;  %v25561_v50 = vpop.f32.mrf.mxu0  ;;  %v5229_v52 = vmul.f32 %v28949_v21, %v3437_v32 }
 0x333   :  { %v25558_v44 = vadd.f32 %v19404_v8, %v25390_v56  ;;  %19526 = vmatprep.mubr.msk.bf16.mxu1 %vm5415_vm1, %v5373_v17  ;;  %v3183_v56 = vmul.f32 0.2, %v2827_v26  ;;  %v5374_v15 = vpack.c.bf16 %v5228_v63, %v5227_v51  ;;  %v3440_v17 = vmax.f32 %v2830_v61, %v3184_v31  ;;  %v25581_v8 = vpop.permute.xlu0 %4891 }
 0x334   :  { %v6531_v38 = vpop.f32.mrf.mxu1  ;;  %v25568_v43 = vpop.f32.mrf.mxu0  ;;  %v5375_v46 = vpack.c.bf16 %v5230_v57, %v5229_v52  ;;  %v2843_v61 = vadd.f32 %v25034_v1, %v25409_v6  ;;  %v2851_v31 = vadd.f32 %v25034_v1, %v25460_v37  ;;  %v28951_v6 = vld [vmem:[#allocation264_spill] sm:$0xff] }
 0x335   :  { %v25566_v18 = vadd.f32 %v6531_v38, %v25400_v10  ;;  %v2846_v10 = vadd.f32 %v25034_v1, %v25433_v30  ;;  %v3442_v38 = vmax.f32 %v2838_v45, %v3186_v49  ;;  %v3441_v30 = vmax.f32 %v2835_v33, %v3185_v13  ;;  %v25602_v49 = vpop.permute.xlu1 %4906  ;;  %v28952_v33 = vld [vmem:[#allocation265_spill] sm:$0xff] }
 0x336   :  { %v19405_v41 = vpop.f32.mrf.mxu1  ;;  %v25577_v19 = vpop.f32.mrf.mxu0  ;;  %v5232_v42 = vmul.f32 %v25413_v4, %v3440_v17  ;;  %v3187_v13 = vmul.f32 0.2, %v2843_v61  ;;  %v3189_v17 = vmul.f32 0.2, %v2851_v31 }
 0x337   :  { %v25575_v48 = vadd.f32 %v19405_v41, %v25407_v59  ;;  %v3439_v41 = vmax.f32 %v2827_v26, %v3183_v56  ;;  %v3188_v26 = vmul.f32 0.2, %v2846_v10  ;;  %v5234_v51 = vmul.f32 %v28951_v6, %v3442_v38 }
 0x338   :  { %v6534_v25 = vpop.f32.mrf.mxu1  ;;  %v25588_v59 = vpop.f32.mrf.mxu0  ;;  %v3190_v56 = vmul.f32 0.2, %v2854_v55  ;;  %v5233_v4 = vmul.f32 %v25453_v40, %v3441_v30  ;;  %v25631_v30 = vld [vmem:[%s28149_s10] ss:$0 sm:$0xff] }
 0x339   :  { %v25586_v32 = vadd.f32 %v6534_v25, %v25418_v39  ;;  %v25611_v25 = vpop.permute.xlu0 %4901  ;;  %v3444_v6 = vmax.f32 %v2846_v10, %v3188_v26 }
 0x33a   :  { %v19408_v63 = vpop.f32.mrf.mxu1  ;;  %19527 = vmatmul.mubr.msk.bf16.gmra.mxu1 %vm5415_vm1, %v5374_v15  ;;  %v25599_v39 = vpop.f32.mrf.mxu0 }
 0x33b   :  { %v25596_v45 = vadd.f32 %v19408_v63, %v25430_v60  ;;  %19530 = vmatprep.mubr.msk.bf16.mxu1 %vm5415_vm1, %v5375_v46  ;;  %v28954_v60 = vld [vmem:[#allocation266_spill] sm:$0xff] }
 0x33c   :  { %v6547_v57 = vpop.f32.mrf.mxu1  ;;  %v25608_v37 = vpop.f32.mrf.mxu0  ;;  %v5231_v52 = vmul.f32 %v28954_v60, %v3439_v41  ;;  %v3446_v41 = vmax.f32 %v2854_v55, %v3190_v56  ;;  %v2870_v60 = vadd.f32 %v25034_v1, %v25529_v27 }
 0x33d   :  { %28950 = vst [vmem:[#allocation270_spill] sm:$0xff] %v25596_v45  ;;  %v25606_v21 = vadd.f32 %v6547_v57, %v28952_v33  ;;  %v2862_v57 = vadd.f32 %v25034_v1, %v25471_v58  ;;  %v2859_v58 = vadd.f32 %v25631_v30, %v25449_v5  ;;  %v25636_v55 = vpop.permute.xlu1 %4916  ;;  %v3445_v1 = vmax.f32 %v2851_v31, %v3189_v17  ;;  %v20082_v5 = vld [vmem:[%s28144_s5 + $0x30] sm:$0xff]   ;;  %v25650_v56 = vpop.permute.xlu0 %4911 }
 0x33e   :  { %v19409_v15 = vpop.f32.mrf.mxu1  ;;  %v25617_v63 = vpop.f32.mrf.mxu0  ;;  %v5376_v38 = vpack.c.bf16 %v5232_v42, %v5231_v52  ;;  %v5236_v42 = vmul.f32 %v25474_v54, %v3444_v6  ;;  %v5238_v31 = vmul.f32 %v25506_v20, %v3446_v41  ;;  %19656 = vmatprep.subr.bf16.mxu0 %v20082_v5  ;;  %v20081_v41 = vld [vmem:[%s28142_s3 + $0xf0] sm:$0xff]  }
 0x33f   :  { %28953 = vst [vmem:[#allocation269_spill] sm:$0xff] %v25606_v21  ;;  %v25615_v46 = vadd.f32 %v19409_v15, %v25447_v9  ;;  %v5377_v21 = vpack.c.bf16 %v5234_v51, %v5233_v4  ;;  %v3443_v9 = vmax.f32 %v2843_v61, %v3187_v13  ;;  %v3192_v26 = vmul.f32 0.2, %v2862_v57  ;;  %19657 = vmatpush3.bf16.msra.mxu0 %v20082_v5 }
 0x340   :  { %v6550_v33 = vpop.f32.mrf.mxu1  ;;  %v25626_v40 = vpop.f32.mrf.mxu0  ;;  %v3191_v13 = vmul.f32 0.2, %v2859_v58  ;;  %v5237_v54 = vmul.f32 %v25523_v22, %v3445_v1  ;;  %v2886_v22 = vadd.f32 %v25631_v30, %v25568_v43 }
 0x341   :  { %v25624_v45 = vadd.f32 %v6550_v33, %v25458_v36  ;;  %v2867_v36 = vadd.f32 %v25631_v30, %v25501_v24  ;;  %v3194_v24 = vmul.f32 0.2, %v2870_v60  ;;  %v3448_v20 = vmax.f32 %v2862_v57, %v3192_v26  ;;  %v25680_v26 = vpop.permute.xlu0 %4921 }
 0x342   :  { %v19412_v10 = vpop.f32.mrf.mxu1  ;;  %19531 = vmatmul.mubr.msk.bf16.gmra.mxu1 %vm5415_vm1, %v5376_v38  ;;  %v25644_v61 = vpop.f32.mrf.mxu0  ;;  %v3447_v1 = vmax.f32 %v2859_v58, %v3191_v13  ;;  %v2875_v57 = vadd.f32 %v25631_v30, %v25489_v3 }
 0x343   :  { %v25641_v27 = vadd.f32 %v19412_v10, %v25468_v34  ;;  %19538 = vmatprep.mubr.msk.bf16.mxu1 %vm5415_vm1, %v5377_v21  ;;  %v28955_v21 = vld [vmem:[#allocation267_spill] sm:$0xff]  ;;  %v3193_v17 = vmul.f32 0.2, %v2867_v36  ;;  %v5379_v10 = vpack.c.bf16 %v5238_v31, %v5237_v54  ;;  %v3450_v5 = vmax.f32 %v2870_v60, %v3194_v24 }
 0x344   :  { %v6563_v51 = vpop.f32.mrf.mxu1  ;;  %v5235_v52 = vmul.f32 %v28955_v21, %v3443_v9  ;;  %v25657_v15 = vpop.f32.mrf.mxu0  ;;  %v2883_v60 = vadd.f32 %v25631_v30, %v25548_v11  ;;  %v5240_v3 = vmul.f32 %v25541_v35, %v3448_v20  ;;  %v3198_v24 = vmul.f32 0.2, %v2886_v22 }
 0x345   :  { %v25654_v34 = vadd.f32 %v6563_v51, %v25478_v23  ;;  %v2878_v23 = vadd.f32 %v25631_v30, %v25515_v0  ;;  %v25668_v9 = vpop.permute.xlu1 %4926  ;;  %v3449_v51 = vmax.f32 %v2867_v36, %v3193_v17  ;;  %v5242_v31 = vmul.f32 %v25571_v7, %v3450_v5 }
 0x346   :  { %v19413_v4 = vpop.f32.mrf.mxu1  ;;  %v5378_v6 = vpack.c.bf16 %v5236_v42, %v5235_v52  ;;  %v25677_v0 = vpop.f32.mrf.mxu0  ;;  %v5239_v11 = vmul.f32 %v25553_v28, %v3447_v1  ;;  %v3195_v21 = vmul.f32 0.2, %v2875_v57  ;;  %v3454_v20 = vmax.f32 %v2886_v22, %v3198_v24 }
 0x347   :  { %v25661_v38 = vadd.f32 %v19413_v4, %v25487_v62  ;;  %v3197_v4 = vmul.f32 0.2, %v2883_v60  ;;  %v2899_v5 = vadd.f32 %v25631_v30, %v25588_v59 }
 0x348   :  { %v6566_v33 = vpop.f32.mrf.mxu1  ;;  %v5380_v54 = vpack.c.bf16 %v5240_v3, %v5239_v11 }
 0x349   :  { %v25673_v62 = vadd.f32 %v6566_v33, %v25499_v29  ;;  %v3196_v29 = vmul.f32 0.2, %v2878_v23  ;;  %v4937_v13 = vpop.permute.xlu1 %4936  ;;  %v2902_v33 = vadd.f32 %v25631_v30, %v25608_v37 }
 0x34a   :  { %v19420_v42 = vpop.f32.mrf.mxu1  ;;  %19539 = vmatmul.mubr.msk.bf16.vlgmr.msra.gmra.mxu1 %vm5415_vm1, %v5378_v6  ;;  %v4932_v6 = vpop.permute.xlu0 %4931 }
 0x34b   :  { %v25685_v43 = vadd.f32 %v19420_v42, %v25511_v2  ;;  %19542 = vmatprep.mubr.msk.bf16.mxu1 %vm5415_vm1, %v5379_v10  ;;  %19555 = vmatpush3.bf16.msra.mxu1 %v25521_v16  ;;  %v25695_v2 = vpop.f32.mrf.mxu0  ;;  %v5241_v16 = vmul.f32 %v25581_v8, %v3449_v51  ;;  %v3452_v7 = vmax.f32 %v2878_v23, %v3196_v29  ;;  %v3202_v42 = vmul.f32 0.2, %v2902_v33 }
 0x34c   :  { %v6669_v58 = vpop.f32.mrf.mxu1  ;;  %19556 = vmatprep.subr.bf16.mxu1 %v20081_v41  ;;  %v3451_v8 = vmax.f32 %v2875_v57, %v3195_v21 }
 0x34d   :  { %v25692_v36 = vadd.f32 %v6669_v58, %v25527_v47  ;;  %v2894_v47 = vadd.f32 %v25631_v30, %v25561_v50  ;;  %v5381_v28 = vpack.c.bf16 %v5242_v31, %v5241_v16  ;;  %v3453_v50 = vmax.f32 %v2883_v60, %v3197_v4  ;;  %v25720_v57 = vpop.permute.xlu1 %4946 }
 0x34e   :  { %v19421_v52 = vpop.f32.mrf.mxu1  ;;  %v5243_v60 = vmul.f32 %v25611_v25, %v3451_v8  ;;  %v4942_v29 = vpop.permute.xlu0 %4941  ;;  %v3201_v31 = vmul.f32 0.2, %v2899_v5  ;;  %v2918_v25 = vadd.f32 %v25631_v30, %v25657_v15 }
 0x34f   :  { %v25699_v35 = vadd.f32 %v19421_v52, %v25534_v12  ;;  %19557 = vmatpush3.bf16.msra.mxu1 %v20081_v41  ;;  %v2891_v12 = vadd.f32 %v25631_v30, %v25536_v14  ;;  %v25710_v41 = vpop.f32.mrf.mxu0  ;;  %v3200_v37 = vmul.f32 0.2, %v2894_v47  ;;  %v5246_v14 = vmul.f32 %v25636_v55, %v3454_v20 }
 0x350   :  { %v6672_v17 = vpop.f32.mrf.mxu1  ;;  %v5245_v58 = vmul.f32 %v25650_v56, %v3453_v50  ;;  %v2910_v55 = vadd.f32 %v25631_v30, %v25599_v39  ;;  %v3458_v52 = vmax.f32 %v2902_v33, %v3202_v42  ;;  %v2907_v56 = vadd.f32 %v25631_v30, %v25577_v19 }
 0x351   :  { %v25706_v10 = vadd.f32 %v6672_v17, %v25546_v53  ;;  %v5244_v53 = vmul.f32 %v25602_v49, %v3452_v7  ;;  %v3199_v59 = vmul.f32 0.2, %v2891_v12  ;;  %v2933_v3 = vpop.f32.mrf.mxu0  ;;  %v3456_v11 = vmax.f32 %v2894_v47, %v3200_v37  ;;  %v4957_v7 = vpop.permute.xlu1 %4956  ;;  %v28956_v17 = vld [vmem:[#allocation270_spill] sm:$0xff] }
 0x352   :  { %v19424_v23 = vpop.f32.mrf.mxu1  ;;  %19543 = vmatmul.mubr.msk.bf16.gmra.mxu1 %vm5415_vm1, %v5380_v54  ;;  %v3457_v39 = vmax.f32 %v2899_v5, %v3201_v31  ;;  %v2915_v47 = vadd.f32 %v25631_v30, %v25626_v40  ;;  %v3204_v15 = vmul.f32 0.2, %v2910_v55  ;;  %v4952_v19 = vpop.permute.xlu0 %4951  ;;  %v5250_v33 = vmul.f32 %v4937_v13, %v3458_v52 }
 0x353   :  { %v25716_v22 = vadd.f32 %v19424_v23, %v25558_v44  ;;  %19546 = vmatprep.mubr.msk.bf16.mxu1 %vm5415_vm1, %v5381_v28  ;;  %v5382_v24 = vpack.c.bf16 %v5244_v53, %v5243_v60  ;;  %v3455_v4 = vmax.f32 %v2891_v12, %v3199_v59  ;;  %v3206_v8 = vmul.f32 0.2, %v2918_v25  ;;  %v28957_v12 = vld [vmem:[#allocation269_spill] sm:$0xff] }
 0x354   :  { %v6685_v1 = vpop.f32.mrf.mxu1  ;;  %v3203_v5 = vmul.f32 0.2, %v2907_v56  ;;  %v5249_v37 = vmul.f32 %v4932_v6, %v3457_v39  ;;  %v2926_v60 = vadd.f32 %v25631_v30, %v25644_v61  ;;  %v2934_v31 = vadd.f32 %v25631_v30, %v2933_v3 }
 0x355   :  { %v25724_v51 = vadd.f32 %v6685_v1, %v25566_v18  ;;  %v5383_v18 = vpack.c.bf16 %v5246_v14, %v5245_v58  ;;  %v5247_v50 = vmul.f32 %v25680_v26, %v3455_v4  ;;  %v3205_v1 = vmul.f32 0.2, %v2915_v47  ;;  %v4967_v59 = vpop.permute.xlu1 %4966 }
 0x356   :  { %v19425_v44 = vpop.f32.mrf.mxu1  ;;  %v3462_v58 = vmax.f32 %v2918_v25, %v3206_v8  ;;  %v2923_v6 = vadd.f32 %v25631_v30, %v25617_v63  ;;  %v2931_v61 = vadd.f32 %v25631_v30, %v25695_v2  ;;  %v4962_v3 = vpop.permute.xlu0 %4961  ;;  %v3210_v63 = vmul.f32 0.2, %v2934_v31 }
 0x357   :  { %v25729_v49 = vadd.f32 %v19425_v44, %v25575_v48  ;;  %v25740_v48 = vpop.f32.mrf.mxu0  ;;  %v5385_v44 = vpack.c.bf16 %v5250_v33, %v5249_v37 }
 0x358   :  { %v6688_v21 = vpop.f32.mrf.mxu1  ;;  %v5254_v25 = vmul.f32 %v4957_v7, %v3462_v58  ;;  %v3466_v8 = vmax.f32 %v2934_v31, %v3210_v63 }
 0x359   :  { %v25736_v16 = vadd.f32 %v6688_v21, %v25586_v32  ;;  %v5248_v32 = vmul.f32 %v25668_v9, %v3456_v11  ;;  %v2946_v53 = vpop.f32.mrf.mxu0  ;;  %v3460_v9 = vmax.f32 %v2910_v55, %v3204_v15  ;;  %v3461_v55 = vmax.f32 %v2915_v47, %v3205_v1 }
 0x35a   :  { %v19428_v54 = vpop.f32.mrf.mxu1  ;;  %19547 = vmatmul.mubr.msk.bf16.gmra.mxu1 %vm5415_vm1, %v5382_v24  ;;  %v3459_v24 = vmax.f32 %v2907_v56, %v3203_v5 }
 0x35b   :  { %v25746_v28 = vadd.f32 %v19428_v54, %v28956_v17  ;;  %19550 = vmatprep.mubr.msk.bf16.mxu1 %vm5415_vm1, %v5383_v18  ;;  %v5384_v42 = vpack.c.bf16 %v5248_v32, %v5247_v50  ;;  %v3208_v18 = vmul.f32 0.2, %v2926_v60  ;;  %v3207_v54 = vmul.f32 0.2, %v2923_v6  ;;  %v4977_v32 = vpop.permute.xlu1 %4976 }
 0x35c   :  { %v6701_v20 = vpop.f32.mrf.mxu1  ;;  %v5251_v56 = vmul.f32 %v4942_v29, %v3459_v24  ;;  %v5253_v2 = vmul.f32 %v4952_v19, %v3461_v55  ;;  %v3209_v17 = vmul.f32 0.2, %v2931_v61 }
 0x35d   :  { %v25751_v23 = vadd.f32 %v6701_v20, %v28957_v12  ;;  %v3464_v20 = vmax.f32 %v2926_v60, %v3208_v18  ;;  %v4972_v12 = vpop.permute.xlu0 %4971  ;;  %v3463_v19 = vmax.f32 %v2923_v6, %v3207_v54 }
 0x35e   :  { %v19429_v40 = vpop.f32.mrf.mxu1  ;;  %v5387_v33 = vpack.c.bf16 %v5254_v25, %v5253_v2  ;;  %v3465_v5 = vmax.f32 %v2931_v61, %v3209_v17 }
 0x35f   :  { %v25755_v14 = vadd.f32 %v19429_v40, %v25615_v46  ;;  %v19253_v46 = vpop.f32.mrf.mxu0  ;;  %v2947_v40 = vadd.f32 %v25631_v30, %v2946_v53  ;;  %v5256_v37 = vmul.f32 %v4967_v59, %v3464_v20 }
 0x360   :  { %v6704_v13 = vpop.f32.mrf.mxu1  ;;  %v5257_v31 = vmul.f32 %v4972_v12, %v3465_v5  ;;  %v2958_v59 = vadd.f32 %v25631_v30, %v19253_v46 }
 0x361   :  { %v25761_v26 = vadd.f32 %v6704_v13, %v25624_v45  ;;  %v5252_v45 = vmul.f32 %v25720_v57, %v3460_v9  ;;  %v2949_v39 = vpop.f32.mrf.mxu0  ;;  %v2942_v57 = vadd.f32 %v25631_v30, %v25710_v41  ;;  %v5255_v13 = vmul.f32 %v4962_v3, %v3463_v19 }
 0x362   :  { %v19432_v11 = vpop.f32.mrf.mxu1  ;;  %19551 = vmatmul.mubr.msk.bf16.gmra.mxu1 %vm5415_vm1, %v5384_v42  ;;  %v5258_v42 = vmul.f32 %v4977_v32, %v3466_v8  ;;  %v3213_v24 = vmul.f32 0.2, %v2947_v40 }
 0x363   :  { %v25769_v21 = vadd.f32 %v19432_v11, %v25641_v27  ;;  %19558 = vmatprep.mubr.msk.bf16.mxu1 %vm5415_vm1, %v5385_v44  ;;  %v5386_v15 = vpack.c.bf16 %v5252_v45, %v5251_v56  ;;  %v3212_v1 = vmul.f32 0.2, %v2942_v57  ;;  %v5388_v6 = vpack.c.bf16 %v5256_v37, %v5255_v13 }
 0x364   :  { %v6717_v52 = vpop.f32.mrf.mxu1  ;;  %v5389_v61 = vpack.c.bf16 %v5258_v42, %v5257_v31  ;;  %v3216_v56 = vmul.f32 0.2, %v2958_v59 }
 0x365   :  { %v25774_v4 = vadd.f32 %v6717_v52, %v25654_v34  ;;  %v2950_v34 = vadd.f32 %v25631_v30, %v2949_v39  ;;  %v3468_v11 = vmax.f32 %v2942_v57, %v3212_v1  ;;  %v3469_v52 = vmax.f32 %v2947_v40, %v3213_v24 }
 0x366   :  { %v19433_v47 = vpop.f32.mrf.mxu1  ;;  %v3472_v20 = vmax.f32 %v2958_v59, %v3216_v56 }
 0x367   :  { %v25777_v27 = vadd.f32 %v19433_v47, %v25661_v38  ;;  %v2939_v38 = vadd.f32 %v25631_v30, %v25677_v0  ;;  %v3214_v9 = vmul.f32 0.2, %v2950_v34  ;;  %v4987_v0 = vpop.permute.xlu1 %4986 }
 0x368   :  { %v6720_v7 = vpop.f32.mrf.mxu1  ;;  %v5260_v63 = vmul.f32 %v4987_v0, %v3468_v11 }
 0x369   :  { %v25783_v29 = vadd.f32 %v6720_v7, %v25673_v62  ;;  %v3211_v44 = vmul.f32 0.2, %v2939_v38  ;;  %v3470_v45 = vmax.f32 %v2950_v34, %v3214_v9 }
 0x36a   :  { %v19440_v50 = vpop.f32.mrf.mxu1  ;;  %19559 = vmatmul.mubr.msk.bf16.vlgmr.msra.gmra.mxu1 %vm5415_vm1, %v5386_v15 }
 0x36b   :  { %v25790_v41 = vadd.f32 %v19440_v50, %v25685_v43  ;;  %19562 = vmatprep.mubr.msk.bf16.mxu1 %vm5415_vm1, %v5387_v33  ;;  %v4982_v43 = vpop.permute.xlu0 %4981  ;;  %v3467_v18 = vmax.f32 %v2939_v38, %v3211_v44 }
 0x36c   :  { %v6823_v62 = vpop.f32.mrf.mxu1 }
 0x36d   :  { %v25794_v60 = vadd.f32 %v6823_v62, %v25692_v36  ;;  %v2955_v36 = vadd.f32 %v25631_v30, %v25740_v48  ;;  %v5259_v2 = vmul.f32 %v4982_v43, %v3467_v18 }
 0x36e   :  { %v19441_v58 = vpop.f32.mrf.mxu1 }
 0x36f   :  { %v6889_v53 = vadd.f32 %v19441_v58, %v25699_v35  ;;  %v4997_v35 = vpop.permute.xlu1 %4996  ;;  %v4992_v47 = vpop.permute.xlu0 %4991  ;;  %v3215_v17 = vmul.f32 0.2, %v2955_v36  ;;  %v5390_v15 = vpack.c.bf16 %v5260_v63, %v5259_v2 }
 0x370   :  { %v25798_v55 = vpop.f32.mrf.mxu1  ;;  %v5262_v54 = vmul.f32 %v4997_v35, %v3470_v45  ;;  %v5261_v30 = vmul.f32 %v4992_v47, %v3469_v52 }
 0x371   :  { %v3471_v7 = vmax.f32 %v2955_v36, %v3215_v17 }
 0x372   :  { %v19444_v3 = vpop.f32.mrf.mxu1  ;;  %19563 = vmatmul.mubr.msk.bf16.gmra.mxu1 %vm5415_vm1, %v5388_v6 }
 0x373   :  { %v6892_v25 = vadd.f32 %v19444_v3, %v25716_v22  ;;  %19566 = vmatprep.mubr.msk.bf16.mxu1 %vm5415_vm1, %v5389_v61  ;;  %v5391_v22 = vpack.c.bf16 %v5262_v54, %v5261_v30  ;;  %v5007_v8 = vpop.permute.xlu1 %5006  ;;  %v5002_v19 = vpop.permute.xlu0 %5001 }
 0x374   :  { %v6839_v46 = vpop.f32.mrf.mxu1 }
 0x375   :  { %v6890_v39 = vadd.f32 %v6839_v46, %v25724_v51  ;;  %v5264_v51 = vmul.f32 %v5007_v8, %v3472_v20 }
 0x376   :  { %v19445_v32 = vpop.f32.mrf.mxu1 }
 0x377   :  { %v6893_v48 = vadd.f32 %v19445_v32, %v25729_v49  ;;  %v5263_v49 = vmul.f32 %v5002_v19, %v3471_v7 }
 0x378   :  { %v25807_v57 = vpop.f32.mrf.mxu1 }
 0x379   :  { %v5392_v40 = vpack.c.bf16 %v5264_v51, %v5263_v49 }
 0x37a   :  { %v19448_v33 = vpop.f32.mrf.mxu1  ;;  %19567 = vmatmul.mubr.msk.bf16.gmra.mxu1 %vm5415_vm1, %v5390_v15 }
 0x37b   :  { %v6896_v34 = vadd.f32 %v19448_v33, %v25746_v28  ;;  %19570 = vmatprep.mubr.msk.bf16.mxu1 %vm5415_vm1, %v5391_v22 }
 0x37c   :  { %v6855_v12 = vpop.f32.mrf.mxu1 }
 0x37d   :  { %v6894_v38 = vadd.f32 %v6855_v12, %v25751_v23 }
 0x37e   :  { %v19449_v50 = vpop.f32.mrf.mxu1 }
 0x37f   :  { %v6897_v5 = vadd.f32 %v19449_v50, %v25755_v14 }
 0x380   :  { %v25814_v37 = vpop.f32.mrf.mxu1 }
 0x382   :  { %v19452_v1 = vpop.f32.mrf.mxu1  ;;  %19571 = vmatmul.mubr.msk.bf16.gmra.mxu1 %vm5415_vm1, %v5392_v40 }
 0x383   :  { %v6900_v62 = vadd.f32 %v19452_v1, %v25769_v21 }
 0x384   :  { %v6871_v28 = vpop.f32.mrf.mxu1 }
 0x385   :  { %v6898_v42 = vadd.f32 %v6871_v28, %v25774_v4 }
 0x386   :  { %v19453_v9 = vpop.f32.mrf.mxu1 }
 0x387   :  { %v6901_v0 = vadd.f32 %v19453_v9, %v25777_v27 }
 0x388   :  { %v25820_v13 = vpop.f32.mrf.mxu1 }
 0x38a   :  { %v19460_v23 = vpop.f32.mrf.mxu1 }
 0x38b   :  { %v7042_v44 = vadd.f32 %v19460_v23, %v25790_v41  ;;  %v20083_v23 = vld [vmem:[%s28144_s5 + $0x28] sm:$0xff]  }
 0x38c   :  { %v6977_v14 = vpop.f32.mrf.mxu1  ;;  %19658 = vmatprep.subr.bf16.mxu0 %v20083_v23 }
 0x38d   :  { %v7040_v58 = vadd.f32 %v6977_v14, %v25794_v60  ;;  %19659 = vmatpush3.bf16.msra.mxu0 %v20083_v23 }
 0x38e   :  { %v19461_v31 = vpop.f32.mrf.mxu1 }
 0x38f   :  { %v7043_v24 = vadd.f32 %v19461_v31, %v6889_v53 }
 0x390   :  { %v25824_v43 = vpop.f32.mrf.mxu1 }
 0x392   :  { %v19464_v6 = vpop.f32.mrf.mxu1 }
 0x393   :  { %v7046_v21 = vadd.f32 %v19464_v6, %v6892_v25 }
 0x394   :  { %v6993_v11 = vpop.f32.mrf.mxu1 }
 0x395   :  { %v7044_v59 = vadd.f32 %v6993_v11, %v6890_v39 }
 0x396   :  { %v19465_v4 = vpop.f32.mrf.mxu1 }
 0x397   :  { %v7047_v61 = vadd.f32 %v19465_v4, %v6893_v48 }
 0x398   :  { %v25826_v45 = vpop.f32.mrf.mxu1 }
 0x39a   :  { %v19468_v27 = vpop.f32.mrf.mxu1 }
 0x39b   :  { %v7050_v18 = vadd.f32 %v19468_v27, %v6896_v34 }
 0x39c   :  { %v7009_v36 = vpop.f32.mrf.mxu1 }
 0x39d   :  { %v7048_v3 = vadd.f32 %v7009_v36, %v6894_v38 }
 0x39e   :  { %v19469_v41 = vpop.f32.mrf.mxu1 }
 0x39f   :  { %v7051_v52 = vadd.f32 %v19469_v41, %v6897_v5 }
 0x3a0   :  { %v25828_v35 = vpop.f32.mrf.mxu1 }
 0x3a2   :  { %v19472_v60 = vpop.f32.mrf.mxu1 }
 0x3a3   :  { %v7054_v53 = vadd.f32 %v19472_v60, %v6900_v62 }
 0x3a4   :  { %v7025_v63 = vpop.f32.mrf.mxu1 }
 0x3a5   :  { %v7052_v56 = vadd.f32 %v7025_v63, %v6898_v42 }
 0x3a6   :  { %v19473_v46 = vpop.f32.mrf.mxu1 }
 0x3a7   :  { %v7055_v25 = vadd.f32 %v19473_v46, %v6901_v0 }
 0x3a8   :  { %v25830_v54 = vpop.f32.mrf.mxu1 }
 0x3aa   :  { %v19480_v39 = vpop.f32.mrf.mxu1 }
 0x3ab   :  { %v7196_v47 = vadd.f32 %v19480_v39, %v7042_v44 }
 0x3ac   :  { %v7131_v2 = vpop.f32.mrf.mxu1 }
 0x3ad   :  { %v7194_v17 = vadd.f32 %v7131_v2, %v7040_v58 }
 0x3ae   :  { %v19481_v32 = vpop.f32.mrf.mxu1 }
 0x3af   :  { %v7197_v30 = vadd.f32 %v19481_v32, %v7043_v24 }
 0x3b0   :  { %v25832_v48 = vpop.f32.mrf.mxu1 }
 0x3b2   :  { %v19484_v15 = vpop.f32.mrf.mxu1 }
 0x3b3   :  { %v7200_v20 = vadd.f32 %v19484_v15, %v7046_v21 }
 0x3b4   :  { %v7147_v22 = vpop.f32.mrf.mxu1 }
 0x3b5   :  { %v7198_v7 = vadd.f32 %v7147_v22, %v7044_v59 }
 0x3b6   :  { %v19485_v33 = vpop.f32.mrf.mxu1 }
 0x3b7   :  { %v7201_v8 = vadd.f32 %v19485_v33, %v7047_v61  ;;  %v20084_v33 = vld [vmem:[%s28143_s4] sm:$0xff]  }
 0x3b8   :  { %v25834_v34 = vpop.f32.mrf.mxu1  ;;  %19590 = vmatprep.mubr.bf16.mxu1 %v20084_v33  ;;  %v6887_v33 = vadd.f32 %v25798_v55, %v25706_v10  ;;  %v6891_v10 = vadd.f32 %v25807_v57, %v25736_v16 }
 0x3ba   :  { %v19488_v51 = vpop.f32.mrf.mxu1 }
 0x3bb   :  { %v7204_v12 = vadd.f32 %v19488_v51, %v7050_v18 }
 0x3bc   :  { %v7163_v19 = vpop.f32.mrf.mxu1 }
 0x3bd   :  { %v7202_v38 = vadd.f32 %v7163_v19, %v7048_v3 }
 0x3be   :  { %v19489_v49 = vpop.f32.mrf.mxu1 }
 0x3bf   :  { %v7205_v50 = vadd.f32 %v19489_v49, %v7051_v52 }
 0x3c0   :  { %v25836_v5 = vpop.f32.mrf.mxu1 }
 0x3c2   :  { %v19492_v40 = vpop.f32.mrf.mxu1 }
 0x3c3   :  { %v7208_v1 = vadd.f32 %v19492_v40, %v7054_v53 }
 0x3c4   :  { %v7179_v62 = vpop.f32.mrf.mxu1 }
 0x3c5   :  { %v7206_v28 = vadd.f32 %v7179_v62, %v7052_v56 }
 0x3c6   :  { %v19493_v42 = vpop.f32.mrf.mxu1 }
 0x3c7   :  { %v7209_v9 = vadd.f32 %v19493_v42, %v7055_v25 }
 0x3c8   :  { %v25838_v0 = vpop.f32.mrf.mxu1 }
 0x3ca   :  { %v19500_v44 = vpop.f32.mrf.mxu1 }
 0x3cb   :  { %v7350_v14 = vadd.f32 %v19500_v44, %v7196_v47 }
 0x3cc   :  { %v7285_v58 = vpop.f32.mrf.mxu1 }
 0x3cd   :  { %v7348_v31 = vadd.f32 %v7285_v58, %v7194_v17 }
 0x3ce   :  { %v19501_v24 = vpop.f32.mrf.mxu1 }
 0x3cf   :  { %v7351_v6 = vadd.f32 %v19501_v24, %v7197_v30 }
 0x3d0   :  { %v25843_v21 = vpop.f32.mrf.mxu1 }
 0x3d2   :  { %v19504_v11 = vpop.f32.mrf.mxu1 }
 0x3d3   :  { %v7354_v59 = vadd.f32 %v19504_v11, %v7200_v20 }
 0x3d4   :  { %v7301_v4 = vpop.f32.mrf.mxu1 }
 0x3d5   :  { %v7352_v61 = vadd.f32 %v7301_v4, %v7198_v7 }
 0x3d6   :  { %v19505_v27 = vpop.f32.mrf.mxu1 }
 0x3d7   :  { %v7355_v18 = vadd.f32 %v19505_v27, %v7201_v8 }
 0x3d8   :  { %v25845_v36 = vpop.f32.mrf.mxu1 }
 0x3da   :  { %v19508_v3 = vpop.f32.mrf.mxu1 }
 0x3db   :  { %v7358_v41 = vadd.f32 %v19508_v3, %v7204_v12 }
 0x3dc   :  { %v7317_v52 = vpop.f32.mrf.mxu1 }
 0x3dd   :  { %v7356_v60 = vadd.f32 %v7317_v52, %v7202_v38 }
 0x3de   :  { %v19509_v53 = vpop.f32.mrf.mxu1 }
 0x3df   :  { %v7359_v63 = vadd.f32 %v19509_v53, %v7205_v50 }
 0x3e0   :  { %v25847_v56 = vpop.f32.mrf.mxu1 }
 0x3e2   :  { %v19512_v46 = vpop.f32.mrf.mxu1 }
 0x3e3   :  { %v7362_v25 = vadd.f32 %v19512_v46, %v7208_v1 }
 0x3e4   :  { %v7333_v39 = vpop.f32.mrf.mxu1 }
 0x3e5   :  { %v7360_v47 = vadd.f32 %v7333_v39, %v7206_v28 }
 0x3e6   :  { %v19513_v2 = vpop.f32.mrf.mxu1 }
 0x3e7   :  { %v25849_v17 = vadd.f32 %v19513_v2, %v7209_v9 }
 0x3e8   :  { %v25851_v32 = vpop.f32.mrf.mxu1 }
 0x3ea   :  { %v19520_v30 = vpop.f32.mrf.mxu1 }
 0x3eb   :  { %v7504_v15 = vadd.f32 %v19520_v30, %v7350_v14 }
 0x3ec   :  { %v7439_v20 = vpop.f32.mrf.mxu1 }
 0x3ed   :  { %v7502_v22 = vadd.f32 %v7439_v20, %v7348_v31 }
 0x3ee   :  { %v19521_v7 = vpop.f32.mrf.mxu1 }
 0x3ef   :  { %v7505_v8 = vadd.f32 %v19521_v7, %v7351_v6 }
 0x3f0   :  { %v7442_v51 = vpop.f32.mrf.mxu1 }
 0x3f2   :  { %v19524_v12 = vpop.f32.mrf.mxu1 }
 0x3f3   :  { %v7508_v19 = vadd.f32 %v19524_v12, %v7354_v59  ;;  %v7041_v12 = vadd.f32 %v25824_v43, %v6887_v33  ;;  %v7045_v43 = vadd.f32 %v25826_v45, %v6891_v10 }
 0x3f4   :  { %v7455_v38 = vpop.f32.mrf.mxu1 }
 0x3f5   :  { %v7506_v49 = vadd.f32 %v7455_v38, %v7352_v61  ;;  %v7195_v38 = vadd.f32 %v25832_v48, %v7041_v12 }
 0x3f6   :  { %v19525_v50 = vpop.f32.mrf.mxu1 }
 0x3f7   :  { %v25856_v40 = vadd.f32 %v19525_v50, %v7355_v18  ;;  %v7349_v50 = vadd.f32 %v25843_v21, %v7195_v38  ;;  %v7199_v21 = vadd.f32 %v25834_v34, %v7045_v43 }
 0x3f8   :  { %v25858_v1 = vpop.f32.mrf.mxu1 }
 0x3f9   :  { %v7353_v16 = vadd.f32 %v25845_v36, %v7199_v21 }
 0x3fa   :  { %v19528_v62 = vpop.f32.mrf.mxu1 }
 0x3fb   :  { %v25860_v28 = vadd.f32 %v19528_v62, %v7358_v41  ;;  %v25899_v62 = vld [vmem:[%s28149_s10 + $0x1] ss:$0 sm:$0xff] }
 0x3fc   :  { %v7471_v42 = vpop.f32.mrf.mxu1 }
 0x3fd   :  { %v25862_v9 = vadd.f32 %v7471_v42, %v7356_v60 }
 0x3fe   :  { %v19529_v23 = vpop.f32.mrf.mxu1 }
 0x3ff   :  { %v25864_v44 = vadd.f32 %v19529_v23, %v7359_v63  ;;  %v7503_v23 = vadd.f32 %v7442_v51, %v7349_v50 }
 0x400   :  { %v25866_v14 = vpop.f32.mrf.mxu1 }
 0x402   :  { %v19532_v58 = vpop.f32.mrf.mxu1 }
 0x403   :  { %v25868_v31 = vadd.f32 %v19532_v58, %v7362_v25 }
 0x404   :  { %v7487_v24 = vpop.f32.mrf.mxu1 }
 0x405   :  { %v25870_v6 = vadd.f32 %v7487_v24, %v7360_v47  ;;  %v20096_v47 = vld [vmem:[%s28144_s5 + $0x20] sm:$0xff]  }
 0x406   :  { %v25872_v11 = vpop.f32.mrf.mxu1  ;;  %19660 = vmatprep.subr.bf16.mxu0 %v20096_v47 }
 0x407   :  { %19661 = vmatpush3.bf16.msra.mxu0 %v20096_v47 }
 0x408   :  { %v25874_v59 = vpop.f32.mrf.mxu1 }
 0x40a   :  { %v19540_v4 = vpop.f32.mrf.mxu1 }
 0x40b   :  { %v7658_v61 = vadd.f32 %v19540_v4, %v7504_v15 }
 0x40c   :  { %v7593_v27 = vpop.f32.mrf.mxu1 }
 0x40d   :  { %v7656_v18 = vadd.f32 %v7593_v27, %v7502_v22 }
 0x40e   :  { %v19541_v3 = vpop.f32.mrf.mxu1 }
 0x40f   :  { %v7659_v41 = vadd.f32 %v19541_v3, %v7505_v8 }
 0x410   :  { %v7596_v52 = vpop.f32.mrf.mxu1 }
 0x411   :  { %v7657_v4 = vadd.f32 %v7596_v52, %v7503_v23  ;;  %v6895_v52 = vadd.f32 %v25814_v37, %v25761_v26 }
 0x412   :  { %v19544_v60 = vpop.f32.mrf.mxu1 }
 0x413   :  { %v7662_v53 = vadd.f32 %v19544_v60, %v7508_v19  ;;  %v7049_v36 = vadd.f32 %v25828_v35, %v6895_v52 }
 0x414   :  { %v7609_v63 = vpop.f32.mrf.mxu1 }
 0x415   :  { %v7660_v46 = vadd.f32 %v7609_v63, %v7506_v49  ;;  %v7203_v26 = vadd.f32 %v25836_v5, %v7049_v36 }
 0x416   :  { %v19545_v25 = vpop.f32.mrf.mxu1 }
 0x417   :  { %v7663_v12 = vadd.f32 %v19545_v25, %v25856_v40  ;;  %v7357_v25 = vadd.f32 %v25847_v56, %v7203_v26 }
 0x418   :  { %v7612_v39 = vpop.f32.mrf.mxu1 }
 0x41a   :  { %v19548_v2 = vpop.f32.mrf.mxu1 }
 0x41b   :  { %v7666_v40 = vadd.f32 %v19548_v2, %v25860_v28  ;;  %v7511_v28 = vadd.f32 %v25866_v14, %v7357_v25 }
 0x41c   :  { %v7625_v30 = vpop.f32.mrf.mxu1 }
 0x41e   :  { %v25879_v15 = vpop.f32.mrf.mxu1 }
 0x41f   :  { %v7667_v56 = vadd.f32 %v25879_v15, %v25864_v44 }
 0x420   :  { %v25881_v20 = vpop.f32.mrf.mxu1 }
 0x422   :  { %v25883_v22 = vpop.f32.mrf.mxu1 }
 0x423   :  { %v7670_v15 = vadd.f32 %v25883_v22, %v25868_v31 }
 0x424   :  { %v25885_v7 = vpop.f32.mrf.mxu1 }
 0x426   :  { %v25889_v8 = vpop.f32.mrf.mxu1 }
 0x428   :  { %v25892_v19 = vpop.f32.mrf.mxu1 }
 0x42a   :  { %v19560_v49 = vpop.f32.mrf.mxu1 }
 0x42b   :  { %v7812_v42 = vadd.f32 %v19560_v49, %v7658_v61 }
 0x42c   :  { %v7747_v55 = vpop.f32.mrf.mxu1 }
 0x42d   :  { %v7810_v58 = vadd.f32 %v7747_v55, %v7656_v18  ;;  %v7828_v24 = vadd.f32 %v7812_v42, %v25899_v62 }
 0x42e   :  { %v19561_v48 = vpop.f32.mrf.mxu1 }
 0x42f   :  { %v7813_v27 = vadd.f32 %v19561_v48, %v7659_v41  ;;  %v7826_v3 = vadd.f32 %v7810_v58, %v25899_v62  ;;  %v7844_v57 = vmul.f32 0.2, %v7828_v24  ;;  %v7507_v41 = vadd.f32 %v25858_v1, %v7353_v16 }
 0x430   :  { %v7750_v60 = vpop.f32.mrf.mxu1 }
 0x431   :  { %v7829_v61 = vadd.f32 %v7813_v27, %v25899_v62  ;;  %v7811_v63 = vadd.f32 %v7750_v60, %v7657_v4  ;;  %v7842_v34 = vmul.f32 0.2, %v7826_v3  ;;  %v7860_v42 = vmax.f32 %v7828_v24, %v7844_v57 }
 0x432   :  { %v19564_v51 = vpop.f32.mrf.mxu1  ;;  %v7661_v23 = vadd.f32 %v7612_v39, %v7507_v41  ;;  %v7664_v27 = vadd.f32 %v7625_v30, %v25862_v9  ;;  %v6899_v60 = vadd.f32 %v25820_v13, %v25783_v29 }
 0x433   :  { %v7845_v18 = vmul.f32 0.2, %v7829_v61  ;;  %v7827_v45 = vadd.f32 %v7811_v63, %v25899_v62  ;;  %v7816_v47 = vadd.f32 %v19564_v51, %v7662_v53  ;;  %v7858_v37 = vmax.f32 %v7826_v3, %v7842_v34 }
 0x434   :  { %v7763_v33 = vpop.f32.mrf.mxu1  ;;  %v7053_v51 = vadd.f32 %v25830_v54, %v6899_v60 }
 0x435   :  { %v7861_v38 = vmax.f32 %v7829_v61, %v7845_v18  ;;  %v7843_v49 = vmul.f32 0.2, %v7827_v45  ;;  %v7814_v50 = vadd.f32 %v7763_v33, %v7660_v46  ;;  %v7832_v10 = vadd.f32 %v7816_v47, %v25899_v62 }
 0x436   :  { %v19565_v55 = vpop.f32.mrf.mxu1  ;;  %v7207_v13 = vadd.f32 %v25838_v0, %v7053_v51  ;;  %v7668_v0 = vadd.f32 %v25885_v7, %v25870_v6  ;;  %v20094_v51 = vld [vmem:[%s28143_s4 + $0x50] sm:$0xff]  }
 0x437   :  { %v7859_v53 = vmax.f32 %v7827_v45, %v7843_v49  ;;  %v7817_v58 = vadd.f32 %v19565_v55, %v7663_v12  ;;  %v7830_v1 = vadd.f32 %v7814_v50, %v25899_v62  ;;  %v25918_v48 = vpack.c.bf16 %v7861_v38, %v7860_v42 }
 0x438   :  { %v7766_v43 = vpop.f32.mrf.mxu1  ;;  %v7848_v24 = vmul.f32 0.2, %v7832_v10  ;;  %v7665_v45 = vadd.f32 %v25881_v20, %v7511_v28  ;;  %v7361_v33 = vadd.f32 %v25851_v32, %v7207_v13  ;;  %v7517_v20 = vadd.f32 %v25872_v11, %v25849_v17  ;;  %v20102_v13 = vld [vmem:[%s28143_s4 + $0x88] sm:$0xff]  }
 0x439   :  { %v7833_v46 = vadd.f32 %v7817_v58, %v25899_v62  ;;  %v7815_v35 = vadd.f32 %v7766_v43, %v7661_v23  ;;  %v25923_v39 = vpack.c.bf16 %v7859_v53, %v7858_v37  ;;  %v7846_v2 = vmul.f32 0.2, %v7830_v1 }
 0x43a   :  { %v19568_v4 = vpop.f32.mrf.mxu1  ;;  %v7864_v9 = vmax.f32 %v7832_v10, %v7848_v24  ;;  %v7515_v31 = vadd.f32 %v25874_v59, %v7361_v33  ;;  %v7671_v22 = vadd.f32 %v25889_v8, %v7517_v20  ;;  %v20108_v33 = vld [vmem:[%s28143_s4 + $0xb8] sm:$0xff]   ;;  %v20109_v20 = vld [vmem:[%s28143_s4 + $0xc0] sm:$0xff]  }
 0x43b   :  { %v7849_v5 = vmul.f32 0.2, %v7833_v46  ;;  %v7831_v21 = vadd.f32 %v7815_v35, %v25899_v62  ;;  %v7820_v3 = vadd.f32 %v19568_v4, %v7666_v40  ;;  %v7862_v14 = vmax.f32 %v7830_v1, %v7846_v2  ;;  %v20086_v2 = vld [vmem:[%s28143_s4 + $0x10] sm:$0xff]  }
 0x43c   :  { %v7779_v61 = vpop.f32.mrf.mxu1  ;;  %v7669_v26 = vadd.f32 %v25892_v19, %v7515_v31  ;;  %v20116_v31 = vld [vmem:[%s28143_s4 + $0xf8] sm:$0xff]  }
 0x43d   :  { %v7865_v63 = vmax.f32 %v7833_v46, %v7849_v5  ;;  %v7847_v16 = vmul.f32 0.2, %v7831_v21  ;;  %v7818_v57 = vadd.f32 %v7779_v61, %v7664_v27  ;;  %v7836_v30 = vadd.f32 %v7820_v3, %v25899_v62  ;;  %v20087_v61 = vld [vmem:[%s28143_s4 + $0x18] sm:$0xff]  }
 0x43e   :  { %v19569_v18 = vpop.f32.mrf.mxu1 }
 0x43f   :  { %v7863_v47 = vmax.f32 %v7831_v21, %v7847_v16  ;;  %v7821_v29 = vadd.f32 %v19569_v18, %v7667_v56  ;;  %v7834_v52 = vadd.f32 %v7818_v57, %v25899_v62  ;;  %v7877_v44 = vpack.c.bf16 %v7865_v63, %v7864_v9  ;;  %v20090_v56 = vld [vmem:[%s28143_s4 + $0x30] sm:$0xff]   ;;  %v20091_v63 = vld [vmem:[%s28143_s4 + $0x38] sm:$0xff]   ;;  %v20092_v16 = vld [vmem:[%s28143_s4 + $0x40] sm:$0xff]  }
 0x440   :  { %v7782_v41 = vpop.f32.mrf.mxu1  ;;  %v7852_v12 = vmul.f32 0.2, %v7836_v30  ;;  %v20093_v57 = vld [vmem:[%s28143_s4 + $0x48] sm:$0xff]   ;;  %v20095_v9 = vld [vmem:[%s28143_s4 + $0x58] sm:$0xff]  }
 0x441   :  { %v7837_v54 = vadd.f32 %v7821_v29, %v25899_v62  ;;  %v7819_v34 = vadd.f32 %v7782_v41, %v7665_v45  ;;  %v7876_v49 = vpack.c.bf16 %v7863_v47, %v7862_v14  ;;  %v7850_v10 = vmul.f32 0.2, %v7834_v52  ;;  %v20098_v18 = vld [vmem:[%s28143_s4 + $0x68] sm:$0xff]   ;;  %v20099_v45 = vld [vmem:[%s28143_s4 + $0x70] sm:$0xff]   ;;  %v20100_v47 = vld [vmem:[%s28143_s4 + $0x78] sm:$0xff]  }
 0x442   :  { %v19572_v38 = vpop.f32.mrf.mxu1  ;;  %v7868_v53 = vmax.f32 %v7836_v30, %v7852_v12  ;;  %v20097_v30 = vld [vmem:[%s28143_s4 + $0x60] sm:$0xff]   ;;  %v20103_v14 = vld [vmem:[%s28143_s4 + $0x90] sm:$0xff]   ;;  %v20110_v12 = vld [vmem:[%s28143_s4 + $0xc8] sm:$0xff]  }
 0x443   :  { %v7853_v50 = vmul.f32 0.2, %v7837_v54  ;;  %v7835_v36 = vadd.f32 %v7819_v34, %v25899_v62  ;;  %v7824_v42 = vadd.f32 %v19572_v38, %v7670_v15  ;;  %v7866_v1 = vmax.f32 %v7834_v52, %v7850_v10  ;;  %v20101_v29 = vld [vmem:[%s28143_s4 + $0x80] sm:$0xff]   ;;  %v20104_v52 = vld [vmem:[%s28143_s4 + $0x98] sm:$0xff]   ;;  %v20107_v15 = vld [vmem:[%s28143_s4 + $0xb0] sm:$0xff]  }
 0x444   :  { %v7795_v55 = vpop.f32.mrf.mxu1  ;;  %v20105_v41 = vld [vmem:[%s28143_s4 + $0xa0] sm:$0xff]   ;;  %v20118_v34 = vld [vmem:[%s28144_s5 + $0x18] sm:$0xff]   ;;  %v20111_v38 = vld [vmem:[%s28143_s4 + $0xd0] sm:$0xff]  }
 0x445   :  { %v7869_v32 = vmax.f32 %v7837_v54, %v7853_v50  ;;  %v7851_v23 = vmul.f32 0.2, %v7835_v36  ;;  %v7840_v17 = vadd.f32 %v7824_v42, %v25899_v62  ;;  %v7822_v11 = vadd.f32 %v7795_v55, %v7668_v0  ;;  %v20117_v54 = vld [vmem:[%s28144_s5 + $0x118] sm:$0xff]   ;;  %19666 = vmatprep.subr.bf16.mxu0 %v20118_v34  ;;  %v20113_v0 = vld [vmem:[%s28143_s4 + $0xe0] sm:$0xff]   ;;  %v20114_v50 = vld [vmem:[%s28143_s4 + $0xe8] sm:$0xff]  }
 0x446   :  { %v19573_v58 = vpop.f32.mrf.mxu1  ;;  %v20126_v42 = vld [vmem:[%s28144_s5 + $0x110] sm:$0xff]   ;;  %v20144_v10 = vld [vmem:[%s28144_s5 + $0x100] sm:$0xff]   ;;  %v26068_v55 = vld [vmem:[%s28144_s5 + $0x158] sm:$0xff]  }
 0x447   :  { %v7867_v6 = vmax.f32 %v7835_v36, %v7851_v23  ;;  %v7838_v7 = vadd.f32 %v7822_v11, %v25899_v62  ;;  %v7825_v37 = vadd.f32 %v19573_v58, %v7671_v22  ;;  %v7879_v59 = vpack.c.bf16 %v7869_v32, %v7868_v53  ;;  %v20115_v36 = vld [vmem:[%s28143_s4 + $0xf0] sm:$0xff]   ;;  %v20135_v22 = vld [vmem:[%s28144_s5 + $0x108] sm:$0xff]  }
 0x448   :  { %v7798_v43 = vpop.f32.mrf.mxu1  ;;  %v7856_v40 = vmul.f32 0.2, %v7840_v17 }
 0x449   :  { %v7841_v8 = vadd.f32 %v7825_v37, %v25899_v62  ;;  %v7823_v46 = vadd.f32 %v7798_v43, %v7669_v26  ;;  %v7878_v35 = vpack.c.bf16 %v7867_v6, %v7866_v1  ;;  %v7854_v25 = vmul.f32 0.2, %v7838_v7  ;;  %v20119_v1 = vld [vmem:[%s28144_s5 + $0x10] sm:$0xff]  }
 0x44a   :  { %v7872_v27 = vmax.f32 %v7840_v17, %v7856_v40 }
 0x44b   :  { %v7857_v24 = vmul.f32 0.2, %v7841_v8  ;;  %v7839_v4 = vadd.f32 %v7823_v46, %v25899_v62  ;;  %v7870_v19 = vmax.f32 %v7838_v7, %v7854_v25  ;;  %v20085_v62 = vld [vmem:[%s28143_s4 + $0x8] sm:$0xff]   ;;  %v20121_v25 = vld [vmem:[%s28144_s5] sm:$0xff]  }
 0x44d   :  { %v7873_v5 = vmax.f32 %v7841_v8, %v7857_v24  ;;  %v7855_v21 = vmul.f32 0.2, %v7839_v4  ;;  %v20120_v8 = vld [vmem:[%s28144_s5 + $0x8] sm:$0xff]  }
 0x44f   :  { %v7871_v3 = vmax.f32 %v7839_v4, %v7855_v21  ;;  %v7881_v60 = vpack.c.bf16 %v7873_v5, %v7872_v27  ;;  %v20122_v27 = vld [vmem:[%s28144_s5 + $0x58] sm:$0xff]  }
 0x451   :  { %19574 = vmatprep.subr.bf16.mxu1 %v7881_v60  ;;  %v7880_v28 = vpack.c.bf16 %v7871_v3, %v7870_v19 }
 0x452   :  { %19575 = vmatpush3.bf16.msra.mxu1 %v7881_v60  ;;  %v20123_v60 = vld [vmem:[%s28144_s5 + $0x50] sm:$0xff]  }
 0x453   :  { %19576 = vmatprep.subr.bf16.mxu1 %v7880_v28 }
 0x456   :  { %19577 = vmatpush3.bf16.msra.mxu1 %v7880_v28 }
 0x457   :  { %19578 = vmatprep.subr.bf16.mxu1 %v7879_v59 }
 0x45a   :  { %19579 = vmatpush3.bf16.msra.mxu1 %v7879_v59 }
 0x45b   :  { %19580 = vmatprep.subr.bf16.mxu1 %v7878_v35 }
 0x45e   :  { %19581 = vmatpush3.bf16.msra.mxu1 %v7878_v35 }
 0x45f   :  { %19582 = vmatprep.subr.bf16.mxu1 %v7877_v44 }
 0x462   :  { %19583 = vmatpush3.bf16.msra.mxu1 %v7877_v44  ;;  %v20106_v44 = vld [vmem:[%s28143_s4 + $0xa8] sm:$0xff]  }
 0x463   :  { %19584 = vmatprep.subr.bf16.mxu1 %v7876_v49 }
 0x466   :  { %19585 = vmatpush3.bf16.msra.mxu1 %v7876_v49  ;;  %v20112_v49 = vld [vmem:[%s28143_s4 + $0xd8] sm:$0xff]  }
 0x467   :  { %19586 = vmatprep.subr.bf16.mxu1 %v25918_v48 }
 0x46a   :  { %19587 = vmatpush3.bf16.msra.mxu1 %v25918_v48  ;;  %v20088_v48 = vld [vmem:[%s28143_s4 + $0x20] sm:$0xff]  }
 0x46b   :  { %19588 = vmatprep.subr.bf16.mxu1 %v25923_v39 }
 0x46e   :  { %19589 = vmatpush3.bf16.msra.mxu1 %v25923_v39  ;;  %v20089_v39 = vld [vmem:[%s28143_s4 + $0x28] sm:$0xff]  }
 0x46f   :  { %19750 = vmatprep.subr.bf16.mxu1 %v20117_v54 }
 0x471   :  { %19591 = vmatmul.mubr.bf16.vlgmr.msra.gmra.mxu1 %v20085_v62 }
 0x472   :  { %19594 = vmatprep.mubr.bf16.mxu1 %v20086_v2  ;;  %19751 = vmatpush3.bf16.msra.mxu1 %v20117_v54  ;;  %v20124_v2 = vld [vmem:[%s28144_s5 + $0x48] sm:$0xff]  }
 0x473   :  { %19752 = vmatprep.subr.bf16.mxu1 %v20126_v42 }
 0x476   :  { %19753 = vmatpush3.bf16.msra.mxu1 %v20126_v42 }
 0x477   :  { %19754 = vmatprep.subr.bf16.mxu1 %v20135_v22 }
 0x479   :  { %19595 = vmatmul.mubr.bf16.gmra.mxu1 %v20087_v61 }
 0x47a   :  { %19598 = vmatprep.mubr.bf16.mxu1 %v20088_v48  ;;  %19755 = vmatpush3.bf16.msra.mxu1 %v20135_v22 }
 0x47b   :  { %19756 = vmatprep.subr.bf16.mxu1 %v20144_v10 }
 0x47e   :  { %19757 = vmatpush3.bf16.msra.mxu1 %v20144_v10  ;;  %v20134_v10 = vld [vmem:[%s28144_s5 + $0x80] sm:$0xff]  }
 0x47f   :  { %19774 = vmatprep.subr.bf16.mxu1 %v26068_v55 }
 0x481   :  { %19599 = vmatmul.mubr.bf16.gmra.mxu1 %v20089_v39  ;;  %v20125_v39 = vld [vmem:[%s28144_s5 + $0x40] sm:$0xff]  }
 0x482   :  { %19602 = vmatprep.mubr.bf16.mxu1 %v20090_v56 }
 0x489   :  { %19603 = vmatmul.mubr.bf16.gmra.mxu1 %v20091_v63 }
 0x48a   :  { %19606 = vmatprep.mubr.bf16.mxu1 %v20092_v16  ;;  %v20127_v16 = vld [vmem:[%s28144_s5 + $0x78] sm:$0xff]  }
 0x491   :  { %19607 = vmatmul.mubr.bf16.gmra.mxu1 %v20093_v57 }
 0x492   :  { %19610 = vmatprep.mubr.bf16.mxu1 %v20094_v51 }
 0x499   :  { %19611 = vmatmul.mubr.bf16.gmra.mxu1 %v20095_v9 }
 0x49a   :  { %19614 = vmatprep.mubr.bf16.mxu1 %v20097_v30 }
 0x4a1   :  { %19615 = vmatmul.mubr.bf16.gmra.mxu1 %v20098_v18  ;;  %v20128_v18 = vld [vmem:[%s28144_s5 + $0x70] sm:$0xff]  }
 0x4a2   :  { %19618 = vmatprep.mubr.bf16.mxu1 %v20099_v45 }
 0x4a9   :  { %19619 = vmatmul.mubr.bf16.gmra.mxu1 %v20100_v47 }
 0x4aa   :  { %19622 = vmatprep.mubr.bf16.mxu1 %v20101_v29  ;;  %v20129_v29 = vld [vmem:[%s28144_s5 + $0x68] sm:$0xff]  }
 0x4b1   :  { %19623 = vmatmul.mubr.bf16.gmra.mxu1 %v20102_v13 }
 0x4b2   :  { %19626 = vmatprep.mubr.bf16.mxu1 %v20103_v14 }
 0x4b9   :  { %19627 = vmatmul.mubr.bf16.gmra.mxu1 %v20104_v52  ;;  %v20130_v52 = vld [vmem:[%s28144_s5 + $0x60] sm:$0xff]  }
 0x4ba   :  { %19630 = vmatprep.mubr.bf16.mxu1 %v20105_v41 }
 0x4c1   :  { %19631 = vmatmul.mubr.bf16.gmra.mxu1 %v20106_v44 }
 0x4c2   :  { %19634 = vmatprep.mubr.bf16.mxu1 %v20107_v15  ;;  %v20131_v15 = vld [vmem:[%s28144_s5 + $0x98] sm:$0xff]  }
 0x4c9   :  { %19635 = vmatmul.mubr.bf16.gmra.mxu1 %v20108_v33 }
 0x4ca   :  { %19638 = vmatprep.mubr.bf16.mxu1 %v20109_v20 }
 0x4d1   :  { %19639 = vmatmul.mubr.bf16.gmra.mxu1 %v20110_v12 }
 0x4d2   :  { %19642 = vmatprep.mubr.bf16.mxu1 %v20111_v38  ;;  %v20132_v38 = vld [vmem:[%s28144_s5 + $0x90] sm:$0xff]  }
 0x4d9   :  { %19643 = vmatmul.mubr.bf16.gmra.mxu1 %v20112_v49 }
 0x4da   :  { %19646 = vmatprep.mubr.bf16.mxu1 %v20113_v0 }
 0x4e1   :  { %19647 = vmatmul.mubr.bf16.gmra.mxu1 %v20114_v50  ;;  %v20133_v50 = vld [vmem:[%s28144_s5 + $0x88] sm:$0xff]  }
 0x4e2   :  { %19650 = vmatprep.mubr.bf16.mxu1 %v20115_v36 }
 0x4e9   :  { %19651 = vmatmul.mubr.bf16.gmra.mxu1 %v20116_v31 }
 0x531   :  { %v19592_v32 = vpop.f32.mrf.mxu1 }
 0x533   :  { %v8172_v23 = vpop.f32.mrf.mxu1 }
 0x535   :  { %v19593_v17 = vpop.f32.mrf.mxu1 }
 0x536   :  { %v8428_v3 = vpack.c.bf16 %v19593_v17, %v19592_v32 }
 0x537   :  { %v8175_v11 = vpop.f32.mrf.mxu1 }
 0x538   :  { %v8427_v59 = vpack.c.bf16 %v8175_v11, %v8172_v23  ;;  %v20150_v23 = vld [vmem:[%s28144_s5 + $0x150] sm:$0xff]   ;;  %v20136_v11 = vld [vmem:[%s28144_s5 + $0xb8] sm:$0xff]  }
 0x539   :  { %v19596_v53 = vpop.f32.mrf.mxu1 }
 0x53b   :  { %v8188_v58 = vpop.f32.mrf.mxu1 }
 0x53d   :  { %v19597_v26 = vpop.f32.mrf.mxu1 }
 0x53e   :  { %v8430_v37 = vpack.c.bf16 %v19597_v26, %v19596_v53 }
 0x53f   :  { %v8191_v6 = vpop.f32.mrf.mxu1 }
 0x540   :  { %v8429_v7 = vpack.c.bf16 %v8191_v6, %v8188_v58  ;;  %v20152_v58 = vld [vmem:[%s28144_s5 + $0x148] sm:$0xff]  }
 0x541   :  { %v19600_v43 = vpop.f32.mrf.mxu1 }
 0x542   :  { %19662 = vmatprep.mubr.msk.bf16.mxu0 %vm1519_vm0, %v8429_v7 }
 0x543   :  { %19663 = vmatmul.mubr.msk.bf16.vlgmr.msra.gmra.mxu0 %vm1519_vm0, %v8430_v37  ;;  %v8204_v40 = vpop.f32.mrf.mxu1  ;;  %v20137_v37 = vld [vmem:[%s28144_s5 + $0xb0] sm:$0xff]  }
 0x544   :  { %19667 = vmatpush3.bf16.msra.mxu0 %v20118_v34  ;;  %19674 = vmatprep.mubr.msk.bf16.mxu0 %vm1519_vm0, %v8427_v59 }
 0x545   :  { %19668 = vmatprep.subr.bf16.mxu0 %v20119_v1  ;;  %v19601_v46 = vpop.f32.mrf.mxu1 }
 0x546   :  { %v8432_v30 = vpack.c.bf16 %v19601_v46, %v19600_v43  ;;  %v20154_v43 = vld [vmem:[%s28144_s5 + $0x140] sm:$0xff]   ;;  %v20156_v46 = vld [vmem:[%s28144_s5 + $0x198] sm:$0xff]  }
 0x547   :  { %v8207_v35 = vpop.f32.mrf.mxu1 }
 0x548   :  { %19669 = vmatpush3.bf16.msra.mxu0 %v20119_v1  ;;  %v8431_v19 = vpack.c.bf16 %v8207_v35, %v8204_v40  ;;  %v20138_v40 = vld [vmem:[%s28144_s5 + $0xa8] sm:$0xff]  }
 0x549   :  { %19670 = vmatprep.subr.bf16.mxu0 %v20120_v8  ;;  %v26083_v24 = vpop.f32.mrf.mxu1 }
 0x54b   :  { %v8220_v4 = vpop.f32.mrf.mxu1 }
 0x54c   :  { %19671 = vmatpush3.bf16.msra.mxu0 %v20120_v8 }
 0x54d   :  { %19672 = vmatprep.subr.bf16.mxu0 %v20121_v25  ;;  %v19605_v5 = vpop.f32.mrf.mxu1 }
 0x54e   :  { %v8434_v12 = vpack.c.bf16 %v19605_v5, %v26083_v24  ;;  %v20158_v5 = vld [vmem:[%s28144_s5 + $0x190] sm:$0xff]  }
 0x54f   :  { %v8223_v21 = vpop.f32.mrf.mxu1 }
 0x550   :  { %19673 = vmatpush3.bf16.msra.mxu0 %v20121_v25  ;;  %v8433_v9 = vpack.c.bf16 %v8223_v21, %v8220_v4  ;;  %v20139_v4 = vld [vmem:[%s28144_s5 + $0xa0] sm:$0xff]  }
 0x551   :  { %19678 = vmatprep.subr.bf16.mxu0 %v20122_v27  ;;  %v26091_v28 = vpop.f32.mrf.mxu1 }
 0x553   :  { %19675 = vmatmul.mubr.msk.bf16.vlgmr.msra.gmra.mxu0 %vm1519_vm0, %v8428_v3  ;;  %v8236_v62 = vpop.f32.mrf.mxu1 }
 0x554   :  { %19679 = vmatpush3.bf16.msra.mxu0 %v20122_v27  ;;  %19686 = vmatprep.mubr.msk.bf16.mxu0 %vm1519_vm0, %v8431_v19  ;;  %v20140_v19 = vld [vmem:[%s28144_s5 + $0xd8] sm:$0xff]  }
 0x555   :  { %19680 = vmatprep.subr.bf16.mxu0 %v20123_v60  ;;  %v26098_v61 = vpop.f32.mrf.mxu1 }
 0x556   :  { %v8436_v7 = vpack.c.bf16 %v26098_v61, %v26091_v28  ;;  %v20160_v28 = vld [vmem:[%s28144_s5 + $0x188] sm:$0xff]  }
 0x557   :  { %v8239_v48 = vpop.f32.mrf.mxu1 }
 0x558   :  { %19681 = vmatpush3.bf16.msra.mxu0 %v20123_v60  ;;  %v8435_v20 = vpack.c.bf16 %v8239_v48, %v8236_v62  ;;  %v20141_v48 = vld [vmem:[%s28144_s5 + $0xd0] sm:$0xff]  }
 0x559   :  { %19682 = vmatprep.subr.bf16.mxu0 %v20124_v2  ;;  %v26103_v56 = vpop.f32.mrf.mxu1 }
 0x55b   :  { %v26105_v63 = vpop.f32.mrf.mxu1 }
 0x55c   :  { %19683 = vmatpush3.bf16.msra.mxu0 %v20124_v2 }
 0x55d   :  { %19684 = vmatprep.subr.bf16.mxu0 %v20125_v39  ;;  %v26110_v57 = vpop.f32.mrf.mxu1 }
 0x55e   :  { %v8438_v61 = vpack.c.bf16 %v26110_v57, %v26103_v56  ;;  %v20142_v56 = vld [vmem:[%s28144_s5 + $0xc8] sm:$0xff]  }
 0x55f   :  { %v26112_v51 = vpop.f32.mrf.mxu1 }
 0x560   :  { %19685 = vmatpush3.bf16.msra.mxu0 %v20125_v39 }
 0x561   :  { %19690 = vmatprep.subr.bf16.mxu0 %v20127_v16  ;;  %v26117_v45 = vpop.f32.mrf.mxu1 }
 0x563   :  { %19687 = vmatmul.mubr.msk.bf16.vlgmr.msra.gmra.mxu0 %vm1519_vm0, %v8432_v30  ;;  %v26120_v47 = vpop.f32.mrf.mxu1 }
 0x564   :  { %19691 = vmatpush3.bf16.msra.mxu0 %v20127_v16  ;;  %19698 = vmatprep.mubr.msk.bf16.mxu0 %vm1519_vm0, %v8433_v9 }
 0x565   :  { %19692 = vmatprep.subr.bf16.mxu0 %v20128_v18  ;;  %v26126_v13 = vpop.f32.mrf.mxu1 }
 0x567   :  { %v26128_v14 = vpop.f32.mrf.mxu1 }
 0x568   :  { %19693 = vmatpush3.bf16.msra.mxu0 %v20128_v18  ;;  %v8439_v2 = vpack.c.bf16 %v26128_v14, %v26120_v47  ;;  %v20143_v47 = vld [vmem:[%s28144_s5 + $0xc0] sm:$0xff]   ;;  %v20166_v14 = vld [vmem:[%s28144_s5 + $0x1d0] sm:$0xff]  }
 0x569   :  { %19694 = vmatprep.subr.bf16.mxu0 %v20129_v29  ;;  %v26133_v41 = vpop.f32.mrf.mxu1 }
 0x56b   :  { %v26135_v44 = vpop.f32.mrf.mxu1 }
 0x56c   :  { %19695 = vmatpush3.bf16.msra.mxu0 %v20129_v29 }
 0x56d   :  { %19696 = vmatprep.subr.bf16.mxu0 %v20130_v52  ;;  %v26140_v54 = vpop.f32.mrf.mxu1 }
 0x56e   :  { %v8442_v34 = vpack.c.bf16 %v26140_v54, %v26133_v41  ;;  %v20159_v41 = vld [vmem:[%s28144_s5 + $0x178] sm:$0xff]  }
 0x56f   :  { %v26144_v33 = vpop.f32.mrf.mxu1 }
 0x570   :  { %19697 = vmatpush3.bf16.msra.mxu0 %v20130_v52 }
 0x571   :  { %19702 = vmatprep.subr.bf16.mxu0 %v20131_v15  ;;  %v19624_v49 = vpop.f32.mrf.mxu1 }
 0x573   :  { %19699 = vmatmul.mubr.msk.bf16.vlgmr.msra.gmra.mxu0 %vm1519_vm0, %v8434_v12  ;;  %v8300_v0 = vpop.f32.mrf.mxu1 }
 0x574   :  { %19703 = vmatpush3.bf16.msra.mxu0 %v20131_v15  ;;  %19710 = vmatprep.mubr.msk.bf16.mxu0 %vm1519_vm0, %v8435_v20  ;;  %v20145_v15 = vld [vmem:[%s28144_s5 + $0xf8] sm:$0xff]  }
 0x575   :  { %19704 = vmatprep.subr.bf16.mxu0 %v20132_v38  ;;  %v19625_v36 = vpop.f32.mrf.mxu1 }
 0x576   :  { %v8444_v42 = vpack.c.bf16 %v19625_v36, %v19624_v49  ;;  %v20146_v36 = vld [vmem:[%s28144_s5 + $0xf0] sm:$0xff]  }
 0x577   :  { %v8303_v31 = vpop.f32.mrf.mxu1 }
 0x578   :  { %19705 = vmatpush3.bf16.msra.mxu0 %v20132_v38  ;;  %v8443_v22 = vpack.c.bf16 %v8303_v31, %v8300_v0  ;;  %v20168_v38 = vld [vmem:[%s28144_s5 + $0x1c8] sm:$0xff]   ;;  %v8441_v0 = vpack.c.bf16 %v26144_v33, %v26135_v44  ;;  %v20170_v31 = vld [vmem:[%s28144_s5 + $0x1c0] sm:$0xff]  }
 0x579   :  { %19706 = vmatprep.subr.bf16.mxu0 %v20133_v50  ;;  %v26158_v32 = vpop.f32.mrf.mxu1 }
 0x57a   :  { %19758 = vmatprep.mubr.msk.bf16.mxu1 %vm1519_vm0, %v8443_v22 }
 0x57b   :  { %v26164_v17 = vpop.f32.mrf.mxu1  ;;  %19759 = vmatmul.mubr.msk.bf16.vlgmr.msra.gmra.mxu1 %vm1519_vm0, %v8444_v42 }
 0x57c   :  { %19707 = vmatpush3.bf16.msra.mxu0 %v20133_v50  ;;  %19775 = vmatpush3.bf16.msra.mxu1 %v26068_v55  ;;  %v8437_v55 = vpack.c.bf16 %v26112_v51, %v26105_v63  ;;  %v20162_v63 = vld [vmem:[%s28144_s5 + $0x180] sm:$0xff]   ;;  %v20164_v51 = vld [vmem:[%s28144_s5 + $0x1d8] sm:$0xff]   ;;  %v8440_v50 = vpack.c.bf16 %v26126_v13, %v26117_v45  ;;  %v20147_v45 = vld [vmem:[%s28144_s5 + $0xe8] sm:$0xff]  }
 0x57d   :  { %19708 = vmatprep.subr.bf16.mxu0 %v20134_v10  ;;  %v26171_v53 = vpop.f32.mrf.mxu1  ;;  %19776 = vmatprep.subr.bf16.mxu1 %v20150_v23 }
 0x57e   :  { %v8446_v26 = vpack.c.bf16 %v26171_v53, %v26158_v32  ;;  %v20167_v32 = vld [vmem:[%s28144_s5 + $0x1b8] sm:$0xff]  }
 0x57f   :  { %v26178_v6 = vpop.f32.mrf.mxu1 }
 0x580   :  { %19709 = vmatpush3.bf16.msra.mxu0 %v20134_v10  ;;  %19777 = vmatpush3.bf16.msra.mxu1 %v20150_v23  ;;  %v20149_v23 = vld [vmem:[%s28144_s5 + $0xe0] sm:$0xff]  }
 0x581   :  { %19714 = vmatprep.subr.bf16.mxu0 %v20136_v11  ;;  %v19632_v1 = vpop.f32.mrf.mxu1  ;;  %19778 = vmatprep.subr.bf16.mxu1 %v20152_v58 }
 0x583   :  { %19711 = vmatmul.mubr.msk.bf16.vlgmr.msra.gmra.mxu0 %vm1519_vm0, %v8436_v7  ;;  %v8332_v59 = vpop.f32.mrf.mxu1  ;;  %v20155_v7 = vld [vmem:[%s28144_s5 + $0x128] sm:$0xff]  }
 0x584   :  { %19715 = vmatpush3.bf16.msra.mxu0 %v20136_v11  ;;  %19722 = vmatprep.mubr.msk.bf16.mxu0 %vm1519_vm0, %v8437_v55  ;;  %v20151_v11 = vld [vmem:[%s28144_s5 + $0x138] sm:$0xff]   ;;  %v20153_v55 = vld [vmem:[%s28144_s5 + $0x130] sm:$0xff]  }
 0x585   :  { %19716 = vmatprep.subr.bf16.mxu0 %v20137_v37  ;;  %19779 = vmatpush3.bf16.msra.mxu1 %v20152_v58  ;;  %v19633_v8 = vpop.f32.mrf.mxu1  ;;  %v8445_v58 = vpack.c.bf16 %v26178_v6, %v26164_v17  ;;  %v20157_v17 = vld [vmem:[%s28144_s5 + $0x120] sm:$0xff]   ;;  %v20163_v6 = vld [vmem:[%s28144_s5 + $0x168] sm:$0xff]  }
 0x586   :  { %19780 = vmatprep.subr.bf16.mxu1 %v20154_v43  ;;  %v8448_v25 = vpack.c.bf16 %v19633_v8, %v19632_v1 }
 0x587   :  { %v8335_v35 = vpop.f32.mrf.mxu1 }
 0x588   :  { %19717 = vmatpush3.bf16.msra.mxu0 %v20137_v37  ;;  %v8447_v24 = vpack.c.bf16 %v8335_v35, %v8332_v59  ;;  %v20165_v37 = vld [vmem:[%s28144_s5 + $0x160] sm:$0xff]  }
 0x589   :  { %19718 = vmatprep.subr.bf16.mxu0 %v20138_v40  ;;  %19781 = vmatpush3.bf16.msra.mxu1 %v20154_v43  ;;  %v26201_v27 = vpop.f32.mrf.mxu1  ;;  %v20171_v43 = vld [vmem:[%s28144_s5 + $0x1a8] sm:$0xff]  }
 0x58a   :  { %19782 = vmatprep.mubr.msk.bf16.mxu1 %vm1519_vm0, %v8447_v24  ;;  %19798 = vmatprep.subr.bf16.mxu1 %v20156_v46  ;;  %v20174_v24 = vld [vmem:[%s28144_s5 + $0x1f0] sm:$0xff]  }
 0x58b   :  { %v26207_v21 = vpop.f32.mrf.mxu1 }
 0x58c   :  { %19719 = vmatpush3.bf16.msra.mxu0 %v20138_v40  ;;  %19783 = vmatmul.mubr.msk.bf16.vlgmr.msra.gmra.mxu1 %vm1519_vm0, %v8448_v25  ;;  %v20172_v40 = vld [vmem:[%s28144_s5 + $0x1a0] sm:$0xff]  }
 0x58d   :  { %19720 = vmatprep.subr.bf16.mxu0 %v20139_v4  ;;  %19799 = vmatpush3.bf16.msra.mxu1 %v20156_v46  ;;  %v26213_v3 = vpop.f32.mrf.mxu1  ;;  %v20173_v46 = vld [vmem:[%s28144_s5 + $0x1f8] sm:$0xff]  }
 0x58e   :  { %v8450_v60 = vpack.c.bf16 %v26213_v3, %v26201_v27  ;;  %19800 = vmatprep.subr.bf16.mxu1 %v20158_v5  ;;  %v20176_v27 = vld [vmem:[%s28144_s5 + $0x1e0] sm:$0xff]  }
 0x58f   :  { %v26220_v62 = vpop.f32.mrf.mxu1 }
 0x590   :  { %19721 = vmatpush3.bf16.msra.mxu0 %v20139_v4  ;;  %v8449_v54 = vpack.c.bf16 %v26220_v62, %v26207_v21  ;;  %v20175_v4 = vld [vmem:[%s28144_s5 + $0x1e8] sm:$0xff]  }
 0x591   :  { %19726 = vmatprep.subr.bf16.mxu0 %v20140_v19  ;;  %19801 = vmatpush3.bf16.msra.mxu1 %v20158_v5  ;;  %v19640_v39 = vpop.f32.mrf.mxu1 }
 0x592   :  { %19802 = vmatprep.subr.bf16.mxu1 %v20160_v28 }
 0x593   :  { %19723 = vmatmul.mubr.msk.bf16.vlgmr.msra.gmra.mxu0 %vm1519_vm0, %v8438_v61  ;;  %v8364_v16 = vpop.f32.mrf.mxu1 }
 0x594   :  { %19727 = vmatpush3.bf16.msra.mxu0 %v20140_v19  ;;  %19734 = vmatprep.mubr.msk.bf16.mxu0 %vm1519_vm0, %v8439_v2 }
 0x595   :  { %19728 = vmatprep.subr.bf16.mxu0 %v20141_v48  ;;  %19803 = vmatpush3.bf16.msra.mxu1 %v20160_v28  ;;  %v19641_v57 = vpop.f32.mrf.mxu1 }
 0x596   :  { %19804 = vmatprep.subr.bf16.mxu1 %v20162_v63  ;;  %v8452_v30 = vpack.c.bf16 %v19641_v57, %v19640_v39 }
 0x597   :  { %v8367_v9 = vpop.f32.mrf.mxu1 }
 0x598   :  { %19729 = vmatpush3.bf16.msra.mxu0 %v20141_v48  ;;  %v8451_v18 = vpack.c.bf16 %v8367_v9, %v8364_v16 }
 0x599   :  { %19730 = vmatprep.subr.bf16.mxu0 %v20142_v56  ;;  %19805 = vmatpush3.bf16.msra.mxu1 %v20162_v63  ;;  %v26243_v29 = vpop.f32.mrf.mxu1 }
 0x59a   :  { %19806 = vmatprep.mubr.msk.bf16.mxu1 %vm1519_vm0, %v8451_v18  ;;  %19822 = vmatprep.subr.bf16.mxu1 %v20164_v51 }
 0x59b   :  { %v26249_v52 = vpop.f32.mrf.mxu1 }
 0x59c   :  { %19731 = vmatpush3.bf16.msra.mxu0 %v20142_v56  ;;  %19807 = vmatmul.mubr.msk.bf16.vlgmr.msra.gmra.mxu1 %vm1519_vm0, %v8452_v30 }
 0x59d   :  { %19732 = vmatprep.subr.bf16.mxu0 %v20143_v47  ;;  %19823 = vmatpush3.bf16.msra.mxu1 %v20164_v51  ;;  %v26255_v20 = vpop.f32.mrf.mxu1  ;;  %v20177_v51 = vld [vmem:[%s28145_s6] sm:$0xff]  }
 0x59e   :  { %v8454_v12 = vpack.c.bf16 %v26255_v20, %v26243_v29  ;;  %19824 = vmatprep.subr.bf16.mxu1 %v20166_v14 }
 0x59f   :  { %v26262_v49 = vpop.f32.mrf.mxu1 }
 0x5a0   :  { %19733 = vmatpush3.bf16.msra.mxu0 %v20143_v47  ;;  %v8453_v53 = vpack.c.bf16 %v26262_v49, %v26249_v52 }
 0x5a1   :  { %19738 = vmatprep.subr.bf16.mxu0 %v20145_v15  ;;  %19825 = vmatpush3.bf16.msra.mxu1 %v20166_v14  ;;  %v19648_v42 = vpop.f32.mrf.mxu1 }
 0x5a2   :  { %19826 = vmatprep.subr.bf16.mxu1 %v20168_v38 }
 0x5a3   :  { %19735 = vmatmul.mubr.msk.bf16.vlgmr.msra.gmra.mxu0 %vm1519_vm0, %v8440_v50  ;;  %v8396_v22 = vpop.f32.mrf.mxu1 }
 0x5a4   :  { %19739 = vmatpush3.bf16.msra.mxu0 %v20145_v15  ;;  %19746 = vmatprep.mubr.msk.bf16.mxu0 %vm1519_vm0, %v8441_v0 }
 0x5a5   :  { %19740 = vmatprep.subr.bf16.mxu0 %v20146_v36  ;;  %19827 = vmatpush3.bf16.msra.mxu1 %v20168_v38  ;;  %v19649_v13 = vpop.f32.mrf.mxu1 }
 0x5a6   :  { %19828 = vmatprep.subr.bf16.mxu1 %v20170_v31  ;;  %v8456_v33 = vpack.c.bf16 %v19649_v13, %v19648_v42 }
 0x5a7   :  { %v8399_v44 = vpop.f32.mrf.mxu1 }
 0x5a8   :  { %19741 = vmatpush3.bf16.msra.mxu0 %v20146_v36  ;;  %v8455_v10 = vpack.c.bf16 %v8399_v44, %v8396_v22 }
 0x5a9   :  { %19742 = vmatprep.subr.bf16.mxu0 %v20147_v45  ;;  %19829 = vmatpush3.bf16.msra.mxu1 %v20170_v31  ;;  %v19652_v1 = vpop.f32.mrf.mxu1 }
 0x5aa   :  { %19830 = vmatprep.mubr.msk.bf16.mxu1 %vm1519_vm0, %v8455_v10 }
 0x5ab   :  { %v8412_v59 = vpop.f32.mrf.mxu1 }
 0x5ac   :  { %19743 = vmatpush3.bf16.msra.mxu0 %v20147_v45  ;;  %19831 = vmatmul.mubr.msk.bf16.vlgmr.msra.gmra.mxu1 %vm1519_vm0, %v8456_v33 }
 0x5ad   :  { %19744 = vmatprep.subr.bf16.mxu0 %v20149_v23  ;;  %v19653_v8 = vpop.f32.mrf.mxu1  ;;  %19850 = vmatprep.mubr.msk.bf16.mxu1 %vm5415_vm1, %v20177_v51 }
 0x5ae   :  { %v8458_v5 = vpack.c.bf16 %v19653_v8, %v19652_v1 }
 0x5af   :  { %v8415_v35 = vpop.f32.mrf.mxu1 }
 0x5b0   :  { %19745 = vmatpush3.bf16.msra.mxu0 %v20149_v23  ;;  %v8457_v25 = vpack.c.bf16 %v8415_v35, %v8412_v59 }
 0x5b1   :  { %19762 = vmatprep.subr.bf16.mxu0 %v20151_v11 }
 0x5b3   :  { %19747 = vmatmul.mubr.msk.bf16.vlgmr.msra.gmra.mxu0 %vm1519_vm0, %v8442_v34  ;;  %v20161_v34 = vld [vmem:[%s28144_s5 + $0x170] sm:$0xff]  }
 0x5b4   :  { %19763 = vmatpush3.bf16.msra.mxu0 %v20151_v11  ;;  %19770 = vmatprep.mubr.msk.bf16.mxu0 %vm1519_vm0, %v8445_v58 }
 0x5b5   :  { %19764 = vmatprep.subr.bf16.mxu0 %v20153_v55 }
 0x5b8   :  { %19765 = vmatpush3.bf16.msra.mxu0 %v20153_v55 }
 0x5b9   :  { %19766 = vmatprep.subr.bf16.mxu0 %v20155_v7 }
 0x5bc   :  { %19767 = vmatpush3.bf16.msra.mxu0 %v20155_v7 }
 0x5bd   :  { %19768 = vmatprep.subr.bf16.mxu0 %v20157_v17 }
 0x5c0   :  { %19769 = vmatpush3.bf16.msra.mxu0 %v20157_v17 }
 0x5c1   :  { %19786 = vmatprep.subr.bf16.mxu0 %v20159_v41 }
 0x5c3   :  { %19771 = vmatmul.mubr.msk.bf16.vlgmr.msra.gmra.mxu0 %vm1519_vm0, %v8446_v26  ;;  %v20169_v26 = vld [vmem:[%s28144_s5 + $0x1b0] sm:$0xff]  }
 0x5c4   :  { %19787 = vmatpush3.bf16.msra.mxu0 %v20159_v41  ;;  %19794 = vmatprep.mubr.msk.bf16.mxu0 %vm1519_vm0, %v8449_v54 }
 0x5c5   :  { %19788 = vmatprep.subr.bf16.mxu0 %v20161_v34 }
 0x5c8   :  { %19789 = vmatpush3.bf16.msra.mxu0 %v20161_v34 }
 0x5c9   :  { %19790 = vmatprep.subr.bf16.mxu0 %v20163_v6 }
 0x5cc   :  { %19791 = vmatpush3.bf16.msra.mxu0 %v20163_v6 }
 0x5cd   :  { %19792 = vmatprep.subr.bf16.mxu0 %v20165_v37 }
 0x5d0   :  { %19793 = vmatpush3.bf16.msra.mxu0 %v20165_v37 }
 0x5d1   :  { %19810 = vmatprep.subr.bf16.mxu0 %v20167_v32 }
 0x5d3   :  { %19795 = vmatmul.mubr.msk.bf16.vlgmr.msra.gmra.mxu0 %vm1519_vm0, %v8450_v60 }
 0x5d4   :  { %19811 = vmatpush3.bf16.msra.mxu0 %v20167_v32  ;;  %19818 = vmatprep.mubr.msk.bf16.mxu0 %vm1519_vm0, %v8453_v53 }
 0x5d5   :  { %19812 = vmatprep.subr.bf16.mxu0 %v20169_v26 }
 0x5d8   :  { %19813 = vmatpush3.bf16.msra.mxu0 %v20169_v26 }
 0x5d9   :  { %19814 = vmatprep.subr.bf16.mxu0 %v20171_v43 }
 0x5dc   :  { %19815 = vmatpush3.bf16.msra.mxu0 %v20171_v43 }
 0x5dd   :  { %19816 = vmatprep.subr.bf16.mxu0 %v20172_v40 }
 0x5e0   :  { %19817 = vmatpush3.bf16.msra.mxu0 %v20172_v40 }
 0x5e1   :  { %19834 = vmatprep.subr.bf16.mxu0 %v20173_v46 }
 0x5e3   :  { %19819 = vmatmul.mubr.msk.bf16.vlgmr.msra.gmra.mxu0 %vm1519_vm0, %v8454_v12 }
 0x5e4   :  { %19835 = vmatpush3.bf16.msra.mxu0 %v20173_v46  ;;  %19842 = vmatprep.mubr.msk.bf16.mxu0 %vm1519_vm0, %v8457_v25 }
 0x5e5   :  { %19836 = vmatprep.subr.bf16.mxu0 %v20174_v24 }
 0x5e8   :  { %19837 = vmatpush3.bf16.msra.mxu0 %v20174_v24 }
 0x5e9   :  { %19838 = vmatprep.subr.bf16.mxu0 %v20175_v4 }
 0x5ec   :  { %19839 = vmatpush3.bf16.msra.mxu0 %v20175_v4 }
 0x5ed   :  { %19840 = vmatprep.subr.bf16.mxu0 %v20176_v27 }
 0x5f0   :  { %19841 = vmatpush3.bf16.msra.mxu0 %v20176_v27 }
 0x5f3   :  { %19843 = vmatmul.mubr.msk.bf16.vlgmr.msra.gmra.mxu0 %vm1519_vm0, %v8458_v5 }
 0x603   :  { %v19664_v21 = vpop.f32.mrf.mxu0 }
 0x605   :  { %v8541_v19 = vpop.f32.mrf.mxu0 }
 0x607   :  { %v19665_v3 = vpop.f32.mrf.mxu0 }
 0x609   :  { %v8544_v60 = vpop.f32.mrf.mxu0 }
 0x613   :  { %v19676_v28 = vpop.f32.mrf.mxu0 }
 0x614   :  { %v8629_v58 = vadd.f32 %v19676_v28, %v19664_v21 }
 0x615   :  { %v8620_v62 = vpop.f32.mrf.mxu0 }
 0x616   :  { %v8621_v7 = vadd.f32 %v8620_v62, %v8541_v19 }
 0x617   :  { %v19677_v2 = vpop.f32.mrf.mxu0 }
 0x618   :  { %v8632_v54 = vadd.f32 %v19677_v2, %v19665_v3 }
 0x619   :  { %v8623_v61 = vpop.f32.mrf.mxu0 }
 0x61a   :  { %v8624_v32 = vadd.f32 %v8623_v61, %v8544_v60 }
 0x623   :  { %v19688_v48 = vpop.f32.mrf.mxu0 }
 0x624   :  { %v8725_v17 = vadd.f32 %v19688_v48, %v8629_v58 }
 0x625   :  { %v8708_v39 = vpop.f32.mrf.mxu0 }
 0x626   :  { %v8723_v34 = vadd.f32 %v8708_v39, %v8621_v7 }
 0x627   :  { %v19689_v63 = vpop.f32.mrf.mxu0 }
 0x628   :  { %v8726_v53 = vadd.f32 %v19689_v63, %v8632_v54 }
 0x629   :  { %v8711_v16 = vpop.f32.mrf.mxu0 }
 0x62a   :  { %v8724_v40 = vadd.f32 %v8711_v16, %v8624_v32 }
 0x633   :  { %v19700_v56 = vpop.f32.mrf.mxu0 }
 0x634   :  { %v8817_v6 = vadd.f32 %v19700_v56, %v8725_v17 }
 0x635   :  { %v8800_v57 = vpop.f32.mrf.mxu0 }
 0x636   :  { %v8815_v26 = vadd.f32 %v8800_v57, %v8723_v34 }
 0x637   :  { %v19701_v9 = vpop.f32.mrf.mxu0 }
 0x638   :  { %v8818_v8 = vadd.f32 %v19701_v9, %v8726_v53 }
 0x639   :  { %v8803_v30 = vpop.f32.mrf.mxu0 }
 0x63a   :  { %v8816_v25 = vadd.f32 %v8803_v30, %v8724_v40 }
 0x63b   :  { %v19760_v31 = vpop.f32.mrf.mxu1 }
 0x63d   :  { %v9260_v45 = vpop.f32.mrf.mxu1 }
 0x63f   :  { %v19761_v44 = vpop.f32.mrf.mxu1 }
 0x641   :  { %v9263_v10 = vpop.f32.mrf.mxu1 }
 0x643   :  { %v19712_v18 = vpop.f32.mrf.mxu0 }
 0x644   :  { %v8909_v1 = vadd.f32 %v19712_v18, %v8817_v6 }
 0x645   :  { %v8892_v47 = vpop.f32.mrf.mxu0 }
 0x646   :  { %v8907_v46 = vadd.f32 %v8892_v47, %v8815_v26 }
 0x647   :  { %v19713_v29 = vpop.f32.mrf.mxu0 }
 0x648   :  { %v8910_v24 = vadd.f32 %v19713_v29, %v8818_v8 }
 0x649   :  { %v8895_v14 = vpop.f32.mrf.mxu0 }
 0x64a   :  { %v8908_v19 = vadd.f32 %v8895_v14, %v8816_v25 }
 0x64c   :  { %v19784_v11 = vpop.f32.mrf.mxu1 }
 0x64e   :  { %v9444_v41 = vpop.f32.mrf.mxu1 }
 0x650   :  { %v19785_v43 = vpop.f32.mrf.mxu1 }
 0x652   :  { %v9447_v5 = vpop.f32.mrf.mxu1 }
 0x653   :  { %v19724_v52 = vpop.f32.mrf.mxu0 }
 0x654   :  { %v9001_v35 = vadd.f32 %v19724_v52, %v8909_v1 }
 0x655   :  { %v8984_v15 = vpop.f32.mrf.mxu0 }
 0x656   :  { %v8999_v4 = vadd.f32 %v8984_v15, %v8907_v46 }
 0x657   :  { %v19725_v20 = vpop.f32.mrf.mxu0 }
 0x658   :  { %v9002_v3 = vadd.f32 %v19725_v20, %v8910_v24 }
 0x659   :  { %v8987_v12 = vpop.f32.mrf.mxu0 }
 0x65a   :  { %v9000_v2 = vadd.f32 %v8987_v12, %v8908_v19 }
 0x65c   :  { %v19808_v60 = vpop.f32.mrf.mxu1 }
 0x65e   :  { %v9628_v57 = vpop.f32.mrf.mxu1 }
 0x660   :  { %v19809_v52 = vpop.f32.mrf.mxu1 }
 0x663   :  { %v19736_v38 = vpop.f32.mrf.mxu0 }
 0x664   :  { %v9093_v27 = vadd.f32 %v19736_v38, %v9001_v35 }
 0x665   :  { %v9076_v49 = vpop.f32.mrf.mxu0 }
 0x666   :  { %v9091_v28 = vadd.f32 %v9076_v49, %v8999_v4 }
 0x667   :  { %v19737_v0 = vpop.f32.mrf.mxu0 }
 0x668   :  { %v9094_v61 = vadd.f32 %v19737_v0, %v9002_v3 }
 0x669   :  { %v9079_v50 = vpop.f32.mrf.mxu0 }
 0x66a   :  { %v9092_v63 = vadd.f32 %v9079_v50, %v9000_v2 }
 0x673   :  { %v19748_v36 = vpop.f32.mrf.mxu0 }
 0x674   :  { %v9185_v62 = vadd.f32 %v19748_v36, %v9093_v27  ;;  %v9631_v36 = vpop.f32.mrf.mxu1 }
 0x675   :  { %v9168_v42 = vpop.f32.mrf.mxu0 }
 0x676   :  { %v9183_v48 = vadd.f32 %v9168_v42, %v9091_v28  ;;  %v9277_v56 = vadd.f32 %v19760_v31, %v9185_v62  ;;  %v19832_v31 = vpop.f32.mrf.mxu1 }
 0x677   :  { %v19749_v22 = vpop.f32.mrf.mxu0 }
 0x678   :  { %v9186_v16 = vadd.f32 %v19749_v22, %v9094_v61  ;;  %v9275_v30 = vadd.f32 %v9260_v45, %v9183_v48  ;;  %v9812_v17 = vpop.f32.mrf.mxu1 }
 0x679   :  { %v9171_v13 = vpop.f32.mrf.mxu0 }
 0x67a   :  { %v9184_v51 = vadd.f32 %v9171_v13, %v9092_v63  ;;  %v9278_v29 = vadd.f32 %v19761_v44, %v9186_v16 }
 0x67c   :  { %v9276_v20 = vadd.f32 %v9263_v10, %v9184_v51  ;;  %v20180_v51 = vld [vmem:[%s28145_s6 + $0x18] sm:$0xff]  }
 0x683   :  { %v19772_v33 = vpop.f32.mrf.mxu0 }
 0x684   :  { %v9369_v9 = vadd.f32 %v19772_v33, %v9277_v56  ;;  %v20178_v56 = vld [vmem:[%s28145_s6 + $0x8] sm:$0xff]  }
 0x685   :  { %v9352_v23 = vpop.f32.mrf.mxu0 }
 0x686   :  { %v9367_v47 = vadd.f32 %v9352_v23, %v9275_v30  ;;  %v9461_v38 = vadd.f32 %v19784_v11, %v9369_v9  ;;  %v20181_v9 = vld [vmem:[%s28145_s6 + $0x20] sm:$0xff]   ;;  %v20182_v30 = vld [vmem:[%s28145_s6 + $0x28] sm:$0xff]  }
 0x687   :  { %v19773_v55 = vpop.f32.mrf.mxu0 }
 0x688   :  { %v9370_v15 = vadd.f32 %v19773_v55, %v9278_v29  ;;  %v9459_v0 = vadd.f32 %v9444_v41, %v9367_v47  ;;  %v19833_v41 = vpop.f32.mrf.mxu1  ;;  %v20184_v47 = vld [vmem:[%s28145_s6 + $0x38] sm:$0xff]   ;;  %v20185_v29 = vld [vmem:[%s28145_s6 + $0x40] sm:$0xff]  }
 0x689   :  { %v9355_v37 = vpop.f32.mrf.mxu0 }
 0x68a   :  { %v9368_v49 = vadd.f32 %v9355_v37, %v9276_v20  ;;  %v9462_v22 = vadd.f32 %v19785_v43, %v9370_v15  ;;  %v8459_v37 = vld [vmem:[%s28149_s10 + $0x2] ss:$0 sm:$0xff]  ;;  %v9815_v46 = vpop.f32.mrf.mxu1  ;;  %v20188_v15 = vld [vmem:[%s28145_s6 + $0x58] sm:$0xff]  }
 0x68b   :  { %v20189_v20 = vld [vmem:[%s28145_s6 + $0x60] sm:$0xff]  }
 0x68c   :  { %v9460_v13 = vadd.f32 %v9447_v5, %v9368_v49  ;;  %v20191_v49 = vld [vmem:[%s28145_s6 + $0x70] sm:$0xff]  }
 0x693   :  { %v19796_v59 = vpop.f32.mrf.mxu0 }
 0x694   :  { %v9553_v12 = vadd.f32 %v19796_v59, %v9461_v38  ;;  %v20190_v38 = vld [vmem:[%s28145_s6 + $0x68] sm:$0xff]  }
 0x695   :  { %v9536_v21 = vpop.f32.mrf.mxu0 }
 0x696   :  { %v9551_v50 = vadd.f32 %v9536_v21, %v9459_v0  ;;  %v9645_v33 = vadd.f32 %v19808_v60, %v9553_v12  ;;  %v20192_v12 = vld [vmem:[%s28145_s6 + $0x78] sm:$0xff]   ;;  %v20193_v0 = vld [vmem:[%s28145_s6 + $0x80] sm:$0xff]  }
 0x697   :  { %v19797_v39 = vpop.f32.mrf.mxu0 }
 0x698   :  { %v9554_v58 = vadd.f32 %v19797_v39, %v9462_v22  ;;  %v9643_v44 = vadd.f32 %v9628_v57, %v9551_v50  ;;  %v20179_v57 = vld [vmem:[%s28145_s6 + $0x10] sm:$0xff]   ;;  %v20196_v50 = vld [vmem:[%s28145_s6 + $0x98] sm:$0xff]   ;;  %v20197_v22 = vld [vmem:[%s28145_s6 + $0xa0] sm:$0xff]  }
 0x699   :  { %v9539_v18 = vpop.f32.mrf.mxu0 }
 0x69a   :  { %v9552_v7 = vadd.f32 %v9539_v18, %v9460_v13  ;;  %v9646_v55 = vadd.f32 %v19809_v52, %v9554_v58  ;;  %v20183_v18 = vld [vmem:[%s28145_s6 + $0x30] sm:$0xff]   ;;  %v20186_v52 = vld [vmem:[%s28145_s6 + $0x48] sm:$0xff]   ;;  %v20200_v13 = vld [vmem:[%s28145_s6 + $0xb8] sm:$0xff]  }
 0x69b   :  { %v20199_v58 = vld [vmem:[%s28145_s6 + $0xb0] sm:$0xff]  }
 0x69c   :  { %v9644_v34 = vadd.f32 %v9631_v36, %v9552_v7  ;;  %v20194_v36 = vld [vmem:[%s28145_s6 + $0x88] sm:$0xff]   ;;  %v20203_v7 = vld [vmem:[%s28145_s6 + $0xd0] sm:$0xff]  }
 0x6a3   :  { %v19820_v14 = vpop.f32.mrf.mxu0 }
 0x6a4   :  { %v9737_v23 = vadd.f32 %v19820_v14, %v9645_v33  ;;  %v20187_v14 = vld [vmem:[%s28145_s6 + $0x50] sm:$0xff]   ;;  %v20201_v33 = vld [vmem:[%s28145_s6 + $0xc0] sm:$0xff]  }
 0x6a5   :  { %v9720_v42 = vpop.f32.mrf.mxu0 }
 0x6a6   :  { %v9735_v54 = vadd.f32 %v9720_v42, %v9643_v44  ;;  %v9829_v6 = vadd.f32 %v19832_v31, %v9737_v23  ;;  %v20195_v42 = vld [vmem:[%s28145_s6 + $0x90] sm:$0xff]   ;;  %v20198_v31 = vld [vmem:[%s28145_s6 + $0xa8] sm:$0xff]   ;;  %v20204_v23 = vld [vmem:[%s28145_s6 + $0xd8] sm:$0xff]  }
 0x6a7   :  { %v19821_v45 = vpop.f32.mrf.mxu0  ;;  %v20205_v44 = vld [vmem:[%s28145_s6 + $0xe0] sm:$0xff]  }
 0x6a8   :  { %v9738_v11 = vadd.f32 %v19821_v45, %v9646_v55  ;;  %v9827_v1 = vadd.f32 %v9812_v17, %v9735_v54  ;;  %v20202_v45 = vld [vmem:[%s28145_s6 + $0xc8] sm:$0xff]   ;;  %v20207_v54 = vld [vmem:[%s28145_s6 + $0xf0] sm:$0xff]   ;;  %v20208_v55 = vld [vmem:[%s28145_s6 + $0xf8] sm:$0xff]  }
 0x6a9   :  { %v9723_v10 = vpop.f32.mrf.mxu0  ;;  %v20206_v17 = vld [vmem:[%s28145_s6 + $0xe8] sm:$0xff]  }
 0x6aa   :  { %v9736_v53 = vadd.f32 %v9723_v10, %v9644_v34  ;;  %v9830_v8 = vadd.f32 %v19833_v41, %v9738_v11 }
 0x6ac   :  { %v9828_v4 = vadd.f32 %v9815_v46, %v9736_v53 }
 0x6b3   :  { %v19844_v32 = vpop.f32.mrf.mxu0 }
 0x6b4   :  { %v9921_v26 = vadd.f32 %v19844_v32, %v9829_v6 }
 0x6b5   :  { %v9904_v43 = vpop.f32.mrf.mxu0 }
 0x6b6   :  { %v9925_v59 = vadd.f32 %v9921_v26, %v8459_v37  ;;  %v9919_v40 = vadd.f32 %v9904_v43, %v9827_v1 }
 0x6b7   :  { %v19845_v35 = vpop.f32.mrf.mxu0 }
 0x6b8   :  { %v9923_v25 = vadd.f32 %v9919_v40, %v8459_v37  ;;  %v9922_v24 = vadd.f32 %v19845_v35, %v9830_v8  ;;  %v9929_v5 = vmul.f32 0.2, %v9925_v59 }
 0x6b9   :  { %v9907_v27 = vpop.f32.mrf.mxu0 }
 0x6ba   :  { %v9926_v21 = vadd.f32 %v9922_v24, %v8459_v37  ;;  %v9920_v19 = vadd.f32 %v9907_v27, %v9828_v4  ;;  %v9927_v3 = vmul.f32 0.2, %v9923_v25  ;;  %v9933_v60 = vmax.f32 %v9925_v59, %v9929_v5 }
 0x6bc   :  { %v9930_v28 = vmul.f32 0.2, %v9926_v21  ;;  %v9924_v62 = vadd.f32 %v9920_v19, %v8459_v37  ;;  %v9931_v48 = vmax.f32 %v9923_v25, %v9927_v3 }
 0x6be   :  { %v9934_v2 = vmax.f32 %v9926_v21, %v9930_v28  ;;  %v9928_v61 = vmul.f32 0.2, %v9924_v62 }
 0x6c0   :  { %v9932_v39 = vmax.f32 %v9924_v62, %v9928_v61  ;;  %v9936_v63 = vpack.c.bf16 %v9934_v2, %v9933_v60 }
 0x6c2   :  { %19846 = vmatprep.subr.bf16.mxu1 %v9936_v63  ;;  %v9935_v16 = vpack.c.bf16 %v9932_v39, %v9931_v48 }
 0x6c3   :  { %19847 = vmatpush3.bf16.msra.mxu1 %v9936_v63 }
 0x6c4   :  { %19848 = vmatprep.subr.bf16.mxu1 %v9935_v16 }
 0x6c7   :  { %19849 = vmatpush3.bf16.msra.mxu1 %v9935_v16 }
 0x6ca   :  { %19851 = vmatmul.mubr.msk.bf16.vlgmr.msra.gmra.mxu1 %vm5415_vm1, %v20178_v56 }
 0x6cb   :  { %19854 = vmatprep.mubr.msk.bf16.mxu1 %vm5415_vm1, %v20179_v57 }
 0x6d2   :  { %19855 = vmatmul.mubr.msk.bf16.gmra.mxu1 %vm5415_vm1, %v20180_v51 }
 0x6d3   :  { %19858 = vmatprep.mubr.msk.bf16.mxu1 %vm5415_vm1, %v20181_v9 }
 0x6da   :  { %19859 = vmatmul.mubr.msk.bf16.gmra.mxu1 %vm5415_vm1, %v20182_v30 }
 0x6db   :  { %19862 = vmatprep.mubr.msk.bf16.mxu1 %vm5415_vm1, %v20183_v18 }
 0x6e2   :  { %19863 = vmatmul.mubr.msk.bf16.gmra.mxu1 %vm5415_vm1, %v20184_v47 }
 0x6e3   :  { %19866 = vmatprep.mubr.msk.bf16.mxu1 %vm5415_vm1, %v20185_v29 }
 0x6ea   :  { %19867 = vmatmul.mubr.msk.bf16.gmra.mxu1 %vm5415_vm1, %v20186_v52 }
 0x6eb   :  { %19870 = vmatprep.mubr.msk.bf16.mxu1 %vm5415_vm1, %v20187_v14 }
 0x6f2   :  { %19871 = vmatmul.mubr.msk.bf16.gmra.mxu1 %vm5415_vm1, %v20188_v15 }
 0x6f3   :  { %19874 = vmatprep.mubr.msk.bf16.mxu1 %vm5415_vm1, %v20189_v20 }
 0x6fa   :  { %19875 = vmatmul.mubr.msk.bf16.gmra.mxu1 %vm5415_vm1, %v20190_v38 }
 0x6fb   :  { %19878 = vmatprep.mubr.msk.bf16.mxu1 %vm5415_vm1, %v20191_v49 }
 0x702   :  { %19879 = vmatmul.mubr.msk.bf16.gmra.mxu1 %vm5415_vm1, %v20192_v12 }
 0x703   :  { %19882 = vmatprep.mubr.msk.bf16.mxu1 %vm5415_vm1, %v20193_v0 }
 0x70a   :  { %19883 = vmatmul.mubr.msk.bf16.gmra.mxu1 %vm5415_vm1, %v20194_v36 }
 0x70b   :  { %19886 = vmatprep.mubr.msk.bf16.mxu1 %vm5415_vm1, %v20195_v42 }
 0x712   :  { %19887 = vmatmul.mubr.msk.bf16.gmra.mxu1 %vm5415_vm1, %v20196_v50 }
 0x713   :  { %19890 = vmatprep.mubr.msk.bf16.mxu1 %vm5415_vm1, %v20197_v22 }
 0x71a   :  { %19891 = vmatmul.mubr.msk.bf16.gmra.mxu1 %vm5415_vm1, %v20198_v31 }
 0x71b   :  { %19894 = vmatprep.mubr.msk.bf16.mxu1 %vm5415_vm1, %v20199_v58 }
 0x722   :  { %19895 = vmatmul.mubr.msk.bf16.gmra.mxu1 %vm5415_vm1, %v20200_v13 }
 0x723   :  { %19898 = vmatprep.mubr.msk.bf16.mxu1 %vm5415_vm1, %v20201_v33 }
 0x72a   :  { %19899 = vmatmul.mubr.msk.bf16.gmra.mxu1 %vm5415_vm1, %v20202_v45 }
 0x72b   :  { %19902 = vmatprep.mubr.msk.bf16.mxu1 %vm5415_vm1, %v20203_v7 }
 0x732   :  { %19903 = vmatmul.mubr.msk.bf16.gmra.mxu1 %vm5415_vm1, %v20204_v23 }
 0x733   :  { %19906 = vmatprep.mubr.msk.bf16.mxu1 %vm5415_vm1, %v20205_v44 }
 0x73a   :  { %19907 = vmatmul.mubr.msk.bf16.gmra.mxu1 %vm5415_vm1, %v20206_v17 }
 0x73b   :  { %19910 = vmatprep.mubr.msk.bf16.mxu1 %vm5415_vm1, %v20207_v54 }
 0x742   :  { %19911 = vmatmul.mubr.msk.bf16.gmra.mxu1 %vm5415_vm1, %v20208_v55 }
 0x78a   :  { %v19852_v10 = vpop.f32.mrf.mxu1 }
 0x78b   :  { %v18050_v11 = vpack.c.bf16 %v19852_v10, %v19852_v10 }
 0x78c   :  { %v10291_v34 = vpop.f32.mrf.mxu1 }
 0x78d   :  { %10594 = vst [vmem:[#allocation3 + $0x80] sm:$0xf] %v18050_v11  ;;  %v18048_v6 = vpack.c.bf16 %v10291_v34, %v10291_v34 }
 0x78e   :  { %v19853_v41 = vpop.f32.mrf.mxu1 }
 0x78f   :  { %10592 = vst [vmem:[#allocation3] sm:$0xf] %v18048_v6  ;;  %v18051_v37 = vpack.c.bf16 %v19853_v41, %v19853_v41 }
 0x790   :  { %v10294_v32 = vpop.f32.mrf.mxu1 }
 0x791   :  { %10595 = vst [vmem:[#allocation3 + $0xc0] sm:$0xf] %v18051_v37  ;;  %v18049_v53 = vpack.c.bf16 %v10294_v32, %v10294_v32 }
 0x792   :  { %v19856_v26 = vpop.f32.mrf.mxu1 }
 0x793   :  { %10593 = vst [vmem:[#allocation3 + $0x40] sm:$0xf] %v18049_v53  ;;  %v18054_v1 = vpack.c.bf16 %v19856_v26, %v19856_v26 }
 0x794   :  { %v10307_v43 = vpop.f32.mrf.mxu1 }
 0x795   :  { %10612 = vst [vmem:[#allocation3 + $0x84] sm:$0xf] %v18054_v1  ;;  %v18052_v59 = vpack.c.bf16 %v10307_v43, %v10307_v43 }
 0x796   :  { %v19857_v40 = vpop.f32.mrf.mxu1 }
 0x797   :  { %10610 = vst [vmem:[#allocation3 + $0x4] sm:$0xf] %v18052_v59  ;;  %v18055_v8 = vpack.c.bf16 %v19857_v40, %v19857_v40 }
 0x798   :  { %v10310_v46 = vpop.f32.mrf.mxu1 }
 0x799   :  { %10613 = vst [vmem:[#allocation3 + $0xc4] sm:$0xf] %v18055_v8  ;;  %v18053_v35 = vpack.c.bf16 %v10310_v46, %v10310_v46 }
 0x79a   :  { %v19860_v25 = vpop.f32.mrf.mxu1 }
 0x79b   :  { %10611 = vst [vmem:[#allocation3 + $0x44] sm:$0xf] %v18053_v35  ;;  %v18058_v24 = vpack.c.bf16 %v19860_v25, %v19860_v25 }
 0x79c   :  { %v10323_v4 = vpop.f32.mrf.mxu1 }
 0x79d   :  { %10630 = vst [vmem:[#allocation3 + $0x88] sm:$0xf] %v18058_v24  ;;  %v18056_v27 = vpack.c.bf16 %v10323_v4, %v10323_v4 }
 0x79e   :  { %v19861_v5 = vpop.f32.mrf.mxu1 }
 0x79f   :  { %10628 = vst [vmem:[#allocation3 + $0x8] sm:$0xf] %v18056_v27  ;;  %v18059_v21 = vpack.c.bf16 %v19861_v5, %v19861_v5 }
 0x7a0   :  { %v10326_v19 = vpop.f32.mrf.mxu1 }
 0x7a1   :  { %10631 = vst [vmem:[#allocation3 + $0xc8] sm:$0xf] %v18059_v21  ;;  %v18057_v3 = vpack.c.bf16 %v10326_v19, %v10326_v19 }
 0x7a2   :  { %v19864_v28 = vpop.f32.mrf.mxu1 }
 0x7a3   :  { %10629 = vst [vmem:[#allocation3 + $0x48] sm:$0xf] %v18057_v3  ;;  %v18062_v62 = vpack.c.bf16 %v19864_v28, %v19864_v28 }
 0x7a4   :  { %v10339_v60 = vpop.f32.mrf.mxu1 }
 0x7a5   :  { %10648 = vst [vmem:[#allocation3 + $0x8c] sm:$0xf] %v18062_v62  ;;  %v18060_v2 = vpack.c.bf16 %v10339_v60, %v10339_v60 }
 0x7a6   :  { %v19865_v61 = vpop.f32.mrf.mxu1 }
 0x7a7   :  { %10646 = vst [vmem:[#allocation3 + $0xc] sm:$0xf] %v18060_v2  ;;  %v18063_v48 = vpack.c.bf16 %v19865_v61, %v19865_v61 }
 0x7a8   :  { %v10342_v39 = vpop.f32.mrf.mxu1 }
 0x7a9   :  { %10649 = vst [vmem:[#allocation3 + $0xcc] sm:$0xf] %v18063_v48  ;;  %v18061_v63 = vpack.c.bf16 %v10342_v39, %v10342_v39 }
 0x7aa   :  { %v19868_v16 = vpop.f32.mrf.mxu1 }
 0x7ab   :  { %10647 = vst [vmem:[#allocation3 + $0x4c] sm:$0xf] %v18061_v63  ;;  %v18066_v56 = vpack.c.bf16 %v19868_v16, %v19868_v16 }
 0x7ac   :  { %v10355_v57 = vpop.f32.mrf.mxu1 }
 0x7ad   :  { %10666 = vst [vmem:[#allocation3 + $0x90] sm:$0xf] %v18066_v56  ;;  %v18064_v51 = vpack.c.bf16 %v10355_v57, %v10355_v57 }
 0x7ae   :  { %v19869_v9 = vpop.f32.mrf.mxu1 }
 0x7af   :  { %10664 = vst [vmem:[#allocation3 + $0x10] sm:$0xf] %v18064_v51  ;;  %v18067_v30 = vpack.c.bf16 %v19869_v9, %v19869_v9 }
 0x7b0   :  { %v10358_v18 = vpop.f32.mrf.mxu1 }
 0x7b1   :  { %10667 = vst [vmem:[#allocation3 + $0xd0] sm:$0xf] %v18067_v30  ;;  %v18065_v47 = vpack.c.bf16 %v10358_v18, %v10358_v18 }
 0x7b2   :  { %v19872_v29 = vpop.f32.mrf.mxu1 }
 0x7b3   :  { %10665 = vst [vmem:[#allocation3 + $0x50] sm:$0xf] %v18065_v47  ;;  %v18070_v52 = vpack.c.bf16 %v19872_v29, %v19872_v29 }
 0x7b4   :  { %v10371_v14 = vpop.f32.mrf.mxu1 }
 0x7b5   :  { %10684 = vst [vmem:[#allocation3 + $0x94] sm:$0xf] %v18070_v52  ;;  %v18068_v15 = vpack.c.bf16 %v10371_v14, %v10371_v14 }
 0x7b6   :  { %v19873_v20 = vpop.f32.mrf.mxu1 }
 0x7b7   :  { %10682 = vst [vmem:[#allocation3 + $0x14] sm:$0xf] %v18068_v15  ;;  %v18071_v38 = vpack.c.bf16 %v19873_v20, %v19873_v20 }
 0x7b8   :  { %v10374_v49 = vpop.f32.mrf.mxu1 }
 0x7b9   :  { %10685 = vst [vmem:[#allocation3 + $0xd4] sm:$0xf] %v18071_v38  ;;  %v18069_v12 = vpack.c.bf16 %v10374_v49, %v10374_v49 }
 0x7ba   :  { %v19876_v0 = vpop.f32.mrf.mxu1 }
 0x7bb   :  { %10683 = vst [vmem:[#allocation3 + $0x54] sm:$0xf] %v18069_v12  ;;  %v18074_v36 = vpack.c.bf16 %v19876_v0, %v19876_v0 }
 0x7bc   :  { %v10387_v42 = vpop.f32.mrf.mxu1 }
 0x7bd   :  { %10702 = vst [vmem:[#allocation3 + $0x98] sm:$0xf] %v18074_v36  ;;  %v18072_v50 = vpack.c.bf16 %v10387_v42, %v10387_v42 }
 0x7be   :  { %v19877_v22 = vpop.f32.mrf.mxu1 }
 0x7bf   :  { %10700 = vst [vmem:[#allocation3 + $0x18] sm:$0xf] %v18072_v50  ;;  %v18075_v31 = vpack.c.bf16 %v19877_v22, %v19877_v22 }
 0x7c0   :  { %v10390_v58 = vpop.f32.mrf.mxu1 }
 0x7c1   :  { %10703 = vst [vmem:[#allocation3 + $0xd8] sm:$0xf] %v18075_v31  ;;  %v18073_v13 = vpack.c.bf16 %v10390_v58, %v10390_v58 }
 0x7c2   :  { %v19880_v33 = vpop.f32.mrf.mxu1 }
 0x7c3   :  { %10701 = vst [vmem:[#allocation3 + $0x58] sm:$0xf] %v18073_v13  ;;  %v18078_v45 = vpack.c.bf16 %v19880_v33, %v19880_v33 }
 0x7c4   :  { %v10403_v7 = vpop.f32.mrf.mxu1 }
 0x7c5   :  { %10720 = vst [vmem:[#allocation3 + $0x9c] sm:$0xf] %v18078_v45  ;;  %v18076_v23 = vpack.c.bf16 %v10403_v7, %v10403_v7 }
 0x7c6   :  { %v19881_v44 = vpop.f32.mrf.mxu1 }
 0x7c7   :  { %10718 = vst [vmem:[#allocation3 + $0x1c] sm:$0xf] %v18076_v23  ;;  %v18079_v17 = vpack.c.bf16 %v19881_v44, %v19881_v44 }
 0x7c8   :  { %v10406_v54 = vpop.f32.mrf.mxu1 }
 0x7c9   :  { %10721 = vst [vmem:[#allocation3 + $0xdc] sm:$0xf] %v18079_v17  ;;  %v18077_v55 = vpack.c.bf16 %v10406_v54, %v10406_v54 }
 0x7ca   :  { %v19884_v10 = vpop.f32.mrf.mxu1 }
 0x7cb   :  { %10719 = vst [vmem:[#allocation3 + $0x5c] sm:$0xf] %v18077_v55  ;;  %v18082_v11 = vpack.c.bf16 %v19884_v10, %v19884_v10  ;;  %v28958_v10 = vld [vmem:[#allocation23_spill] sm:$0xff] }
 0x7cc   :  { %v10419_v34 = vpop.f32.mrf.mxu1 }
 0x7cd   :  { %10738 = vst [vmem:[#allocation3 + $0xa0] sm:$0xf] %v18082_v11  ;;  %v18080_v6 = vpack.c.bf16 %v10419_v34, %v10419_v34  ;;  %v28959_v11 = vld [vmem:[#allocation22_spill] sm:$0xff] }
 0x7ce   :  { %v19885_v41 = vpop.f32.mrf.mxu1  ;;  %v17454_v34 = vcombine.high %v28959_v11, %v28958_v10 }
 0x7cf   :  { %10736 = vst [vmem:[#allocation3 + $0x20] sm:$0xf] %v18080_v6  ;;  %v18083_v37 = vpack.c.bf16 %v19885_v41, %v19885_v41  ;;  %v17453_v6 = vcombine.low %v28959_v11, %v28958_v10  ;;  %v28960_v41 = vld [vmem:[#allocation21_spill] sm:$0xff] }
 0x7d0   :  { %v10422_v32 = vpop.f32.mrf.mxu1 }
 0x7d1   :  { %10739 = vst [vmem:[#allocation3 + $0xe0] sm:$0xf] %v18083_v37  ;;  %v18081_v53 = vpack.c.bf16 %v10422_v32, %v10422_v32  ;;  %v28961_v37 = vld [vmem:[#allocation20_spill] sm:$0xff] }
 0x7d2   :  { %v19888_v26 = vpop.f32.mrf.mxu1  ;;  %v17452_v32 = vcombine.high %v28961_v37, %v28960_v41 }
 0x7d3   :  { %10737 = vst [vmem:[#allocation3 + $0x60] sm:$0xf] %v18081_v53  ;;  %v18086_v1 = vpack.c.bf16 %v19888_v26, %v19888_v26 }
 0x7d4   :  { %v10435_v43 = vpop.f32.mrf.mxu1 }
 0x7d5   :  { %10756 = vst [vmem:[#allocation3 + $0xa4] sm:$0xf] %v18086_v1  ;;  %v18084_v59 = vpack.c.bf16 %v10435_v43, %v10435_v43 }
 0x7d6   :  { %v19889_v40 = vpop.f32.mrf.mxu1 }
 0x7d7   :  { %10754 = vst [vmem:[#allocation3 + $0x24] sm:$0xf] %v18084_v59  ;;  %v18087_v8 = vpack.c.bf16 %v19889_v40, %v19889_v40 }
 0x7d8   :  { %v10438_v46 = vpop.f32.mrf.mxu1 }
 0x7d9   :  { %10757 = vst [vmem:[#allocation3 + $0xe4] sm:$0xf] %v18087_v8  ;;  %v18085_v35 = vpack.c.bf16 %v10438_v46, %v10438_v46 }
 0x7da   :  { %v19892_v25 = vpop.f32.mrf.mxu1 }
 0x7db   :  { %10755 = vst [vmem:[#allocation3 + $0x64] sm:$0xf] %v18085_v35  ;;  %v18090_v24 = vpack.c.bf16 %v19892_v25, %v19892_v25 }
 0x7dc   :  { %v10451_v4 = vpop.f32.mrf.mxu1 }
 0x7dd   :  { %10774 = vst [vmem:[#allocation3 + $0xa8] sm:$0xf] %v18090_v24  ;;  %v18088_v27 = vpack.c.bf16 %v10451_v4, %v10451_v4 }
 0x7de   :  { %v19893_v5 = vpop.f32.mrf.mxu1 }
 0x7df   :  { %10772 = vst [vmem:[#allocation3 + $0x28] sm:$0xf] %v18088_v27  ;;  %v18091_v21 = vpack.c.bf16 %v19893_v5, %v19893_v5 }
 0x7e0   :  { %v10454_v19 = vpop.f32.mrf.mxu1 }
 0x7e1   :  { %10775 = vst [vmem:[#allocation3 + $0xe8] sm:$0xf] %v18091_v21  ;;  %v18089_v3 = vpack.c.bf16 %v10454_v19, %v10454_v19 }
 0x7e2   :  { %v19896_v28 = vpop.f32.mrf.mxu1 }
 0x7e3   :  { %10773 = vst [vmem:[#allocation3 + $0x68] sm:$0xf] %v18089_v3  ;;  %v18094_v62 = vpack.c.bf16 %v19896_v28, %v19896_v28 }
 0x7e4   :  { %v10467_v60 = vpop.f32.mrf.mxu1 }
 0x7e5   :  { %10792 = vst [vmem:[#allocation3 + $0xac] sm:$0xf] %v18094_v62  ;;  %v18092_v2 = vpack.c.bf16 %v10467_v60, %v10467_v60 }
 0x7e6   :  { %v19897_v61 = vpop.f32.mrf.mxu1 }
 0x7e7   :  { %10790 = vst [vmem:[#allocation3 + $0x2c] sm:$0xf] %v18092_v2  ;;  %v18095_v48 = vpack.c.bf16 %v19897_v61, %v19897_v61 }
 0x7e8   :  { %v10470_v39 = vpop.f32.mrf.mxu1 }
 0x7e9   :  { %10793 = vst [vmem:[#allocation3 + $0xec] sm:$0xf] %v18095_v48  ;;  %v18093_v63 = vpack.c.bf16 %v10470_v39, %v10470_v39 }
 0x7ea   :  { %v19900_v16 = vpop.f32.mrf.mxu1 }
 0x7eb   :  { %10791 = vst [vmem:[#allocation3 + $0x6c] sm:$0xf] %v18093_v63  ;;  %v18098_v56 = vpack.c.bf16 %v19900_v16, %v19900_v16 }
 0x7ec   :  { %v10483_v57 = vpop.f32.mrf.mxu1 }
 0x7ed   :  { %10810 = vst [vmem:[#allocation3 + $0xb0] sm:$0xf] %v18098_v56  ;;  %v18096_v51 = vpack.c.bf16 %v10483_v57, %v10483_v57 }
 0x7ee   :  { %v19901_v9 = vpop.f32.mrf.mxu1 }
 0x7ef   :  { %10808 = vst [vmem:[#allocation3 + $0x30] sm:$0xf] %v18096_v51  ;;  %v18099_v30 = vpack.c.bf16 %v19901_v9, %v19901_v9 }
 0x7f0   :  { %v10486_v18 = vpop.f32.mrf.mxu1 }
 0x7f1   :  { %10811 = vst [vmem:[#allocation3 + $0xf0] sm:$0xf] %v18099_v30  ;;  %v18097_v47 = vpack.c.bf16 %v10486_v18, %v10486_v18 }
 0x7f2   :  { %v19904_v29 = vpop.f32.mrf.mxu1 }
 0x7f3   :  { %10809 = vst [vmem:[#allocation3 + $0x70] sm:$0xf] %v18097_v47  ;;  %v18102_v52 = vpack.c.bf16 %v19904_v29, %v19904_v29 }
 0x7f4   :  { %v10499_v14 = vpop.f32.mrf.mxu1 }
 0x7f5   :  { %10828 = vst [vmem:[#allocation3 + $0xb4] sm:$0xf] %v18102_v52  ;;  %v18100_v15 = vpack.c.bf16 %v10499_v14, %v10499_v14 }
 0x7f6   :  { %v19905_v20 = vpop.f32.mrf.mxu1 }
 0x7f7   :  { %10826 = vst [vmem:[#allocation3 + $0x34] sm:$0xf] %v18100_v15  ;;  %v18103_v38 = vpack.c.bf16 %v19905_v20, %v19905_v20 }
 0x7f8   :  { %v10502_v49 = vpop.f32.mrf.mxu1 }
 0x7f9   :  { %10829 = vst [vmem:[#allocation3 + $0xf4] sm:$0xf] %v18103_v38  ;;  %v18101_v12 = vpack.c.bf16 %v10502_v49, %v10502_v49 }
 0x7fa   :  { %v19908_v0 = vpop.f32.mrf.mxu1 }
 0x7fb   :  { %10827 = vst [vmem:[#allocation3 + $0x74] sm:$0xf] %v18101_v12  ;;  %v18106_v36 = vpack.c.bf16 %v19908_v0, %v19908_v0 }
 0x7fc   :  { %v10515_v42 = vpop.f32.mrf.mxu1 }
 0x7fd   :  { %10846 = vst [vmem:[#allocation3 + $0xb8] sm:$0xf] %v18106_v36  ;;  %v18104_v50 = vpack.c.bf16 %v10515_v42, %v10515_v42 }
 0x7fe   :  { %v19909_v22 = vpop.f32.mrf.mxu1 }
 0x7ff   :  { %10844 = vst [vmem:[#allocation3 + $0x38] sm:$0xf] %v18104_v50  ;;  %v18107_v31 = vpack.c.bf16 %v19909_v22, %v19909_v22 }
 0x800   :  { %v10518_v58 = vpop.f32.mrf.mxu1 }
 0x801   :  { %10847 = vst [vmem:[#allocation3 + $0xf8] sm:$0xf] %v18107_v31  ;;  %v18105_v13 = vpack.c.bf16 %v10518_v58, %v10518_v58 }
 0x802   :  { %v19912_v33 = vpop.f32.mrf.mxu1 }
 0x803   :  { %10845 = vst [vmem:[#allocation3 + $0x78] sm:$0xf] %v18105_v13  ;;  %v18110_v45 = vpack.c.bf16 %v19912_v33, %v19912_v33 }
 0x804   :  { %v10531_v7 = vpop.f32.mrf.mxu1 }
 0x805   :  { %10864 = vst [vmem:[#allocation3 + $0xbc] sm:$0xf] %v18110_v45  ;;  %v18108_v23 = vpack.c.bf16 %v10531_v7, %v10531_v7 }
 0x806   :  { %v19913_v44 = vpop.f32.mrf.mxu1 }
 0x807   :  { %10862 = vst [vmem:[#allocation3 + $0x3c] sm:$0xf] %v18108_v23  ;;  %v18111_v17 = vpack.c.bf16 %v19913_v44, %v19913_v44 }
 0x808   :  { %v10534_v54 = vpop.f32.mrf.mxu1 }
 0x809   :  { %10865 = vst [vmem:[#allocation3 + $0xfc] sm:$0xf] %v18111_v17  ;;  %v18109_v55 = vpack.c.bf16 %v10534_v54, %v10534_v54 }
 0x80b   :  { %10863 = vst [vmem:[#allocation3 + $0x7c] sm:$0xf] %v18109_v55 }
 0x80c   :  { %20487 = dma.done.wait [#allocation5], 32768 }
 0x80d   :  { %20488 = vsyncadd [#allocation5], 4294934528  ;;  %12611 = vmatprep.subr.bf16.mxu0 %v17454_v34  ;;  %v17451_v53 = vcombine.low %v28961_v37, %v28960_v41  ;;  %v28962_v26 = vld [vmem:[#allocation19_spill] sm:$0xff]  ;;  %v28963_v1 = vld [vmem:[#allocation18_spill] sm:$0xff]  ;;  %vm16529_vm2 = vcmask 64512  }
 0x80e   :  { %12612 = vmatpush1.bf16.msra.mxu0 %v17453_v6  ;;  %v17450_v43 = vcombine.high %v28963_v1, %v28962_v26  ;;  %v17449_v59 = vcombine.low %v28963_v1, %v28962_v26  ;;  %v26502_v40 = vld [vmem:[#allocation3] sm:$0xff]  ;;  %v28964_v46 = vld [vmem:[#allocation17_spill] sm:$0xff]  ;;  %v28966_v4 = vld [vmem:[#allocation87_spill] sm:$0xff] }
 0x80f   :  { %12613 = vmatprep.subr.bf16.mxu0 %v17452_v32  ;;  %v26504_v8 = vld [vmem:[#allocation3 + $0x40] sm:$0xff]  ;;  %v28967_v27 = vld [vmem:[#allocation86_spill] sm:$0xff]  ;;  %v28968_v19 = vld [vmem:[#allocation85_spill] sm:$0xff] }
 0x810   :  { %v28965_v35 = vld [vmem:[#allocation16_spill] sm:$0xff]  ;;  %v17408_v24 = vcombine.high %v26502_v40, %v26504_v8  ;;  %v17518_v5 = vcombine.high %v28967_v27, %v28966_v4  ;;  %v17517_v21 = vcombine.low %v28967_v27, %v28966_v4  ;;  %v28970_v60 = vld [vmem:[#allocation15_spill] sm:$0xff]  ;;  %v28971_v2 = vld [vmem:[#allocation14_spill] sm:$0xff] }
 0x811   :  { %v17448_v25 = vcombine.high %v28965_v35, %v28964_v46  ;;  %v28969_v3 = vld [vmem:[#allocation84_spill] sm:$0xff]  ;;  %v17447_v62 = vcombine.low %v28965_v35, %v28964_v46  ;;  %v17446_v61 = vcombine.high %v28971_v2, %v28970_v60  ;;  %v28972_v39 = vld [vmem:[#allocation83_spill] sm:$0xff]  ;;  %v28973_v63 = vld [vmem:[#allocation82_spill] sm:$0xff]  ;;  %v17445_v56 = vcombine.low %v28971_v2, %v28970_v60 }
 0x812   :  { %12614 = vmatpush1.bf16.msra.mxu0 %v17451_v53  ;;  %12643 = vmatprep.mubr.bf16.mxu0 %v17408_v24  ;;  %v17516_v28 = vcombine.high %v28969_v3, %v28968_v19  ;;  %v17515_v48 = vcombine.low %v28969_v3, %v28968_v19  ;;  %v17514_v16 = vcombine.high %v28973_v63, %v28972_v39  ;;  %v28974_v57 = vld [vmem:[#allocation13_spill] sm:$0xff]  ;;  %v28975_v51 = vld [vmem:[#allocation12_spill] sm:$0xff]  ;;  %v28978_v14 = vld [vmem:[#allocation11_spill] sm:$0xff] }
 0x813   :  { %12615 = vmatprep.subr.bf16.mxu0 %v17450_v43  ;;  %12717 = vmatprep.subr.bf16.mxu1 %v17518_v5  ;;  %v17444_v9 = vcombine.high %v28975_v51, %v28974_v57  ;;  %v17513_v30 = vcombine.low %v28973_v63, %v28972_v39  ;;  %v28976_v18 = vld [vmem:[#allocation81_spill] sm:$0xff]  ;;  %v28977_v47 = vld [vmem:[#allocation80_spill] sm:$0xff]  ;;  %v17443_v52 = vcombine.low %v28975_v51, %v28974_v57  ;;  %v28979_v15 = vld [vmem:[#allocation10_spill] sm:$0xff] }
 0x814   :  { %12718 = vmatpush1.bf16.msra.mxu1 %v17517_v21  ;;  %v17512_v29 = vcombine.high %v28977_v47, %v28976_v18  ;;  %v17442_v20 = vcombine.high %v28979_v15, %v28978_v14  ;;  %v17511_v38 = vcombine.low %v28977_v47, %v28976_v18  ;;  %v28980_v49 = vld [vmem:[#allocation79_spill] sm:$0xff]  ;;  %v28981_v12 = vld [vmem:[#allocation78_spill] sm:$0xff]  ;;  %v17441_v50 = vcombine.low %v28979_v15, %v28978_v14  ;;  %v28982_v22 = vld [vmem:[#allocation9_spill] sm:$0xff] }
 0x815   :  { %12719 = vmatprep.subr.bf16.mxu1 %v17516_v28  ;;  %v17510_v0 = vcombine.high %v28981_v12, %v28980_v49  ;;  %v26540_v36 = vld [vmem:[#allocation3 + $0x10] sm:$0xff]  ;;  %v28983_v31 = vld [vmem:[#allocation8_spill] sm:$0xff]  ;;  %v17509_v13 = vcombine.low %v28981_v12, %v28980_v49  ;;  %v28984_v33 = vld [vmem:[#allocation77_spill] sm:$0xff] }
 0x816   :  { %12616 = vmatpush1.bf16.msra.mxu0 %v17449_v59  ;;  %v26542_v42 = vld [vmem:[#allocation3 + $0x50] sm:$0xff]  ;;  %v17440_v58 = vcombine.high %v28983_v31, %v28982_v22  ;;  %v28985_v45 = vld [vmem:[#allocation76_spill] sm:$0xff]  ;;  %v17439_v23 = vcombine.low %v28983_v31, %v28982_v22  ;;  %v28986_v17 = vld [vmem:[#allocation39_spill] sm:$0xff] }
 0x817   :  { %12617 = vmatprep.subr.bf16.mxu0 %v17448_v25  ;;  %v17508_v7 = vcombine.high %v28985_v45, %v28984_v33  ;;  %v17412_v44 = vcombine.high %v26540_v36, %v26542_v42  ;;  %v28987_v54 = vld [vmem:[#allocation38_spill] sm:$0xff]  ;;  %v17507_v10 = vcombine.low %v28985_v45, %v28984_v33  ;;  %v28988_v11 = vld [vmem:[#allocation75_spill] sm:$0xff]  ;;  %v28990_v37 = vld [vmem:[#allocation37_spill] sm:$0xff] }
 0x818   :  { %12720 = vmatpush1.bf16.msra.mxu1 %v17515_v48  ;;  %v17470_v55 = vcombine.high %v28987_v54, %v28986_v17  ;;  %v28989_v34 = vld [vmem:[#allocation74_spill] sm:$0xff]  ;;  %v17469_v41 = vcombine.low %v28987_v54, %v28986_v17  ;;  %v28991_v32 = vld [vmem:[#allocation36_spill] sm:$0xff]  ;;  %v28992_v1 = vld [vmem:[#allocation73_spill] sm:$0xff] }
 0x819   :  { %12721 = vmatprep.subr.bf16.mxu1 %v17514_v16  ;;  %v17506_v6 = vcombine.high %v28989_v34, %v28988_v11  ;;  %12749 = vmatprep.mubr.bf16.mxu1 %v17412_v44  ;;  %v17468_v53 = vcombine.high %v28991_v32, %v28990_v37  ;;  %v17505_v26 = vcombine.low %v28989_v34, %v28988_v11  ;;  %v28993_v43 = vld [vmem:[#allocation72_spill] sm:$0xff]  ;;  %v28994_v35 = vld [vmem:[#allocation35_spill] sm:$0xff]  ;;  %v28995_v25 = vld [vmem:[#allocation34_spill] sm:$0xff] }
 0x81a   :  { %12618 = vmatpush1.bf16.msra.mxu0 %v17447_v62  ;;  %v17504_v59 = vcombine.high %v28993_v43, %v28992_v1  ;;  %v17467_v46 = vcombine.low %v28991_v32, %v28990_v37  ;;  %v17466_v24 = vcombine.high %v28995_v25, %v28994_v35  ;;  %v17503_v4 = vcombine.low %v28993_v43, %v28992_v1  ;;  %v28996_v27 = vld [vmem:[#allocation103_spill] sm:$0xff]  ;;  %v28997_v5 = vld [vmem:[#allocation102_spill] sm:$0xff]  ;;  %v28998_v3 = vld [vmem:[#allocation33_spill] sm:$0xff] }
 0x81b   :  { %12619 = vmatprep.subr.bf16.mxu0 %v17446_v61  ;;  %v17534_v21 = vcombine.high %v28997_v5, %v28996_v27  ;;  %v17465_v19 = vcombine.low %v28995_v25, %v28994_v35  ;;  %v28999_v28 = vld [vmem:[#allocation32_spill] sm:$0xff]  ;;  %v17533_v60 = vcombine.low %v28997_v5, %v28996_v27  ;;  %v29000_v2 = vld [vmem:[#allocation101_spill] sm:$0xff]  ;;  %v29002_v63 = vld [vmem:[#allocation31_spill] sm:$0xff]  ;;  %v17407_v43 = vcombine.low %v26502_v40, %v26504_v8 }
 0x81c   :  { %12722 = vmatpush1.bf16.msra.mxu1 %v17513_v30  ;;  %v17464_v62 = vcombine.high %v28999_v28, %v28998_v3  ;;  %v29001_v61 = vld [vmem:[#allocation100_spill] sm:$0xff]  ;;  %v17463_v39 = vcombine.low %v28999_v28, %v28998_v3  ;;  %v29003_v16 = vld [vmem:[#allocation30_spill] sm:$0xff]  ;;  %v29004_v51 = vld [vmem:[#allocation99_spill] sm:$0xff] }
 0x81d   :  { %12723 = vmatprep.subr.bf16.mxu1 %v17512_v29  ;;  %v17532_v48 = vcombine.high %v29001_v61, %v29000_v2  ;;  %v17531_v57 = vcombine.low %v29001_v61, %v29000_v2  ;;  %v17461_v18 = vcombine.low %v29003_v16, %v29002_v63  ;;  %v29006_v47 = vld [vmem:[#allocation29_spill] sm:$0xff]  ;;  %v29007_v29 = vld [vmem:[#allocation28_spill] sm:$0xff]  ;;  %v29010_v12 = vld [vmem:[#allocation27_spill] sm:$0xff] }
 0x81e   :  { %12620 = vmatpush1.bf16.msra.mxu0 %v17445_v56  ;;  %v17462_v56 = vcombine.high %v29003_v16, %v29002_v63  ;;  %v29008_v15 = vld [vmem:[#allocation97_spill] sm:$0xff]  ;;  %v17459_v49 = vcombine.low %v29007_v29, %v29006_v47  ;;  %v29012_v31 = vld [vmem:[#allocation95_spill] sm:$0xff]  ;;  %v29017_v54 = vld [vmem:[#allocation92_spill] sm:$0xff] }
 0x81f   :  { %12621 = vmatprep.subr.bf16.mxu0 %v17444_v9  ;;  %v29005_v9 = vld [vmem:[#allocation98_spill] sm:$0xff]  ;;  %v29014_v45 = vld [vmem:[#allocation25_spill] sm:$0xff]  ;;  %v10894_v11 = vld [vmem:[#allocation3 + $0xc0] sm:$0xff] }
 0x820   :  { %12724 = vmatpush1.bf16.msra.mxu1 %v17511_v38  ;;  %v17530_v30 = vcombine.high %v29005_v9, %v29004_v51  ;;  %v17529_v14 = vcombine.low %v29005_v9, %v29004_v51  ;;  %v29016_v17 = vld [vmem:[#allocation93_spill] sm:$0xff]  ;;  %v29023_v25 = vld [vmem:[#allocation52_spill] sm:$0xff]  ;;  %v29026_v3 = vld [vmem:[#allocation51_spill] sm:$0xff] }
 0x821   :  { %12725 = vmatprep.subr.bf16.mxu1 %v17510_v0  ;;  %v29011_v0 = vld [vmem:[#allocation26_spill] sm:$0xff]  ;;  %v17523_v32 = vcombine.low %v29017_v54, %v29016_v17  ;;  %v29022_v35 = vld [vmem:[#allocation53_spill] sm:$0xff]  ;;  %v29025_v5 = vld [vmem:[#allocation88_spill] sm:$0xff] }
 0x822   :  { %12622 = vmatpush1.bf16.msra.mxu0 %v17443_v52  ;;  %v17460_v52 = vcombine.high %v29007_v29, %v29006_v47  ;;  %v17457_v33 = vcombine.low %v29011_v0, %v29010_v12  ;;  %v29024_v27 = vld [vmem:[#allocation89_spill] sm:$0xff]  ;;  %v17483_v8 = vcombine.low %v29023_v25, %v29022_v35  ;;  %v29027_v28 = vld [vmem:[#allocation50_spill] sm:$0xff]  ;;  %v29028_v2 = vld [vmem:[#allocation151_spill] sm:$0xff] }
 0x823   :  { %12623 = vmatprep.subr.bf16.mxu0 %v17442_v20  ;;  %v29009_v20 = vld [vmem:[#allocation96_spill] sm:$0xff]  ;;  %v26638_v40 = vld [vmem:[#allocation3 + $0x48] sm:$0xff]  ;;  %v29029_v61 = vld [vmem:[#allocation150_spill] sm:$0xff] }
 0x824   :  { %12726 = vmatpush1.bf16.msra.mxu1 %v17509_v13  ;;  %v17528_v38 = vcombine.high %v29009_v20, %v29008_v15  ;;  %v17527_v22 = vcombine.low %v29009_v20, %v29008_v15  ;;  %v10888_v63 = vld [vmem:[#allocation3 + $0x90] sm:$0xff]  ;;  %v29030_v51 = vld [vmem:[#allocation49_spill] sm:$0xff]  ;;  %v29031_v9 = vld [vmem:[#allocation48_spill] sm:$0xff]  ;;  %v17581_v47 = vcombine.low %v29029_v61, %v29028_v2 }
 0x825   :  { %12727 = vmatprep.subr.bf16.mxu1 %v17508_v7  ;;  %v29015_v7 = vld [vmem:[#allocation24_spill] sm:$0xff]  ;;  %v10896_v16 = vld [vmem:[#allocation3 + $0xd0] sm:$0xff]  ;;  %v17479_v20 = vcombine.low %v29031_v9, %v29030_v51 }
 0x826   :  { %12624 = vmatpush1.bf16.msra.mxu0 %v17441_v50  ;;  %v17458_v50 = vcombine.high %v29011_v0, %v29010_v12  ;;  %v17455_v34 = vcombine.low %v29015_v7, %v29014_v45  ;;  %v17428_v29 = vcombine.high %v10888_v63, %v10896_v16 }
 0x827   :  { %12625 = vmatprep.subr.bf16.mxu0 %v17440_v58  ;;  %v29013_v58 = vld [vmem:[#allocation94_spill] sm:$0xff] }
 0x828   :  { %12728 = vmatpush1.bf16.msra.mxu1 %v17507_v10  ;;  %v17526_v13 = vcombine.high %v29013_v58, %v29012_v31  ;;  %v17525_v44 = vcombine.low %v29013_v58, %v29012_v31  ;;  %v10886_v10 = vld [vmem:[#allocation3 + $0x80] sm:$0xff] }
 0x829   :  { %12729 = vmatprep.subr.bf16.mxu1 %v17506_v6  ;;  %v29018_v6 = vld [vmem:[#allocation55_spill] sm:$0xff] }
 0x82a   :  { %12626 = vmatpush1.bf16.msra.mxu0 %v17439_v23  ;;  %v17456_v23 = vcombine.high %v29015_v7, %v29014_v45  ;;  %v17427_v7 = vcombine.low %v10888_v63, %v10896_v16  ;;  %v29056_v63 = vld [vmem:[#allocation137_spill] sm:$0xff]  ;;  %v29057_v16 = vld [vmem:[#allocation136_spill] sm:$0xff] }
 0x82b   :  { %12627 = vmatprep.subr.bf16.mxu0 %v17470_v55  ;;  %v17524_v55 = vcombine.high %v29017_v54, %v29016_v17  ;;  %v29040_v17 = vld [vmem:[#allocation145_spill] sm:$0xff]  ;;  %v29041_v54 = vld [vmem:[#allocation144_spill] sm:$0xff] }
 0x82c   :  { %12730 = vmatpush1.bf16.msra.mxu1 %v17505_v26  ;;  %v29021_v26 = vld [vmem:[#allocation90_spill] sm:$0xff] }
 0x82d   :  { %12731 = vmatprep.subr.bf16.mxu1 %v17504_v59 }
 0x82e   :  { %12628 = vmatpush2.bf16.msra.mxu0 %v17469_v41  ;;  %v29019_v41 = vld [vmem:[#allocation54_spill] sm:$0xff] }
 0x82f   :  { %12629 = vmatprep.subr.bf16.mxu0 %v17468_v53  ;;  %v17486_v37 = vcombine.high %v29019_v41, %v29018_v6  ;;  %v29020_v53 = vld [vmem:[#allocation91_spill] sm:$0xff]  ;;  %v17485_v59 = vcombine.low %v29019_v41, %v29018_v6  ;;  %v17575_v41 = vcombine.low %v29041_v54, %v29040_v17 }
 0x830   :  { %12732 = vmatpush1.bf16.msra.mxu1 %v17503_v4  ;;  %v17522_v1 = vcombine.high %v29021_v26, %v29020_v53  ;;  %v17521_v4 = vcombine.low %v29021_v26, %v29020_v53 }
 0x831   :  { %12733 = vmatprep.subr.bf16.mxu1 %v17534_v21  ;;  %v17520_v21 = vcombine.high %v29025_v5, %v29024_v27 }
 0x832   :  { %12630 = vmatpush2.bf16.msra.mxu0 %v17467_v46  ;;  %v17424_v46 = vcombine.high %v10886_v10, %v10894_v11 }
 0x833   :  { %12631 = vmatprep.subr.bf16.mxu0 %v17466_v24  ;;  %v17484_v24 = vcombine.high %v29023_v25, %v29022_v35  ;;  %v29048_v35 = vld [vmem:[#allocation141_spill] sm:$0xff]  ;;  %v29049_v25 = vld [vmem:[#allocation140_spill] sm:$0xff] }
 0x834   :  { %12734 = vmatpush2.bf16.msra.mxu1 %v17533_v60  ;;  %v17519_v60 = vcombine.low %v29025_v5, %v29024_v27  ;;  %v29050_v27 = vld [vmem:[#allocation71_spill] sm:$0xff]  ;;  %v29051_v5 = vld [vmem:[#allocation70_spill] sm:$0xff] }
 0x835   :  { %12735 = vmatprep.subr.bf16.mxu1 %v17532_v48  ;;  %v17582_v48 = vcombine.high %v29029_v61, %v29028_v2  ;;  %v29054_v2 = vld [vmem:[#allocation69_spill] sm:$0xff]  ;;  %v29055_v61 = vld [vmem:[#allocation68_spill] sm:$0xff] }
 0x836   :  { %12632 = vmatpush2.bf16.msra.mxu0 %v17465_v19  ;;  %v26636_v19 = vld [vmem:[#allocation3 + $0x8] sm:$0xff] }
 0x837   :  { %12633 = vmatprep.subr.bf16.mxu0 %v17464_v62  ;;  %v17482_v62 = vcombine.high %v29027_v28, %v29026_v3 }
 0x838   :  { %12736 = vmatpush2.bf16.msra.mxu1 %v17531_v57  ;;  %v17410_v57 = vcombine.high %v26636_v19, %v26638_v40 }
 0x839   :  { %12737 = vmatprep.subr.bf16.mxu1 %v17530_v30  ;;  %v17480_v30 = vcombine.high %v29031_v9, %v29030_v51  ;;  %v29058_v51 = vld [vmem:[#allocation67_spill] sm:$0xff]  ;;  %v29059_v9 = vld [vmem:[#allocation66_spill] sm:$0xff] }
 0x83a   :  { %12634 = vmatpush2.bf16.msra.mxu0 %v17463_v39  ;;  %v17423_v39 = vcombine.low %v10886_v10, %v10894_v11  ;;  %v29042_v11 = vld [vmem:[#allocation43_spill] sm:$0xff] }
 0x83b   :  { %12635 = vmatprep.subr.bf16.mxu0 %v17462_v56  ;;  %v17481_v56 = vcombine.low %v29027_v28, %v29026_v3  ;;  %v29052_v3 = vld [vmem:[#allocation139_spill] sm:$0xff]  ;;  %v29053_v28 = vld [vmem:[#allocation138_spill] sm:$0xff] }
 0x83c   :  { %12738 = vmatpush2.bf16.msra.mxu1 %v17529_v14  ;;  %v29033_v14 = vld [vmem:[#allocation148_spill] sm:$0xff] }
 0x83d   :  { %12739 = vmatprep.subr.bf16.mxu1 %v17528_v38  ;;  %v29034_v38 = vld [vmem:[#allocation47_spill] sm:$0xff] }
 0x83e   :  { %12636 = vmatpush2.bf16.msra.mxu0 %v17461_v18  ;;  %v17411_v18 = vcombine.low %v26540_v36, %v26542_v42  ;;  %v26664_v36 = vld [vmem:[#allocation3 + $0x20] sm:$0xff] }
 0x83f   :  { %12637 = vmatprep.subr.bf16.mxu0 %v17460_v52  ;;  %v29032_v52 = vld [vmem:[#allocation149_spill] sm:$0xff]  ;;  %v26666_v42 = vld [vmem:[#allocation3 + $0x60] sm:$0xff] }
 0x840   :  { %12740 = vmatpush2.bf16.msra.mxu1 %v17527_v22  ;;  %v17580_v15 = vcombine.high %v29033_v14, %v29032_v52  ;;  %v17579_v0 = vcombine.low %v29033_v14, %v29032_v52  ;;  %v29037_v22 = vld [vmem:[#allocation146_spill] sm:$0xff]  ;;  %v17497_v14 = vcombine.low %v29059_v9, %v29058_v51 }
 0x841   :  { %12741 = vmatprep.subr.bf16.mxu1 %v17526_v13  ;;  %v29038_v13 = vld [vmem:[#allocation45_spill] sm:$0xff] }
 0x842   :  { %12638 = vmatpush2.bf16.msra.mxu0 %v17459_v49  ;;  %v29035_v49 = vld [vmem:[#allocation46_spill] sm:$0xff] }
 0x843   :  { %12639 = vmatprep.subr.bf16.mxu0 %v17458_v50  ;;  %v17478_v12 = vcombine.high %v29035_v49, %v29034_v38  ;;  %v29036_v50 = vld [vmem:[#allocation147_spill] sm:$0xff]  ;;  %v17477_v58 = vcombine.low %v29035_v49, %v29034_v38 }
 0x844   :  { %12742 = vmatpush2.bf16.msra.mxu1 %v17525_v44  ;;  %v17578_v31 = vcombine.high %v29037_v22, %v29036_v50  ;;  %v17416_v44 = vcombine.high %v26664_v36, %v26666_v42 }
 0x845   :  { %12743 = vmatprep.subr.bf16.mxu1 %v17524_v55  ;;  %v17576_v55 = vcombine.high %v29041_v54, %v29040_v17  ;;  %v29070_v17 = vld [vmem:[#allocation61_spill] sm:$0xff]  ;;  %v29071_v54 = vld [vmem:[#allocation60_spill] sm:$0xff] }
 0x846   :  { %12640 = vmatpush2.bf16.msra.mxu0 %v17457_v33  ;;  %v29039_v33 = vld [vmem:[#allocation44_spill] sm:$0xff] }
 0x847   :  { %12641 = vmatprep.subr.bf16.mxu0 %v17456_v23  ;;  %v17476_v45 = vcombine.high %v29039_v33, %v29038_v13  ;;  %v17577_v23 = vcombine.low %v29037_v22, %v29036_v50  ;;  %v17475_v10 = vcombine.low %v29039_v33, %v29038_v13 }
 0x848   :  { %12744 = vmatpush2.bf16.msra.mxu1 %v17523_v32  ;;  %v29045_v32 = vld [vmem:[#allocation142_spill] sm:$0xff] }
 0x849   :  { %12745 = vmatprep.subr.bf16.mxu1 %v17522_v1  ;;  %v29046_v1 = vld [vmem:[#allocation41_spill] sm:$0xff] }
 0x84a   :  { %12642 = vmatpush2.bf16.msra.mxu0 %v17455_v34  ;;  %v29043_v34 = vld [vmem:[#allocation42_spill] sm:$0xff] }
 0x84b   :  { %12664 = vmatprep.subr.bf16.mxu0 %v17486_v37  ;;  %v17474_v6 = vcombine.high %v29043_v34, %v29042_v11  ;;  %v29044_v37 = vld [vmem:[#allocation143_spill] sm:$0xff]  ;;  %v17473_v26 = vcombine.low %v29043_v34, %v29042_v11  ;;  %v29072_v11 = vld [vmem:[#allocation161_spill] sm:$0xff]  ;;  %v29073_v34 = vld [vmem:[#allocation160_spill] sm:$0xff] }
 0x84c   :  { %12746 = vmatpush2.bf16.msra.mxu1 %v17521_v4  ;;  %v17574_v53 = vcombine.high %v29045_v32, %v29044_v37 }
 0x84d   :  { %12644 = vmatmul.mubr.bf16.vlgmr.msra.gmra.mxu0 %v17407_v43  ;;  %12747 = vmatprep.subr.bf16.mxu1 %v17520_v21  ;;  %v29047_v43 = vld [vmem:[#allocation40_spill] sm:$0xff]  ;;  %v17502_v21 = vcombine.high %v29051_v5, %v29050_v27 }
 0x84e   :  { %12665 = vmatpush1.bf16.msra.mxu0 %v17485_v59  ;;  %12653 = vmatprep.mubr.bf16.mxu0 %v17424_v46  ;;  %v17472_v59 = vcombine.high %v29047_v43, %v29046_v1  ;;  %v17573_v46 = vcombine.low %v29045_v32, %v29044_v37  ;;  %v17471_v4 = vcombine.low %v29047_v43, %v29046_v1  ;;  %v29074_v37 = vld [vmem:[#allocation59_spill] sm:$0xff]  ;;  %v29075_v32 = vld [vmem:[#allocation58_spill] sm:$0xff] }
 0x84f   :  { %12666 = vmatprep.subr.bf16.mxu0 %v17484_v24  ;;  %v17572_v24 = vcombine.high %v29049_v25, %v29048_v35  ;;  %v29076_v1 = vld [vmem:[#allocation159_spill] sm:$0xff]  ;;  %v29077_v43 = vld [vmem:[#allocation158_spill] sm:$0xff] }
 0x850   :  { %12748 = vmatpush2.bf16.msra.mxu1 %v17519_v60  ;;  %v17501_v60 = vcombine.low %v29051_v5, %v29050_v27  ;;  %v10887_v27 = vld [vmem:[#allocation3 + $0x88] sm:$0xff] }
 0x851   :  { %12823 = vmatprep.subr.bf16.mxu1 %v17582_v48  ;;  %v17500_v48 = vcombine.high %v29055_v61, %v29054_v2  ;;  %v10895_v5 = vld [vmem:[#allocation3 + $0xc8] sm:$0xff] }
 0x852   :  { %12667 = vmatpush1.bf16.msra.mxu0 %v17483_v8  ;;  %v17571_v8 = vcombine.low %v29049_v25, %v29048_v35  ;;  %v29078_v35 = vld [vmem:[#allocation57_spill] sm:$0xff]  ;;  %v29079_v25 = vld [vmem:[#allocation56_spill] sm:$0xff] }
 0x853   :  { %12668 = vmatprep.subr.bf16.mxu0 %v17482_v62  ;;  %12750 = vmatmul.mubr.bf16.vlgmr.msra.gmra.mxu1 %v17411_v18  ;;  %v17570_v62 = vcombine.high %v29053_v28, %v29052_v3  ;;  %v17567_v18 = vcombine.low %v29057_v16, %v29056_v63 }
 0x854   :  { %12824 = vmatpush1.bf16.msra.mxu1 %v17581_v47  ;;  %12759 = vmatprep.mubr.bf16.mxu1 %v17428_v29  ;;  %v29060_v47 = vld [vmem:[#allocation167_spill] sm:$0xff]  ;;  %v29061_v29 = vld [vmem:[#allocation166_spill] sm:$0xff] }
 0x855   :  { %12654 = vmatmul.mubr.bf16.gmra.mxu0 %v17423_v39  ;;  %12825 = vmatprep.subr.bf16.mxu1 %v17580_v15  ;;  %v17569_v39 = vcombine.low %v29053_v28, %v29052_v3  ;;  %v17598_v52 = vcombine.high %v29061_v29, %v29060_v47  ;;  %v29062_v15 = vld [vmem:[#allocation65_spill] sm:$0xff]  ;;  %v17597_v49 = vcombine.low %v29061_v29, %v29060_v47  ;;  %v26780_v29 = vld [vmem:[#allocation3 + $0x18] sm:$0xff] }
 0x856   :  { %12669 = vmatpush1.bf16.msra.mxu0 %v17481_v56  ;;  %12696 = vmatprep.mubr.bf16.mxu0 %v17410_v57  ;;  %v17568_v56 = vcombine.high %v29057_v16, %v29056_v63  ;;  %v17499_v57 = vcombine.low %v29055_v61, %v29054_v2  ;;  %v17487_v28 = vcombine.low %v29079_v25, %v29078_v35  ;;  %v29085_v63 = vld [vmem:[#allocation154_spill] sm:$0xff] }
 0x857   :  { %12670 = vmatprep.subr.bf16.mxu0 %v17480_v30  ;;  %v17498_v30 = vcombine.high %v29059_v9, %v29058_v51  ;;  %v29086_v51 = vld [vmem:[#allocation117_spill] sm:$0xff]  ;;  %v29087_v9 = vld [vmem:[#allocation116_spill] sm:$0xff] }
 0x858   :  { %12826 = vmatpush1.bf16.msra.mxu1 %v17579_v0  ;;  %v29065_v0 = vld [vmem:[#allocation164_spill] sm:$0xff] }
 0x859   :  { %12827 = vmatprep.subr.bf16.mxu1 %v17578_v31  ;;  %v29066_v31 = vld [vmem:[#allocation63_spill] sm:$0xff] }
 0x85a   :  { %12671 = vmatpush1.bf16.msra.mxu0 %v17479_v20  ;;  %v29063_v20 = vld [vmem:[#allocation64_spill] sm:$0xff] }
 0x85b   :  { %12672 = vmatprep.subr.bf16.mxu0 %v17478_v12  ;;  %12760 = vmatmul.mubr.bf16.gmra.mxu1 %v17427_v7  ;;  %v17496_v38 = vcombine.high %v29063_v20, %v29062_v15  ;;  %v29064_v12 = vld [vmem:[#allocation165_spill] sm:$0xff]  ;;  %v17495_v22 = vcombine.low %v29063_v20, %v29062_v15  ;;  %v29069_v7 = vld [vmem:[#allocation162_spill] sm:$0xff]  ;;  %v29090_v15 = vld [vmem:[#allocation115_spill] sm:$0xff] }
 0x85c   :  { %12828 = vmatpush1.bf16.msra.mxu1 %v17577_v23  ;;  %12855 = vmatprep.mubr.bf16.mxu1 %v17416_v44  ;;  %v17596_v50 = vcombine.high %v29065_v0, %v29064_v12  ;;  %v17595_v33 = vcombine.low %v29065_v0, %v29064_v12  ;;  %v29091_v20 = vld [vmem:[#allocation114_spill] sm:$0xff]  ;;  %v17425_v12 = vcombine.low %v10887_v27, %v10895_v5  ;;  %v29092_v0 = vld [vmem:[#allocation215_spill] sm:$0xff] }
 0x85d   :  { %12829 = vmatprep.subr.bf16.mxu1 %v17576_v55  ;;  %v17492_v55 = vcombine.high %v29071_v54, %v29070_v17 }
 0x85e   :  { %12673 = vmatpush1.bf16.msra.mxu0 %v17477_v58  ;;  %v29067_v58 = vld [vmem:[#allocation62_spill] sm:$0xff] }
 0x85f   :  { %12674 = vmatprep.subr.bf16.mxu0 %v17476_v45  ;;  %v17494_v13 = vcombine.high %v29067_v58, %v29066_v31  ;;  %v29068_v45 = vld [vmem:[#allocation163_spill] sm:$0xff]  ;;  %v17493_v44 = vcombine.low %v29067_v58, %v29066_v31  ;;  %v10890_v31 = vld [vmem:[#allocation3 + $0xa0] sm:$0xff] }
 0x860   :  { %12830 = vmatpush1.bf16.msra.mxu1 %v17575_v41  ;;  %v17594_v23 = vcombine.high %v29069_v7, %v29068_v45  ;;  %v17491_v41 = vcombine.low %v29071_v54, %v29070_v17  ;;  %v10898_v58 = vld [vmem:[#allocation3 + $0xe0] sm:$0xff] }
 0x861   :  { %12831 = vmatprep.subr.bf16.mxu1 %v17574_v53  ;;  %v17490_v53 = vcombine.high %v29075_v32, %v29074_v37  ;;  %v17432_v54 = vcombine.high %v10890_v31, %v10898_v58 }
 0x862   :  { %12675 = vmatpush1.bf16.msra.mxu0 %v17475_v10  ;;  %v17593_v10 = vcombine.low %v29069_v7, %v29068_v45  ;;  %v29094_v45 = vld [vmem:[#allocation113_spill] sm:$0xff]  ;;  %v29095_v7 = vld [vmem:[#allocation112_spill] sm:$0xff] }
 0x863   :  { %12676 = vmatprep.subr.bf16.mxu0 %v17474_v6  ;;  %v17592_v6 = vcombine.high %v29073_v34, %v29072_v11 }
 0x864   :  { %12832 = vmatpush1.bf16.msra.mxu1 %v17573_v46  ;;  %v17489_v46 = vcombine.low %v29075_v32, %v29074_v37 }
 0x865   :  { %12833 = vmatprep.subr.bf16.mxu1 %v17572_v24  ;;  %v17488_v24 = vcombine.high %v29079_v25, %v29078_v35  ;;  %v17431_v25 = vcombine.low %v10890_v31, %v10898_v58  ;;  %v29120_v31 = vld [vmem:[#allocation201_spill] sm:$0xff]  ;;  %v29121_v58 = vld [vmem:[#allocation200_spill] sm:$0xff] }
 0x866   :  { %12677 = vmatpush1.bf16.msra.mxu0 %v17473_v26  ;;  %v17591_v26 = vcombine.low %v29073_v34, %v29072_v11  ;;  %v17543_v34 = vcombine.low %v29095_v7, %v29094_v45 }
 0x867   :  { %12678 = vmatprep.subr.bf16.mxu0 %v17472_v59  ;;  %v17590_v59 = vcombine.high %v29077_v43, %v29076_v1 }
 0x868   :  { %12834 = vmatpush1.bf16.msra.mxu1 %v17571_v8  ;;  %v29081_v8 = vld [vmem:[#allocation156_spill] sm:$0xff] }
 0x869   :  { %12835 = vmatprep.subr.bf16.mxu1 %v17570_v62  ;;  %v29082_v62 = vld [vmem:[#allocation119_spill] sm:$0xff] }
 0x86a   :  { %12679 = vmatpush1.bf16.msra.mxu0 %v17471_v4  ;;  %v17589_v4 = vcombine.low %v29077_v43, %v29076_v1 }
 0x86b   :  { %12680 = vmatprep.subr.bf16.mxu0 %v17502_v21  ;;  %v29080_v21 = vld [vmem:[#allocation157_spill] sm:$0xff] }
 0x86c   :  { %12836 = vmatpush1.bf16.msra.mxu1 %v17569_v39  ;;  %v17588_v3 = vcombine.high %v29081_v8, %v29080_v21  ;;  %v17587_v61 = vcombine.low %v29081_v8, %v29080_v21  ;;  %v29084_v39 = vld [vmem:[#allocation155_spill] sm:$0xff] }
 0x86d   :  { %12837 = vmatprep.subr.bf16.mxu1 %v17568_v56  ;;  %v17586_v16 = vcombine.high %v29085_v63, %v29084_v39 }
 0x86e   :  { %12681 = vmatpush2.bf16.msra.mxu0 %v17501_v60  ;;  %v29083_v60 = vld [vmem:[#allocation118_spill] sm:$0xff] }
 0x86f   :  { %12682 = vmatprep.subr.bf16.mxu0 %v17500_v48  ;;  %v17550_v2 = vcombine.high %v29083_v60, %v29082_v62  ;;  %v17409_v48 = vcombine.low %v26636_v19, %v26638_v40  ;;  %v17549_v56 = vcombine.low %v29083_v60, %v29082_v62  ;;  %v29088_v19 = vld [vmem:[#allocation153_spill] sm:$0xff]  ;;  %v29089_v40 = vld [vmem:[#allocation152_spill] sm:$0xff] }
 0x870   :  { %12838 = vmatpush1.bf16.msra.mxu1 %v17567_v18  ;;  %v17585_v18 = vcombine.low %v29085_v63, %v29084_v39  ;;  %v17584_v47 = vcombine.high %v29089_v40, %v29088_v19  ;;  %v29110_v63 = vld [vmem:[#allocation105_spill] sm:$0xff] }
 0x871   :  { %12839 = vmatprep.subr.bf16.mxu1 %v17598_v52  ;;  %v26782_v52 = vld [vmem:[#allocation3 + $0x58] sm:$0xff] }
 0x872   :  { %12683 = vmatpush2.bf16.msra.mxu0 %v17499_v57  ;;  %v17426_v57 = vcombine.high %v10887_v27, %v10895_v5  ;;  %v29104_v27 = vld [vmem:[#allocation209_spill] sm:$0xff]  ;;  %v29105_v5 = vld [vmem:[#allocation208_spill] sm:$0xff] }
 0x873   :  { %12684 = vmatprep.subr.bf16.mxu0 %v17498_v30  ;;  %v17548_v30 = vcombine.high %v29087_v9, %v29086_v51  ;;  %v17640_v21 = vcombine.high %v29105_v5, %v29104_v27  ;;  %v17639_v60 = vcombine.low %v29105_v5, %v29104_v27  ;;  %v29134_v27 = vld [vmem:[#allocation125_spill] sm:$0xff]  ;;  %v29135_v5 = vld [vmem:[#allocation124_spill] sm:$0xff] }
 0x874   :  { %12840 = vmatpush2.bf16.msra.mxu1 %v17597_v49  ;;  %v17583_v49 = vcombine.low %v29089_v40, %v29088_v19  ;;  %v29114_v19 = vld [vmem:[#allocation135_spill] sm:$0xff]  ;;  %v29115_v40 = vld [vmem:[#allocation134_spill] sm:$0xff] }
 0x875   :  { %12841 = vmatprep.subr.bf16.mxu1 %v17596_v50  ;;  %v29093_v50 = vld [vmem:[#allocation214_spill] sm:$0xff] }
 0x876   :  { %12685 = vmatpush2.bf16.msra.mxu0 %v17497_v14  ;;  %v17547_v14 = vcombine.low %v29087_v9, %v29086_v51  ;;  %v17645_v17 = vcombine.low %v29093_v50, %v29092_v0  ;;  %v29112_v51 = vld [vmem:[#allocation205_spill] sm:$0xff]  ;;  %v29113_v9 = vld [vmem:[#allocation204_spill] sm:$0xff] }
 0x877   :  { %12686 = vmatprep.subr.bf16.mxu0 %v17496_v38  ;;  %v17546_v38 = vcombine.high %v29091_v20, %v29090_v15 }
 0x878   :  { %12842 = vmatpush2.bf16.msra.mxu1 %v17595_v33  ;;  %v17414_v33 = vcombine.high %v26780_v29, %v26782_v52 }
 0x879   :  { %12843 = vmatprep.subr.bf16.mxu1 %v17594_v23  ;;  %v17544_v23 = vcombine.high %v29095_v7, %v29094_v45  ;;  %v29122_v45 = vld [vmem:[#allocation131_spill] sm:$0xff]  ;;  %v29123_v7 = vld [vmem:[#allocation130_spill] sm:$0xff] }
 0x87a   :  { %12687 = vmatpush2.bf16.msra.mxu0 %v17495_v22  ;;  %v17646_v22 = vcombine.high %v29093_v50, %v29092_v0  ;;  %v29119_v0 = vld [vmem:[#allocation132_spill] sm:$0xff] }
 0x87b   :  { %12688 = vmatprep.subr.bf16.mxu0 %v17494_v13  ;;  %v17545_v13 = vcombine.low %v29091_v20, %v29090_v15  ;;  %v29116_v15 = vld [vmem:[#allocation203_spill] sm:$0xff]  ;;  %v29117_v20 = vld [vmem:[#allocation202_spill] sm:$0xff] }
 0x87c   :  { %12844 = vmatpush2.bf16.msra.mxu1 %v17593_v10  ;;  %v29097_v10 = vld [vmem:[#allocation212_spill] sm:$0xff] }
 0x87d   :  { %12845 = vmatprep.subr.bf16.mxu1 %v17592_v6  ;;  %v29098_v6 = vld [vmem:[#allocation111_spill] sm:$0xff] }
 0x87e   :  { %12689 = vmatpush2.bf16.msra.mxu0 %v17493_v44  ;;  %v17415_v44 = vcombine.low %v26664_v36, %v26666_v42  ;;  %v26808_v36 = vld [vmem:[#allocation3 + $0x30] sm:$0xff] }
 0x87f   :  { %12690 = vmatprep.subr.bf16.mxu0 %v17492_v55  ;;  %v29096_v55 = vld [vmem:[#allocation213_spill] sm:$0xff]  ;;  %v26810_v42 = vld [vmem:[#allocation3 + $0x70] sm:$0xff] }
 0x880   :  { %12846 = vmatpush2.bf16.msra.mxu1 %v17591_v26  ;;  %v17644_v11 = vcombine.high %v29097_v10, %v29096_v55  ;;  %v17643_v32 = vcombine.low %v29097_v10, %v29096_v55  ;;  %v29101_v26 = vld [vmem:[#allocation210_spill] sm:$0xff]  ;;  %v17561_v10 = vcombine.low %v29123_v7, %v29122_v45 }
 0x881   :  { %12847 = vmatprep.subr.bf16.mxu1 %v17590_v59  ;;  %v29102_v59 = vld [vmem:[#allocation109_spill] sm:$0xff] }
 0x882   :  { %12691 = vmatpush2.bf16.msra.mxu0 %v17491_v41  ;;  %v29099_v41 = vld [vmem:[#allocation110_spill] sm:$0xff] }
 0x883   :  { %12692 = vmatprep.subr.bf16.mxu0 %v17490_v53  ;;  %v17542_v37 = vcombine.high %v29099_v41, %v29098_v6  ;;  %v29100_v53 = vld [vmem:[#allocation211_spill] sm:$0xff]  ;;  %v17541_v43 = vcombine.low %v29099_v41, %v29098_v6 }
 0x884   :  { %12848 = vmatpush2.bf16.msra.mxu1 %v17589_v4  ;;  %v17642_v1 = vcombine.high %v29101_v26, %v29100_v53  ;;  %v17420_v4 = vcombine.high %v26808_v36, %v26810_v42 }
 0x885   :  { %12849 = vmatprep.subr.bf16.mxu1 %v17588_v3  ;;  %v29106_v3 = vld [vmem:[#allocation107_spill] sm:$0xff] }
 0x886   :  { %12693 = vmatpush2.bf16.msra.mxu0 %v17489_v46  ;;  %v29103_v46 = vld [vmem:[#allocation108_spill] sm:$0xff] }
 0x887   :  { %12694 = vmatprep.subr.bf16.mxu0 %v17488_v24  ;;  %v17540_v35 = vcombine.high %v29103_v46, %v29102_v59  ;;  %v17641_v24 = vcombine.low %v29101_v26, %v29100_v53  ;;  %v17539_v8 = vcombine.low %v29103_v46, %v29102_v59 }
 0x888   :  { %12850 = vmatpush2.bf16.msra.mxu1 %v17587_v61  ;;  %v29109_v61 = vld [vmem:[#allocation206_spill] sm:$0xff] }
 0x889   :  { %12851 = vmatprep.subr.bf16.mxu1 %v17586_v16  ;;  %v29111_v16 = vld [vmem:[#allocation104_spill] sm:$0xff] }
 0x88a   :  { %12695 = vmatpush2.bf16.msra.mxu0 %v17487_v28  ;;  %v29107_v28 = vld [vmem:[#allocation106_spill] sm:$0xff] }
 0x88b   :  { %12770 = vmatprep.subr.bf16.mxu0 %v17550_v2  ;;  %v17538_v62 = vcombine.high %v29107_v28, %v29106_v3  ;;  %v29108_v2 = vld [vmem:[#allocation207_spill] sm:$0xff]  ;;  %v17537_v39 = vcombine.low %v29107_v28, %v29106_v3  ;;  %v29136_v3 = vld [vmem:[#allocation225_spill] sm:$0xff]  ;;  %v29137_v28 = vld [vmem:[#allocation224_spill] sm:$0xff] }
 0x88c   :  { %12852 = vmatpush2.bf16.msra.mxu1 %v17585_v18  ;;  %v17535_v18 = vcombine.low %v29111_v16, %v29110_v63 }
 0x88d   :  { %12697 = vmatmul.mubr.bf16.vlgmr.msra.gmra.mxu0 %v17409_v48  ;;  %12853 = vmatprep.subr.bf16.mxu1 %v17584_v47  ;;  %v17638_v48 = vcombine.high %v29109_v61, %v29108_v2  ;;  %v17566_v47 = vcombine.high %v29115_v40, %v29114_v19 }
 0x88e   :  { %12771 = vmatpush1.bf16.msra.mxu0 %v17549_v56  ;;  %12706 = vmatprep.mubr.bf16.mxu0 %v17426_v57  ;;  %v17536_v56 = vcombine.high %v29111_v16, %v29110_v63  ;;  %v17637_v57 = vcombine.low %v29109_v61, %v29108_v2  ;;  %v29138_v2 = vld [vmem:[#allocation123_spill] sm:$0xff]  ;;  %v29139_v61 = vld [vmem:[#allocation122_spill] sm:$0xff] }
 0x88f   :  { %12772 = vmatprep.subr.bf16.mxu0 %v17548_v30  ;;  %v17636_v30 = vcombine.high %v29113_v9, %v29112_v51  ;;  %v29140_v63 = vld [vmem:[#allocation223_spill] sm:$0xff]  ;;  %v29141_v16 = vld [vmem:[#allocation222_spill] sm:$0xff] }
 0x890   :  { %12854 = vmatpush2.bf16.msra.mxu1 %v17583_v49  ;;  %v17565_v49 = vcombine.low %v29115_v40, %v29114_v19  ;;  %v10889_v19 = vld [vmem:[#allocation3 + $0x98] sm:$0xff] }
 0x891   :  { %12929 = vmatprep.subr.bf16.mxu1 %v17646_v22  ;;  %v17633_v22 = vcombine.low %v29117_v20, %v29116_v15  ;;  %v10897_v40 = vld [vmem:[#allocation3 + $0xd8] sm:$0xff] }
 0x892   :  { %12773 = vmatpush1.bf16.msra.mxu0 %v17547_v14  ;;  %v17635_v14 = vcombine.low %v29113_v9, %v29112_v51  ;;  %v29142_v51 = vld [vmem:[#allocation121_spill] sm:$0xff]  ;;  %v29143_v9 = vld [vmem:[#allocation120_spill] sm:$0xff] }
 0x893   :  { %12774 = vmatprep.subr.bf16.mxu0 %v17546_v38  ;;  %12856 = vmatmul.mubr.bf16.vlgmr.msra.gmra.mxu1 %v17415_v44  ;;  %v17634_v38 = vcombine.high %v29117_v20, %v29116_v15  ;;  %v17631_v44 = vcombine.low %v29121_v58, %v29120_v31  ;;  %v17551_v20 = vcombine.low %v29143_v9, %v29142_v51 }
 0x894   :  { %12930 = vmatpush1.bf16.msra.mxu1 %v17645_v17  ;;  %12865 = vmatprep.mubr.bf16.mxu1 %v17432_v54  ;;  %v29124_v17 = vld [vmem:[#allocation231_spill] sm:$0xff]  ;;  %v29125_v54 = vld [vmem:[#allocation230_spill] sm:$0xff] }
 0x895   :  { %12707 = vmatmul.mubr.bf16.gmra.mxu0 %v17425_v12  ;;  %12931 = vmatprep.subr.bf16.mxu1 %v17644_v11  ;;  %v29118_v12 = vld [vmem:[#allocation133_spill] sm:$0xff]  ;;  %v17662_v55 = vcombine.high %v29125_v54, %v29124_v17  ;;  %v17661_v41 = vcombine.low %v29125_v54, %v29124_v17 }
 0x896   :  { %12775 = vmatpush1.bf16.msra.mxu0 %v17545_v13  ;;  %12802 = vmatprep.mubr.bf16.mxu0 %v17414_v33  ;;  %v17564_v50 = vcombine.high %v29119_v0, %v29118_v12  ;;  %v17632_v13 = vcombine.high %v29121_v58, %v29120_v31  ;;  %v17563_v33 = vcombine.low %v29119_v0, %v29118_v12  ;;  %v29126_v11 = vld [vmem:[#allocation129_spill] sm:$0xff]  ;;  %v29149_v31 = vld [vmem:[#allocation218_spill] sm:$0xff] }
 0x897   :  { %12776 = vmatprep.subr.bf16.mxu0 %v17544_v23  ;;  %v17562_v23 = vcombine.high %v29123_v7, %v29122_v45  ;;  %v29150_v45 = vld [vmem:[#allocation181_spill] sm:$0xff]  ;;  %v29151_v7 = vld [vmem:[#allocation180_spill] sm:$0xff] }
 0x898   :  { %12932 = vmatpush1.bf16.msra.mxu1 %v17643_v32  ;;  %v29129_v32 = vld [vmem:[#allocation228_spill] sm:$0xff]  ;;  %v26924_v54 = vld [vmem:[#allocation3 + $0x28] sm:$0xff] }
 0x899   :  { %12933 = vmatprep.subr.bf16.mxu1 %v17642_v1  ;;  %v29130_v1 = vld [vmem:[#allocation127_spill] sm:$0xff] }
 0x89a   :  { %12777 = vmatpush1.bf16.msra.mxu0 %v17543_v34  ;;  %v29127_v34 = vld [vmem:[#allocation128_spill] sm:$0xff] }
 0x89b   :  { %12778 = vmatprep.subr.bf16.mxu0 %v17542_v37  ;;  %12866 = vmatmul.mubr.bf16.gmra.mxu1 %v17431_v25  ;;  %v17560_v6 = vcombine.high %v29127_v34, %v29126_v11  ;;  %v29128_v37 = vld [vmem:[#allocation229_spill] sm:$0xff]  ;;  %v17559_v26 = vcombine.low %v29127_v34, %v29126_v11  ;;  %v29133_v25 = vld [vmem:[#allocation226_spill] sm:$0xff]  ;;  %v29154_v11 = vld [vmem:[#allocation179_spill] sm:$0xff] }
 0x89c   :  { %12934 = vmatpush1.bf16.msra.mxu1 %v17641_v24  ;;  %12961 = vmatprep.mubr.bf16.mxu1 %v17420_v4  ;;  %v17660_v53 = vcombine.high %v29129_v32, %v29128_v37  ;;  %v17659_v46 = vcombine.low %v29129_v32, %v29128_v37  ;;  %v29155_v34 = vld [vmem:[#allocation178_spill] sm:$0xff]  ;;  %v17429_v37 = vcombine.low %v10889_v19, %v10897_v40 }
 0x89d   :  { %12935 = vmatprep.subr.bf16.mxu1 %v17640_v21  ;;  %v17556_v21 = vcombine.high %v29135_v5, %v29134_v27  ;;  %v10892_v32 = vld [vmem:[#allocation3 + $0xb0] sm:$0xff] }
 0x89e   :  { %12779 = vmatpush1.bf16.msra.mxu0 %v17541_v43  ;;  %v29131_v43 = vld [vmem:[#allocation126_spill] sm:$0xff] }
 0x89f   :  { %12780 = vmatprep.subr.bf16.mxu0 %v17540_v35  ;;  %v17558_v59 = vcombine.high %v29131_v43, %v29130_v1  ;;  %v29132_v35 = vld [vmem:[#allocation227_spill] sm:$0xff]  ;;  %v17557_v4 = vcombine.low %v29131_v43, %v29130_v1  ;;  %v29156_v43 = vld [vmem:[#allocation177_spill] sm:$0xff] }
 0x8a0   :  { %12936 = vmatpush1.bf16.msra.mxu1 %v17639_v60  ;;  %v17658_v24 = vcombine.high %v29133_v25, %v29132_v35  ;;  %v17555_v60 = vcombine.low %v29135_v5, %v29134_v27  ;;  %v29159_v27 = vld [vmem:[#allocation174_spill] sm:$0xff] }
 0x8a1   :  { %12937 = vmatprep.subr.bf16.mxu1 %v17638_v48  ;;  %v17554_v48 = vcombine.high %v29139_v61, %v29138_v2 }
 0x8a2   :  { %12781 = vmatpush1.bf16.msra.mxu0 %v17539_v8  ;;  %v17657_v8 = vcombine.low %v29133_v25, %v29132_v35  ;;  %v17419_v35 = vcombine.low %v26808_v36, %v26810_v42  ;;  %v29160_v36 = vld [vmem:[#allocation173_spill] sm:$0xff]  ;;  %v29161_v42 = vld [vmem:[#allocation172_spill] sm:$0xff] }
 0x8a3   :  { %12782 = vmatprep.subr.bf16.mxu0 %v17538_v62  ;;  %v17656_v62 = vcombine.high %v29137_v28, %v29136_v3 }
 0x8a4   :  { %12938 = vmatpush1.bf16.msra.mxu1 %v17637_v57  ;;  %v17553_v57 = vcombine.low %v29139_v61, %v29138_v2  ;;  %v29164_v61 = vmov 0  }
 0x8a5   :  { %12939 = vmatprep.subr.bf16.mxu1 %v17636_v30  ;;  %v17552_v30 = vcombine.high %v29143_v9, %v29142_v51  ;;  %v29168_v51 = vld [vmem:[#allocation198_spill] sm:$0xff] }
 0x8a6   :  { %12783 = vmatpush1.bf16.msra.mxu0 %v17537_v39  ;;  %v17655_v39 = vcombine.low %v29137_v28, %v29136_v3  ;;  %v17603_v28 = vcombine.low %v29161_v42, %v29160_v36 }
 0x8a7   :  { %12784 = vmatprep.subr.bf16.mxu0 %v17536_v56  ;;  %v17654_v56 = vcombine.high %v29141_v16, %v29140_v63 }
 0x8a8   :  { %12940 = vmatpush1.bf16.msra.mxu1 %v17635_v14  ;;  %v29145_v14 = vld [vmem:[#allocation220_spill] sm:$0xff] }
 0x8a9   :  { %12941 = vmatprep.subr.bf16.mxu1 %v17634_v38  ;;  %v29146_v38 = vld [vmem:[#allocation183_spill] sm:$0xff] }
 0x8aa   :  { %12785 = vmatpush1.bf16.msra.mxu0 %v17535_v18  ;;  %v17653_v18 = vcombine.low %v29141_v16, %v29140_v63  ;;  %v29166_v63 = vld [vmem:[#allocation168_spill] sm:$0xff] }
 0x8ab   :  { %12786 = vmatprep.subr.bf16.mxu0 %v17566_v47  ;;  %v29144_v47 = vld [vmem:[#allocation221_spill] sm:$0xff] }
 0x8ac   :  { %12942 = vmatpush1.bf16.msra.mxu1 %v17633_v22  ;;  %v17652_v15 = vcombine.high %v29145_v14, %v29144_v47  ;;  %v17651_v0 = vcombine.low %v29145_v14, %v29144_v47  ;;  %v29148_v22 = vld [vmem:[#allocation219_spill] sm:$0xff] }
 0x8ad   :  { %12943 = vmatprep.subr.bf16.mxu1 %v17632_v13  ;;  %v17650_v58 = vcombine.high %v29149_v31, %v29148_v22  ;;  %v29171_v14 = vld [vmem:[#allocation195_spill] sm:$0xff] }
 0x8ae   :  { %12787 = vmatpush2.bf16.msra.mxu0 %v17565_v49  ;;  %v29147_v49 = vld [vmem:[#allocation182_spill] sm:$0xff] }
 0x8af   :  { %12788 = vmatprep.subr.bf16.mxu0 %v17564_v50  ;;  %v17614_v12 = vcombine.high %v29147_v49, %v29146_v38  ;;  %v17413_v50 = vcombine.low %v26780_v29, %v26782_v52  ;;  %v17613_v13 = vcombine.low %v29147_v49, %v29146_v38  ;;  %v29152_v29 = vld [vmem:[#allocation217_spill] sm:$0xff]  ;;  %v29153_v52 = vld [vmem:[#allocation216_spill] sm:$0xff] }
 0x8b0   :  { %12944 = vmatpush1.bf16.msra.mxu1 %v17631_v44  ;;  %v17649_v44 = vcombine.low %v29149_v31, %v29148_v22  ;;  %v17648_v17 = vcombine.high %v29153_v52, %v29152_v29  ;;  %v29173_v49 = vld [vmem:[#allocation193_spill] sm:$0xff]  ;;  %v29175_v22 = vld [vmem:[#allocation191_spill] sm:$0xff]  ;;  %v29176_v31 = vld [vmem:[#allocation190_spill] sm:$0xff] }
 0x8b1   :  { %12945 = vmatprep.subr.bf16.mxu1 %v17662_v55  ;;  %v26926_v55 = vld [vmem:[#allocation3 + $0x68] sm:$0xff] }
 0x8b2   :  { %12789 = vmatpush2.bf16.msra.mxu0 %v17563_v33  ;;  %v17430_v33 = vcombine.high %v10889_v19, %v10897_v40  ;;  %v17418_v1 = vcombine.high %v26924_v54, %v26926_v55  ;;  %v29170_v19 = vld [vmem:[#allocation196_spill] sm:$0xff] }
 0x8b3   :  { %12790 = vmatprep.subr.bf16.mxu0 %v17562_v23  ;;  %v17612_v23 = vcombine.high %v29151_v7, %v29150_v45 }
 0x8b4   :  { %12946 = vmatpush2.bf16.msra.mxu1 %v17661_v41  ;;  %v17647_v41 = vcombine.low %v29153_v52, %v29152_v29  ;;  %v29180_v29 = vld [vmem:[#allocation186_spill] sm:$0xff] }
 0x8b5   :  { %12947 = vmatprep.subr.bf16.mxu1 %v17660_v53  ;;  %v10900_v53 = vld [vmem:[#allocation3 + $0xf0] sm:$0xff] }
 0x8b6   :  { %12791 = vmatpush2.bf16.msra.mxu0 %v17561_v10  ;;  %v17611_v10 = vcombine.low %v29151_v7, %v29150_v45  ;;  %v17436_v25 = vcombine.high %v10892_v32, %v10900_v53  ;;  %v17435_v3 = vcombine.low %v10892_v32, %v10900_v53  ;;  %v29178_v45 = vld [vmem:[#allocation188_spill] sm:$0xff]  ;;  %v10891_v53 = vld [vmem:[#allocation3 + $0xa8] sm:$0xff] }
 0x8b7   :  { %12792 = vmatprep.subr.bf16.mxu0 %v17560_v6  ;;  %v17610_v6 = vcombine.high %v29155_v34, %v29154_v11 }
 0x8b8   :  { %12948 = vmatpush2.bf16.msra.mxu1 %v17659_v46 }
 0x8b9   :  { %12949 = vmatprep.subr.bf16.mxu1 %v17658_v24 }
 0x8ba   :  { %12793 = vmatpush2.bf16.msra.mxu0 %v17559_v26  ;;  %v17609_v26 = vcombine.low %v29155_v34, %v29154_v11  ;;  %v29182_v11 = vld [vmem:[#allocation184_spill] sm:$0xff] }
 0x8bb   :  { %12794 = vmatprep.subr.bf16.mxu0 %v17558_v59  ;;  %v29157_v59 = vld [vmem:[#allocation176_spill] sm:$0xff] }
 0x8bc   :  { %12950 = vmatpush2.bf16.msra.mxu1 %v17657_v8  ;;  %v17608_v46 = vcombine.high %v29157_v59, %v29156_v43  ;;  %v17607_v24 = vcombine.low %v29157_v59, %v29156_v43  ;;  %v17604_v8 = vcombine.high %v29161_v42, %v29160_v36 }
 0x8bd   :  { %12951 = vmatprep.subr.bf16.mxu1 %v17656_v62  ;;  %v29162_v62 = vld [vmem:[#allocation171_spill] sm:$0xff] }
 0x8be   :  { %12795 = vmatpush2.bf16.msra.mxu0 %v17557_v4  ;;  %v29158_v4 = vld [vmem:[#allocation175_spill] sm:$0xff] }
 0x8bf   :  { %12796 = vmatprep.subr.bf16.mxu0 %v17556_v21  ;;  %v17606_v5 = vcombine.high %v29159_v27, %v29158_v4  ;;  %v17605_v21 = vcombine.low %v29159_v27, %v29158_v4  ;;  %v29187_v4 = vld [vmem:[#allocation243_spill] sm:$0xff]  ;;  %v29188_v27 = vld [vmem:[#allocation242_spill] sm:$0xff] }
 0x8c0   :  { %12952 = vmatpush2.bf16.msra.mxu1 %v17655_v39  ;;  %v29165_v39 = vld [vmem:[#allocation169_spill] sm:$0xff]  ;;  %v17673_v36 = vcombine.low %v29188_v27, %v29187_v4 }
 0x8c1   :  { %12953 = vmatprep.subr.bf16.mxu1 %v17654_v56  ;;  %v17600_v16 = vcombine.high %v29166_v63, %v29165_v39  ;;  %v17599_v56 = vcombine.low %v29166_v63, %v29165_v39  ;;  %v29193_v63 = vld [vmem:[#allocation237_spill] sm:$0xff] }
 0x8c2   :  { %12797 = vmatpush2.bf16.msra.mxu0 %v17555_v60  ;;  %v29163_v60 = vld [vmem:[#allocation170_spill] sm:$0xff] }
 0x8c3   :  { %12798 = vmatprep.subr.bf16.mxu0 %v17554_v48  ;;  %v17602_v2 = vcombine.high %v29163_v60, %v29162_v62  ;;  %v17601_v48 = vcombine.low %v29163_v60, %v29162_v62  ;;  %v29191_v60 = vld [vmem:[#allocation239_spill] sm:$0xff] }
 0x8c4   :  { %12954 = vmatpush2.bf16.msra.mxu1 %v17653_v18  ;;  %v29169_v18 = vld [vmem:[#allocation197_spill] sm:$0xff] }
 0x8c5   :  { %12955 = vmatprep.subr.bf16.mxu1 %v17652_v15  ;;  %v17628_v40 = vcombine.high %v29170_v19, %v29169_v18  ;;  %v17627_v47 = vcombine.low %v29170_v19, %v29169_v18  ;;  %v29172_v15 = vld [vmem:[#allocation194_spill] sm:$0xff]  ;;  %v29197_v19 = vld [vmem:[#allocation233_spill] sm:$0xff] }
 0x8c6   :  { %12799 = vmatpush2.bf16.msra.mxu0 %v17553_v57  ;;  %v29167_v57 = vld [vmem:[#allocation199_spill] sm:$0xff]  ;;  %v17625_v38 = vcombine.low %v29172_v15, %v29171_v14 }
 0x8c7   :  { %12800 = vmatprep.subr.bf16.mxu0 %v17552_v30  ;;  %v17630_v9 = vcombine.high %v29168_v51, %v29167_v57  ;;  %v17629_v30 = vcombine.low %v29168_v51, %v29167_v57  ;;  %v29195_v51 = vld [vmem:[#allocation235_spill] sm:$0xff] }
 0x8c8   :  { %12956 = vmatpush2.bf16.msra.mxu1 %v17651_v0 }
 0x8c9   :  { %12957 = vmatprep.subr.bf16.mxu1 %v17650_v58  ;;  %v17622_v58 = vcombine.high %v29176_v31, %v29175_v22 }
 0x8ca   :  { %12801 = vmatpush2.bf16.msra.mxu0 %v17551_v20  ;;  %v17626_v20 = vcombine.high %v29172_v15, %v29171_v14  ;;  %v29199_v15 = vld [vmem:[#allocation263_spill] sm:$0xff] }
 0x8cb   :  { %12876 = vmatprep.subr.bf16.mxu0 %v17614_v12  ;;  %v29174_v12 = vld [vmem:[#allocation192_spill] sm:$0xff] }
 0x8cc   :  { %12958 = vmatpush2.bf16.msra.mxu1 %v17649_v44  ;;  %v17624_v0 = vcombine.high %v29174_v12, %v29173_v49  ;;  %v29179_v44 = vld [vmem:[#allocation187_spill] sm:$0xff] }
 0x8cd   :  { %12803 = vmatmul.mubr.bf16.vlgmr.msra.gmra.mxu0 %v17413_v50  ;;  %12959 = vmatprep.subr.bf16.mxu1 %v17648_v17  ;;  %v17623_v50 = vcombine.low %v29174_v12, %v29173_v49  ;;  %v17618_v52 = vcombine.high %v29180_v29, %v29179_v44  ;;  %v17617_v17 = vcombine.low %v29180_v29, %v29179_v44  ;;  %v29201_v12 = vld [vmem:[#allocation261_spill] sm:$0xff]  ;;  %v29207_v29 = vld [vmem:[#allocation255_spill] sm:$0xff] }
 0x8ce   :  { %12877 = vmatpush1.bf16.msra.mxu0 %v17613_v13  ;;  %12812 = vmatprep.mubr.bf16.mxu0 %v17430_v33  ;;  %v17621_v13 = vcombine.low %v29176_v31, %v29175_v22  ;;  %v29177_v33 = vld [vmem:[#allocation189_spill] sm:$0xff]  ;;  %v29203_v31 = vld [vmem:[#allocation259_spill] sm:$0xff] }
 0x8cf   :  { %12878 = vmatprep.subr.bf16.mxu0 %v17612_v23  ;;  %v17620_v7 = vcombine.high %v29178_v45, %v29177_v33  ;;  %v17619_v23 = vcombine.low %v29178_v45, %v29177_v33  ;;  %v29205_v45 = vld [vmem:[#allocation257_spill] sm:$0xff] }
 0x8d0   :  { %12960 = vmatpush2.bf16.msra.mxu1 %v17647_v41  ;;  %v29183_v41 = vld [vmem:[#allocation247_spill] sm:$0xff] }
 0x8d2   :  { %12879 = vmatpush1.bf16.msra.mxu0 %v17611_v10  ;;  %v29181_v10 = vld [vmem:[#allocation185_spill] sm:$0xff] }
 0x8d3   :  { %12880 = vmatprep.subr.bf16.mxu0 %v17610_v6  ;;  %12962 = vmatmul.mubr.bf16.vlgmr.msra.gmra.mxu1 %v17419_v35  ;;  %v17616_v34 = vcombine.high %v29182_v11, %v29181_v10  ;;  %v17615_v6 = vcombine.low %v29182_v11, %v29181_v10  ;;  %v29186_v35 = vld [vmem:[#allocation244_spill] sm:$0xff]  ;;  %v29209_v11 = vld [vmem:[#allocation253_spill] sm:$0xff] }
 0x8d4   :  { %12971 = vmatprep.mubr.bf16.mxu1 %v17436_v25 }
 0x8d5   :  { %12813 = vmatmul.mubr.bf16.gmra.mxu0 %v17429_v37  ;;  %v29184_v37 = vld [vmem:[#allocation246_spill] sm:$0xff] }
 0x8d6   :  { %12881 = vmatpush1.bf16.msra.mxu0 %v17609_v26  ;;  %12908 = vmatprep.mubr.bf16.mxu0 %v17418_v1  ;;  %v17678_v32 = vcombine.high %v29184_v37, %v29183_v41  ;;  %v10899_v26 = vld [vmem:[#allocation3 + $0xe8] sm:$0xff]  ;;  %v17417_v1 = vcombine.low %v26924_v54, %v26926_v55  ;;  %v17677_v43 = vcombine.low %v29184_v37, %v29183_v41  ;;  %v27005_v54 = vld [vmem:[#allocation3 + $0x38] sm:$0xff] }
 0x8d7   :  { %12882 = vmatprep.subr.bf16.mxu0 %v17608_v46  ;;  %v17434_v59 = vcombine.high %v10891_v53, %v10899_v26  ;;  %v29185_v46 = vld [vmem:[#allocation245_spill] sm:$0xff]  ;;  %v27007_v55 = vld [vmem:[#allocation3 + $0x78] sm:$0xff] }
 0x8d8   :  { %v17676_v25 = vcombine.high %v29186_v35, %v29185_v46  ;;  %v17422_v42 = vcombine.high %v27005_v54, %v27007_v55  ;;  %v29211_v37 = vld [vmem:[#allocation251_spill] sm:$0xff] }
 0x8da   :  { %12883 = vmatpush1.bf16.msra.mxu0 %v17607_v24  ;;  %v17675_v24 = vcombine.low %v29186_v35, %v29185_v46  ;;  %v10893_v35 = vld [vmem:[#allocation3 + $0xb8] sm:$0xff] }
 0x8db   :  { %12884 = vmatprep.subr.bf16.mxu0 %v17606_v5  ;;  %12972 = vmatmul.mubr.bf16.gmra.mxu1 %v17435_v3  ;;  %v17674_v5 = vcombine.high %v29188_v27, %v29187_v4  ;;  %v29190_v3 = vld [vmem:[#allocation240_spill] sm:$0xff] }
 0x8dc   :  { %13247 = vmatprep.mubr.bf16.mxu1 %v29164_v61 }
 0x8de   :  { %12885 = vmatpush1.bf16.msra.mxu0 %v17605_v21  ;;  %v17433_v21 = vcombine.low %v10891_v53, %v10899_v26 }
 0x8df   :  { %12886 = vmatprep.subr.bf16.mxu0 %v17604_v8  ;;  %v29189_v8 = vld [vmem:[#allocation241_spill] sm:$0xff] }
 0x8e0   :  { %v17671_v62 = vcombine.low %v29190_v3, %v29189_v8 }
 0x8e2   :  { %12887 = vmatpush1.bf16.msra.mxu0 %v17603_v28  ;;  %v17672_v28 = vcombine.high %v29190_v3, %v29189_v8 }
 0x8e3   :  { %12888 = vmatprep.subr.bf16.mxu0 %v17602_v2  ;;  %v29192_v2 = vld [vmem:[#allocation238_spill] sm:$0xff] }
 0x8e4   :  { %v17669_v39 = vcombine.low %v29192_v2, %v29191_v60 }
 0x8e6   :  { %12889 = vmatpush1.bf16.msra.mxu0 %v17601_v48  ;;  %v17670_v48 = vcombine.high %v29192_v2, %v29191_v60 }
 0x8e7   :  { %12890 = vmatprep.subr.bf16.mxu0 %v17600_v16  ;;  %v29194_v16 = vld [vmem:[#allocation236_spill] sm:$0xff] }
 0x8e8   :  { %v17667_v57 = vcombine.low %v29194_v16, %v29193_v63 }
 0x8ea   :  { %12891 = vmatpush1.bf16.msra.mxu0 %v17599_v56  ;;  %v17668_v56 = vcombine.high %v29194_v16, %v29193_v63 }
 0x8eb   :  { %12892 = vmatprep.subr.bf16.mxu0 %v17630_v9  ;;  %v29196_v9 = vld [vmem:[#allocation234_spill] sm:$0xff] }
 0x8ec   :  { %v17665_v18 = vcombine.low %v29196_v9, %v29195_v51 }
 0x8ee   :  { %12893 = vmatpush2.bf16.msra.mxu0 %v17629_v30  ;;  %v17666_v30 = vcombine.high %v29196_v9, %v29195_v51 }
 0x8ef   :  { %12894 = vmatprep.subr.bf16.mxu0 %v17628_v40  ;;  %v29198_v40 = vld [vmem:[#allocation232_spill] sm:$0xff] }
 0x8f0   :  { %v17663_v14 = vcombine.low %v29198_v40, %v29197_v19 }
 0x8f2   :  { %12895 = vmatpush2.bf16.msra.mxu0 %v17627_v47  ;;  %v17664_v47 = vcombine.high %v29198_v40, %v29197_v19 }
 0x8f3   :  { %12896 = vmatprep.subr.bf16.mxu0 %v17626_v20  ;;  %v29200_v20 = vld [vmem:[#allocation262_spill] sm:$0xff] }
 0x8f4   :  { %v17693_v49 = vcombine.low %v29200_v20, %v29199_v15 }
 0x8f6   :  { %12897 = vmatpush2.bf16.msra.mxu0 %v17625_v38  ;;  %v17694_v38 = vcombine.high %v29200_v20, %v29199_v15 }
 0x8f7   :  { %12898 = vmatprep.subr.bf16.mxu0 %v17624_v0  ;;  %v29202_v0 = vld [vmem:[#allocation260_spill] sm:$0xff] }
 0x8f8   :  { %v17691_v22 = vcombine.low %v29202_v0, %v29201_v12 }
 0x8fa   :  { %12899 = vmatpush2.bf16.msra.mxu0 %v17623_v50  ;;  %v17692_v50 = vcombine.high %v29202_v0, %v29201_v12 }
 0x8fb   :  { %12900 = vmatprep.subr.bf16.mxu0 %v17622_v58  ;;  %v29204_v58 = vld [vmem:[#allocation258_spill] sm:$0xff] }
 0x8fc   :  { %v17689_v33 = vcombine.low %v29204_v58, %v29203_v31 }
 0x8fe   :  { %12901 = vmatpush2.bf16.msra.mxu0 %v17621_v13  ;;  %v17690_v13 = vcombine.high %v29204_v58, %v29203_v31  ;;  %v11161_v58 = vlaneseq }
 0x8ff   :  { %12902 = vmatprep.subr.bf16.mxu0 %v17620_v7  ;;  %v29206_v7 = vld [vmem:[#allocation256_spill] sm:$0xff] }
 0x900   :  { %v17687_v44 = vcombine.low %v29206_v7, %v29205_v45 }
 0x902   :  { %12903 = vmatpush2.bf16.msra.mxu0 %v17619_v23  ;;  %v17688_v23 = vcombine.high %v29206_v7, %v29205_v45  ;;  %v11162_v45 = vshrl.u32 %v11161_v58, 7 }
 0x903   :  { %12904 = vmatprep.subr.bf16.mxu0 %v17618_v52  ;;  %v29208_v52 = vld [vmem:[#allocation254_spill] sm:$0xff] }
 0x904   :  { %v17685_v10 = vcombine.low %v29208_v52, %v29207_v29 }
 0x906   :  { %12905 = vmatpush2.bf16.msra.mxu0 %v17617_v17  ;;  %v17686_v17 = vcombine.high %v29208_v52, %v29207_v29  ;;  %v17406_v29 = vld [vmem:[%s28149_s10 + $0x3] ss:$8 sm:$0x3] }
 0x907   :  { %12906 = vmatprep.subr.bf16.mxu0 %v17616_v34  ;;  %v29210_v34 = vld [vmem:[#allocation252_spill] sm:$0xff] }
 0x908   :  { %v17683_v41 = vcombine.low %v29210_v34, %v29209_v11 }
 0x90a   :  { %12907 = vmatpush2.bf16.msra.mxu0 %v17615_v6  ;;  %v17684_v6 = vcombine.high %v29210_v34, %v29209_v11 }
 0x90b   :  { %12982 = vmatprep.subr.bf16.mxu0 %v17678_v32  ;;  %v29212_v32 = vld [vmem:[#allocation250_spill] sm:$0xff] }
 0x90c   :  { %v17682_v53 = vcombine.high %v29212_v32, %v29211_v37  ;;  %v17681_v26 = vcombine.low %v29212_v32, %v29211_v37 }
 0x90d   :  { %12909 = vmatmul.mubr.bf16.vlgmr.msra.gmra.mxu0 %v17417_v1  ;;  %v29213_v1 = vld [vmem:[#allocation249_spill] sm:$0xff] }
 0x90e   :  { %12983 = vmatpush1.bf16.msra.mxu0 %v17677_v43  ;;  %12918 = vmatprep.mubr.bf16.mxu0 %v17434_v59  ;;  %v29214_v43 = vld [vmem:[#allocation248_spill] sm:$0xff] }
 0x90f   :  { %12984 = vmatprep.subr.bf16.mxu0 %v17676_v25  ;;  %v17680_v59 = vcombine.high %v29214_v43, %v29213_v1  ;;  %v17679_v46 = vcombine.low %v29214_v43, %v29213_v1  ;;  %v10901_v25 = vld [vmem:[#allocation3 + $0xf8] sm:$0xff]  ;;  %v11167_v1 = vsub.s32 1, %v11162_v45  ;;  %v20232_v43 = vld [vmem:[%s28148_s9 + $0x70] sm:$0xff]  }
 0x910   :  { %v17438_v4 = vcombine.high %v10893_v35, %v10901_v25  ;;  %v17437_v27 = vcombine.low %v10893_v35, %v10901_v25  ;;  %v20233_v25 = vld [vmem:[%s28148_s9 + $0x30] sm:$0xff]  }
 0x912   :  { %12985 = vmatpush1.bf16.msra.mxu0 %v17675_v24  ;;  %v17421_v24 = vcombine.low %v27005_v54, %v27007_v55 }
 0x913   :  { %12986 = vmatprep.subr.bf16.mxu0 %v17674_v5  ;;  %v12645_v5 = vpop.f32.mrf.mxu0  ;;  %v12751_v2 = vpop.f32.mrf.mxu1 }
 0x915   :  { %12919 = vmatmul.mubr.bf16.gmra.mxu0 %v17433_v21  ;;  %v27067_v21 = vpop.f32.mrf.mxu0 }
 0x916   :  { %12987 = vmatpush1.bf16.msra.mxu0 %v17673_v36  ;;  %13014 = vmatprep.mubr.bf16.mxu0 %v17422_v42 }
 0x917   :  { %12988 = vmatprep.subr.bf16.mxu0 %v17672_v28  ;;  %v12649_v36 = vpop.f32.mrf.mxu0 }
 0x919   :  { %v27069_v42 = vpop.f32.mrf.mxu0 }
 0x91a   :  { %12989 = vmatpush1.bf16.msra.mxu0 %v17671_v62 }
 0x91b   :  { %12990 = vmatprep.subr.bf16.mxu0 %v17670_v48  ;;  %v27071_v8 = vpop.f32.mrf.mxu0 }
 0x91d   :  { %v27073_v3 = vpop.f32.mrf.mxu0 }
 0x91e   :  { %12991 = vmatpush1.bf16.msra.mxu0 %v17669_v39  ;;  %v27083_v39 = vpop.f32.mrf.mxu1 }
 0x91f   :  { %12992 = vmatprep.subr.bf16.mxu0 %v17668_v56  ;;  %v27075_v28 = vpop.f32.mrf.mxu0 }
 0x920   :  { %v12755_v16 = vpop.f32.mrf.mxu1 }
 0x921   :  { %v27077_v62 = vpop.f32.mrf.mxu0 }
 0x922   :  { %12993 = vmatpush1.bf16.msra.mxu0 %v17667_v57  ;;  %v27089_v57 = vpop.f32.mrf.mxu1 }
 0x923   :  { %12994 = vmatprep.subr.bf16.mxu0 %v17666_v30 }
 0x924   :  { %v27093_v9 = vpop.f32.mrf.mxu1 }
 0x926   :  { %12995 = vmatpush1.bf16.msra.mxu0 %v17665_v18  ;;  %v27097_v19 = vpop.f32.mrf.mxu1 }
 0x927   :  { %12996 = vmatprep.subr.bf16.mxu0 %v17664_v47 }
 0x928   :  { %v27101_v47 = vpop.f32.mrf.mxu1 }
 0x92a   :  { %12997 = vmatpush1.bf16.msra.mxu0 %v17663_v14  ;;  %v27103_v15 = vpop.f32.mrf.mxu1 }
 0x92b   :  { %12998 = vmatprep.subr.bf16.mxu0 %v17694_v38 }
 0x92e   :  { %12999 = vmatpush2.bf16.msra.mxu0 %v17693_v49 }
 0x92f   :  { %13000 = vmatprep.subr.bf16.mxu0 %v17692_v50 }
 0x932   :  { %13001 = vmatpush2.bf16.msra.mxu0 %v17691_v22 }
 0x933   :  { %13002 = vmatprep.subr.bf16.mxu0 %v17690_v13 }
 0x936   :  { %13003 = vmatpush2.bf16.msra.mxu0 %v17689_v33 }
 0x937   :  { %13004 = vmatprep.subr.bf16.mxu0 %v17688_v23 }
 0x93a   :  { %13005 = vmatpush2.bf16.msra.mxu0 %v17687_v44  ;;  %v11163_v44 = vsub.s32 0, %v11162_v45 }
 0x93b   :  { %13006 = vmatprep.subr.bf16.mxu0 %v17686_v17 }
 0x93e   :  { %13007 = vmatpush2.bf16.msra.mxu0 %v17685_v10  ;;  %v11164_v10 = vrot.slane %v17406_v29, %v11163_v44  ;;  %v20237_v44 = vld [vmem:[%s28148_s9 + $0x28] sm:$0xff]  }
 0x93f   :  { %13008 = vmatprep.subr.bf16.mxu0 %v17684_v6 }
 0x940   :  { %v12646_v6 = vadd.f32 %v12645_v5, %v11164_v10  ;;  %v11168_v5 = vrot.slane %v17406_v29, %v11167_v1 }
 0x942   :  { %13009 = vmatpush2.bf16.msra.mxu0 %v17683_v41  ;;  %v12648_v29 = vadd.f32 %v27067_v21, %v11168_v5  ;;  %v20239_v21 = vld [vmem:[%s28148_s9 + $0x20] sm:$0xff]  }
 0x943   :  { %13010 = vmatprep.subr.bf16.mxu0 %v17682_v53  ;;  %v20230_v53 = vld [vmem:[%s28148_s9 + $0x78] sm:$0xff]  }
 0x946   :  { %13011 = vmatpush2.bf16.msra.mxu0 %v17681_v26  ;;  %v20231_v26 = vld [vmem:[%s28148_s9 + $0x38] sm:$0xff]  }
 0x947   :  { %13012 = vmatprep.subr.bf16.mxu0 %v17680_v59  ;;  %v12650_v59 = vadd.f32 %v12649_v36, %v11164_v10  ;;  %v12652_v36 = vadd.f32 %v27069_v42, %v11168_v5 }
 0x94a   :  { %13013 = vmatpush2.bf16.msra.mxu0 %v17679_v46 }
 0x94b   :  { %18638 = vmatprep.subr.bf16.mxu0 %v20230_v53 }
 0x94d   :  { %13015 = vmatmul.mubr.bf16.vlgmr.msra.gmra.mxu0 %v17421_v24  ;;  %v12698_v54 = vpop.f32.mrf.mxu0 }
 0x94e   :  { %13024 = vmatprep.mubr.bf16.mxu0 %v17438_v4  ;;  %v12699_v32 = vadd.f32 %v12698_v54, %v12646_v6  ;;  %18639 = vmatpush3.bf16.msra.mxu0 %v20231_v26  ;;  %v12658_v6 = vadd.f32 %v27073_v3, %v11168_v5 }
 0x94f   :  { %v27079_v55 = vpop.f32.mrf.mxu0  ;;  %18640 = vmatprep.subr.bf16.mxu0 %v20232_v43 }
 0x950   :  { %v12752_v24 = vadd.f32 %v12751_v2, %v12699_v32  ;;  %v12660_v32 = vadd.f32 %v27075_v28, %v11164_v10  ;;  %v12701_v3 = vadd.f32 %v27079_v55, %v12648_v29 }
 0x951   :  { %v12702_v60 = vpop.f32.mrf.mxu0 }
 0x952   :  { %v12703_v4 = vadd.f32 %v12702_v60, %v12650_v59  ;;  %18641 = vmatpush3.bf16.msra.mxu0 %v20233_v25  ;;  %v20238_v60 = vld [vmem:[%s28148_s9 + $0x60] sm:$0xff]  }
 0x953   :  { %v27081_v48 = vpop.f32.mrf.mxu0  ;;  %v12857_v20 = vpop.f32.mrf.mxu1 }
 0x954   :  { %v12756_v2 = vadd.f32 %v12755_v16, %v12703_v4  ;;  %v12705_v42 = vadd.f32 %v27081_v48, %v12652_v36 }
 0x955   :  { %13025 = vmatmul.mubr.bf16.gmra.mxu0 %v17437_v27  ;;  %v27085_v63 = vpop.f32.mrf.mxu0  ;;  %v27107_v49 = vpop.f32.mrf.mxu1  ;;  %v20235_v27 = vld [vmem:[%s28148_s9 + $0x68] sm:$0xff]  }
 0x956   :  { %18642 = vmatprep.subr.bf16.mxu0 %v20235_v27  ;;  %v12758_v55 = vadd.f32 %v27089_v57, %v12705_v42 }
 0x957   :  { %v27087_v56 = vpop.f32.mrf.mxu0  ;;  %v27111_v0 = vpop.f32.mrf.mxu1  ;;  %18643 = vmatpush3.bf16.msra.mxu0 %v20237_v44 }
 0x958   :  { %v12711_v53 = vadd.f32 %v27087_v56, %v12658_v6  ;;  %18644 = vmatprep.subr.bf16.mxu0 %v20238_v60  ;;  %v20241_v56 = vld [vmem:[%s28148_s9 + $0x58] sm:$0xff]  }
 0x959   :  { %v27091_v51 = vpop.f32.mrf.mxu0  ;;  %v27115_v22 = vpop.f32.mrf.mxu1 }
 0x95a   :  { %v12713_v48 = vadd.f32 %v27091_v51, %v12660_v32 }
 0x95b   :  { %v27095_v30 = vpop.f32.mrf.mxu0  ;;  %v27119_v13 = vpop.f32.mrf.mxu1  ;;  %18645 = vmatpush3.bf16.msra.mxu0 %v20239_v21 }
 0x95c   :  { %v12766_v57 = vadd.f32 %v27101_v47, %v12713_v48  ;;  %18646 = vmatprep.subr.bf16.mxu0 %v20241_v56 }
 0x95d   :  { %v27123_v23 = vpop.f32.mrf.mxu1 }
 0x95f   :  { %v27130_v17 = vpop.f32.mrf.mxu1 }
 0x961   :  { %v27134_v34 = vpop.f32.mrf.mxu1 }
 0x98d   :  { %v12804_v18 = vpop.f32.mrf.mxu0 }
 0x98e   :  { %v12805_v54 = vadd.f32 %v12804_v18, %v12752_v24  ;;  %v12656_v18 = vadd.f32 %v27071_v8, %v11164_v10  ;;  %v12662_v8 = vadd.f32 %v27077_v62, %v11168_v5  ;;  %v12754_v10 = vadd.f32 %v27083_v39, %v12701_v3  ;;  %v20242_v24 = vld [vmem:[%s28148_s9 + $0x18] sm:$0xff]   ;;  %v20243_v39 = vld [vmem:[%s28148_s9 + $0x50] sm:$0xff]  }
 0x98f   :  { %v27099_v40 = vpop.f32.mrf.mxu0  ;;  %18647 = vmatpush3.bf16.msra.mxu0 %v20242_v24 }
 0x990   :  { %v12858_v26 = vadd.f32 %v12857_v20, %v12805_v54  ;;  %v12709_v16 = vadd.f32 %v27085_v63, %v12656_v18  ;;  %v12764_v63 = vadd.f32 %v27097_v19, %v12711_v53  ;;  %18648 = vmatprep.subr.bf16.mxu0 %v20243_v39 }
 0x991   :  { %v12808_v14 = vpop.f32.mrf.mxu0 }
 0x992   :  { %v12809_v1 = vadd.f32 %v12808_v14, %v12756_v2  ;;  %v12715_v14 = vadd.f32 %v27095_v30, %v12662_v8  ;;  %v12762_v62 = vadd.f32 %v27093_v9, %v12709_v16  ;;  %v12807_v9 = vadd.f32 %v27099_v40, %v12754_v10 }
 0x993   :  { %v27105_v38 = vpop.f32.mrf.mxu0  ;;  %v12963_v41 = vpop.f32.mrf.mxu1 }
 0x994   :  { %v12862_v20 = vadd.f32 %v27111_v0, %v12809_v1  ;;  %v12811_v51 = vadd.f32 %v27105_v38, %v12758_v55  ;;  %v12768_v27 = vadd.f32 %v27103_v15, %v12715_v14  ;;  %v12860_v15 = vadd.f32 %v27107_v49, %v12807_v9 }
 0x995   :  { %v27109_v12 = vpop.f32.mrf.mxu0  ;;  %v27147_v46 = vpop.f32.mrf.mxu1 }
 0x996   :  { %v12815_v38 = vadd.f32 %v27109_v12, %v12762_v62 }
 0x997   :  { %v27113_v50 = vpop.f32.mrf.mxu0  ;;  %v12967_v58 = vpop.f32.mrf.mxu1 }
 0x998   :  { %v12817_v19 = vadd.f32 %v27113_v50, %v12764_v63  ;;  %v12864_v50 = vadd.f32 %v27115_v22, %v12811_v51 }
 0x999   :  { %v27117_v31 = vpop.f32.mrf.mxu0  ;;  %v12969_v43 = vpop.f32.mrf.mxu1 }
 0x99a   :  { %v12819_v5 = vadd.f32 %v27117_v31, %v12766_v57  ;;  %v12870_v36 = vadd.f32 %v27123_v23, %v12817_v19  ;;  %v12868_v31 = vadd.f32 %v27119_v13, %v12815_v38  ;;  %v20224_v38 = vld [vmem:[%s28148_s9 + $0x178] sm:$0xff]  }
 0x99b   :  { %v27121_v33 = vpop.f32.mrf.mxu0 }
 0x99c   :  { %v12821_v40 = vadd.f32 %v27121_v33, %v12768_v27  ;;  %v12872_v6 = vadd.f32 %v27130_v17, %v12819_v5  ;;  %v20225_v27 = vld [vmem:[%s28148_s9 + $0x138] sm:$0xff]   ;;  %v20227_v5 = vld [vmem:[%s28148_s9 + $0x170] sm:$0xff]  }
 0x9cd   :  { %v12910_v7 = vpop.f32.mrf.mxu0 }
 0x9ce   :  { %v12911_v28 = vadd.f32 %v12910_v7, %v12858_v26  ;;  %v12973_v7 = vpop.f32.mrf.mxu1 }
 0x9cf   :  { %v27128_v52 = vpop.f32.mrf.mxu0 }
 0x9d0   :  { %v12964_v30 = vadd.f32 %v12963_v41, %v12911_v28  ;;  %v12975_v41 = vpop.f32.mrf.mxu1  ;;  %v12913_v18 = vadd.f32 %v27128_v52, %v12860_v15  ;;  %v20221_v15 = vld [vmem:[%s28147_s8 + $0x30] sm:$0xff]  }
 0x9d1   :  { %v27132_v11 = vpop.f32.mrf.mxu0 }
 0x9d2   :  { %v12915_v0 = vadd.f32 %v27132_v11, %v12862_v20  ;;  %v20244_v11 = vld [vmem:[%s28148_s9 + $0x10] sm:$0xff]   ;;  %v12977_v42 = vpop.f32.mrf.mxu1 }
 0x9d3   :  { %v27136_v37 = vpop.f32.mrf.mxu0  ;;  %18649 = vmatpush3.bf16.msra.mxu0 %v20244_v11  ;;  %v20217_v11 = vld [vmem:[%s28147_s8 + $0x10] sm:$0xff]  }
 0x9d4   :  { %v12968_v12 = vadd.f32 %v12967_v58, %v12915_v0  ;;  %v12917_v44 = vadd.f32 %v27136_v37, %v12864_v50  ;;  %v12874_v58 = vadd.f32 %v27134_v34, %v12821_v40  ;;  %v12979_v16 = vpop.f32.mrf.mxu1  ;;  %v20234_v50 = vld [vmem:[%s28148_s9 + $0x168] sm:$0xff]   ;;  %v20219_v40 = vld [vmem:[%s28147_s8 + $0x20] sm:$0xff]  }
 0x9d5   :  { %v27149_v35 = vpop.f32.mrf.mxu0 }
 0x9d6   :  { %v12921_v23 = vadd.f32 %v27149_v35, %v12868_v31  ;;  %v12970_v13 = vadd.f32 %v12969_v43, %v12917_v44  ;;  %v20222_v31 = vld [vmem:[%s28147_s8 + $0x38] sm:$0xff]   ;;  %v20223_v44 = vld [vmem:[%s28147_s8 + $0x40] sm:$0xff]  }
 0x9d7   :  { %v12922_v45 = vpop.f32.mrf.mxu0 }
 0x9d8   :  { %v12923_v2 = vadd.f32 %v12922_v45, %v12870_v36  ;;  %v12966_v45 = vadd.f32 %v27147_v46, %v12913_v18  ;;  %v12974_v3 = vadd.f32 %v12973_v7, %v12921_v23  ;;  %v20218_v36 = vld [vmem:[%s28147_s8 + $0x18] sm:$0xff]   ;;  %v20226_v18 = vld [vmem:[%s28147_s8 + $0x48] sm:$0xff]   ;;  %v20251_v23 = vld [vmem:[%s28148_s9] sm:$0xff]  }
 0x9d9   :  { %v12924_v59 = vpop.f32.mrf.mxu0 }
 0x9da   :  { %v12925_v49 = vadd.f32 %v12924_v59, %v12872_v6  ;;  %v12976_v37 = vadd.f32 %v12975_v41, %v12923_v2  ;;  %v20216_v41 = vld [vmem:[%s28147_s8 + $0x8] sm:$0xff]   ;;  %v20245_v6 = vld [vmem:[%s28148_s9 + $0x160] sm:$0xff]  }
 0x9db   :  { %v12926_v25 = vpop.f32.mrf.mxu0  ;;  %v20248_v2 = vld [vmem:[%s28148_s9 + $0x120] sm:$0xff]  }
 0x9dc   :  { %v12927_v26 = vadd.f32 %v12926_v25, %v12874_v58  ;;  %v12978_v21 = vadd.f32 %v12977_v42, %v12925_v49  ;;  %v20252_v42 = vld [vmem:[%s28148_s9 + $0xf8] sm:$0xff]  }
 0x9dd   :  { %v20256_v58 = vld [vmem:[%s28148_s9 + $0x158] sm:$0xff]  }
 0x9de   :  { %v12980_v34 = vadd.f32 %v12979_v16, %v12927_v26  ;;  %v20258_v49 = vld [vmem:[%s28148_s9 + $0x118] sm:$0xff]   ;;  %v20273_v26 = vld [vmem:[%s28148_s9 + $0x148] sm:$0xff]  }
 0x9df   :  { %v20281_v16 = vld [vmem:[%s28148_s9 + $0x278] sm:$0xff]  }
 0xa0d   :  { %v13016_v4 = vpop.f32.mrf.mxu0 }
 0xa0e   :  { %v13017_v47 = vadd.f32 %v13016_v4, %v12964_v30  ;;  %v20215_v4 = vld [vmem:[%s28147_s8] sm:$0xff]  }
 0xa0f   :  { %v13018_v54 = vpop.f32.mrf.mxu0 }
 0xa10   :  { %v13035_v60 = vmul.f32 0.2, %v13017_v47  ;;  %v13019_v59 = vadd.f32 %v13018_v54, %v12966_v45  ;;  %v20236_v54 = vld [vmem:[%s28148_s9 + $0x128] sm:$0xff]   ;;  %v20277_v45 = vld [vmem:[%s28148_s9 + $0x140] sm:$0xff]  }
 0xa11   :  { %v13020_v22 = vpop.f32.mrf.mxu0 }
 0xa12   :  { %v13021_v29 = vadd.f32 %v13020_v22, %v12968_v12  ;;  %v13043_v1 = vmax.f32 %v13017_v47, %v13035_v60  ;;  %v13036_v51 = vmul.f32 0.2, %v13019_v59  ;;  %v20229_v47 = vld [vmem:[%s28148_s9 + $0x130] sm:$0xff]   ;;  %v20220_v12 = vld [vmem:[%s28147_s8 + $0x28] sm:$0xff]  }
 0xa13   :  { %v13022_v33 = vpop.f32.mrf.mxu0  ;;  %v20247_v22 = vld [vmem:[%s28148_s9 + $0x48] sm:$0xff]  }
 0xa14   :  { %v13037_v32 = vmul.f32 0.2, %v13021_v29  ;;  %v13023_v8 = vadd.f32 %v13022_v33, %v12970_v13  ;;  %v13044_v30 = vmax.f32 %v13019_v59, %v13036_v51  ;;  %v20249_v60 = vld [vmem:[%s28148_s9 + $0x8] sm:$0xff]   ;;  %18650 = vmatprep.subr.bf16.mxu0 %v20247_v22  ;;  %v20228_v33 = vld [vmem:[%s28147_s8 + $0x50] sm:$0xff]   ;;  %v20246_v13 = vld [vmem:[%s28147_s8 + $0x60] sm:$0xff]  }
 0xa15   :  { %v13026_v53 = vpop.f32.mrf.mxu0  ;;  %18651 = vmatpush3.bf16.msra.mxu0 %v20249_v60  ;;  %v20294_v60 = vld [vmem:[%s28148_s9 + $0x220] sm:$0xff]  }
 0xa16   :  { %v13045_v17 = vmax.f32 %v13021_v29, %v13037_v32  ;;  %v13027_v28 = vadd.f32 %v13026_v53, %v12974_v3  ;;  %v13038_v63 = vmul.f32 0.2, %v13023_v8  ;;  %v20250_v29 = vld [vmem:[%s28148_s9 + $0x40] sm:$0xff]   ;;  %v20240_v32 = vld [vmem:[%s28147_s8 + $0x58] sm:$0xff]   ;;  %v20268_v53 = vld [vmem:[%s28148_s9 + $0x150] sm:$0xff]  }
 0xa17   :  { %v13028_v52 = vpop.f32.mrf.mxu0  ;;  %18652 = vmatprep.subr.bf16.mxu0 %v20250_v29  ;;  %v20278_v3 = vld [vmem:[%s28148_s9 + $0x100] sm:$0xff]   ;;  %v20279_v29 = vld [vmem:[%s28148_s9 + $0x1f8] sm:$0xff]  }
 0xa18   :  { %v13051_v35 = vpack.c.bf16 %v13045_v17, %v13043_v1  ;;  %v13029_v48 = vadd.f32 %v13028_v52, %v12976_v37  ;;  %v13039_v62 = vmul.f32 0.2, %v13027_v28  ;;  %v13046_v25 = vmax.f32 %v13023_v8, %v13038_v63  ;;  %v20269_v37 = vld [vmem:[%s28148_s9 + $0x110] sm:$0xff]   ;;  %v20274_v1 = vld [vmem:[%s28148_s9 + $0x108] sm:$0xff]  }
 0xa19   :  { %v13030_v56 = vpop.f32.mrf.mxu0  ;;  %18653 = vmatpush3.bf16.msra.mxu0 %v20251_v23  ;;  %v20260_v17 = vld [vmem:[%s28147_s8 + $0x68] sm:$0xff]   ;;  %v20265_v52 = vld [vmem:[%s28147_s8 + $0x70] sm:$0xff]  }
 0xa1a   :  { %v13031_v55 = vadd.f32 %v13030_v56, %v12978_v21  ;;  %v13040_v14 = vmul.f32 0.2, %v13029_v48  ;;  %v13047_v19 = vmax.f32 %v13027_v28, %v13039_v62  ;;  %v13052_v9 = vpack.c.bf16 %v13046_v25, %v13044_v30  ;;  %18660 = vmatprep.subr.bf16.mxu0 %v20252_v42  ;;  %v20272_v21 = vld [vmem:[%s28147_s8 + $0x78] sm:$0xff]   ;;  %v20255_v63 = vld [vmem:[%s28148_s9 + $0xb0] sm:$0xff]   ;;  %v20259_v62 = vld [vmem:[%s28148_s9 + $0xa8] sm:$0xff]  }
 0xa1b   :  { %v13032_v43 = vpop.f32.mrf.mxu0 }
 0xa1c   :  { %v13041_v20 = vmul.f32 0.2, %v13031_v55  ;;  %v13033_v10 = vadd.f32 %v13032_v43, %v12980_v34  ;;  %v13048_v24 = vmax.f32 %v13029_v48, %v13040_v14  ;;  %v20253_v34 = vld [vmem:[%s28148_s9 + $0xb8] sm:$0xff]   ;;  %v20257_v14 = vld [vmem:[%s28148_s9 + $0xe8] sm:$0xff]  }
 0xa1e   :  { %v13042_v46 = vmul.f32 0.2, %v13033_v10  ;;  %v13049_v7 = vmax.f32 %v13031_v55, %v13041_v20 }
 0xa20   :  { %v13050_v57 = vmax.f32 %v13033_v10, %v13042_v46  ;;  %v13053_v39 = vpack.c.bf16 %v13049_v7, %v13047_v19  ;;  %v20261_v46 = vld [vmem:[%s28148_s9 + $0xe0] sm:$0xff]  }
 0xa22   :  { %v13054_v0 = vpack.c.bf16 %v13050_v57, %v13048_v24  ;;  %v20262_v24 = vld [vmem:[%s28148_s9 + $0xa0] sm:$0xff]   ;;  %v20263_v57 = vld [vmem:[%s28148_s9 + $0xd8] sm:$0xff]  }
 0xa24   :  { %13227 = vmatprep.subr.bf16.mxu1 %v13054_v0 }
 0xa25   :  { %13228 = vmatpush1.bf16.msra.mxu1 %v13053_v39  ;;  %v20264_v39 = vld [vmem:[%s28148_s9 + $0x98] sm:$0xff]  }
 0xa26   :  { %13229 = vmatprep.subr.bf16.mxu1 %v13052_v9 }
 0xa29   :  { %13230 = vmatpush1.bf16.msra.mxu1 %v13051_v35 }
 0xa2a   :  { %18682 = vmatprep.subr.bf16.mxu1 %v20224_v38  ;;  %v20282_v38 = vld [vmem:[%s28148_s9 + $0x238] sm:$0xff]  }
 0xa2c   :  { %17711 = vmatmul.mubr.msk.bf16.vlgmr.msra.gmra.mxu1 %vm5415_vm1, %v20215_v4  ;;  %v20266_v4 = vld [vmem:[%s28148_s9 + $0xd0] sm:$0xff]  }
 0xa2d   :  { %13257 = vmatprep.mubr.bf16.mxu1 %v29164_v61  ;;  %18683 = vmatpush3.bf16.msra.mxu1 %v20225_v27  ;;  %v20285_v27 = vld [vmem:[%s28148_s9 + $0x270] sm:$0xff]  }
 0xa2e   :  { %18684 = vmatprep.subr.bf16.mxu1 %v20227_v5 }
 0xa31   :  { %18685 = vmatpush3.bf16.msra.mxu1 %v20229_v47 }
 0xa32   :  { %18686 = vmatprep.subr.bf16.mxu1 %v20234_v50  ;;  %v20267_v50 = vld [vmem:[%s28148_s9 + $0x90] sm:$0xff]  }
 0xa34   :  { %17712 = vmatmul.mubr.msk.bf16.gmra.mxu1 %vm5415_vm1, %v20216_v41  ;;  %v20286_v41 = vld [vmem:[%s28148_s9 + $0x230] sm:$0xff]  }
 0xa35   :  { %13267 = vmatprep.mubr.bf16.mxu1 %v29164_v61  ;;  %18687 = vmatpush3.bf16.msra.mxu1 %v20236_v54  ;;  %v20270_v54 = vld [vmem:[%s28148_s9 + $0xc8] sm:$0xff]  }
 0xa36   :  { %18688 = vmatprep.subr.bf16.mxu1 %v20245_v6 }
 0xa39   :  { %18689 = vmatpush3.bf16.msra.mxu1 %v20248_v2  ;;  %v20276_v2 = vld [vmem:[%s28148_s9 + $0x80] sm:$0xff]  }
 0xa3a   :  { %18690 = vmatprep.subr.bf16.mxu1 %v20256_v58  ;;  %v20298_v58 = vld [vmem:[%s28148_s9 + $0x218] sm:$0xff]  }
 0xa3c   :  { %17713 = vmatmul.mubr.msk.bf16.gmra.mxu1 %vm5415_vm1, %v20217_v11  ;;  %v20289_v11 = vld [vmem:[%s28148_s9 + $0x268] sm:$0xff]  }
 0xa3d   :  { %13277 = vmatprep.mubr.bf16.mxu1 %v29164_v61  ;;  %18691 = vmatpush3.bf16.msra.mxu1 %v20258_v49 }
 0xa3e   :  { %18692 = vmatprep.subr.bf16.mxu1 %v20268_v53  ;;  %v20301_v53 = vld [vmem:[%s28148_s9 + $0x250] sm:$0xff]  }
 0xa41   :  { %18693 = vmatpush3.bf16.msra.mxu1 %v20269_v37 }
 0xa42   :  { %18694 = vmatprep.subr.bf16.mxu1 %v20273_v26 }
 0xa44   :  { %17714 = vmatmul.mubr.msk.bf16.gmra.mxu1 %vm5415_vm1, %v20218_v36 }
 0xa45   :  { %13287 = vmatprep.mubr.bf16.mxu1 %v29164_v61  ;;  %18695 = vmatpush3.bf16.msra.mxu1 %v20274_v1 }
 0xa46   :  { %18696 = vmatprep.subr.bf16.mxu1 %v20277_v45  ;;  %v20302_v45 = vld [vmem:[%s28148_s9 + $0x210] sm:$0xff]  }
 0xa49   :  { %18697 = vmatpush3.bf16.msra.mxu1 %v20278_v3  ;;  %v20287_v3 = vld [vmem:[%s28148_s9 + $0x1e8] sm:$0xff]  }
 0xa4a   :  { %18726 = vmatprep.subr.bf16.mxu1 %v20281_v16  ;;  %v20305_v16 = vld [vmem:[%s28148_s9 + $0x248] sm:$0xff]  }
 0xa4c   :  { %17715 = vmatmul.mubr.msk.bf16.gmra.mxu1 %vm5415_vm1, %v20219_v40 }
 0xa4d   :  { %13297 = vmatprep.mubr.bf16.mxu1 %v29164_v61 }
 0xa54   :  { %17716 = vmatmul.mubr.msk.bf16.gmra.mxu1 %vm5415_vm1, %v20220_v12  ;;  %v20271_v12 = vld [vmem:[%s28148_s9 + $0x88] sm:$0xff]  }
 0xa55   :  { %13307 = vmatprep.mubr.bf16.mxu1 %v29164_v61 }
 0xa5c   :  { %17717 = vmatmul.mubr.msk.bf16.gmra.mxu1 %vm5415_vm1, %v20221_v15  ;;  %v20290_v15 = vld [vmem:[%s28148_s9 + $0x228] sm:$0xff]  }
 0xa5d   :  { %13317 = vmatprep.mubr.bf16.mxu1 %v29164_v61 }
 0xa64   :  { %17718 = vmatmul.mubr.msk.bf16.gmra.mxu1 %vm5415_vm1, %v20222_v31  ;;  %v20275_v31 = vld [vmem:[%s28148_s9 + $0xc0] sm:$0xff]  }
 0xa65   :  { %13327 = vmatprep.mubr.bf16.mxu1 %v29164_v61 }
 0xa6c   :  { %17719 = vmatmul.mubr.msk.bf16.gmra.mxu1 %vm5415_vm1, %v20223_v44  ;;  %v20293_v44 = vld [vmem:[%s28148_s9 + $0x260] sm:$0xff]  }
 0xa6d   :  { %13337 = vmatprep.mubr.bf16.mxu1 %v29164_v61 }
 0xa74   :  { %17720 = vmatmul.mubr.msk.bf16.gmra.mxu1 %vm5415_vm1, %v20226_v18  ;;  %v20297_v18 = vld [vmem:[%s28148_s9 + $0x258] sm:$0xff]  }
 0xa75   :  { %13347 = vmatprep.mubr.bf16.mxu1 %v29164_v61 }
 0xa7c   :  { %17721 = vmatmul.mubr.msk.bf16.gmra.mxu1 %vm5415_vm1, %v20228_v33  ;;  %v20280_v33 = vld [vmem:[%s28148_s9 + $0x1b8] sm:$0xff]  }
 0xa7d   :  { %13357 = vmatprep.mubr.bf16.mxu1 %v29164_v61 }
 0xa84   :  { %17722 = vmatmul.mubr.msk.bf16.gmra.mxu1 %vm5415_vm1, %v20240_v32 }
 0xa85   :  { %13367 = vmatprep.mubr.bf16.mxu1 %v29164_v61 }
 0xa8c   :  { %17723 = vmatmul.mubr.msk.bf16.gmra.mxu1 %vm5415_vm1, %v20246_v13  ;;  %v20283_v13 = vld [vmem:[%s28148_s9 + $0x1f0] sm:$0xff]  }
 0xa8d   :  { %13377 = vmatprep.mubr.bf16.mxu1 %v29164_v61 }
 0xa94   :  { %17724 = vmatmul.mubr.msk.bf16.gmra.mxu1 %vm5415_vm1, %v20260_v17  ;;  %v20284_v17 = vld [vmem:[%s28148_s9 + $0x1b0] sm:$0xff]  }
 0xa95   :  { %13387 = vmatprep.mubr.bf16.mxu1 %v29164_v61 }
 0xa9c   :  { %17725 = vmatmul.mubr.msk.bf16.gmra.mxu1 %vm5415_vm1, %v20265_v52 }
 0xa9d   :  { %13397 = vmatprep.mubr.bf16.mxu1 %v29164_v61  ;;  %v20254_v61 = vld [vmem:[%s28148_s9 + $0xf0] sm:$0xff]  }
 0xaa4   :  { %17726 = vmatmul.mubr.msk.bf16.gmra.mxu1 %vm5415_vm1, %v20272_v21 }
 0xaec   :  { %v13249_v35 = vpop.f32.mrf.mxu1 }
 0xaee   :  { %v13251_v8 = vpop.f32.mrf.mxu1 }
 0xaf0   :  { %v13253_v48 = vpop.f32.mrf.mxu1 }
 0xaf1   :  { %v18144_v59 = vpack.c.bf16 %v13253_v48, %v13249_v35  ;;  %v20288_v35 = vld [vmem:[%s28148_s9 + $0x1a8] sm:$0xff]   ;;  %v20291_v48 = vld [vmem:[%s28148_s9 + $0x1e0] sm:$0xff]  }
 0xaf2   :  { %v13255_v28 = vpop.f32.mrf.mxu1 }
 0xaf3   :  { %v18145_v56 = vpack.c.bf16 %v13255_v28, %v13251_v8  ;;  %v20306_v8 = vld [vmem:[%s28148_s9 + $0x208] sm:$0xff]   ;;  %v20309_v28 = vld [vmem:[%s28148_s9 + $0x240] sm:$0xff]  }
 0xaf4   :  { %v27365_v55 = vpop.f32.mrf.mxu1 }
 0xaf5   :  { %15905 = vmatprep.mubr.bf16.mxu0 %v18145_v56 }
 0xaf6   :  { %15906 = vmatmul.mubr.bf16.vlgmr.msra.gmra.mxu0 %v18144_v59  ;;  %v13261_v43 = vpop.f32.mrf.mxu1  ;;  %v20292_v59 = vld [vmem:[%s28148_s9 + $0x1a0] sm:$0xff]  }
 0xaf7   :  { %18661 = vmatpush3.bf16.msra.mxu0 %v20253_v34 }
 0xaf8   :  { %18662 = vmatprep.subr.bf16.mxu0 %v20254_v61  ;;  %v27373_v20 = vpop.f32.mrf.mxu1  ;;  %v20310_v61 = vld [vmem:[%s28148_s9 + $0x200] sm:$0xff]  }
 0xaf9   :  { %v18146_v32 = vpack.c.bf16 %v27373_v20, %v27365_v55  ;;  %v20295_v55 = vld [vmem:[%s28148_s9 + $0x1d8] sm:$0xff]  }
 0xafa   :  { %v13265_v10 = vpop.f32.mrf.mxu1 }
 0xafb   :  { %18663 = vmatpush3.bf16.msra.mxu0 %v20255_v63  ;;  %v18147_v51 = vpack.c.bf16 %v13265_v10, %v13261_v43  ;;  %v20313_v43 = vld [vmem:[%s28148_s9 + $0x378] sm:$0xff]  }
 0xafc   :  { %18664 = vmatprep.subr.bf16.mxu0 %v20257_v14  ;;  %v13269_v7 = vpop.f32.mrf.mxu1  ;;  %v20296_v10 = vld [vmem:[%s28148_s9 + $0x198] sm:$0xff]  }
 0xafd   :  { %15946 = vmatprep.mubr.bf16.mxu0 %v18147_v51  ;;  %v20299_v51 = vld [vmem:[%s28148_s9 + $0x1d0] sm:$0xff]  }
 0xafe   :  { %v13271_v25 = vpop.f32.mrf.mxu1 }
 0xaff   :  { %18665 = vmatpush3.bf16.msra.mxu0 %v20259_v62  ;;  %v20314_v62 = vld [vmem:[%s28148_s9 + $0x338] sm:$0xff]  }
 0xb00   :  { %18666 = vmatprep.subr.bf16.mxu0 %v20261_v46  ;;  %v13273_v19 = vpop.f32.mrf.mxu1  ;;  %v20317_v46 = vld [vmem:[%s28148_s9 + $0x370] sm:$0xff]  }
 0xb01   :  { %v18148_v30 = vpack.c.bf16 %v13273_v19, %v13269_v7  ;;  %v20303_v19 = vld [vmem:[%s28148_s9 + $0x1c8] sm:$0xff]  }
 0xb02   :  { %v13275_v0 = vpop.f32.mrf.mxu1 }
 0xb03   :  { %18667 = vmatpush3.bf16.msra.mxu0 %v20262_v24  ;;  %v18149_v9 = vpack.c.bf16 %v13275_v0, %v13271_v25  ;;  %v20300_v24 = vld [vmem:[%s28148_s9 + $0x190] sm:$0xff]  }
 0xb04   :  { %18668 = vmatprep.subr.bf16.mxu0 %v20263_v57  ;;  %v27399_v5 = vpop.f32.mrf.mxu1  ;;  %v20318_v57 = vld [vmem:[%s28148_s9 + $0x330] sm:$0xff]  }
 0xb05   :  { %15987 = vmatprep.mubr.bf16.mxu1 %v18149_v9  ;;  %v20322_v9 = vld [vmem:[%s28148_s9 + $0x328] sm:$0xff]  }
 0xb06   :  { %15988 = vmatmul.mubr.bf16.vlgmr.msra.gmra.mxu1 %v18148_v30  ;;  %v13281_v47 = vpop.f32.mrf.mxu1  ;;  %v20321_v30 = vld [vmem:[%s28148_s9 + $0x368] sm:$0xff]  }
 0xb07   :  { %18669 = vmatpush3.bf16.msra.mxu0 %v20264_v39  ;;  %18727 = vmatpush3.bf16.msra.mxu1 %v20282_v38  ;;  %v20304_v39 = vld [vmem:[%s28148_s9 + $0x188] sm:$0xff]   ;;  %v20307_v38 = vld [vmem:[%s28148_s9 + $0x1c0] sm:$0xff]  }
 0xb08   :  { %18670 = vmatprep.subr.bf16.mxu0 %v20266_v4  ;;  %18728 = vmatprep.subr.bf16.mxu1 %v20285_v27  ;;  %v27413_v36 = vpop.f32.mrf.mxu1  ;;  %v20325_v4 = vld [vmem:[%s28148_s9 + $0x360] sm:$0xff]  }
 0xb0a   :  { %v13285_v40 = vpop.f32.mrf.mxu1 }
 0xb0b   :  { %18671 = vmatpush3.bf16.msra.mxu0 %v20267_v50  ;;  %18729 = vmatpush3.bf16.msra.mxu1 %v20286_v41  ;;  %v18151_v26 = vpack.c.bf16 %v13285_v40, %v13281_v47  ;;  %v20308_v47 = vld [vmem:[%s28148_s9 + $0x180] sm:$0xff]   ;;  %v20311_v41 = vld [vmem:[%s28148_s9 + $0x2f8] sm:$0xff]  }
 0xb0c   :  { %18672 = vmatprep.subr.bf16.mxu0 %v20270_v54  ;;  %18730 = vmatprep.subr.bf16.mxu1 %v20289_v11  ;;  %v27427_v22 = vpop.f32.mrf.mxu1  ;;  %v20326_v50 = vld [vmem:[%s28148_s9 + $0x320] sm:$0xff]   ;;  %v20329_v54 = vld [vmem:[%s28148_s9 + $0x358] sm:$0xff]  }
 0xb0d   :  { %v20312_v40 = vld [vmem:[%s28148_s9 + $0x2b8] sm:$0xff]  }
 0xb0e   :  { %v13291_v6 = vpop.f32.mrf.mxu1 }
 0xb0f   :  { %18673 = vmatpush3.bf16.msra.mxu0 %v20271_v12  ;;  %18731 = vmatpush3.bf16.msra.mxu1 %v20290_v15  ;;  %v20330_v12 = vld [vmem:[%s28148_s9 + $0x318] sm:$0xff]   ;;  %v18150_v15 = vpack.c.bf16 %v27413_v36, %v27399_v5  ;;  %v20316_v5 = vld [vmem:[%s28148_s9 + $0x2b0] sm:$0xff]  }
 0xb10   :  { %18674 = vmatprep.subr.bf16.mxu0 %v20275_v31  ;;  %18732 = vmatprep.subr.bf16.mxu1 %v20293_v44  ;;  %v13293_v23 = vpop.f32.mrf.mxu1  ;;  %v20315_v31 = vld [vmem:[%s28148_s9 + $0x2f0] sm:$0xff]  }
 0xb11   :  { %v18152_v14 = vpack.c.bf16 %v13293_v23, %v27427_v22  ;;  %v20333_v44 = vld [vmem:[%s28148_s9 + $0x350] sm:$0xff]   ;;  %v20338_v23 = vld [vmem:[%s28148_s9 + $0x308] sm:$0xff]  }
 0xb12   :  { %v13295_v42 = vpop.f32.mrf.mxu1  ;;  %v20334_v36 = vld [vmem:[%s28148_s9 + $0x310] sm:$0xff]  }
 0xb13   :  { %18675 = vmatpush3.bf16.msra.mxu0 %v20276_v2  ;;  %18733 = vmatpush3.bf16.msra.mxu1 %v20294_v60  ;;  %v18153_v49 = vpack.c.bf16 %v13295_v42, %v13291_v6  ;;  %v20319_v2 = vld [vmem:[%s28148_s9 + $0x2e8] sm:$0xff]   ;;  %v20323_v42 = vld [vmem:[%s28148_s9 + $0x2e0] sm:$0xff]  }
 0xb14   :  { %18704 = vmatprep.subr.bf16.mxu0 %v20279_v29  ;;  %18734 = vmatprep.subr.bf16.mxu1 %v20297_v18  ;;  %v27455_v37 = vpop.f32.mrf.mxu1  ;;  %v20337_v60 = vld [vmem:[%s28148_s9 + $0x348] sm:$0xff]  }
 0xb15   :  { %16069 = vmatprep.mubr.bf16.mxu1 %v18153_v49  ;;  %v20320_v18 = vld [vmem:[%s28148_s9 + $0x2a8] sm:$0xff]   ;;  %v20324_v49 = vld [vmem:[%s28148_s9 + $0x2a0] sm:$0xff]  }
 0xb16   :  { %15947 = vmatmul.mubr.bf16.vlgmr.msra.gmra.mxu0 %v18146_v32  ;;  %v27457_v1 = vpop.f32.mrf.mxu1  ;;  %v20342_v32 = vld [vmem:[%s28148_s9 + $0x300] sm:$0xff]  }
 0xb17   :  { %18705 = vmatpush3.bf16.msra.mxu0 %v20280_v33  ;;  %18735 = vmatpush3.bf16.msra.mxu1 %v20298_v58  ;;  %v20341_v33 = vld [vmem:[%s28148_s9 + $0x340] sm:$0xff]  }
 0xb18   :  { %18706 = vmatprep.subr.bf16.mxu0 %v20283_v13  ;;  %18736 = vmatprep.subr.bf16.mxu1 %v20301_v53  ;;  %v27471_v52 = vpop.f32.mrf.mxu1  ;;  %v20327_v13 = vld [vmem:[%s28148_s9 + $0x2d8] sm:$0xff]  }
 0xb19   :  { %16028 = vmatprep.mubr.bf16.mxu0 %v18151_v26  ;;  %v20345_v53 = vld [vmem:[%s28148_s9 + $0x478] sm:$0xff]  }
 0xb1a   :  { %v27473_v21 = vpop.f32.mrf.mxu1 }
 0xb1b   :  { %18707 = vmatpush3.bf16.msra.mxu0 %v20284_v17  ;;  %18737 = vmatpush3.bf16.msra.mxu1 %v20302_v45  ;;  %v18155_v22 = vpack.c.bf16 %v27473_v21, %v27457_v1  ;;  %v20328_v17 = vld [vmem:[%s28148_s9 + $0x298] sm:$0xff]  }
 0xb1c   :  { %18708 = vmatprep.subr.bf16.mxu0 %v20287_v3  ;;  %18738 = vmatprep.subr.bf16.mxu1 %v20305_v16  ;;  %v27487_v56 = vpop.f32.mrf.mxu1  ;;  %v20346_v45 = vld [vmem:[%s28148_s9 + $0x438] sm:$0xff]   ;;  %v20331_v3 = vld [vmem:[%s28148_s9 + $0x2d0] sm:$0xff]  }
 0xb1d   :  { %v20349_v16 = vld [vmem:[%s28148_s9 + $0x470] sm:$0xff]  }
 0xb1e   :  { %v13311_v34 = vpop.f32.mrf.mxu1 }
 0xb1f   :  { %18709 = vmatpush3.bf16.msra.mxu0 %v20288_v35  ;;  %18739 = vmatpush3.bf16.msra.mxu1 %v20306_v8  ;;  %v20332_v8 = vld [vmem:[%s28148_s9 + $0x290] sm:$0xff]  }
 0xb20   :  { %18710 = vmatprep.subr.bf16.mxu0 %v20291_v48  ;;  %18740 = vmatprep.subr.bf16.mxu1 %v20309_v28  ;;  %v27501_v63 = vpop.f32.mrf.mxu1  ;;  %v20350_v48 = vld [vmem:[%s28148_s9 + $0x430] sm:$0xff]   ;;  %v20335_v28 = vld [vmem:[%s28148_s9 + $0x2c8] sm:$0xff]  }
 0xb21   :  { %v18156_v26 = vpack.c.bf16 %v27501_v63, %v27487_v56  ;;  %v20353_v56 = vld [vmem:[%s28148_s9 + $0x468] sm:$0xff]  }
 0xb22   :  { %v13315_v20 = vpop.f32.mrf.mxu1 }
 0xb23   :  { %18711 = vmatpush3.bf16.msra.mxu0 %v20292_v59  ;;  %18741 = vmatpush3.bf16.msra.mxu1 %v20310_v61  ;;  %v18157_v7 = vpack.c.bf16 %v13315_v20, %v13311_v34  ;;  %v20336_v59 = vld [vmem:[%s28148_s9 + $0x288] sm:$0xff]   ;;  %v20358_v20 = vld [vmem:[%s28148_s9 + $0x420] sm:$0xff]  }
 0xb24   :  { %18712 = vmatprep.subr.bf16.mxu0 %v20295_v55  ;;  %18770 = vmatprep.subr.bf16.mxu1 %v20313_v43  ;;  %v27516_v25 = vpop.f32.mrf.mxu1  ;;  %v20354_v61 = vld [vmem:[%s28148_s9 + $0x428] sm:$0xff]   ;;  %v20339_v55 = vld [vmem:[%s28148_s9 + $0x2c0] sm:$0xff]  }
 0xb25   :  { %v20357_v43 = vld [vmem:[%s28148_s9 + $0x460] sm:$0xff]  }
 0xb26   :  { %16070 = vmatmul.mubr.bf16.vlgmr.msra.gmra.mxu1 %v18152_v14  ;;  %v27530_v0 = vpop.f32.mrf.mxu1  ;;  %v20340_v14 = vld [vmem:[%s28148_s9 + $0x280] sm:$0xff]  }
 0xb27   :  { %18713 = vmatpush3.bf16.msra.mxu0 %v20296_v10  ;;  %18771 = vmatpush3.bf16.msra.mxu1 %v20314_v62  ;;  %v20343_v10 = vld [vmem:[%s28148_s9 + $0x3f8] sm:$0xff]  }
 0xb28   :  { %18714 = vmatprep.subr.bf16.mxu0 %v20299_v51  ;;  %18772 = vmatprep.subr.bf16.mxu1 %v20317_v46  ;;  %v27544_v27 = vpop.f32.mrf.mxu1  ;;  %v20361_v62 = vld [vmem:[%s28148_s9 + $0x458] sm:$0xff]  }
 0xb29   :  { %16151 = vmatprep.mubr.bf16.mxu1 %v18157_v7  ;;  %v20344_v46 = vld [vmem:[%s28148_s9 + $0x3b8] sm:$0xff]  }
 0xb2a   :  { %v27558_v11 = vpop.f32.mrf.mxu1  ;;  %v20362_v7 = vld [vmem:[%s28148_s9 + $0x418] sm:$0xff]  }
 0xb2b   :  { %18715 = vmatpush3.bf16.msra.mxu0 %v20300_v24  ;;  %18773 = vmatpush3.bf16.msra.mxu1 %v20318_v57  ;;  %v18154_v24 = vpack.c.bf16 %v27471_v52, %v27455_v37  ;;  %v20347_v57 = vld [vmem:[%s28148_s9 + $0x3f0] sm:$0xff]  }
 0xb2c   :  { %18716 = vmatprep.subr.bf16.mxu0 %v20303_v19  ;;  %18774 = vmatprep.subr.bf16.mxu1 %v20321_v30  ;;  %v27576_v6 = vpop.f32.mrf.mxu1  ;;  %v20365_v19 = vld [vmem:[%s28148_s9 + $0x450] sm:$0xff]   ;;  %v18159_v30 = vpack.c.bf16 %v27558_v11, %v27530_v0  ;;  %v20369_v0 = vld [vmem:[%s28148_s9 + $0x448] sm:$0xff]   ;;  %v20356_v11 = vld [vmem:[%s28148_s9 + $0x3a0] sm:$0xff]  }
 0xb2d   :  { %v20348_v37 = vld [vmem:[%s28148_s9 + $0x3b0] sm:$0xff]  }
 0xb2e   :  { %v13331_v29 = vpop.f32.mrf.mxu1  ;;  %v20366_v52 = vld [vmem:[%s28148_s9 + $0x410] sm:$0xff]  }
 0xb2f   :  { %18717 = vmatpush3.bf16.msra.mxu0 %v20304_v39  ;;  %18775 = vmatpush3.bf16.msra.mxu1 %v20322_v9  ;;  %v20351_v9 = vld [vmem:[%s28148_s9 + $0x3e8] sm:$0xff]  }
 0xb30   :  { %18718 = vmatprep.subr.bf16.mxu0 %v20307_v38  ;;  %18776 = vmatprep.subr.bf16.mxu1 %v20325_v4  ;;  %v27602_v58 = vpop.f32.mrf.mxu1  ;;  %v20352_v4 = vld [vmem:[%s28148_s9 + $0x3a8] sm:$0xff]  }
 0xb32   :  { %v13335_v1 = vpop.f32.mrf.mxu1 }
 0xb33   :  { %18719 = vmatpush3.bf16.msra.mxu0 %v20308_v47  ;;  %18777 = vmatpush3.bf16.msra.mxu1 %v20326_v50  ;;  %v18161_v21 = vpack.c.bf16 %v13335_v1, %v13331_v29  ;;  %v20370_v47 = vld [vmem:[%s28148_s9 + $0x408] sm:$0xff]   ;;  %v20355_v50 = vld [vmem:[%s28148_s9 + $0x3e0] sm:$0xff]   ;;  %v20364_v29 = vld [vmem:[%s28148_s9 + $0x390] sm:$0xff]  }
 0xb34   :  { %18748 = vmatprep.subr.bf16.mxu0 %v20311_v41  ;;  %18778 = vmatprep.subr.bf16.mxu1 %v20329_v54  ;;  %v27630_v35 = vpop.f32.mrf.mxu1  ;;  %v20373_v41 = vld [vmem:[%s28148_s9 + $0x440] sm:$0xff]  }
 0xb35   :  { %v20390_v1 = vld [vmem:[%s28148_s9 + $0x520] sm:$0xff]  }
 0xb36   :  { %16029 = vmatmul.mubr.bf16.vlgmr.msra.gmra.mxu0 %v18150_v15  ;;  %v27644_v34 = vpop.f32.mrf.mxu1  ;;  %v20377_v15 = vld [vmem:[%s28148_s9 + $0x578] sm:$0xff]  }
 0xb37   :  { %18749 = vmatpush3.bf16.msra.mxu0 %v20312_v40  ;;  %18779 = vmatpush3.bf16.msra.mxu1 %v20330_v12  ;;  %v20374_v40 = vld [vmem:[%s28148_s9 + $0x400] sm:$0xff]   ;;  %v20359_v12 = vld [vmem:[%s28148_s9 + $0x3d8] sm:$0xff]  }
 0xb38   :  { %18750 = vmatprep.subr.bf16.mxu0 %v20315_v31  ;;  %18780 = vmatprep.subr.bf16.mxu1 %v20333_v44  ;;  %v27658_v63 = vpop.f32.mrf.mxu1  ;;  %v18160_v31 = vpack.c.bf16 %v27602_v58, %v27576_v6  ;;  %v20381_v6 = vld [vmem:[%s28148_s9 + $0x570] sm:$0xff]   ;;  %v20368_v58 = vld [vmem:[%s28148_s9 + $0x388] sm:$0xff]  }
 0xb39   :  { %16110 = vmatprep.mubr.bf16.mxu0 %v18155_v22  ;;  %v20360_v22 = vld [vmem:[%s28148_s9 + $0x398] sm:$0xff]  }
 0xb3a   :  { %v27672_v51 = vpop.f32.mrf.mxu1 }
 0xb3b   :  { %18751 = vmatpush3.bf16.msra.mxu0 %v20316_v5  ;;  %18781 = vmatpush3.bf16.msra.mxu1 %v20334_v36  ;;  %v20378_v5 = vld [vmem:[%s28148_s9 + $0x538] sm:$0xff]   ;;  %v20363_v36 = vld [vmem:[%s28148_s9 + $0x3d0] sm:$0xff]  }
 0xb3c   :  { %18752 = vmatprep.subr.bf16.mxu0 %v20319_v2  ;;  %18782 = vmatprep.subr.bf16.mxu1 %v20337_v60  ;;  %v27690_v39 = vpop.f32.mrf.mxu1 }
 0xb3e   :  { %v13351_v38 = vpop.f32.mrf.mxu1 }
 0xb3f   :  { %18753 = vmatpush3.bf16.msra.mxu0 %v20320_v18  ;;  %18783 = vmatpush3.bf16.msra.mxu1 %v20338_v23  ;;  %v20382_v18 = vld [vmem:[%s28148_s9 + $0x530] sm:$0xff]   ;;  %v20367_v23 = vld [vmem:[%s28148_s9 + $0x3c8] sm:$0xff]  }
 0xb40   :  { %18754 = vmatprep.subr.bf16.mxu0 %v20323_v42  ;;  %18784 = vmatprep.subr.bf16.mxu1 %v20341_v33  ;;  %v27716_v54 = vpop.f32.mrf.mxu1  ;;  %v20385_v42 = vld [vmem:[%s28148_s9 + $0x568] sm:$0xff]  }
 0xb42   :  { %v13355_v44 = vpop.f32.mrf.mxu1 }
 0xb43   :  { %18755 = vmatpush3.bf16.msra.mxu0 %v20324_v49  ;;  %18785 = vmatpush3.bf16.msra.mxu1 %v20342_v32  ;;  %v18165_v2 = vpack.c.bf16 %v13355_v44, %v13351_v38  ;;  %v20386_v49 = vld [vmem:[%s28148_s9 + $0x528] sm:$0xff]   ;;  %v20371_v32 = vld [vmem:[%s28148_s9 + $0x3c0] sm:$0xff]   ;;  %v20414_v38 = vld [vmem:[%s28148_s9 + $0x630] sm:$0xff]  }
 0xb44   :  { %18756 = vmatprep.subr.bf16.mxu0 %v20327_v13  ;;  %18814 = vmatprep.subr.bf16.mxu1 %v20345_v53  ;;  %v27744_v60 = vpop.f32.mrf.mxu1  ;;  %v20389_v13 = vld [vmem:[%s28148_s9 + $0x560] sm:$0xff]   ;;  %v20407_v44 = vld [vmem:[%s28148_s9 + $0x5f8] sm:$0xff]  }
 0xb46   :  { %16152 = vmatmul.mubr.bf16.vlgmr.msra.gmra.mxu1 %v18156_v26  ;;  %v27758_v33 = vpop.f32.mrf.mxu1  ;;  %v20372_v26 = vld [vmem:[%s28148_s9 + $0x380] sm:$0xff]  }
 0xb47   :  { %18757 = vmatpush3.bf16.msra.mxu0 %v20328_v17  ;;  %18815 = vmatpush3.bf16.msra.mxu1 %v20346_v45  ;;  %v20375_v17 = vld [vmem:[%s28148_s9 + $0x4f8] sm:$0xff]  }
 0xb48   :  { %18758 = vmatprep.subr.bf16.mxu0 %v20331_v3  ;;  %18816 = vmatprep.subr.bf16.mxu1 %v20349_v16  ;;  %v27772_v53 = vpop.f32.mrf.mxu1  ;;  %v20393_v45 = vld [vmem:[%s28148_s9 + $0x558] sm:$0xff]  }
 0xb49   :  { %16233 = vmatprep.mubr.bf16.mxu1 %v18161_v21  ;;  %v20376_v16 = vld [vmem:[%s28148_s9 + $0x4b8] sm:$0xff]  }
 0xb4a   :  { %v27786_v3 = vpop.f32.mrf.mxu1  ;;  %v20394_v21 = vld [vmem:[%s28148_s9 + $0x518] sm:$0xff]  }
 0xb4b   :  { %18759 = vmatpush3.bf16.msra.mxu0 %v20332_v8  ;;  %18817 = vmatpush3.bf16.msra.mxu1 %v20350_v48  ;;  %v18158_v8 = vpack.c.bf16 %v27544_v27, %v27516_v25  ;;  %v20379_v48 = vld [vmem:[%s28148_s9 + $0x4f0] sm:$0xff]  }
 0xb4c   :  { %18760 = vmatprep.subr.bf16.mxu0 %v20335_v28  ;;  %18818 = vmatprep.subr.bf16.mxu1 %v20353_v56  ;;  %v20397_v28 = vld [vmem:[%s28148_s9 + $0x550] sm:$0xff]   ;;  %v18163_v56 = vpack.c.bf16 %v27672_v51, %v27644_v34  ;;  %v20401_v34 = vld [vmem:[%s28148_s9 + $0x548] sm:$0xff]   ;;  %v20388_v51 = vld [vmem:[%s28148_s9 + $0x4a0] sm:$0xff]  }
 0xb4d   :  { %v20380_v25 = vld [vmem:[%s28148_s9 + $0x4b0] sm:$0xff]  }
 0xb4e   :  { %v20398_v27 = vld [vmem:[%s28148_s9 + $0x510] sm:$0xff]  }
 0xb4f   :  { %18761 = vmatpush3.bf16.msra.mxu0 %v20336_v59  ;;  %18819 = vmatpush3.bf16.msra.mxu1 %v20354_v61  ;;  %v27804_v59 = vpop.f32.mrf.mxu1  ;;  %v20383_v61 = vld [vmem:[%s28148_s9 + $0x4e8] sm:$0xff]  }
 0xb50   :  { %18762 = vmatprep.subr.bf16.mxu0 %v20339_v55  ;;  %18820 = vmatprep.subr.bf16.mxu1 %v20357_v43  ;;  %v20384_v43 = vld [vmem:[%s28148_s9 + $0x4a8] sm:$0xff]  }
 0xb51   :  { %v13371_v55 = vpop.f32.mrf.mxu1 }
 0xb53   :  { %18763 = vmatpush3.bf16.msra.mxu0 %v20340_v14  ;;  %18821 = vmatpush3.bf16.msra.mxu1 %v20358_v20  ;;  %v20402_v14 = vld [vmem:[%s28148_s9 + $0x508] sm:$0xff]   ;;  %v20387_v20 = vld [vmem:[%s28148_s9 + $0x4e0] sm:$0xff]  }
 0xb54   :  { %18792 = vmatprep.subr.bf16.mxu0 %v20343_v10  ;;  %18822 = vmatprep.subr.bf16.mxu1 %v20361_v62  ;;  %v20405_v10 = vld [vmem:[%s28148_s9 + $0x540] sm:$0xff]   ;;  %v27830_v62 = vpop.f32.mrf.mxu1 }
 0xb56   :  { %16111 = vmatmul.mubr.bf16.vlgmr.msra.gmra.mxu0 %v18154_v24  ;;  %v20409_v24 = vld [vmem:[%s28148_s9 + $0x678] sm:$0xff]  }
 0xb57   :  { %18793 = vmatpush3.bf16.msra.mxu0 %v20344_v46  ;;  %18823 = vmatpush3.bf16.msra.mxu1 %v20362_v7  ;;  %v20406_v46 = vld [vmem:[%s28148_s9 + $0x500] sm:$0xff]   ;;  %v20391_v7 = vld [vmem:[%s28148_s9 + $0x4d8] sm:$0xff]  }
 0xb58   :  { %18794 = vmatprep.subr.bf16.mxu0 %v20347_v57  ;;  %18824 = vmatprep.subr.bf16.mxu1 %v20365_v19  ;;  %v18164_v57 = vpack.c.bf16 %v27716_v54, %v27690_v39  ;;  %v13375_v19 = vpop.f32.mrf.mxu1  ;;  %v20413_v39 = vld [vmem:[%s28148_s9 + $0x670] sm:$0xff]   ;;  %v20418_v54 = vld [vmem:[%s28148_s9 + $0x628] sm:$0xff]  }
 0xb59   :  { %16192 = vmatprep.mubr.bf16.mxu0 %v18159_v30  ;;  %v20392_v30 = vld [vmem:[%s28148_s9 + $0x498] sm:$0xff]  }
 0xb5b   :  { %18795 = vmatpush3.bf16.msra.mxu0 %v20348_v37  ;;  %18825 = vmatpush3.bf16.msra.mxu1 %v20366_v52  ;;  %v20410_v37 = vld [vmem:[%s28148_s9 + $0x638] sm:$0xff]   ;;  %v20395_v52 = vld [vmem:[%s28148_s9 + $0x4d0] sm:$0xff]  }
 0xb5c   :  { %18796 = vmatprep.subr.bf16.mxu0 %v20351_v9  ;;  %18826 = vmatprep.subr.bf16.mxu1 %v20369_v0  ;;  %v18169_v9 = vpack.c.bf16 %v13375_v19, %v13371_v55  ;;  %v20396_v0 = vld [vmem:[%s28148_s9 + $0x490] sm:$0xff]   ;;  %v20440_v19 = vld [vmem:[%s28148_s9 + $0x6b8] sm:$0xff]  }
 0xb5d   :  { %v20446_v55 = vld [vmem:[%s28148_s9 + $0x730] sm:$0xff]  }
 0xb5f   :  { %18797 = vmatpush3.bf16.msra.mxu0 %v20352_v4  ;;  %18827 = vmatpush3.bf16.msra.mxu1 %v20370_v47  ;;  %v20399_v4 = vld [vmem:[%s28148_s9 + $0x4c8] sm:$0xff]  }
 0xb60   :  { %18798 = vmatprep.subr.bf16.mxu0 %v20355_v50  ;;  %18828 = vmatprep.subr.bf16.mxu1 %v20373_v41  ;;  %v20417_v47 = vld [vmem:[%s28148_s9 + $0x668] sm:$0xff]   ;;  %v27870_v50 = vpop.f32.mrf.mxu1 }
 0xb61   :  { %v20400_v41 = vld [vmem:[%s28148_s9 + $0x488] sm:$0xff]  }
 0xb63   :  { %18799 = vmatpush3.bf16.msra.mxu0 %v20356_v11  ;;  %18829 = vmatpush3.bf16.msra.mxu1 %v20374_v40  ;;  %v20403_v11 = vld [vmem:[%s28148_s9 + $0x4c0] sm:$0xff]  }
 0xb64   :  { %18800 = vmatprep.subr.bf16.mxu0 %v20359_v12  ;;  %18858 = vmatprep.subr.bf16.mxu1 %v20377_v15  ;;  %v20421_v40 = vld [vmem:[%s28148_s9 + $0x660] sm:$0xff]   ;;  %v27884_v12 = vpop.f32.mrf.mxu1 }
 0xb65   :  { %v20404_v15 = vld [vmem:[%s28148_s9 + $0x480] sm:$0xff]  }
 0xb66   :  { %16234 = vmatmul.mubr.bf16.vlgmr.msra.gmra.mxu1 %v18160_v31  ;;  %v20422_v31 = vld [vmem:[%s28148_s9 + $0x620] sm:$0xff]  }
 0xb67   :  { %18801 = vmatpush3.bf16.msra.mxu0 %v20360_v22  ;;  %18859 = vmatpush3.bf16.msra.mxu1 %v20378_v5  ;;  %v20425_v22 = vld [vmem:[%s28148_s9 + $0x658] sm:$0xff]   ;;  %v27898_v5 = vpop.f32.mrf.mxu1 }
 0xb68   :  { %18802 = vmatprep.subr.bf16.mxu0 %v20363_v36  ;;  %18860 = vmatprep.subr.bf16.mxu1 %v20381_v6  ;;  %v20408_v36 = vld [vmem:[%s28148_s9 + $0x5b8] sm:$0xff]  }
 0xb69   :  { %16315 = vmatprep.mubr.bf16.mxu1 %v18165_v2  ;;  %v20426_v6 = vld [vmem:[%s28148_s9 + $0x618] sm:$0xff]   ;;  %v18162_v2 = vpack.c.bf16 %v27658_v63, %v27630_v35  ;;  %v20412_v35 = vld [vmem:[%s28148_s9 + $0x5b0] sm:$0xff]  }
 0xb6a   :  { %v20430_v63 = vld [vmem:[%s28148_s9 + $0x610] sm:$0xff]  }
 0xb6b   :  { %18803 = vmatpush3.bf16.msra.mxu0 %v20364_v29  ;;  %18861 = vmatpush3.bf16.msra.mxu1 %v20382_v18  ;;  %v20411_v29 = vld [vmem:[%s28148_s9 + $0x5f0] sm:$0xff]  }
 0xb6c   :  { %18804 = vmatprep.subr.bf16.mxu0 %v20367_v23  ;;  %18862 = vmatprep.subr.bf16.mxu1 %v20385_v42  ;;  %v20429_v18 = vld [vmem:[%s28148_s9 + $0x650] sm:$0xff]   ;;  %v27914_v23 = vpop.f32.mrf.mxu1  ;;  %v18167_v42 = vpack.c.bf16 %v27786_v3, %v27758_v33  ;;  %v20433_v33 = vld [vmem:[%s28148_s9 + $0x648] sm:$0xff]   ;;  %v20438_v3 = vld [vmem:[%s28148_s9 + $0x600] sm:$0xff]  }
 0xb6f   :  { %18805 = vmatpush3.bf16.msra.mxu0 %v20368_v58  ;;  %18863 = vmatpush3.bf16.msra.mxu1 %v20386_v49  ;;  %v20415_v58 = vld [vmem:[%s28148_s9 + $0x5e8] sm:$0xff]   ;;  %v27930_v49 = vpop.f32.mrf.mxu1 }
 0xb70   :  { %18806 = vmatprep.subr.bf16.mxu0 %v20371_v32  ;;  %18864 = vmatprep.subr.bf16.mxu1 %v20389_v13  ;;  %v20416_v32 = vld [vmem:[%s28148_s9 + $0x5a8] sm:$0xff]  }
 0xb71   :  { %v20434_v13 = vld [vmem:[%s28148_s9 + $0x608] sm:$0xff]  }
 0xb73   :  { %18807 = vmatpush3.bf16.msra.mxu0 %v20372_v26  ;;  %18865 = vmatpush3.bf16.msra.mxu1 %v20390_v1  ;;  %v20419_v26 = vld [vmem:[%s28148_s9 + $0x5e0] sm:$0xff]  }
 0xb74   :  { %18836 = vmatprep.subr.bf16.mxu0 %v20375_v17  ;;  %18866 = vmatprep.subr.bf16.mxu1 %v20393_v45  ;;  %v20437_v1 = vld [vmem:[%s28148_s9 + $0x640] sm:$0xff]   ;;  %v13391_v17 = vpop.f32.mrf.mxu1 }
 0xb75   :  { %v20420_v45 = vld [vmem:[%s28148_s9 + $0x5a0] sm:$0xff]  }
 0xb76   :  { %16193 = vmatmul.mubr.bf16.vlgmr.msra.gmra.mxu0 %v18158_v8  ;;  %v27956_v8 = vpop.f32.mrf.mxu1 }
 0xb77   :  { %18837 = vmatpush3.bf16.msra.mxu0 %v20376_v16  ;;  %18867 = vmatpush3.bf16.msra.mxu1 %v20394_v21  ;;  %v20423_v16 = vld [vmem:[%s28148_s9 + $0x5d8] sm:$0xff]  }
 0xb78   :  { %18838 = vmatprep.subr.bf16.mxu0 %v20379_v48  ;;  %18868 = vmatprep.subr.bf16.mxu1 %v20397_v28  ;;  %v20441_v21 = vld [vmem:[%s28148_s9 + $0x778] sm:$0xff]   ;;  %v18168_v48 = vpack.c.bf16 %v27830_v62, %v27804_v59  ;;  %v20445_v59 = vld [vmem:[%s28148_s9 + $0x770] sm:$0xff]   ;;  %v20435_v62 = vld [vmem:[%s28148_s9 + $0x5c0] sm:$0xff]  }
 0xb79   :  { %16274 = vmatprep.mubr.bf16.mxu0 %v18163_v56  ;;  %v20424_v28 = vld [vmem:[%s28148_s9 + $0x598] sm:$0xff]  }
 0xb7a   :  { %v20442_v56 = vld [vmem:[%s28148_s9 + $0x738] sm:$0xff]  }
 0xb7b   :  { %18839 = vmatpush3.bf16.msra.mxu0 %v20380_v25  ;;  %18869 = vmatpush3.bf16.msra.mxu1 %v20398_v27  ;;  %v20427_v25 = vld [vmem:[%s28148_s9 + $0x5d0] sm:$0xff]   ;;  %v13395_v27 = vpop.f32.mrf.mxu1 }
 0xb7c   :  { %18840 = vmatprep.subr.bf16.mxu0 %v20383_v61  ;;  %18870 = vmatprep.subr.bf16.mxu1 %v20401_v34  ;;  %v18173_v61 = vpack.c.bf16 %v13395_v27, %v13391_v17  ;;  %v20428_v34 = vld [vmem:[%s28148_s9 + $0x590] sm:$0xff]   ;;  %v20479_v17 = vld [vmem:[%s28148_s9 + $0x7d8] sm:$0xff]  }
 0xb7f   :  { %18841 = vmatpush3.bf16.msra.mxu0 %v20384_v43  ;;  %18871 = vmatpush3.bf16.msra.mxu1 %v20402_v14  ;;  %v20431_v43 = vld [vmem:[%s28148_s9 + $0x5c8] sm:$0xff]  }
 0xb80   :  { %18842 = vmatprep.subr.bf16.mxu0 %v20387_v20  ;;  %18872 = vmatprep.subr.bf16.mxu1 %v20405_v10  ;;  %v20449_v14 = vld [vmem:[%s28148_s9 + $0x768] sm:$0xff]  }
 0xb81   :  { %v20432_v20 = vld [vmem:[%s28148_s9 + $0x588] sm:$0xff]  }
 0xb82   :  { %v20450_v10 = vld [vmem:[%s28148_s9 + $0x728] sm:$0xff]  }
 0xb83   :  { %18843 = vmatpush3.bf16.msra.mxu0 %v20388_v51  ;;  %18873 = vmatpush3.bf16.msra.mxu1 %v20406_v46  ;;  %v20453_v51 = vld [vmem:[%s28148_s9 + $0x760] sm:$0xff]  }
 0xb84   :  { %18844 = vmatprep.subr.bf16.mxu0 %v20391_v7  ;;  %18902 = vmatprep.subr.bf16.mxu1 %v20409_v24  ;;  %v20436_v46 = vld [vmem:[%s28148_s9 + $0x580] sm:$0xff]   ;;  %v20439_v24 = vld [vmem:[%s28148_s9 + $0x6f8] sm:$0xff]  }
 0xb85   :  { %v20454_v7 = vld [vmem:[%s28148_s9 + $0x720] sm:$0xff]  }
 0xb86   :  { %16316 = vmatmul.mubr.bf16.vlgmr.msra.gmra.mxu1 %v18164_v57  ;;  %v20457_v57 = vld [vmem:[%s28148_s9 + $0x758] sm:$0xff]  }
 0xb87   :  { %18845 = vmatpush3.bf16.msra.mxu0 %v20392_v30  ;;  %18903 = vmatpush3.bf16.msra.mxu1 %v20410_v37  ;;  %v20458_v30 = vld [vmem:[%s28148_s9 + $0x718] sm:$0xff]   ;;  %v18166_v37 = vpack.c.bf16 %v27772_v53, %v27744_v60  ;;  %v20462_v60 = vld [vmem:[%s28148_s9 + $0x710] sm:$0xff]   ;;  %v20447_v53 = vld [vmem:[%s28148_s9 + $0x6e8] sm:$0xff]  }
 0xb88   :  { %18846 = vmatprep.subr.bf16.mxu0 %v20395_v52  ;;  %18904 = vmatprep.subr.bf16.mxu1 %v20413_v39  ;;  %v20443_v52 = vld [vmem:[%s28148_s9 + $0x6f0] sm:$0xff]  }
 0xb89   :  { %16397 = vmatprep.mubr.bf16.mxu1 %v18169_v9  ;;  %v20461_v39 = vld [vmem:[%s28148_s9 + $0x750] sm:$0xff]   ;;  %v18171_v9 = vpack.c.bf16 %v27914_v23, %v27884_v12  ;;  %v20455_v12 = vld [vmem:[%s28148_s9 + $0x6d8] sm:$0xff]  }
 0xb8b   :  { %18847 = vmatpush3.bf16.msra.mxu0 %v20396_v0  ;;  %18905 = vmatpush3.bf16.msra.mxu1 %v20414_v38  ;;  %v20444_v0 = vld [vmem:[%s28148_s9 + $0x6b0] sm:$0xff]   ;;  %v20465_v38 = vld [vmem:[%s28148_s9 + $0x748] sm:$0xff]  }
 0xb8c   :  { %18848 = vmatprep.subr.bf16.mxu0 %v20399_v4  ;;  %18906 = vmatprep.subr.bf16.mxu1 %v20417_v47  ;;  %v20448_v4 = vld [vmem:[%s28148_s9 + $0x6a8] sm:$0xff]  }
 0xb8d   :  { %v20466_v47 = vld [vmem:[%s28148_s9 + $0x708] sm:$0xff]  }
 0xb8f   :  { %18849 = vmatpush3.bf16.msra.mxu0 %v20400_v41  ;;  %18907 = vmatpush3.bf16.msra.mxu1 %v20418_v54  ;;  %v20451_v41 = vld [vmem:[%s28148_s9 + $0x6e0] sm:$0xff]  }
 0xb90   :  { %18850 = vmatprep.subr.bf16.mxu0 %v20403_v11  ;;  %18908 = vmatprep.subr.bf16.mxu1 %v20421_v40  ;;  %v20469_v54 = vld [vmem:[%s28148_s9 + $0x740] sm:$0xff]  }
 0xb91   :  { %v20452_v11 = vld [vmem:[%s28148_s9 + $0x6a0] sm:$0xff]  }
 0xb92   :  { %v20470_v40 = vld [vmem:[%s28148_s9 + $0x700] sm:$0xff]  }
 0xb93   :  { %18851 = vmatpush3.bf16.msra.mxu0 %v20404_v15  ;;  %18909 = vmatpush3.bf16.msra.mxu1 %v20422_v31  ;;  %v18172_v15 = vpack.c.bf16 %v27956_v8, %v27930_v49  ;;  %v20456_v31 = vld [vmem:[%s28148_s9 + $0x698] sm:$0xff]   ;;  %v18170_v49 = vpack.c.bf16 %v27898_v5, %v27870_v50  ;;  %v20476_v50 = vld [vmem:[%s28148_s9 + $0x7a8] sm:$0xff]   ;;  %v20477_v5 = vld [vmem:[%s28148_s9 + $0x7e0] sm:$0xff]  }
 0xb94   :  { %18880 = vmatprep.subr.bf16.mxu0 %v20407_v44  ;;  %18910 = vmatprep.subr.bf16.mxu1 %v20425_v22  ;;  %v20459_v44 = vld [vmem:[%s28148_s9 + $0x6d0] sm:$0xff]   ;;  %v13399_v22 = vpop.f32.mrf.mxu1  ;;  %v20484_v8 = vld [vmem:[%s28148_s9 + $0x788] sm:$0xff]  }
 0xb96   :  { %16275 = vmatmul.mubr.bf16.vlgmr.msra.gmra.mxu0 %v18162_v2  ;;  %v13401_v2 = vpop.f32.mrf.mxu1 }
 0xb97   :  { %18881 = vmatpush3.bf16.msra.mxu0 %v20408_v36  ;;  %18911 = vmatpush3.bf16.msra.mxu1 %v20426_v6  ;;  %v20460_v36 = vld [vmem:[%s28148_s9 + $0x690] sm:$0xff]   ;;  %v20463_v6 = vld [vmem:[%s28148_s9 + $0x6c8] sm:$0xff]  }
 0xb98   :  { %18882 = vmatprep.subr.bf16.mxu0 %v20411_v29  ;;  %18912 = vmatprep.subr.bf16.mxu1 %v20429_v18  ;;  %v20464_v29 = vld [vmem:[%s28148_s9 + $0x688] sm:$0xff]   ;;  %v20467_v18 = vld [vmem:[%s28148_s9 + $0x6c0] sm:$0xff]   ;;  %v13403_v23 = vpop.f32.mrf.mxu1 }
 0xb99   :  { %16356 = vmatprep.mubr.bf16.mxu0 %v18167_v42  ;;  %v20468_v42 = vld [vmem:[%s28148_s9 + $0x680] sm:$0xff]  }
 0xb9b   :  { %18883 = vmatpush3.bf16.msra.mxu0 %v20412_v35  ;;  %18913 = vmatpush3.bf16.msra.mxu1 %v20430_v63  ;;  %v20471_v35 = vld [vmem:[%s28148_s9 + $0x7f8] sm:$0xff]   ;;  %v13405_v63 = vpop.f32.mrf.mxu1 }
 0xb9c   :  { %18884 = vmatprep.subr.bf16.mxu0 %v20415_v58  ;;  %18914 = vmatprep.subr.bf16.mxu1 %v20433_v33  ;;  %v18175_v58 = vpack.c.bf16 %v13405_v63, %v13401_v2  ;;  %v20472_v33 = vld [vmem:[%s28148_s9 + $0x7b8] sm:$0xff]  }
 0xb9f   :  { %18885 = vmatpush3.bf16.msra.mxu0 %v20416_v32  ;;  %18915 = vmatpush3.bf16.msra.mxu1 %v20434_v13  ;;  %v20473_v32 = vld [vmem:[%s28148_s9 + $0x7f0] sm:$0xff]  }
 0xba0   :  { %18886 = vmatprep.subr.bf16.mxu0 %v20419_v26  ;;  %18916 = vmatprep.subr.bf16.mxu1 %v20437_v1  ;;  %v20474_v13 = vld [vmem:[%s28148_s9 + $0x7b0] sm:$0xff]   ;;  %v20475_v26 = vld [vmem:[%s28148_s9 + $0x7e8] sm:$0xff]   ;;  %v20478_v1 = vld [vmem:[%s28148_s9 + $0x7a0] sm:$0xff]  }
 0xba3   :  { %18887 = vmatpush3.bf16.msra.mxu0 %v20420_v45  ;;  %18917 = vmatpush3.bf16.msra.mxu1 %v20438_v3  ;;  %v20480_v45 = vld [vmem:[%s28148_s9 + $0x798] sm:$0xff]   ;;  %v20481_v3 = vld [vmem:[%s28148_s9 + $0x7d0] sm:$0xff]  }
 0xba4   :  { %18888 = vmatprep.subr.bf16.mxu0 %v20423_v16  ;;  %18946 = vmatprep.subr.bf16.mxu1 %v20441_v21  ;;  %v20482_v16 = vld [vmem:[%s28148_s9 + $0x790] sm:$0xff]   ;;  %v20483_v21 = vld [vmem:[%s28148_s9 + $0x7c8] sm:$0xff]  }
 0xba6   :  { %16398 = vmatmul.mubr.bf16.vlgmr.msra.gmra.mxu1 %v18168_v48  ;;  %v20485_v48 = vld [vmem:[%s28148_s9 + $0x7c0] sm:$0xff]  }
 0xba7   :  { %18889 = vmatpush3.bf16.msra.mxu0 %v20424_v28  ;;  %18947 = vmatpush3.bf16.msra.mxu1 %v20442_v56  ;;  %v20486_v28 = vld [vmem:[%s28148_s9 + $0x780] sm:$0xff]   ;;  %v18174_v56 = vpack.c.bf16 %v13403_v23, %v13399_v22 }
 0xba8   :  { %18890 = vmatprep.subr.bf16.mxu0 %v20427_v25  ;;  %18948 = vmatprep.subr.bf16.mxu1 %v20445_v59 }
 0xba9   :  { %16479 = vmatprep.mubr.bf16.mxu1 %v18173_v61 }
 0xbab   :  { %18891 = vmatpush3.bf16.msra.mxu0 %v20428_v34  ;;  %18949 = vmatpush3.bf16.msra.mxu1 %v20446_v55 }
 0xbac   :  { %18892 = vmatprep.subr.bf16.mxu0 %v20431_v43  ;;  %18950 = vmatprep.subr.bf16.mxu1 %v20449_v14 }
 0xbaf   :  { %18893 = vmatpush3.bf16.msra.mxu0 %v20432_v20  ;;  %18951 = vmatpush3.bf16.msra.mxu1 %v20450_v10 }
 0xbb0   :  { %18894 = vmatprep.subr.bf16.mxu0 %v20435_v62  ;;  %18952 = vmatprep.subr.bf16.mxu1 %v20453_v51 }
 0xbb3   :  { %18895 = vmatpush3.bf16.msra.mxu0 %v20436_v46  ;;  %18953 = vmatpush3.bf16.msra.mxu1 %v20454_v7 }
 0xbb4   :  { %18924 = vmatprep.subr.bf16.mxu0 %v20439_v24  ;;  %18954 = vmatprep.subr.bf16.mxu1 %v20457_v57 }
 0xbb6   :  { %16357 = vmatmul.mubr.bf16.vlgmr.msra.gmra.mxu0 %v18166_v37  ;;  %v18654_v25 = vpop.f32.mrf.mxu0 }
 0xbb7   :  { %18925 = vmatpush3.bf16.msra.mxu0 %v20440_v19  ;;  %18955 = vmatpush3.bf16.msra.mxu1 %v20458_v30 }
 0xbb8   :  { %18926 = vmatprep.subr.bf16.mxu0 %v20443_v52  ;;  %18956 = vmatprep.subr.bf16.mxu1 %v20461_v39  ;;  %v18655_v59 = vpop.f32.mrf.mxu0 }
 0xbb9   :  { %16438 = vmatprep.mubr.bf16.mxu0 %v18171_v9  ;;  %v18656_v22 = vadd.f32 %v18655_v59, %v18654_v25 }
 0xbba   :  { %v18657_v27 = vpop.f32.mrf.mxu0 }
 0xbbb   :  { %18927 = vmatpush3.bf16.msra.mxu0 %v20444_v0  ;;  %18957 = vmatpush3.bf16.msra.mxu1 %v20462_v60 }
 0xbbc   :  { %18928 = vmatprep.subr.bf16.mxu0 %v20447_v53  ;;  %18958 = vmatprep.subr.bf16.mxu1 %v20465_v38  ;;  %v18658_v61 = vpop.f32.mrf.mxu0 }
 0xbbf   :  { %18929 = vmatpush3.bf16.msra.mxu0 %v20448_v4  ;;  %18959 = vmatpush3.bf16.msra.mxu1 %v20466_v47 }
 0xbc0   :  { %18930 = vmatprep.subr.bf16.mxu0 %v20451_v41  ;;  %18960 = vmatprep.subr.bf16.mxu1 %v20469_v54 }
 0xbc3   :  { %18931 = vmatpush3.bf16.msra.mxu0 %v20452_v11  ;;  %18961 = vmatpush3.bf16.msra.mxu1 %v20470_v40 }
 0xbc4   :  { %18932 = vmatprep.subr.bf16.mxu0 %v20455_v12 }
 0xbc6   :  { %16480 = vmatmul.mubr.bf16.vlgmr.msra.gmra.mxu1 %v18172_v15  ;;  %v18698_v43 = vpop.f32.mrf.mxu1 }
 0xbc7   :  { %18933 = vmatpush3.bf16.msra.mxu0 %v20456_v31 }
 0xbc8   :  { %18934 = vmatprep.subr.bf16.mxu0 %v20459_v44  ;;  %v18699_v20 = vpop.f32.mrf.mxu1 }
 0xbc9   :  { %v18700_v63 = vadd.f32 %v18699_v20, %v18698_v43 }
 0xbca   :  { %v18701_v62 = vpop.f32.mrf.mxu1 }
 0xbcb   :  { %18935 = vmatpush3.bf16.msra.mxu0 %v20460_v36  ;;  %v14176_v36 = vld [vmem:[%s28149_s10 + $0x4] ss:$0 sm:$0xff] }
 0xbcc   :  { %18936 = vmatprep.subr.bf16.mxu0 %v20463_v6  ;;  %v18702_v46 = vpop.f32.mrf.mxu1  ;;  %v15908_v23 = vadd.f32 %v18656_v22, %v14176_v36 }
 0xbcf   :  { %18937 = vmatpush3.bf16.msra.mxu0 %v20464_v29 }
 0xbd0   :  { %18938 = vmatprep.subr.bf16.mxu0 %v20467_v18 }
 0xbd3   :  { %18939 = vmatpush3.bf16.msra.mxu0 %v20468_v42  ;;  %v18659_v42 = vadd.f32 %v18658_v61, %v18657_v27 }
 0xbd4   :  { %18968 = vmatprep.subr.bf16.mxu0 %v20471_v35 }
 0xbd6   :  { %16439 = vmatmul.mubr.bf16.vlgmr.msra.gmra.mxu0 %v18170_v49  ;;  %v18676_v34 = vpop.f32.mrf.mxu0 }
 0xbd7   :  { %18969 = vmatpush3.bf16.msra.mxu0 %v20472_v33  ;;  %16520 = vmatprep.mubr.bf16.mxu0 %v18175_v58 }
 0xbd8   :  { %18970 = vmatprep.subr.bf16.mxu0 %v20473_v32  ;;  %v18677_v55 = vpop.f32.mrf.mxu0  ;;  %v15911_v32 = vadd.f32 %v18659_v42, %v14176_v36 }
 0xbd9   :  { %v18678_v2 = vadd.f32 %v18677_v55, %v18676_v34 }
 0xbda   :  { %v18679_v14 = vpop.f32.mrf.mxu0 }
 0xbdb   :  { %18971 = vmatpush3.bf16.msra.mxu0 %v20474_v13  ;;  %v15949_v35 = vadd.f32 %v18678_v2, %v15908_v23 }
 0xbdc   :  { %18972 = vmatprep.subr.bf16.mxu0 %v20475_v26  ;;  %v18680_v10 = vpop.f32.mrf.mxu0 }
 0xbdd   :  { %v18681_v58 = vadd.f32 %v18680_v10, %v18679_v14  ;;  %v15990_v26 = vadd.f32 %v18700_v63, %v15949_v35 }
 0xbdf   :  { %18973 = vmatpush3.bf16.msra.mxu0 %v20476_v50  ;;  %v15952_v50 = vadd.f32 %v18681_v58, %v15911_v32 }
 0xbe0   :  { %18974 = vmatprep.subr.bf16.mxu0 %v20477_v5  ;;  %v18703_v5 = vadd.f32 %v18702_v46, %v18701_v62 }
 0xbe3   :  { %18975 = vmatpush3.bf16.msra.mxu0 %v20478_v1 }
 0xbe4   :  { %18976 = vmatprep.subr.bf16.mxu0 %v20479_v17 }
 0xbe6   :  { %v18742_v24 = vpop.f32.mrf.mxu1 }
 0xbe7   :  { %18977 = vmatpush3.bf16.msra.mxu0 %v20480_v45 }
 0xbe8   :  { %18978 = vmatprep.subr.bf16.mxu0 %v20481_v3  ;;  %v18743_v19 = vpop.f32.mrf.mxu1 }
 0xbe9   :  { %v18744_v3 = vadd.f32 %v18743_v19, %v18742_v24 }
 0xbea   :  { %v18745_v37 = vpop.f32.mrf.mxu1 }
 0xbeb   :  { %18979 = vmatpush3.bf16.msra.mxu0 %v20482_v16 }
 0xbec   :  { %18980 = vmatprep.subr.bf16.mxu0 %v20483_v21  ;;  %v18746_v39 = vpop.f32.mrf.mxu1 }
 0xbed   :  { %v18747_v59 = vadd.f32 %v18746_v39, %v18745_v37 }
 0xbef   :  { %18981 = vmatpush3.bf16.msra.mxu0 %v20484_v8  ;;  %v15993_v8 = vadd.f32 %v18703_v5, %v15952_v50 }
 0xbf0   :  { %18982 = vmatprep.subr.bf16.mxu0 %v20485_v48 }
 0xbf3   :  { %18983 = vmatpush3.bf16.msra.mxu0 %v20486_v28 }
 0xbf6   :  { %16521 = vmatmul.mubr.bf16.vlgmr.msra.gmra.mxu0 %v18174_v56  ;;  %v18720_v51 = vpop.f32.mrf.mxu0 }
 0xbf8   :  { %v18721_v7 = vpop.f32.mrf.mxu0 }
 0xbf9   :  { %v18722_v13 = vadd.f32 %v18721_v7, %v18720_v51 }
 0xbfa   :  { %v18723_v57 = vpop.f32.mrf.mxu0 }
 0xbfb   :  { %v16031_v45 = vadd.f32 %v18722_v13, %v15990_v26 }
 0xbfc   :  { %v18724_v30 = vpop.f32.mrf.mxu0 }
 0xbfd   :  { %v18725_v16 = vadd.f32 %v18724_v30, %v18723_v57  ;;  %v16072_v56 = vadd.f32 %v18744_v3, %v16031_v45 }
 0xbff   :  { %v16034_v25 = vadd.f32 %v18725_v16, %v15993_v8 }
 0xc01   :  { %v16075_v14 = vadd.f32 %v18747_v59, %v16034_v25 }
 0xc06   :  { %v18786_v0 = vpop.f32.mrf.mxu1 }
 0xc08   :  { %v18787_v53 = vpop.f32.mrf.mxu1 }
 0xc09   :  { %v18788_v55 = vadd.f32 %v18787_v53, %v18786_v0 }
 0xc0a   :  { %v18789_v4 = vpop.f32.mrf.mxu1 }
 0xc0c   :  { %v18790_v41 = vpop.f32.mrf.mxu1 }
 0xc0d   :  { %v18791_v7 = vadd.f32 %v18790_v41, %v18789_v4 }
 0xc16   :  { %v18764_v52 = vpop.f32.mrf.mxu0 }
 0xc18   :  { %v18765_v9 = vpop.f32.mrf.mxu0 }
 0xc19   :  { %v18766_v48 = vadd.f32 %v18765_v9, %v18764_v52 }
 0xc1a   :  { %v18767_v60 = vpop.f32.mrf.mxu0 }
 0xc1b   :  { %v16113_v34 = vadd.f32 %v18766_v48, %v16072_v56 }
 0xc1c   :  { %v18768_v38 = vpop.f32.mrf.mxu0 }
 0xc1d   :  { %v18769_v43 = vadd.f32 %v18768_v38, %v18767_v60  ;;  %v16154_v51 = vadd.f32 %v18788_v55, %v16113_v34 }
 0xc1f   :  { %v16116_v46 = vadd.f32 %v18769_v43, %v16075_v14 }
 0xc21   :  { %v16157_v9 = vadd.f32 %v18791_v7, %v16116_v46 }
 0xc26   :  { %v18830_v11 = vpop.f32.mrf.mxu1 }
 0xc28   :  { %v18831_v12 = vpop.f32.mrf.mxu1 }
 0xc29   :  { %v18832_v57 = vadd.f32 %v18831_v12, %v18830_v11 }
 0xc2a   :  { %v18833_v31 = vpop.f32.mrf.mxu1 }
 0xc2c   :  { %v18834_v6 = vpop.f32.mrf.mxu1 }
 0xc2d   :  { %v18835_v2 = vadd.f32 %v18834_v6, %v18833_v31 }
 0xc36   :  { %v18808_v47 = vpop.f32.mrf.mxu0 }
 0xc38   :  { %v18809_v54 = vpop.f32.mrf.mxu0 }
 0xc39   :  { %v18810_v20 = vadd.f32 %v18809_v54, %v18808_v47 }
 0xc3a   :  { %v18811_v40 = vpop.f32.mrf.mxu0 }
 0xc3b   :  { %v16195_v24 = vadd.f32 %v18810_v20, %v16154_v51 }
 0xc3c   :  { %v18812_v15 = vpop.f32.mrf.mxu0 }
 0xc3d   :  { %v18813_v19 = vadd.f32 %v18812_v15, %v18811_v40  ;;  %v16236_v39 = vadd.f32 %v18832_v57, %v16195_v24 }
 0xc3f   :  { %v16198_v36 = vadd.f32 %v18813_v19, %v16157_v9 }
 0xc41   :  { %v16239_v23 = vadd.f32 %v18835_v2, %v16198_v36 }
 0xc46   :  { %v18874_v18 = vpop.f32.mrf.mxu1 }
 0xc48   :  { %v18875_v49 = vpop.f32.mrf.mxu1 }
 0xc49   :  { %v18876_v53 = vadd.f32 %v18875_v49, %v18874_v18 }
 0xc4a   :  { %v18877_v17 = vpop.f32.mrf.mxu1 }
 0xc4c   :  { %v18878_v28 = vpop.f32.mrf.mxu1 }
 0xc4d   :  { %v18879_v11 = vadd.f32 %v18878_v28, %v18877_v17 }
 0xc56   :  { %v18852_v44 = vpop.f32.mrf.mxu0 }
 0xc58   :  { %v18853_v29 = vpop.f32.mrf.mxu0 }
 0xc59   :  { %v18854_v22 = vadd.f32 %v18853_v29, %v18852_v44 }
 0xc5a   :  { %v18855_v33 = vpop.f32.mrf.mxu0 }
 0xc5b   :  { %v16277_v60 = vadd.f32 %v18854_v22, %v16236_v39 }
 0xc5c   :  { %v18856_v1 = vpop.f32.mrf.mxu0 }
 0xc5d   :  { %v18857_v38 = vadd.f32 %v18856_v1, %v18855_v33  ;;  %v16318_v4 = vadd.f32 %v18876_v53, %v16277_v60 }
 0xc5f   :  { %v16280_v41 = vadd.f32 %v18857_v38, %v16239_v23 }
 0xc61   :  { %v16321_v29 = vadd.f32 %v18879_v11, %v16280_v41 }
 0xc66   :  { %v18918_v61 = vpop.f32.mrf.mxu1 }
 0xc68   :  { %v18919_v62 = vpop.f32.mrf.mxu1 }
 0xc69   :  { %v18920_v35 = vadd.f32 %v18919_v62, %v18918_v61 }
 0xc6a   :  { %v18921_v52 = vpop.f32.mrf.mxu1 }
 0xc6c   :  { %v18922_v0 = vpop.f32.mrf.mxu1 }
 0xc6d   :  { %v18923_v18 = vadd.f32 %v18922_v0, %v18921_v52 }
 0xc76   :  { %v18896_v21 = vpop.f32.mrf.mxu0 }
 0xc78   :  { %v18897_v27 = vpop.f32.mrf.mxu0 }
 0xc79   :  { %v18898_v42 = vadd.f32 %v18897_v27, %v18896_v21 }
 0xc7a   :  { %v18899_v10 = vpop.f32.mrf.mxu0 }
 0xc7b   :  { %v16359_v15 = vadd.f32 %v18898_v42, %v16318_v4 }
 0xc7c   :  { %v18900_v30 = vpop.f32.mrf.mxu0 }
 0xc7d   :  { %v18901_v44 = vadd.f32 %v18900_v30, %v18899_v10  ;;  %v16400_v6 = vadd.f32 %v18920_v35, %v16359_v15 }
 0xc7f   :  { %v16362_v32 = vadd.f32 %v18901_v44, %v16321_v29 }
 0xc81   :  { %v16403_v5 = vadd.f32 %v18923_v18, %v16362_v32 }
 0xc86   :  { %v18962_v54 = vpop.f32.mrf.mxu1 }
 0xc88   :  { %v18963_v12 = vpop.f32.mrf.mxu1 }
 0xc89   :  { %v18964_v49 = vadd.f32 %v18963_v12, %v18962_v54 }
 0xc8a   :  { %v18965_v31 = vpop.f32.mrf.mxu1 }
 0xc8c   :  { %v18966_v26 = vpop.f32.mrf.mxu1 }
 0xc8d   :  { %v18967_v3 = vadd.f32 %v18966_v26, %v18965_v31 }
 0xc96   :  { %v18940_v37 = vpop.f32.mrf.mxu0 }
 0xc98   :  { %v18941_v47 = vpop.f32.mrf.mxu0 }
 0xc99   :  { %v18942_v63 = vadd.f32 %v18941_v47, %v18940_v37 }
 0xc9a   :  { %v18943_v40 = vpop.f32.mrf.mxu0 }
 0xc9b   :  { %v16441_v33 = vadd.f32 %v18942_v63, %v16400_v6 }
 0xc9c   :  { %v18944_v58 = vpop.f32.mrf.mxu0 }
 0xc9d   :  { %v18945_v13 = vadd.f32 %v18944_v58, %v18943_v40  ;;  %v16482_v17 = vadd.f32 %v18964_v49, %v16441_v33 }
 0xc9f   :  { %v16444_v45 = vadd.f32 %v18945_v13, %v16403_v5 }
 0xca1   :  { %v16485_v28 = vadd.f32 %v18967_v3, %v16444_v45 }
 0xcb6   :  { %v18984_v50 = vpop.f32.mrf.mxu0 }
 0xcb8   :  { %v18985_v1 = vpop.f32.mrf.mxu0 }
 0xcb9   :  { %v18986_v16 = vadd.f32 %v18985_v1, %v18984_v50 }
 0xcba   :  { %v18987_v21 = vpop.f32.mrf.mxu0 }
 0xcbb   :  { %v16523_v8 = vadd.f32 %v18986_v16, %v16482_v17 }
 0xcbc   :  { %v18988_v48 = vpop.f32.mrf.mxu0 }
 0xcbd   :  { %16530 = vst.msk [vmem:[%s28150_s11] sm:$0xff] %vm16529_vm2, %v16523_v8  ;;  %v18989_v56 = vadd.f32 %v18988_v48, %v18987_v21 }
 0xcbf   :  { %v16526_v25 = vadd.f32 %v18989_v56, %v16485_v28 }
 0xcc1   :  { %16531 = vst.msk [vmem:[%s28150_s11 + $0x8] sm:$0xff] %vm16529_vm2, %v16526_v25 }
 0xcc2   :  { %16536 = vsyncmov [#allocation5] }
 0xcc5   :  { %s16537_s3 = vpop.sfrf %16536 }
 0xcc6   :  { %p18047_p0 = scmp.ne.s32.totalorder %s16537_s3, 0 }
 0xcc8   :  { %16541 = shalt.err (%p18047_p0)  }

</bundles_post_ra>
